<compile_context>
chip_gen: v6e
topology: v6e:2x2x1
jax: 0.10.0
libtpu: 0.0.40
codegen_flags: <defaults>
</compile_context>

<pallas_src>
import jax
import jax.numpy as jnp
import numpy as np
from jax.experimental import pallas as pl
from jax.experimental.pallas import tpu as pltpu


def _round_up(x, m):
    return ((x + m - 1) // m) * m


def _pad_last(x, new_last):
    pad = new_last - x.shape[-1]
    if pad == 0:
        return x
    cfg = [(0, 0)] * (x.ndim - 1) + [(0, pad)]
    return jnp.pad(x, cfg)


def _speaker_decoder_kernel(
    x_ref,             # (B, Ep)      f32  embedded previous word (dropout==identity)
    h0_ref, c0_ref,    # (B, Hp)      f32  recurrent state (aliased with h1/c1 outputs)
    ctx_ref,           # (B, Sp, Hp)  f32
    bias_ref,          # (B, Sp)      f32  additive mask bias (0 keep, -1e30 masked/pad)
    w_gates_ref,       # (Ep+Hp, 4Hp) bf16 [w_ih ; w_hh] row-stacked, per-gate padded
    b_gates_ref,       # (1, 4Hp)     f32  b_ih + b_hh
    w_h_ref,           # (Hp, 2Hp)    bf16 [attn linear_in | linear_out h-half]
    w_out_ctx_ref,     # (Hp, Hp)     bf16 linear_out weighted-context half
    w_dec_ref,         # (Hp, Vp)     bf16 decoder2action
    b_dec_ref,         # (1, Vp)      f32
    h1_ref, c1_ref, alpha_ref, logit_ref,
):
    f32, bf16 = jnp.float32, jnp.bfloat16
    Hp = h0_ref.shape[1]

    x = x_ref[...]
    h0 = h0_ref[...]
    c0 = c0_ref[...]

    # ---- LSTMCell: single fused gate matmul over [x | h0].  The concat boundary
    # is at Ep (multiple of 128) so it is lane-aligned; gate slices are too.
    xh = jnp.concatenate([x, h0], axis=1).astype(bf16)                 # (B, Ep+Hp)
    gates = (jnp.dot(xh, w_gates_ref[...], preferred_element_type=f32)
             + b_gates_ref[...])                                       # (B, 4Hp)
    i_g = jax.nn.sigmoid(gates[:, 0 * Hp:1 * Hp])
    f_g = jax.nn.sigmoid(gates[:, 1 * Hp:2 * Hp])
    g_g = jnp.tanh(gates[:, 2 * Hp:3 * Hp])
    o_g = jax.nn.sigmoid(gates[:, 3 * Hp:4 * Hp])
    c1 = f_g * c0 + i_g * g_g
    h1 = o_g * jnp.tanh(c1)
    h1_ref[...] = h1
    c1_ref[...] = c1
    # h_1_drop (eval) == h1

    # ---- SoftDotAttention.  Both h1-consuming matmuls fused into one MXU pass:
    # cols [0:Hp) = linear_in target, cols [Hp:2Hp) = linear_out h-half.
    th = jnp.dot(h1.astype(bf16), w_h_ref[...], preferred_element_type=f32)  # (B, 2Hp)
    target = th[:, :Hp]
    h1_half = th[:, Hp:]

    ctx = ctx_ref[...]                                                 # (B, Sp, Hp)
    attn = jnp.sum(ctx * target[:, None, :], axis=-1)                  # (B, Sp) VPU+XLU
    attn = attn + bias_ref[...]                                        # additive mask
    m = jnp.max(attn, axis=-1, keepdims=True)
    e = jnp.exp(attn - m)
    denom = jnp.sum(e, axis=-1, keepdims=True)
    alpha = e / denom                                                  # exact divide
    alpha_ref[...] = alpha                                             # lane-dense (Sp)

    weighted = jnp.sum(alpha[:, :, None] * ctx, axis=1)                # (B, Hp)

    h_tilde = jnp.tanh(
        jnp.dot(weighted.astype(bf16), w_out_ctx_ref[...], preferred_element_type=f32)
        + h1_half)

    # ---- decoder2action (lane-dense Vp output).
    logit_ref[...] = (
        jnp.dot(h_tilde.astype(bf16), w_dec_ref[...], preferred_element_type=f32)
        + b_dec_ref[...])


def prepare_params(p, *, vocab_size, embed_size, hidden_size):
    """PyTorch-layout params -> kernel layout.  Done once, outside the kernel:
    pre-transposed to (in_features, out_features), per-gate padded to
    Hp/Vp/Ep = round_up(., 128), LSTM biases fused, the two gate matmuls fused
    row-wise, the two h1-consuming matmuls fused column-wise, matmul weights in
    bf16 (f32 accumulation)."""
    f32, bf16 = jnp.float32, jnp.bfloat16
    V, E, H = vocab_size, embed_size, hidden_size
    Hp, Vp, Ep = _round_up(H, 128), _round_up(V, 128), _round_up(E, 128)

    w_emb = p["w_emb"]                  # (E, V)   Linear(V, E, bias=False)
    w_ih = p["w_ih"]                    # (4H, E)  LSTMCell, gate order [i|f|g|o]
    w_hh = p["w_hh"]                    # (4H, H)
    b_sum = p["b_ih"].reshape(-1) + p["b_hh"].reshape(-1)
    w_attn_in = p["w_attn_in"]          # (H, H)
    w_attn_out = p["w_attn_out"]        # (H, 2H)  columns = [weighted | h1]
    w_dec = p["w_dec"]                  # (V, H)
    b_dec = p["b_dec"].reshape(-1)      # (V,)

    # Embedding table: one row per vocab id, padded to Ep (gathered in wrapper).
    w_emb_rows = jnp.zeros((V, Ep), f32).at[:, :E].set(w_emb.T)

    # Fused gate weight: rows [x-block (Ep) ; h-block (Hp)], cols per-gate padded.
    w_gates = jnp.zeros((Ep + Hp, 4 * Hp), f32)
    b_gates = jnp.zeros((1, 4 * Hp), f32)
    for g in range(4):
        w_gates = w_gates.at[:E, g * Hp:g * Hp + H].set(w_ih[g * H:(g + 1) * H, :].T)
        w_gates = w_gates.at[Ep:Ep + H, g * Hp:g * Hp + H].set(w_hh[g * H:(g + 1) * H, :].T)
        b_gates = b_gates.at[0, g * Hp:g * Hp + H].set(b_sum[g * H:(g + 1) * H])

    # Fused h1 consumer: cols [0:Hp) = attention linear_in, [Hp:2Hp) = linear_out h-half.
    w_h = jnp.zeros((Hp, 2 * Hp), f32)
    w_h = w_h.at[:H, :H].set(w_attn_in.T)
    w_h = w_h.at[:H, Hp:Hp + H].set(w_attn_out[:, H:].T)

    w_out_ctx = jnp.zeros((Hp, Hp), f32).at[:H, :H].set(w_attn_out[:, :H].T)
    w_dec_p = jnp.zeros((Hp, Vp), f32).at[:H, :V].set(w_dec.T)
    b_dec_p = jnp.zeros((1, Vp), f32).at[0, :V].set(b_dec)

    return {
        "H": H, "V": V, "E": E, "Hp": Hp, "Vp": Vp, "Ep": Ep,
        "w_emb": w_emb_rows,                 # f32 (wrapper gather target)
        "w_gates": w_gates.astype(bf16),
        "b_gates": b_gates,                  # f32
        "w_h": w_h.astype(bf16),
        "w_out_ctx": w_out_ctx.astype(bf16),
        "w_dec": w_dec_p.astype(bf16),
        "b_dec": b_dec_p,                    # f32
    }


def speaker_decoder_step(word_ids, h0, c0, ctx, ctx_mask, prep):
    """One forward step.  word_ids: (B,) int32 ids of previous_word (one-hot in
    the reference model); h0, c0: (B, H); ctx: (B, S, H); ctx_mask: (B, S),
    1.0 == masked position."""
    B, H = h0.shape
    S = ctx.shape[1]
    Hp, Vp, V = prep["Hp"], prep["Vp"], prep["V"]
    Sp = _round_up(S, 128)

    # Embedding of the (one-hot) previous word == row gather of the Linear weight.
    x = prep["w_emb"][word_ids]                                   # (B, Ep) f32

    h0_p = _pad_last(h0, Hp)
    c0_p = _pad_last(c0, Hp)
    ctx_p = jnp.pad(ctx, ((0, 0), (0, Sp - S), (0, Hp - H)))
    # Additive mask bias: -1e30 at masked positions AND at the S padding.
    neg = jnp.float32(-1e30)
    bias = jnp.full((B, Sp), neg, jnp.float32)
    bias = bias.at[:, :S].set(jnp.where(ctx_mask > 0.5, neg, jnp.float32(0.0)))

    inputs = (
        x, h0_p, c0_p, ctx_p, bias,
        prep["w_gates"], prep["b_gates"], prep["w_h"],
        prep["w_out_ctx"], prep["w_dec"], prep["b_dec"],
    )
    out_shape = (
        jax.ShapeDtypeStruct((B, Hp), jnp.float32),   # h_1 (padded)
        jax.ShapeDtypeStruct((B, Hp), jnp.float32),   # c_1 (padded)
        jax.ShapeDtypeStruct((B, Sp), jnp.float32),   # alpha (padded, lane-dense)
        jax.ShapeDtypeStruct((B, Vp), jnp.float32),   # logit (padded, lane-dense)
    )
    vmem = pl.BlockSpec(memory_space=pltpu.MemorySpace.VMEM)
    h1_p, c1_p, alpha_p, logit_p = pl.pallas_call(
        _speaker_decoder_kernel,
        out_shape=out_shape,
        in_specs=[vmem] * len(inputs),
        out_specs=(vmem, vmem, vmem, vmem),
        input_output_aliases={1: 0, 2: 1},            # h0 -> h1, c0 -> c1 in place
        compiler_params=pltpu.CompilerParams(vmem_limit_bytes=64 * 1024 * 1024),
    )(*inputs)
    return h1_p[:, :H], c1_p[:, :H], alpha_p[:, :S], logit_p[:, :V]


def _reference(prev_onehot, h0, c0, ctx, ctx_mask, p):
    """Pure-JAX mirror of the PyTorch forward (eval mode).  Matmuls use bf16
    operands with f32 accumulation to mirror the kernel's MXU precision."""
    f32, bf16 = jnp.float32, jnp.bfloat16
    hi = jax.lax.Precision.HIGHEST

    def bdot(a, b):
        return jnp.dot(a.astype(bf16).astype(f32), b.astype(bf16).astype(f32),
                       precision=hi)

    H = h0.shape[-1]
    x = jnp.dot(prev_onehot, p["w_emb"].T, precision=hi)
    gates = bdot(x, p["w_ih"].T) + p["b_ih"] + bdot(h0, p["w_hh"].T) + p["b_hh"]
    i = jax.nn.sigmoid(gates[:, 0 * H:1 * H])
    f = jax.nn.sigmoid(gates[:, 1 * H:2 * H])
    g = jnp.tanh(gates[:, 2 * H:3 * H])
    o = jax.nn.sigmoid(gates[:, 3 * H:4 * H])
    c1 = f * c0 + i * g
    h1 = o * jnp.tanh(c1)
    target = bdot(h1, p["w_attn_in"].T)
    attn = jnp.sum(ctx * target[:, None, :], axis=-1)      # == einsum('bsh,bh->bs')
    attn = jnp.where(ctx_mask > 0.5, -1e30, attn)
    alpha = jax.nn.softmax(attn, axis=-1)
    weighted = jnp.sum(alpha[:, :, None] * ctx, axis=1)    # == einsum('bs,bsh->bh')
    h_tilde = jnp.tanh(bdot(weighted, p["w_attn_out"][:, :H].T)
                       + bdot(h1, p["w_attn_out"][:, H:].T))
    logit = bdot(h_tilde, p["w_dec"].T) + p["b_dec"]
    return h1, c1, alpha, logit


if __name__ == "__main__":
    B, V, E, H, S = 8, 64, 32, 32, 8

    key = jax.random.PRNGKey(0)
    ks = jax.random.split(key, 16)

    def rnd(k, shape, scale=0.1):
        return (scale * jax.random.normal(k, shape)).astype(jnp.float32)

    raw = {
        "w_emb":      rnd(ks[0], (E, V)),        # embedding: Linear(V, E, bias=False)
        "w_ih":       rnd(ks[1], (4 * H, E)),    # LSTMCell weight_ih
        "b_ih":       rnd(ks[2], (4 * H,)),      # LSTMCell bias_ih
        "w_hh":       rnd(ks[3], (4 * H, H)),    # LSTMCell weight_hh
        "b_hh":       rnd(ks[4], (4 * H,)),      # LSTMCell bias_hh
        "w_attn_in":  rnd(ks[5], (H, H)),        # SoftDotAttention linear_in
        "w_attn_out": rnd(ks[6], (H, 2 * H)),    # SoftDotAttention linear_out
        "w_dec":      rnd(ks[7], (V, H)),        # decoder2action
        "b_dec":      rnd(ks[8], (V,)),
    }

    word_ids = jax.random.randint(ks[9], (B,), 0, V).astype(jnp.int32)
    prev_onehot = jax.nn.one_hot(word_ids, V, dtype=jnp.float32)  # what the module sees
    h0 = rnd(ks[10], (B, H), 1.0)
    c0 = rnd(ks[11], (B, H), 1.0)
    ctx = rnd(ks[12], (B, S, H), 1.0)
    # Mask out the last two context positions of every batch element.
    ctx_mask = jnp.concatenate(
        [jnp.zeros((B, S - 2), jnp.float32), jnp.ones((B, 2), jnp.float32)], axis=1)

    prep = prepare_params(raw, vocab_size=V, embed_size=E, hidden_size=H)

    h1, c1, alpha, logit = jax.block_until_ready(
        speaker_decoder_step(word_ids, h0, c0, ctx, ctx_mask, prep))

    rh1, rc1, ralpha, rlogit = _reference(prev_onehot, h0, c0, ctx, ctx_mask, raw)
    np.testing.assert_allclose(np.asarray(h1), np.asarray(rh1), rtol=1e-4, atol=1e-4)
    np.testing.assert_allclose(np.asarray(c1), np.asarray(rc1), rtol=1e-4, atol=1e-4)
    np.testing.assert_allclose(np.asarray(alpha), np.asarray(ralpha), rtol=1e-3, atol=1e-3)
    np.testing.assert_allclose(np.asarray(logit), np.asarray(rlogit), rtol=1e-3, atol=1e-3)

    print("KERNEL_OK")
</pallas_src>

<mosaic_0001>
module attributes {stable_mosaic.version = 11 : i64} {
  func.func @_speaker_decoder_kernel(%arg0: memref<8x128xf32, #tpu.memory_space<vmem>>, %arg1: memref<8x128xf32, #tpu.memory_space<vmem>>, %arg2: memref<8x128xf32, #tpu.memory_space<vmem>>, %arg3: memref<8x128x128xf32, #tpu.memory_space<vmem>>, %arg4: memref<8x128xf32, #tpu.memory_space<vmem>>, %arg5: memref<256x512xbf16, #tpu.memory_space<vmem>>, %arg6: memref<1x512xf32, #tpu.memory_space<vmem>>, %arg7: memref<128x256xbf16, #tpu.memory_space<vmem>>, %arg8: memref<128x128xbf16, #tpu.memory_space<vmem>>, %arg9: memref<128x128xbf16, #tpu.memory_space<vmem>>, %arg10: memref<1x128xf32, #tpu.memory_space<vmem>>, %arg11: memref<8x128xf32, #tpu.memory_space<vmem>>, %arg12: memref<8x128xf32, #tpu.memory_space<vmem>>, %arg13: memref<8x128xf32, #tpu.memory_space<vmem>>, %arg14: memref<8x128xf32, #tpu.memory_space<vmem>>) attributes {dimension_semantics = [], scalar_prefetch = 0 : i64, scratch_operands = 0 : i64, tpu.core_type = #tpu.core_type<tc>} {
    %c0 = arith.constant 0 : index
    %c0_0 = arith.constant 0 : index
    %0 = vector.load %arg0[%c0, %c0_0] : memref<8x128xf32, #tpu.memory_space<vmem>>, vector<8x128xf32>
    %c0_1 = arith.constant 0 : index
    %c0_2 = arith.constant 0 : index
    %1 = vector.load %arg1[%c0_1, %c0_2] : memref<8x128xf32, #tpu.memory_space<vmem>>, vector<8x128xf32>
    %c0_3 = arith.constant 0 : index
    %c0_4 = arith.constant 0 : index
    %2 = vector.load %arg2[%c0_3, %c0_4] : memref<8x128xf32, #tpu.memory_space<vmem>>, vector<8x128xf32>
    %3 = tpu.concatenate %0, %1 in 1 : vector<8x128xf32>, vector<8x128xf32> -> vector<8x256xf32>
    %4 = arith.truncf %3 : vector<8x256xf32> to vector<8x256xbf16>
    %c0_5 = arith.constant 0 : index
    %c0_6 = arith.constant 0 : index
    %5 = vector.load %arg5[%c0_5, %c0_6] : memref<256x512xbf16, #tpu.memory_space<vmem>>, vector<256x512xbf16>
    %cst = arith.constant dense<0.000000e+00> : vector<8x512xf32>
    %6 = tpu.matmul %4, %5, %cst {dimension_numbers = #tpu.dot_dimension_numbers<[1], [0], [0], [1], [0, 0, 1, 1], [], []>} : vector<8x256xbf16>, vector<256x512xbf16>, vector<8x512xf32> -> vector<8x512xf32>
    %c0_7 = arith.constant 0 : index
    %c0_8 = arith.constant 0 : index
    %7 = vector.load %arg6[%c0_7, %c0_8] : memref<1x512xf32, #tpu.memory_space<vmem>>, vector<1x512xf32>
    %8 = vector.broadcast %7 : vector<1x512xf32> to vector<8x512xf32>
    %9 = arith.addf %6, %8 : vector<8x512xf32>
    %10 = vector.extract_strided_slice %9 {offsets = [0, 0], sizes = [8, 128], strides = [1, 1]} : vector<8x512xf32> to vector<8x128xf32>
    %11 = arith.negf %10 : vector<8x128xf32>
    %12 = math.exp %11 : vector<8x128xf32>
    %cst_9 = arith.constant 1.000000e+00 : f32
    %13 = vector.broadcast %cst_9 : f32 to vector<8x128xf32>
    %14 = arith.addf %13, %12 : vector<8x128xf32>
    %15 = arith.divf %13, %14 : vector<8x128xf32>
    %16 = vector.extract_strided_slice %9 {offsets = [0, 128], sizes = [8, 128], strides = [1, 1]} : vector<8x512xf32> to vector<8x128xf32>
    %17 = arith.negf %16 : vector<8x128xf32>
    %18 = math.exp %17 : vector<8x128xf32>
    %cst_10 = arith.constant 1.000000e+00 : f32
    %19 = vector.broadcast %cst_10 : f32 to vector<8x128xf32>
    %20 = arith.addf %19, %18 : vector<8x128xf32>
    %21 = arith.divf %19, %20 : vector<8x128xf32>
    %22 = vector.extract_strided_slice %9 {offsets = [0, 256], sizes = [8, 128], strides = [1, 1]} : vector<8x512xf32> to vector<8x128xf32>
    %23 = math.tanh %22 : vector<8x128xf32>
    %24 = vector.extract_strided_slice %9 {offsets = [0, 384], sizes = [8, 128], strides = [1, 1]} : vector<8x512xf32> to vector<8x128xf32>
    %25 = arith.negf %24 : vector<8x128xf32>
    %26 = math.exp %25 : vector<8x128xf32>
    %cst_11 = arith.constant 1.000000e+00 : f32
    %27 = vector.broadcast %cst_11 : f32 to vector<8x128xf32>
    %28 = arith.addf %27, %26 : vector<8x128xf32>
    %29 = arith.divf %27, %28 : vector<8x128xf32>
    %30 = arith.mulf %21, %2 : vector<8x128xf32>
    %31 = arith.mulf %15, %23 : vector<8x128xf32>
    %32 = arith.addf %30, %31 : vector<8x128xf32>
    %33 = math.tanh %32 : vector<8x128xf32>
    %34 = arith.mulf %29, %33 : vector<8x128xf32>
    %c0_12 = arith.constant 0 : index
    %c0_13 = arith.constant 0 : index
    %35 = vector.load %arg11[%c0_12, %c0_13] : memref<8x128xf32, #tpu.memory_space<vmem>>, vector<8x128xf32>
    tpu.vector_store %arg11[%c0_12, %c0_13], %34 {strides = array<i32>} : memref<8x128xf32, #tpu.memory_space<vmem>>, vector<8x128xf32>,
    %c0_14 = arith.constant 0 : index
    %c0_15 = arith.constant 0 : index
    %36 = vector.load %arg12[%c0_14, %c0_15] : memref<8x128xf32, #tpu.memory_space<vmem>>, vector<8x128xf32>
    tpu.vector_store %arg12[%c0_14, %c0_15], %32 {strides = array<i32>} : memref<8x128xf32, #tpu.memory_space<vmem>>, vector<8x128xf32>,
    %37 = arith.truncf %34 : vector<8x128xf32> to vector<8x128xbf16>
    %c0_16 = arith.constant 0 : index
    %c0_17 = arith.constant 0 : index
    %38 = vector.load %arg7[%c0_16, %c0_17] : memref<128x256xbf16, #tpu.memory_space<vmem>>, vector<128x256xbf16>
    %cst_18 = arith.constant dense<0.000000e+00> : vector<8x256xf32>
    %39 = tpu.matmul %37, %38, %cst_18 {dimension_numbers = #tpu.dot_dimension_numbers<[1], [0], [0], [1], [0, 0, 1, 1], [], []>} : vector<8x128xbf16>, vector<128x256xbf16>, vector<8x256xf32> -> vector<8x256xf32>
    %40 = vector.extract_strided_slice %39 {offsets = [0, 0], sizes = [8, 128], strides = [1, 1]} : vector<8x256xf32> to vector<8x128xf32>
    %41 = vector.extract_strided_slice %39 {offsets = [0, 128], sizes = [8, 128], strides = [1, 1]} : vector<8x256xf32> to vector<8x128xf32>
    %c0_19 = arith.constant 0 : index
    %c0_20 = arith.constant 0 : index
    %c0_21 = arith.constant 0 : index
    %42 = vector.load %arg3[%c0_19, %c0_20, %c0_21] : memref<8x128x128xf32, #tpu.memory_space<vmem>>, vector<8x128x128xf32>
    %43 = vector.shape_cast %40 : vector<8x128xf32> to vector<8x1x128xf32>
    %44 = vector.broadcast %43 : vector<8x1x128xf32> to vector<8x128x128xf32>
    %45 = arith.mulf %42, %44 : vector<8x128x128xf32>
    %cst_22 = arith.constant dense<0.000000e+00> : vector<8x128xf32>
    %46 = vector.multi_reduction <add>, %45, %cst_22 [2] : vector<8x128x128xf32> to vector<8x128xf32>
    %c0_23 = arith.constant 0 : index
    %c0_24 = arith.constant 0 : index
    %47 = vector.load %arg4[%c0_23, %c0_24] : memref<8x128xf32, #tpu.memory_space<vmem>>, vector<8x128xf32>
    %48 = arith.addf %46, %47 : vector<8x128xf32>
    %cst_25 = arith.constant dense<0xFF800000> : vector<8xf32>
    %49 = vector.multi_reduction <maximumf>, %48, %cst_25 [1] : vector<8x128xf32> to vector<8xf32>
    %50 = vector.shape_cast %49 : vector<8xf32> to vector<8x1xf32>
    %51 = vector.broadcast %50 : vector<8x1xf32> to vector<8x128xf32>
    %52 = arith.subf %48, %51 : vector<8x128xf32>
    %53 = math.exp %52 : vector<8x128xf32>
    %cst_26 = arith.constant dense<0.000000e+00> : vector<8xf32>
    %54 = vector.multi_reduction <add>, %53, %cst_26 [1] : vector<8x128xf32> to vector<8xf32>
    %55 = vector.shape_cast %54 : vector<8xf32> to vector<8x1xf32>
    %56 = vector.broadcast %55 : vector<8x1xf32> to vector<8x128xf32>
    %57 = arith.divf %53, %56 : vector<8x128xf32>
    %c0_27 = arith.constant 0 : index
    %c0_28 = arith.constant 0 : index
    %58 = vector.load %arg13[%c0_27, %c0_28] : memref<8x128xf32, #tpu.memory_space<vmem>>, vector<8x128xf32>
    tpu.vector_store %arg13[%c0_27, %c0_28], %57 {strides = array<i32>} : memref<8x128xf32, #tpu.memory_space<vmem>>, vector<8x128xf32>,
    %59 = vector.shape_cast %57 : vector<8x128xf32> to vector<8x128x1xf32>
    %60 = vector.broadcast %59 : vector<8x128x1xf32> to vector<8x128x128xf32>
    %61 = arith.mulf %60, %42 : vector<8x128x128xf32>
    %cst_29 = arith.constant dense<0.000000e+00> : vector<8x128xf32>
    %62 = vector.multi_reduction <add>, %61, %cst_29 [1] : vector<8x128x128xf32> to vector<8x128xf32>
    %63 = arith.truncf %62 : vector<8x128xf32> to vector<8x128xbf16>
    %c0_30 = arith.constant 0 : index
    %c0_31 = arith.constant 0 : index
    %64 = vector.load %arg8[%c0_30, %c0_31] : memref<128x128xbf16, #tpu.memory_space<vmem>>, vector<128x128xbf16>
    %cst_32 = arith.constant dense<0.000000e+00> : vector<8x128xf32>
    %65 = tpu.matmul %63, %64, %cst_32 {dimension_numbers = #tpu.dot_dimension_numbers<[1], [0], [0], [1], [0, 0, 1, 1], [], []>} : vector<8x128xbf16>, vector<128x128xbf16>, vector<8x128xf32> -> vector<8x128xf32>
    %66 = arith.addf %65, %41 : vector<8x128xf32>
    %67 = math.tanh %66 : vector<8x128xf32>
    %68 = arith.truncf %67 : vector<8x128xf32> to vector<8x128xbf16>
    %c0_33 = arith.constant 0 : index
    %c0_34 = arith.constant 0 : index
    %69 = vector.load %arg9[%c0_33, %c0_34] : memref<128x128xbf16, #tpu.memory_space<vmem>>, vector<128x128xbf16>
    %cst_35 = arith.constant dense<0.000000e+00> : vector<8x128xf32>
    %70 = tpu.matmul %68, %69, %cst_35 {dimension_numbers = #tpu.dot_dimension_numbers<[1], [0], [0], [1], [0, 0, 1, 1], [], []>} : vector<8x128xbf16>, vector<128x128xbf16>, vector<8x128xf32> -> vector<8x128xf32>
    %c0_36 = arith.constant 0 : index
    %c0_37 = arith.constant 0 : index
    %71 = vector.load %arg10[%c0_36, %c0_37] : memref<1x128xf32, #tpu.memory_space<vmem>>, vector<1x128xf32>
    %72 = vector.broadcast %71 : vector<1x128xf32> to vector<8x128xf32>
    %73 = arith.addf %70, %72 : vector<8x128xf32>
    %c0_38 = arith.constant 0 : index
    %c0_39 = arith.constant 0 : index
    %74 = vector.load %arg14[%c0_38, %c0_39] : memref<8x128xf32, #tpu.memory_space<vmem>>, vector<8x128xf32>
    tpu.vector_store %arg14[%c0_38, %c0_39], %73 {strides = array<i32>} : memref<8x128xf32, #tpu.memory_space<vmem>>, vector<8x128xf32>,
    return
  }
}

</mosaic_0001>

<bundles_post_ra>
// kernel: tpu_custom_call.1
= control target key start
LH: loop header
LB: loop body
LE: loop exit
PB: predicated region body
PF: predicated region fallthrough
CT: control target
= control target key end

     0   :  { %20 = vsyncpa [#allocation3], 0  ;;  %s12509_s0 = inlined_call_operand.vmem [shape: f32[8,128], index: 0, kind: input, shape index: {}]   ;;  %s12510_s1 = inlined_call_operand.hbm [shape: f32[8,128], index: 1, kind: input, shape index: {}, may-alias: {1,11}]   ;;  %s12511_s2 = inlined_call_operand.hbm [shape: f32[8,128], index: 2, kind: input, shape index: {}, may-alias: {2,12}]   ;;  %s12512_s3 = inlined_call_operand.hbm [shape: f32[8,128,128], index: 3, kind: input, shape index: {}]   ;;  %s12513_s4 = inlined_call_operand.vmem [shape: f32[8,128], index: 4, kind: input, shape index: {}]   ;;  %s12514_s5 = inlined_call_operand.hbm [shape: bf16[256,512], index: 5, kind: input, shape index: {}]   ;;  %s12515_s6 = inlined_call_operand.vmem [shape: f32[1,512], index: 6, kind: input, shape index: {}]   ;;  %s12516_s7 = inlined_call_operand.hbm [shape: bf16[128,256], index: 7, kind: input, shape index: {}]   ;;  %s12517_s8 = inlined_call_operand.hbm [shape: bf16[128,128], index: 8, kind: input, shape index: {}]   ;;  %s12518_s9 = inlined_call_operand.hbm [shape: bf16[128,128], index: 9, kind: input, shape index: {}]   ;;  %s12519_s10 = inlined_call_operand.vmem [shape: f32[1,128], index: 10, kind: input, shape index: {}]   ;;  %s12520_s11 = inlined_call_operand.hbm [shape: f32[8,128], index: 11, kind: output, shape index: {0}, may-alias: {1,11}]   ;;  %s12521_s12 = inlined_call_operand.hbm [shape: f32[8,128], index: 12, kind: output, shape index: {1}, may-alias: {2,12}]   ;;  %s12522_s13 = inlined_call_operand.hbm [shape: f32[8,128], index: 13, kind: output, shape index: {2}]   ;;  %s12523_s14 = inlined_call_operand.hbm [shape: f32[8,128], index: 14, kind: output, shape index: {3}]  }
   0x1   :  { %21 = vsyncpa [#allocation6], 0 }
   0x2   :  { %22 = vsyncpa [#allocation9], 0 }
   0x3   :  { %23 = vsyncpa [#allocation12], 0 }
   0x4   :  { %24 = vsyncpa [#allocation4], 0 }
   0x5   :  { %25 = vsyncpa [#allocation16], 0 }
   0x6   :  { %26 = vsyncpa [#allocation19], 0  ;;  %s7995_s29 = smov [#allocation5]   ;;  %s7996_s15 = smov [#allocation8]  }
   0x7   :  { %s45_s30 = sshll.u32 %s7995_s29, 4  ;;  %s68_s16 = sshll.u32 %s7996_s15, 4  ;;  %s46_s30 = int_to_ptr.vmem [resolvable:$true] %s45_s30  ;;  %s69_s16 = int_to_ptr.vmem [resolvable:$true] %s68_s16 }
   0x8   :  { %s7769_s17 = scalar_lea.vmem %s46_s30, 128  ;;  %p7774_p1 = scmp.lt.s32.totalorder %s46_s30, %s46_s30 }
   0x9   :  { %p7770_p0 = scmp.ne.s32.totalorder %s46_s30, %s7769_s17  ;;  %p7775_p2 = scmp.lt.s32.totalorder %s7769_s17, %s7769_s17 }
   0xb   :  { %p7776_p3 = por %p7775_p2, %p7774_p1 }
   0xd   :  { %p7777_p4 = pnand %p7776_p3, %p7770_p0 }
   0xf   :  { %7780 = shalt.err (!%p7777_p4)
}
  0x10   :  { %48 = dma.hbm_to_vmem [thread:$0]  %s12511_s2, 128, %s46_s30, [#allocation6]  }
  0x11   :  { %s7789_s20 = scalar_lea.vmem %s69_s16, 8192  ;;  %p7794_p6 = scmp.lt.s32.totalorder %s69_s16, %s69_s16 }
  0x12   :  { %p7790_p5 = scmp.ne.s32.totalorder %s69_s16, %s7789_s20  ;;  %p7795_p7 = scmp.lt.s32.totalorder %s7789_s20, %s7789_s20 }
  0x14   :  { %p7796_p8 = por %p7795_p7, %p7794_p6 }
  0x16   :  { %p7797_p9 = pnand %p7796_p8, %p7790_p5 }
  0x18   :  { %7800 = shalt.err (!%p7797_p9)
}
  0x19   :  { %s7997_s21 = smov 256   ;;  %s7998_s22 = smov 16  }
  0x1a   :  { %74 = dma.hbm_to_vmem [thread:$0]  %s12514_s5, 8192, %s69_s16, [#allocation9], %s7997_s21, %s7997_s21, %s7998_s22  }
  0x1b   :  { %s7999_s25 = smov [#allocation11]  }
  0x1c   :  { %s94_s26 = sshll.u32 %s7999_s25, 4  ;;  %s95_s26 = int_to_ptr.vmem [resolvable:$true] %s94_s26 }
  0x1d   :  { %s7809_s27 = scalar_lea.vmem %s95_s26, 1024  ;;  %p7814_p11 = scmp.lt.s32.totalorder %s95_s26, %s95_s26 }
  0x1e   :  { %p7810_p10 = scmp.ne.s32.totalorder %s95_s26, %s7809_s27  ;;  %p7815_p12 = scmp.lt.s32.totalorder %s7809_s27, %s7809_s27 }
  0x20   :  { %p7816_p13 = por %p7815_p12, %p7814_p11 }
  0x22   :  { %p7817_p0 = pnand %p7816_p13, %p7810_p10 }
  0x24   :  { %7820 = shalt.err (!%p7817_p0)
}
  0x25   :  { %s8000_s2 = smov 64   ;;  %s8001_s28 = smov 4  }
  0x26   :  { %100 = dma.hbm_to_vmem [thread:$0]  %s12517_s8, 1024, %s95_s26, [#allocation12], %s8000_s2, %s8000_s2, %s8001_s28  }
  0x27   :  { %s8002_s5 = smov [#allocation2]   ;;  %s8003_s16 = smov [#allocation7]  }
  0x28   :  { %s35_s15 = sshll.u32 %s8002_s5, 4  ;;  %s54_s17 = sshll.u32 %s8003_s16, 4  ;;  %s36_s15 = int_to_ptr.vmem [resolvable:$true] %s35_s15  ;;  %s55_s17 = int_to_ptr.vmem [resolvable:$true] %s54_s17 }
  0x29   :  { %s7829_s18 = scalar_lea.vmem %s36_s15, 128  ;;  %p7834_p2 = scmp.lt.s32.totalorder %s36_s15, %s36_s15 }
  0x2a   :  { %p7830_p1 = scmp.ne.s32.totalorder %s36_s15, %s7829_s18  ;;  %p7835_p3 = scmp.lt.s32.totalorder %s7829_s18, %s7829_s18 }
  0x2c   :  { %p7836_p4 = por %p7835_p3, %p7834_p2 }
  0x2e   :  { %p7837_p5 = pnand %p7836_p4, %p7830_p1 }
  0x30   :  { %7840 = shalt.err (!%p7837_p5)
}
  0x31   :  { %38 = dma.hbm_to_vmem [thread:$0]  %s12510_s1, 128, %s36_s15, [#allocation3]  }
  0x32   :  { %s7849_s21 = scalar_lea.vmem %s55_s17, 16384  ;;  %p7854_p7 = scmp.lt.s32.totalorder %s55_s17, %s55_s17 }
  0x33   :  { %p7850_p6 = scmp.ne.s32.totalorder %s55_s17, %s7849_s21  ;;  %p7855_p8 = scmp.lt.s32.totalorder %s7849_s21, %s7849_s21 }
  0x35   :  { %p7856_p9 = por %p7855_p8, %p7854_p7 }
  0x37   :  { %p7857_p10 = pnand %p7856_p9, %p7850_p6 }
  0x39   :  { %7860 = shalt.err (!%p7857_p10)
}
  0x3a   :  { %s8004_s8 = smov 128   ;;  %s8005_s22 = smov 8  }
  0x3b   :  { %60 = dma.hbm_to_vmem [thread:$0]  %s12512_s3, 16384, %s55_s17, [#allocation6], %s8004_s8, %s8004_s8, %s8005_s22  }
  0x3c   :  { %s8006_s25 = smov [#allocation10]   ;;  %s8007_s27 = smov [#allocation13]  }
  0x3d   :  { %s82_s26 = sshll.u32 %s8006_s25, 4  ;;  %s106_s29 = sshll.u32 %s8007_s27, 4  ;;  %s83_s26 = int_to_ptr.vmem [resolvable:$true] %s82_s26  ;;  %s107_s29 = int_to_ptr.vmem [resolvable:$true] %s106_s29 }
  0x3e   :  { %s7869_s1 = scalar_lea.vmem %s83_s26, 2048  ;;  %p7874_p12 = scmp.lt.s32.totalorder %s83_s26, %s83_s26 }
  0x3f   :  { %p7870_p11 = scmp.ne.s32.totalorder %s83_s26, %s7869_s1  ;;  %p7875_p13 = scmp.lt.s32.totalorder %s7869_s1, %s7869_s1 }
  0x41   :  { %p7876_p0 = por %p7875_p13, %p7874_p12 }
  0x43   :  { %p7877_p1 = pnand %p7876_p0, %p7870_p11 }
  0x45   :  { %7880 = shalt.err (!%p7877_p1)
}
  0x46   :  { %88 = dma.hbm_to_vmem [thread:$0]  %s12516_s7, 2048, %s83_s26, [#allocation9], %s8004_s8, %s8004_s8, %s8005_s22  }
  0x47   :  { %s7889_s15 = scalar_lea.vmem %s107_s29, 1024  ;;  %p7894_p3 = scmp.lt.s32.totalorder %s107_s29, %s107_s29 }
  0x48   :  { %p7890_p2 = scmp.ne.s32.totalorder %s107_s29, %s7889_s15  ;;  %p7895_p4 = scmp.lt.s32.totalorder %s7889_s15, %s7889_s15 }
  0x4a   :  { %p7896_p5 = por %p7895_p4, %p7894_p3 }
  0x4c   :  { %p7897_p6 = pnand %p7896_p5, %p7890_p2 }
  0x4e   :  { %7900 = shalt.err (!%p7897_p6)
}
  0x4f   :  { %112 = dma.hbm_to_vmem [thread:$0]  %s12518_s9, 1024, %s107_s29, [#allocation12], %s8000_s2, %s8000_s2, %s8001_s28  }
  0x50   :  { %7981 = dma.done.wait [#allocation3], 128  }
  0x51   :  { %7982 = vsyncadd [#allocation3], 4294967168 }
  0x52   :  { %7983 = dma.done.wait [#allocation6], 16512  }
  0x53   :  { %7984 = vsyncadd [#allocation6], 4294950784 }
  0x54   :  { %7985 = dma.done.wait [#allocation9], 10240  }
  0x55   :  { %7986 = vsyncadd [#allocation9], 4294957056 }
  0x56   :  { %7987 = dma.done.wait [#allocation12], 2048  }
  0x57   :  { %7988 = vsyncadd [#allocation12], 4294965248  ;;  %v7207_v0 = vld [vmem:[#allocation8 + $0xe4] ss:$16 sps:$4 sm:$0xff]   ;;  %v7209_v1 = vld [vmem:[#allocation8 + $0xe0] ss:$16 sps:$4 sm:$0xff]   ;;  %v12524_v35 = vlaneseq }
  0x58   :  { %548 = vmatprep.subr.bf16.mxu0 %v7207_v0  ;;  %v7210_v2 = vld [vmem:[#allocation8 + $0xc4] ss:$16 sps:$4 sm:$0xff]   ;;  %v7212_v3 = vld [vmem:[#allocation8 + $0xc0] ss:$16 sps:$4 sm:$0xff]   ;;  %v7218_v5 = vld [vmem:[#allocation8 + $0xec] ss:$16 sps:$4 sm:$0xff]  }
  0x59   :  { %549 = vmatpush1.bf16.msra.mxu0 %v7209_v1  ;;  %v7213_v4 = vld [vmem:[#allocation8 + $0xa4] ss:$16 sps:$4 sm:$0xff]   ;;  %v7221_v6 = vld [vmem:[#allocation8 + $0xe8] ss:$16 sps:$4 sm:$0xff]   ;;  %v7215_v7 = vld [vmem:[#allocation8 + $0xa0] ss:$16 sps:$4 sm:$0xff]   ;;  %589 = vmatprep.subr.bf16.mxu1 %v7218_v5 }
  0x5a   :  { %550 = vmatprep.subr.bf16.mxu0 %v7210_v2  ;;  %v7216_v8 = vld [vmem:[#allocation8 + $0x84] ss:$16 sps:$4 sm:$0xff]   ;;  %590 = vmatpush1.bf16.msra.mxu1 %v7221_v6  ;;  %v7224_v9 = vld [vmem:[#allocation8 + $0xcc] ss:$16 sps:$4 sm:$0xff]   ;;  %v7227_v10 = vld [vmem:[#allocation8 + $0xc8] ss:$16 sps:$4 sm:$0xff]  }
  0x5b   :  { %591 = vmatprep.subr.bf16.mxu1 %v7224_v9  ;;  %v7220_v11 = vld [vmem:[#allocation8 + $0x80] ss:$16 sps:$4 sm:$0xff]   ;;  %v7222_v12 = vld [vmem:[#allocation8 + $0x64] ss:$16 sps:$4 sm:$0xff]   ;;  %v7230_v13 = vld [vmem:[#allocation8 + $0xac] ss:$16 sps:$4 sm:$0xff]  }
  0x5c   :  { %v7233_v14 = vld [vmem:[#allocation8 + $0xa8] ss:$16 sps:$4 sm:$0xff]   ;;  %v7236_v15 = vld [vmem:[#allocation8 + $0x8c] ss:$16 sps:$4 sm:$0xff]   ;;  %v7226_v16 = vld [vmem:[#allocation8 + $0x60] ss:$16 sps:$4 sm:$0xff]  }
  0x5d   :  { %551 = vmatpush1.bf16.msra.mxu0 %v7212_v3  ;;  %v7228_v17 = vld [vmem:[#allocation8 + $0x44] ss:$16 sps:$4 sm:$0xff]   ;;  %v7239_v18 = vld [vmem:[#allocation8 + $0x88] ss:$16 sps:$4 sm:$0xff]   ;;  %v7242_v19 = vld [vmem:[#allocation8 + $0x6c] ss:$16 sps:$4 sm:$0xff]  }
  0x5e   :  { %552 = vmatprep.subr.bf16.mxu0 %v7213_v4  ;;  %592 = vmatpush1.bf16.msra.mxu1 %v7227_v10  ;;  %v7232_v20 = vld [vmem:[#allocation8 + $0x40] ss:$16 sps:$4 sm:$0xff]   ;;  %v7234_v21 = vld [vmem:[#allocation8 + $0x24] ss:$16 sps:$4 sm:$0xff]   ;;  %v7245_v22 = vld [vmem:[#allocation8 + $0x68] ss:$16 sps:$4 sm:$0xff]  }
  0x5f   :  { %593 = vmatprep.subr.bf16.mxu1 %v7230_v13  ;;  %v7248_v23 = vld [vmem:[#allocation8 + $0x4c] ss:$16 sps:$4 sm:$0xff]   ;;  %v7238_v24 = vld [vmem:[#allocation8 + $0x20] ss:$16 sps:$4 sm:$0xff]   ;;  %v7240_v25 = vld [vmem:[#allocation8 + $0x4] ss:$16 sps:$4 sm:$0xff]  }
  0x60   :  { %v7251_v26 = vld [vmem:[#allocation8 + $0x48] ss:$16 sps:$4 sm:$0xff]   ;;  %v7254_v27 = vld [vmem:[#allocation8 + $0x2c] ss:$16 sps:$4 sm:$0xff]   ;;  %v7244_v28 = vld [vmem:[#allocation8] ss:$16 sps:$4 sm:$0xff]  }
  0x61   :  { %553 = vmatpush1.bf16.msra.mxu0 %v7215_v7  ;;  %v7246_v29 = vld [vmem:[#allocation8 + $0x1e4] ss:$16 sps:$4 sm:$0xff]   ;;  %v7257_v30 = vld [vmem:[#allocation8 + $0x28] ss:$16 sps:$4 sm:$0xff]   ;;  %v7260_v31 = vld [vmem:[#allocation8 + $0xc] ss:$16 sps:$4 sm:$0xff]  }
  0x62   :  { %554 = vmatprep.subr.bf16.mxu0 %v7216_v8  ;;  %594 = vmatpush1.bf16.msra.mxu1 %v7233_v14  ;;  %v7250_v32 = vld [vmem:[#allocation8 + $0x1e0] ss:$16 sps:$4 sm:$0xff]   ;;  %v7252_v33 = vld [vmem:[#allocation8 + $0x1c4] ss:$16 sps:$4 sm:$0xff]   ;;  %v7263_v34 = vld [vmem:[#allocation8 + $0x8] ss:$16 sps:$4 sm:$0xff]  }
  0x63   :  { %595 = vmatprep.subr.bf16.mxu1 %v7236_v15  ;;  %v7266_v36 = vld [vmem:[#allocation8 + $0x1ec] ss:$16 sps:$4 sm:$0xff]   ;;  %v7256_v37 = vld [vmem:[#allocation8 + $0x1c0] ss:$16 sps:$4 sm:$0xff]   ;;  %v7258_v38 = vld [vmem:[#allocation8 + $0x1a4] ss:$16 sps:$4 sm:$0xff]  }
  0x64   :  { %v7269_v39 = vld [vmem:[#allocation8 + $0x1e8] ss:$16 sps:$4 sm:$0xff]   ;;  %v8119_v40 = vshrl.u32 %v12524_v35, 7  ;;  %v7272_v41 = vld [vmem:[#allocation8 + $0x1cc] ss:$16 sps:$4 sm:$0xff]   ;;  %v138_v42 = vld [vmem:[#allocation2] sm:$0xff] }
  0x65   :  { %555 = vmatpush1.bf16.msra.mxu0 %v7220_v11  ;;  %v7262_v43 = vld [vmem:[#allocation8 + $0x1a0] ss:$16 sps:$4 sm:$0xff]   ;;  %v141_v44 = vpack.c.bf16 %v138_v42, %v138_v42  ;;  %v7264_v45 = vld [vmem:[#allocation8 + $0x184] ss:$16 sps:$4 sm:$0xff]   ;;  %v7275_v46 = vld [vmem:[#allocation8 + $0x1c8] ss:$16 sps:$4 sm:$0xff]  }
  0x66   :  { %556 = vmatprep.subr.bf16.mxu0 %v7222_v12  ;;  %596 = vmatpush1.bf16.msra.mxu1 %v7239_v18  ;;  %12839 = vst [vmem:[#allocation27_spill] sm:$0xff] %v8119_v40  ;;  %v8122_v47 = vsub.s32 0, %v8119_v40  ;;  %v7268_v48 = vld [vmem:[#allocation8 + $0x180] ss:$16 sps:$4 sm:$0xff]   ;;  %v7278_v49 = vld [vmem:[#allocation8 + $0x1ac] ss:$16 sps:$4 sm:$0xff]  }
  0x67   :  { %597 = vmatprep.subr.bf16.mxu1 %v7242_v19  ;;  %580 = vmatprep.mubr.bf16.mxu0 %v141_v44  ;;  %v7270_v50 = vld [vmem:[#allocation8 + $0x164] ss:$16 sps:$4 sm:$0xff]   ;;  %v7281_v51 = vld [vmem:[#allocation8 + $0x1a8] ss:$16 sps:$4 sm:$0xff]   ;;  %v7284_v52 = vld [vmem:[#allocation8 + $0x18c] ss:$16 sps:$4 sm:$0xff]  }
  0x68   :  { %12840 = vst [vmem:[#allocation28_spill] sm:$0xff] %v8122_v47  ;;  %621 = vmatprep.mubr.bf16.mxu1 %v141_v44  ;;  %v8127_v53 = vld [vmem:[%s12513_s4] sm:$0xff]  ;;  %v7287_v57 = vld [vmem:[#allocation8 + $0x188] ss:$16 sps:$4 sm:$0xff]   ;;  %v7290_v58 = vld [vmem:[#allocation8 + $0x16c] ss:$16 sps:$4 sm:$0xff]  }
  0x69   :  { %557 = vmatpush1.bf16.msra.mxu0 %v7226_v16  ;;  %v1401_v54 = vrot.slane %v8127_v53, %v8122_v47  ;;  %v7274_v55 = vld [vmem:[#allocation8 + $0x160] ss:$16 sps:$4 sm:$0xff]   ;;  %v7276_v56 = vld [vmem:[#allocation8 + $0x144] ss:$16 sps:$4 sm:$0xff]   ;;  %v7293_v61 = vld [vmem:[#allocation8 + $0x168] ss:$16 sps:$4 sm:$0xff]  }
  0x6a   :  { %558 = vmatprep.subr.bf16.mxu0 %v7228_v17  ;;  %598 = vmatpush1.bf16.msra.mxu1 %v7245_v22  ;;  %v7280_v59 = vld [vmem:[#allocation8 + $0x140] ss:$16 sps:$4 sm:$0xff]   ;;  %v7282_v60 = vld [vmem:[#allocation8 + $0x124] ss:$16 sps:$4 sm:$0xff]   ;;  %v7294_v62 = vld [vmem:[#allocation8 + $0x14c] ss:$16 sps:$4 sm:$0xff]  }
  0x6b   :  { %599 = vmatprep.subr.bf16.mxu1 %v7248_v23  ;;  %1407 = vbcast.lane.b32.xlu1 %v1401_v54, 264  ;;  %v7286_v63 = vld [vmem:[#allocation8 + $0x120] ss:$16 sps:$4 sm:$0xff]   ;;  %v7288_v0 = vld [vmem:[#allocation8 + $0x104] ss:$16 sps:$4 sm:$0xff]   ;;  %v8135_v9 = vsub.s32 1, %v8119_v40 }
  0x6c   :  { %1403 = vbcast.lane.b32.xlu0 %v1401_v54, 256  ;;  %v7296_v1 = vld [vmem:[#allocation8 + $0x148] ss:$16 sps:$4 sm:$0xff]   ;;  %v7297_v2 = vld [vmem:[#allocation8 + $0x12c] ss:$16 sps:$4 sm:$0xff]   ;;  %v137_v4 = vld [vmem:[%s12509_s0] sm:$0xff] }
  0x6d   :  { %559 = vmatpush1.bf16.msra.mxu0 %v7232_v20  ;;  %v7292_v3 = vld [vmem:[#allocation8 + $0x100] ss:$16 sps:$4 sm:$0xff]   ;;  %v7299_v5 = vld [vmem:[#allocation8 + $0x128] ss:$16 sps:$4 sm:$0xff]   ;;  %v7300_v6 = vld [vmem:[#allocation8 + $0x10c] ss:$16 sps:$4 sm:$0xff]   ;;  %v140_v7 = vpack.c.bf16 %v137_v4, %v137_v4  ;;  %v1468_v10 = vrot.slane %v8127_v53, %v8135_v9 }
  0x6e   :  { %560 = vmatprep.subr.bf16.mxu0 %v7234_v21  ;;  %600 = vmatpush1.bf16.msra.mxu1 %v7251_v26  ;;  %v7302_v8 = vld [vmem:[#allocation8 + $0x108] ss:$16 sps:$4 sm:$0xff]   ;;  %12841 = vst [vmem:[#allocation29_spill] sm:$0xff] %v8135_v9  ;;  %v7305_v11 = vld [vmem:[#allocation10 + $0x74] ss:$8 sps:$4 sm:$0xff]   ;;  %v8140_v15 = vsub.s32 2, %v8119_v40 }
  0x6f   :  { %601 = vmatprep.subr.bf16.mxu1 %v7254_v27  ;;  %1411 = vbcast.lane.b32.xlu1 %v1401_v54, 272  ;;  %v7303_v12 = vld [vmem:[#allocation10 + $0x70] ss:$8 sps:$4 sm:$0xff]   ;;  %v7308_v13 = vld [vmem:[#allocation10 + $0x64] ss:$8 sps:$4 sm:$0xff]   ;;  %vm2713_vm0 = vcmask 130112  }
  0x70   :  { %1419 = vbcast.lane.b32.xlu0 %v1401_v54, 288  ;;  %v7306_v14 = vld [vmem:[#allocation10 + $0x60] ss:$8 sps:$4 sm:$0xff]   ;;  %12842 = vst [vmem:[#allocation30_spill] sm:$0xff] %v8140_v15  ;;  %v7311_v16 = vld [vmem:[#allocation10 + $0x54] ss:$8 sps:$4 sm:$0xff]   ;;  %v1535_v17 = vrot.slane %v8127_v53, %v8140_v15 }
  0x71   :  { %561 = vmatpush1.bf16.msra.mxu0 %v7238_v24  ;;  %v7309_v18 = vld [vmem:[#allocation10 + $0x50] ss:$8 sps:$4 sm:$0xff]   ;;  %v7314_v19 = vld [vmem:[#allocation10 + $0x44] ss:$8 sps:$4 sm:$0xff]   ;;  %v7312_v20 = vld [vmem:[#allocation10 + $0x40] ss:$8 sps:$4 sm:$0xff]  }
  0x72   :  { %562 = vmatprep.subr.bf16.mxu0 %v7240_v25  ;;  %602 = vmatpush1.bf16.msra.mxu1 %v7257_v30  ;;  %v7315_v21 = vld [vmem:[#allocation10 + $0x30] ss:$8 sps:$4 sm:$0xff]   ;;  %v7317_v22 = vld [vmem:[#allocation10 + $0x34] ss:$8 sps:$4 sm:$0xff]   ;;  %v7320_v23 = vld [vmem:[#allocation10 + $0x24] ss:$8 sps:$4 sm:$0xff]  }
  0x73   :  { %603 = vmatprep.subr.bf16.mxu1 %v7260_v31  ;;  %1415 = vbcast.lane.b32.xlu1 %v1401_v54, 280  ;;  %v8008_v24 = vmov 0   ;;  %v7318_v25 = vld [vmem:[#allocation10 + $0x20] ss:$8 sps:$4 sm:$0xff]   ;;  %v7323_v26 = vld [vmem:[#allocation10 + $0x14] ss:$8 sps:$4 sm:$0xff]  }
  0x74   :  { %1427 = vbcast.lane.b32.xlu0 %v1401_v54, 304  ;;  %7206 = vset.pattern.permute.xlu1 %v8008_v24  ;;  %v7321_v27 = vld [vmem:[#allocation10 + $0x10] ss:$8 sps:$4 sm:$0xff]   ;;  %v8145_v30 = vsub.s32 3, %v8119_v40  ;;  %vm2720_vm1 = vcmask 195712   ;;  %vm2727_vm2 = vcmask 261312  }
  0x75   :  { %563 = vmatpush1.bf16.msra.mxu0 %v7244_v28  ;;  %7205 = vset.pattern.permute.xlu0 %v8008_v24  ;;  %v7326_v28 = vld [vmem:[#allocation10 + $0x4] ss:$8 sps:$4 sm:$0xff]   ;;  %vm2734_vm3 = vcmask 326912   ;;  %vm2741_vm4 = vcmask 392512   ;;  %vm12674_vm5 = vcmask 458112   ;;  %vm12675_vm6 = vcmask 523712  }
  0x76   :  { %564 = vmatprep.subr.bf16.mxu0 %v7246_v29  ;;  %604 = vmatpush1.bf16.msra.mxu1 %v7263_v34  ;;  %v7324_v29 = vld [vmem:[#allocation10] ss:$8 sps:$4 sm:$0xff]   ;;  %12843 = vst [vmem:[#allocation31_spill] sm:$0xff] %v8145_v30  ;;  %v1602_v31 = vrot.slane %v8127_v53, %v8145_v30  ;;  %v206_v34 = vld [vmem:[%s12515_s6] sm:$0xf]  ;;  %vm2762_vm7 = vcmask 589312  }
  0x77   :  { %605 = vmatprep.subr.bf16.mxu1 %v7266_v36  ;;  %1423 = vbcast.lane.b32.xlu1 %v1401_v54, 296  ;;  %v8158_v36 = vsub.s32 5, %v8119_v40  ;;  %vm2769_vm8 = vcmask 654912   ;;  %vm12677_vm9 = vcmask 720512   ;;  %vm12676_vm10 = vcmask 786112   ;;  %s8012_s6 = smov [#allocation15]  }
  0x78   :  { %1435 = vbcast.lane.b32.xlu0 %v1401_v54, 320  ;;  %vm12678_vm11 = vcmask 851712   ;;  %vm2797_vm12 = vcmask 917312   ;;  %vm2804_vm13 = vcmask 982912   ;;  %vm2811_vm14 = vcmask 1048512   ;;  %s6983_s17 = sshll.u32 %s8012_s6, 4  ;;  %s6984_s17 = int_to_ptr.vmem [resolvable:$true] %s6983_s17 }
  0x79   :  { %565 = vmatpush2.bf16.msra.mxu0 %v7250_v32  ;;  %v8150_v32 = vsub.s32 4, %v8119_v40  ;;  %12845 = vst [vmem:[#allocation33_spill] sm:$0xff] %v8158_v36  ;;  %vm12673_vm15 = vcmask 1041409   ;;  %s7901_s18 = scalar_lea.vmem %s6984_s17, 128  ;;  %p7906_p8 = scmp.lt.s32.totalorder %s6984_s17, %s6984_s17 }
  0x7a   :  { %566 = vmatprep.subr.bf16.mxu0 %v7252_v33  ;;  %606 = vmatpush2.bf16.msra.mxu1 %v7269_v39  ;;  %p7902_p7 = scmp.ne.s32.totalorder %s6984_s17, %s7901_s18  ;;  %p7907_p9 = scmp.lt.s32.totalorder %s7901_s18, %s7901_s18 }
  0x7b   :  { %607 = vmatprep.subr.bf16.mxu1 %v7272_v41  ;;  %1431 = vbcast.lane.b32.xlu1 %v1401_v54, 312  ;;  %12844 = vst [vmem:[#allocation32_spill] sm:$0xff] %v8150_v32  ;;  %v1669_v33 = vrot.slane %v8127_v53, %v8150_v32  ;;  %v1736_v41 = vrot.slane %v8127_v53, %v8158_v36 }
  0x7c   :  { %1443 = vbcast.lane.b32.xlu0 %v1401_v54, 336  ;;  %p7908_p10 = por %p7907_p9, %p7906_p8 }
  0x7d   :  { %567 = vmatpush2.bf16.msra.mxu0 %v7256_v37  ;;  %v211_v37 = vrot.slane %v206_v34, %v8122_v47 }
  0x7e   :  { %568 = vmatprep.subr.bf16.mxu0 %v7258_v38  ;;  %608 = vmatpush2.bf16.msra.mxu1 %v7275_v46  ;;  %v215_v38 = vrot.slane %v206_v34, %v8135_v9  ;;  %p7909_p11 = pnand %p7908_p10, %p7902_p7 }
  0x7f   :  { %609 = vmatprep.subr.bf16.mxu1 %v7278_v49  ;;  %1439 = vbcast.lane.b32.xlu1 %v1401_v54, 328 }
  0x80   :  { %1451 = vbcast.lane.b32.xlu0 %v1401_v54, 352 }
  0x81   :  { %569 = vmatpush2.bf16.msra.mxu0 %v7262_v43 }
  0x82   :  { %570 = vmatprep.subr.bf16.mxu0 %v7264_v45  ;;  %610 = vmatpush2.bf16.msra.mxu1 %v7281_v51 }
  0x83   :  { %611 = vmatprep.subr.bf16.mxu1 %v7284_v52  ;;  %1447 = vbcast.lane.b32.xlu1 %v1401_v54, 344 }
  0x84   :  { %1459 = vbcast.lane.b32.xlu0 %v1401_v54, 368 }
  0x85   :  { %571 = vmatpush2.bf16.msra.mxu0 %v7268_v48 }
  0x86   :  { %572 = vmatprep.subr.bf16.mxu0 %v7270_v50  ;;  %612 = vmatpush2.bf16.msra.mxu1 %v7287_v57 }
  0x87   :  { %613 = vmatprep.subr.bf16.mxu1 %v7290_v58  ;;  %1455 = vbcast.lane.b32.xlu1 %v1401_v54, 360 }
  0x88   :  { %1470 = vbcast.lane.b32.xlu0 %v1468_v10, 256 }
  0x89   :  { %573 = vmatpush2.bf16.msra.mxu0 %v7274_v55 }
  0x8a   :  { %574 = vmatprep.subr.bf16.mxu0 %v7276_v56  ;;  %614 = vmatpush2.bf16.msra.mxu1 %v7293_v61  ;;  %v219_v56 = vrot.slane %v206_v34, %v8140_v15 }
  0x8b   :  { %615 = vmatprep.subr.bf16.mxu1 %v7294_v62  ;;  %1463 = vbcast.lane.b32.xlu1 %v1401_v54, 376  ;;  %v223_v54 = vrot.slane %v206_v34, %v8145_v30 }
  0x8c   :  { %1478 = vbcast.lane.b32.xlu0 %v1468_v10, 272 }
  0x8d   :  { %575 = vmatpush2.bf16.msra.mxu0 %v7280_v59 }
  0x8e   :  { %576 = vmatprep.subr.bf16.mxu0 %v7282_v60  ;;  %616 = vmatpush2.bf16.msra.mxu1 %v7296_v1 }
  0x8f   :  { %617 = vmatprep.subr.bf16.mxu1 %v7297_v2  ;;  %1474 = vbcast.lane.b32.xlu1 %v1468_v10, 264 }
  0x90   :  { %1486 = vbcast.lane.b32.xlu0 %v1468_v10, 288 }
  0x91   :  { %577 = vmatpush2.bf16.msra.mxu0 %v7286_v63 }
  0x92   :  { %578 = vmatprep.subr.bf16.mxu0 %v7288_v0  ;;  %618 = vmatpush2.bf16.msra.mxu1 %v7299_v5 }
  0x93   :  { %619 = vmatprep.subr.bf16.mxu1 %v7300_v6  ;;  %1482 = vbcast.lane.b32.xlu1 %v1468_v10, 280  ;;  %v8179_v6 = vsub.s32 6, %v8119_v40 }
  0x94   :  { %1494 = vbcast.lane.b32.xlu0 %v1468_v10, 304 }
  0x95   :  { %579 = vmatpush2.bf16.msra.mxu0 %v7292_v3  ;;  %12846 = vst [vmem:[#allocation34_spill] sm:$0xff] %v8179_v6 }
  0x96   :  { %620 = vmatpush2.bf16.msra.mxu1 %v7302_v8  ;;  %753 = vmatprep.subr.bf16.mxu0 %v7305_v11  ;;  %v1803_v11 = vrot.slane %v8127_v53, %v8179_v6 }
  0x97   :  { %1490 = vbcast.lane.b32.xlu1 %v1468_v10, 296 }
  0x98   :  { %581 = vmatmul.mubr.bf16.vlgmr.msra.gmra.mxu0 %v140_v7  ;;  %1502 = vbcast.lane.b32.xlu0 %v1468_v10, 320 }
  0x99   :  { %622 = vmatmul.mubr.bf16.vlgmr.msra.gmra.mxu1 %v140_v7  ;;  %754 = vmatpush1.bf16.msra.mxu0 %v7303_v12 }
  0x9a   :  { %755 = vmatprep.subr.bf16.mxu0 %v7308_v13  ;;  %785 = vmatprep.mubr.bf16.mxu0 %v8008_v24 }
  0x9b   :  { %1498 = vbcast.lane.b32.xlu1 %v1468_v10, 312 }
  0x9c   :  { %1510 = vbcast.lane.b32.xlu0 %v1468_v10, 336 }
  0x9d   :  { %756 = vmatpush1.bf16.msra.mxu0 %v7306_v14  ;;  %v139_v14 = vld [vmem:[#allocation5] sm:$0xff] }
  0x9e   :  { %757 = vmatprep.subr.bf16.mxu0 %v7311_v16 }
  0x9f   :  { %1506 = vbcast.lane.b32.xlu1 %v1468_v10, 328 }
  0xa0   :  { %1518 = vbcast.lane.b32.xlu0 %v1468_v10, 352 }
  0xa1   :  { %758 = vmatpush1.bf16.msra.mxu0 %v7309_v18 }
  0xa2   :  { %759 = vmatprep.subr.bf16.mxu0 %v7314_v19 }
  0xa3   :  { %1514 = vbcast.lane.b32.xlu1 %v1468_v10, 344 }
  0xa4   :  { %1526 = vbcast.lane.b32.xlu0 %v1468_v10, 368 }
  0xa5   :  { %760 = vmatpush1.bf16.msra.mxu0 %v7312_v20 }
  0xa6   :  { %761 = vmatprep.subr.bf16.mxu0 %v7317_v22 }
  0xa7   :  { %1522 = vbcast.lane.b32.xlu1 %v1468_v10, 360 }
  0xa8   :  { %1537 = vbcast.lane.b32.xlu0 %v1535_v17, 256 }
  0xa9   :  { %762 = vmatpush1.bf16.msra.mxu0 %v7315_v21 }
  0xaa   :  { %763 = vmatprep.subr.bf16.mxu0 %v7320_v23 }
  0xab   :  { %1530 = vbcast.lane.b32.xlu1 %v1468_v10, 376 }
  0xac   :  { %1545 = vbcast.lane.b32.xlu0 %v1535_v17, 272 }
  0xad   :  { %764 = vmatpush1.bf16.msra.mxu0 %v7318_v25 }
  0xae   :  { %765 = vmatprep.subr.bf16.mxu0 %v7323_v26 }
  0xaf   :  { %1541 = vbcast.lane.b32.xlu1 %v1535_v17, 264 }
  0xb0   :  { %1553 = vbcast.lane.b32.xlu0 %v1535_v17, 288 }
  0xb1   :  { %766 = vmatpush1.bf16.msra.mxu0 %v7321_v27 }
  0xb2   :  { %767 = vmatprep.subr.bf16.mxu0 %v7326_v28 }
  0xb3   :  { %1549 = vbcast.lane.b32.xlu1 %v1535_v17, 280 }
  0xb4   :  { %1561 = vbcast.lane.b32.xlu0 %v1535_v17, 304 }
  0xb5   :  { %768 = vmatpush1.bf16.msra.mxu0 %v7324_v29 }
  0xb7   :  { %1557 = vbcast.lane.b32.xlu1 %v1535_v17, 296 }
  0xb8   :  { %1569 = vbcast.lane.b32.xlu0 %v1535_v17, 320 }
  0xbb   :  { %1565 = vbcast.lane.b32.xlu1 %v1535_v17, 312 }
  0xbc   :  { %1577 = vbcast.lane.b32.xlu0 %v1535_v17, 336 }
  0xbf   :  { %1573 = vbcast.lane.b32.xlu1 %v1535_v17, 328 }
  0xc0   :  { %1585 = vbcast.lane.b32.xlu0 %v1535_v17, 352 }
  0xc3   :  { %1581 = vbcast.lane.b32.xlu1 %v1535_v17, 344 }
  0xc4   :  { %1593 = vbcast.lane.b32.xlu0 %v1535_v17, 368 }
  0xc7   :  { %1589 = vbcast.lane.b32.xlu1 %v1535_v17, 360 }
  0xc8   :  { %1604 = vbcast.lane.b32.xlu0 %v1602_v31, 256 }
  0xcb   :  { %1597 = vbcast.lane.b32.xlu1 %v1535_v17, 376 }
  0xcc   :  { %1612 = vbcast.lane.b32.xlu0 %v1602_v31, 272 }
  0xcf   :  { %1608 = vbcast.lane.b32.xlu1 %v1602_v31, 264 }
  0xd0   :  { %1620 = vbcast.lane.b32.xlu0 %v1602_v31, 288 }
  0xd3   :  { %1616 = vbcast.lane.b32.xlu1 %v1602_v31, 280 }
  0xd4   :  { %1628 = vbcast.lane.b32.xlu0 %v1602_v31, 304 }
  0xd7   :  { %1624 = vbcast.lane.b32.xlu1 %v1602_v31, 296 }
  0xd8   :  { %1636 = vbcast.lane.b32.xlu0 %v1602_v31, 320 }
  0xdb   :  { %1632 = vbcast.lane.b32.xlu1 %v1602_v31, 312 }
  0xdc   :  { %1644 = vbcast.lane.b32.xlu0 %v1602_v31, 336 }
  0xdd   :  { %v8164_v51 = vpop.permute.xlu1 %1407 }
  0xde   :  { %v8172_v1 = vpop.permute.xlu0 %1403 }
  0xdf   :  { %1640 = vbcast.lane.b32.xlu1 %v1602_v31, 328 }
  0xe0   :  { %1652 = vbcast.lane.b32.xlu0 %v1602_v31, 352 }
  0xe1   :  { %v8168_v59 = vpop.permute.xlu1 %1411 }
  0xe2   :  { %v8176_v5 = vpop.permute.xlu0 %1419 }
  0xe3   :  { %1648 = vbcast.lane.b32.xlu1 %v1602_v31, 344 }
  0xe4   :  { %1660 = vbcast.lane.b32.xlu0 %v1602_v31, 368 }
  0xe5   :  { %v8170_v63 = vpop.permute.xlu1 %1415 }
  0xe6   :  { %v8183_v8 = vpop.permute.xlu0 %1427 }
  0xe7   :  { %1656 = vbcast.lane.b32.xlu1 %v1602_v31, 360 }
  0xe8   :  { %1671 = vbcast.lane.b32.xlu0 %v1669_v33, 256 }
  0xe9   :  { %v8174_v4 = vpop.permute.xlu1 %1423 }
  0xea   :  { %v8189_v21 = vpop.permute.xlu0 %1435 }
  0xeb   :  { %1664 = vbcast.lane.b32.xlu1 %v1602_v31, 376 }
  0xec   :  { %1679 = vbcast.lane.b32.xlu0 %v1669_v33, 272 }
  0xed   :  { %v8181_v7 = vpop.permute.xlu1 %1431 }
  0xee   :  { %v8193_v24 = vpop.permute.xlu0 %1443 }
  0xef   :  { %1675 = vbcast.lane.b32.xlu1 %v1669_v33, 264 }
  0xf0   :  { %1687 = vbcast.lane.b32.xlu0 %v1669_v33, 288 }
  0xf1   :  { %v8187_v18 = vpop.permute.xlu1 %1439 }
  0xf2   :  { %v8197_v26 = vpop.permute.xlu0 %1451 }
  0xf3   :  { %1683 = vbcast.lane.b32.xlu1 %v1669_v33, 280 }
  0xf4   :  { %1695 = vbcast.lane.b32.xlu0 %v1669_v33, 304 }
  0xf5   :  { %v8191_v23 = vpop.permute.xlu1 %1447 }
  0xf7   :  { %1691 = vbcast.lane.b32.xlu1 %v1669_v33, 296 }
  0xf8   :  { %1703 = vbcast.lane.b32.xlu0 %v1669_v33, 320 }
  0xf9   :  { %v8195_v25 = vpop.permute.xlu1 %1455 }
  0xfb   :  { %1699 = vbcast.lane.b32.xlu1 %v1669_v33, 312 }
  0xfc   :  { %1711 = vbcast.lane.b32.xlu0 %v1669_v33, 336 }
  0xfd   :  { %v8199_v29 = vpop.permute.xlu1 %1463 }
  0xff   :  { %1707 = vbcast.lane.b32.xlu1 %v1669_v33, 328 }
 0x100   :  { %1719 = vbcast.lane.b32.xlu0 %v1669_v33, 352 }
 0x103   :  { %1715 = vbcast.lane.b32.xlu1 %v1669_v33, 344 }
 0x104   :  { %1727 = vbcast.lane.b32.xlu0 %v1669_v33, 368 }
 0x107   :  { %1723 = vbcast.lane.b32.xlu1 %v1669_v33, 360 }
 0x108   :  { %1738 = vbcast.lane.b32.xlu0 %v1736_v41, 256 }
 0x10b   :  { %1731 = vbcast.lane.b32.xlu1 %v1669_v33, 376  ;;  %v8201_v33 = vpop.permute.xlu0 %1459 }
 0x10c   :  { %1746 = vbcast.lane.b32.xlu0 %v1736_v41, 272 }
 0x10f   :  { %1742 = vbcast.lane.b32.xlu1 %v1736_v41, 264 }
 0x110   :  { %1754 = vbcast.lane.b32.xlu0 %v1736_v41, 288 }
 0x113   :  { %1750 = vbcast.lane.b32.xlu1 %v1736_v41, 280 }
 0x114   :  { %1762 = vbcast.lane.b32.xlu0 %v1736_v41, 304 }
 0x117   :  { %1758 = vbcast.lane.b32.xlu1 %v1736_v41, 296 }
 0x118   :  { %1770 = vbcast.lane.b32.xlu0 %v1736_v41, 320 }
 0x11b   :  { %1766 = vbcast.lane.b32.xlu1 %v1736_v41, 312 }
 0x11c   :  { %1778 = vbcast.lane.b32.xlu0 %v1736_v41, 336 }
 0x11f   :  { %1774 = vbcast.lane.b32.xlu1 %v1736_v41, 328 }
 0x120   :  { %1786 = vbcast.lane.b32.xlu0 %v1736_v41, 352 }
 0x123   :  { %1782 = vbcast.lane.b32.xlu1 %v1736_v41, 344 }
 0x124   :  { %1794 = vbcast.lane.b32.xlu0 %v1736_v41, 368 }
 0x127   :  { %1790 = vbcast.lane.b32.xlu1 %v1736_v41, 360 }
 0x128   :  { %1805 = vbcast.lane.b32.xlu0 %v1803_v11, 256 }
 0x12b   :  { %1798 = vbcast.lane.b32.xlu1 %v1736_v41, 376 }
 0x12c   :  { %1813 = vbcast.lane.b32.xlu0 %v1803_v11, 272 }
 0x12f   :  { %1809 = vbcast.lane.b32.xlu1 %v1803_v11, 264 }
 0x130   :  { %1821 = vbcast.lane.b32.xlu0 %v1803_v11, 288 }
 0x133   :  { %1817 = vbcast.lane.b32.xlu1 %v1803_v11, 280 }
 0x134   :  { %1829 = vbcast.lane.b32.xlu0 %v1803_v11, 304 }
 0x137   :  { %1825 = vbcast.lane.b32.xlu1 %v1803_v11, 296 }
 0x138   :  { %1837 = vbcast.lane.b32.xlu0 %v1803_v11, 320 }
 0x13b   :  { %1833 = vbcast.lane.b32.xlu1 %v1803_v11, 312 }
 0x13c   :  { %1845 = vbcast.lane.b32.xlu0 %v1803_v11, 336 }
 0x13f   :  { %1841 = vbcast.lane.b32.xlu1 %v1803_v11, 328 }
 0x140   :  { %1853 = vbcast.lane.b32.xlu0 %v1803_v11, 352 }
 0x143   :  { %1849 = vbcast.lane.b32.xlu1 %v1803_v11, 344 }
 0x144   :  { %1861 = vbcast.lane.b32.xlu0 %v1803_v11, 368 }
 0x147   :  { %1857 = vbcast.lane.b32.xlu1 %v1803_v11, 360 }
 0x14b   :  { %1865 = vbcast.lane.b32.xlu1 %v1803_v11, 376 }
 0x158   :  { %v582_v39 = vpop.f32.mrf.mxu0 }
 0x159   :  { %v583_v42 = vadd.f32 %v582_v39, %v211_v37  ;;  %v623_v49 = vpop.f32.mrf.mxu1  ;;  %v8203_v37 = vpop.permute.xlu1 %1474 }
 0x15a   :  { %v584_v43 = vpop.f32.mrf.mxu0  ;;  %v624_v60 = vadd.f32 %v623_v49, %v219_v56  ;;  %v8208_v39 = vpop.permute.xlu0 %1470 }
 0x15b   :  { %v7090_v44 = vmul.f32 -1.442695, %v583_v42  ;;  %v585_v45 = vadd.f32 %v584_v43, %v215_v38  ;;  %v625_v52 = vpop.f32.mrf.mxu1  ;;  %v8206_v38 = vsub.s32 7, %v8119_v40 }
 0x15c   :  { %v586_v46 = vpop.f32.mrf.mxu0  ;;  %v626_v58 = vadd.f32 %v625_v52, %v223_v54 }
 0x15d   :  { %7343 = vpow2.f32 %v7090_v44  ;;  %v7091_v48 = vmul.f32 -1.442695, %v585_v45  ;;  %v627_v55 = vpop.f32.mrf.mxu1  ;;  %12847 = vst [vmem:[#allocation35_spill] sm:$0xff] %v8206_v38  ;;  %v1870_v41 = vrot.slane %v8127_v53, %v8206_v38  ;;  %v8212_v42 = vpop.permute.xlu1 %1482 }
 0x15e   :  { %v587_v50 = vpop.f32.mrf.mxu0  ;;  %v7092_v61 = vmul.f32 -1.442695, %v626_v58  ;;  %v8214_v43 = vpop.permute.xlu0 %1478 }
 0x15f   :  { %7345 = vpow2.f32 %v7091_v48  ;;  %v628_v57 = vpop.f32.mrf.mxu1  ;;  %1876 = vbcast.lane.b32.xlu1 %v1870_v41, 264  ;;  %1872 = vbcast.lane.b32.xlu0 %v1870_v41, 256 }
 0x160   :  { %7347 = vtanh.f32 %v624_v60 }
 0x161   :  { %7349 = vpow2.f32 %v7092_v61  ;;  %v8216_v44 = vpop.permute.xlu1 %1490 }
 0x162   :  { %v8218_v45 = vpop.permute.xlu0 %1486 }
 0x163   :  { %1884 = vbcast.lane.b32.xlu1 %v1870_v41, 280  ;;  %1880 = vbcast.lane.b32.xlu0 %v1870_v41, 272 }
 0x165   :  { %v8220_v46 = vpop.permute.xlu1 %1498 }
 0x166   :  { %12848 = vst [vmem:[#allocation36_spill] sm:$0xff] %v8220_v46  ;;  %v8222_v48 = vpop.permute.xlu0 %1494 }
 0x167   :  { %1892 = vbcast.lane.b32.xlu1 %v1870_v41, 296  ;;  %1888 = vbcast.lane.b32.xlu0 %v1870_v41, 288 }
 0x169   :  { %v8224_v53 = vpop.permute.xlu1 %1506 }
 0x16a   :  { %v7344_v62 = vpop.eup %7343  ;;  %12849 = vst [vmem:[#allocation37_spill] sm:$0xff] %v8224_v53  ;;  %v8226_v49 = vpop.permute.xlu0 %1502  ;;  %v889_v53 = vld [vmem:[#allocation7 + $0x2f8] sm:$0xff] }
 0x16b   :  { %v633_v0 = vadd.f32 1.0, %v7344_v62  ;;  %1900 = vbcast.lane.b32.xlu1 %v1870_v41, 312  ;;  %1896 = vbcast.lane.b32.xlu0 %v1870_v41, 304  ;;  %12850 = vst [vmem:[#allocation38_spill] sm:$0xff] %v8226_v49  ;;  %v892_v49 = vld [vmem:[#allocation7 + $0x310] sm:$0xff] }
 0x16c   :  { %v7346_v2 = vpop.eup %7345 }
 0x16d   :  { %7351 = vrcp.f32 %v633_v0  ;;  %v639_v3 = vadd.f32 1.0, %v7346_v2  ;;  %v7348_v10 = vpop.eup %7347  ;;  %v8228_v50 = vpop.permute.xlu1 %1514 }
 0x16e   :  { %v7350_v12 = vpop.eup %7349  ;;  %12851 = vst [vmem:[#allocation39_spill] sm:$0xff] %v8228_v50  ;;  %v8230_v52 = vpop.permute.xlu0 %1510  ;;  %v886_v50 = vld [vmem:[#allocation7 + $0x2e0] sm:$0xff] }
 0x16f   :  { %7353 = vrcp.f32 %v639_v3  ;;  %v646_v17 = vadd.f32 1.0, %v7350_v12  ;;  %1908 = vbcast.lane.b32.xlu1 %v1870_v41, 328  ;;  %1904 = vbcast.lane.b32.xlu0 %v1870_v41, 320  ;;  %12852 = vst [vmem:[#allocation40_spill] sm:$0xff] %v8230_v52  ;;  %v888_v52 = vld [vmem:[#allocation7 + $0x2f0] sm:$0xff] }
 0x171   :  { %7355 = vrcp.f32 %v646_v17  ;;  %v8232_v54 = vpop.permute.xlu1 %1522 }
 0x172   :  { %12853 = vst [vmem:[#allocation41_spill] sm:$0xff] %v8232_v54  ;;  %v8234_v55 = vpop.permute.xlu0 %1518  ;;  %v884_v54 = vld [vmem:[#allocation7 + $0x2d0] sm:$0xff] }
 0x173   :  { %1916 = vbcast.lane.b32.xlu1 %v1870_v41, 344  ;;  %1912 = vbcast.lane.b32.xlu0 %v1870_v41, 336  ;;  %12854 = vst [vmem:[#allocation42_spill] sm:$0xff] %v8234_v55 }
 0x175   :  { %v8236_v56 = vpop.permute.xlu1 %1530 }
 0x176   :  { %12855 = vst [vmem:[#allocation43_spill] sm:$0xff] %v8236_v56  ;;  %v8238_v57 = vpop.permute.xlu0 %1526  ;;  %v882_v56 = vld [vmem:[#allocation7 + $0x2c0] sm:$0xff] }
 0x177   :  { %1924 = vbcast.lane.b32.xlu1 %v1870_v41, 360  ;;  %1920 = vbcast.lane.b32.xlu0 %v1870_v41, 352  ;;  %12856 = vst [vmem:[#allocation44_spill] sm:$0xff] %v8238_v57 }
 0x179   :  { %v8240_v58 = vpop.permute.xlu1 %1541 }
 0x17a   :  { %v7352_v13 = vpop.eup %7351  ;;  %12857 = vst [vmem:[#allocation45_spill] sm:$0xff] %v8240_v58  ;;  %v8242_v60 = vpop.permute.xlu0 %1537  ;;  %v880_v58 = vld [vmem:[#allocation7 + $0x2b0] sm:$0xff] }
 0x17b   :  { %v650_v20 = vmul.f32 %v7352_v13, %v7348_v10  ;;  %1932 = vbcast.lane.b32.xlu1 %v1870_v41, 376  ;;  %1928 = vbcast.lane.b32.xlu0 %v1870_v41, 368  ;;  %12858 = vst [vmem:[#allocation46_spill] sm:$0xff] %v8242_v60 }
 0x17c   :  { %v7354_v16 = vpop.eup %7353 }
 0x17d   :  { %v649_v19 = vmul.f32 %v7354_v16, %v139_v14  ;;  %v8244_v61 = vpop.permute.xlu1 %1549 }
 0x17e   :  { %v7356_v27 = vpop.eup %7355  ;;  %12859 = vst [vmem:[#allocation47_spill] sm:$0xff] %v8244_v61  ;;  %v8246_v62 = vpop.permute.xlu0 %1545 }
 0x17f   :  { %v651_v22 = vadd.f32 %v650_v20, %v649_v19  ;;  %12860 = vst [vmem:[#allocation48_spill] sm:$0xff] %v8246_v62 }
 0x181   :  { %7357 = vtanh.f32 %v651_v22  ;;  %655 = vst [vmem:[#allocation15] sm:$0xff] %v651_v22  ;;  %v8248_v0 = vpop.permute.xlu1 %1557 }
 0x182   :  { %12861 = vst [vmem:[#allocation49_spill] sm:$0xff] %v8248_v0  ;;  %v8250_v2 = vpop.permute.xlu0 %1553  ;;  %v877_v0 = vld [vmem:[#allocation7 + $0x298] sm:$0xff] }
 0x183   :  { %12862 = vst [vmem:[#allocation50_spill] sm:$0xff] %v8250_v2 }
 0x185   :  { %v8252_v3 = vpop.permute.xlu1 %1565 }
 0x186   :  { %12863 = vst [vmem:[#allocation51_spill] sm:$0xff] %v8252_v3  ;;  %v8254_v10 = vpop.permute.xlu0 %1561  ;;  %v875_v3 = vld [vmem:[#allocation7 + $0x288] sm:$0xff] }
 0x187   :  { %12864 = vst [vmem:[#allocation52_spill] sm:$0xff] %v8254_v10  ;;  %v876_v10 = vld [vmem:[#allocation7 + $0x290] sm:$0xff] }
 0x189   :  { %v8256_v11 = vpop.permute.xlu1 %1573 }
 0x18a   :  { %12865 = vst [vmem:[#allocation53_spill] sm:$0xff] %v8256_v11  ;;  %v8258_v12 = vpop.permute.xlu0 %1569 }
 0x18b   :  { %12866 = vst [vmem:[#allocation54_spill] sm:$0xff] %v8258_v12 }
 0x18d   :  { %v8260_v13 = vpop.permute.xlu1 %1581 }
 0x18e   :  { %v7358_v28 = vpop.eup %7357  ;;  %12867 = vst [vmem:[#allocation55_spill] sm:$0xff] %v8260_v13  ;;  %v8262_v14 = vpop.permute.xlu0 %1577  ;;  %v799_v13 = vld [vmem:[#allocation7 + $0x28] sm:$0xff] }
 0x18f   :  { %v653_v31 = vmul.f32 %v7358_v28, %v7356_v27  ;;  %12868 = vst [vmem:[#allocation56_spill] sm:$0xff] %v8262_v14  ;;  %v800_v14 = vld [vmem:[#allocation7 + $0x30] sm:$0xff] }
 0x191   :  { %v656_v34 = vpack.c.bf16 %v653_v31, %v653_v31  ;;  %654 = vst [vmem:[#allocation14] sm:$0xff] %v653_v31  ;;  %v8264_v16 = vpop.permute.xlu1 %1589 }
 0x192   :  { %12869 = vst [vmem:[#allocation57_spill] sm:$0xff] %v8264_v16  ;;  %v8266_v17 = vpop.permute.xlu0 %1585  ;;  %v795_v16 = vld [vmem:[#allocation7 + $0x8] sm:$0xff] }
 0x193   :  { %786 = vmatmul.mubr.bf16.vlgmr.msra.gmra.mxu0 %v656_v34  ;;  %12870 = vst [vmem:[#allocation58_spill] sm:$0xff] %v8266_v17  ;;  %v798_v17 = vld [vmem:[#allocation7 + $0x20] sm:$0xff] }
 0x195   :  { %v8268_v19 = vpop.permute.xlu1 %1597 }
 0x196   :  { %12871 = vst [vmem:[#allocation59_spill] sm:$0xff] %v8268_v19  ;;  %v8270_v20 = vpop.permute.xlu0 %1593 }
 0x197   :  { %12872 = vst [vmem:[#allocation60_spill] sm:$0xff] %v8270_v20 }
 0x199   :  { %v8272_v22 = vpop.permute.xlu1 %1608 }
 0x19a   :  { %12873 = vst [vmem:[#allocation61_spill] sm:$0xff] %v8272_v22  ;;  %v8274_v27 = vpop.permute.xlu0 %1604 }
 0x19b   :  { %12874 = vst [vmem:[#allocation62_spill] sm:$0xff] %v8274_v27 }
 0x19d   :  { %v8276_v28 = vpop.permute.xlu1 %1616 }
 0x19e   :  { %12875 = vst [vmem:[#allocation63_spill] sm:$0xff] %v8276_v28  ;;  %v8278_v31 = vpop.permute.xlu0 %1612 }
 0x19f   :  { %12876 = vst [vmem:[#allocation64_spill] sm:$0xff] %v8278_v31  ;;  %v8009_v31 = vmov 1966171168  }
 0x1a0   :  { %v925_v27 = vunpack.c.l.s4 %v8009_v31 }
 0x1a1   :  { %v8280_v34 = vpop.permute.xlu1 %1624 }
 0x1a2   :  { %12877 = vst [vmem:[#allocation65_spill] sm:$0xff] %v8280_v34  ;;  %v8282_v41 = vpop.permute.xlu0 %1620 }
 0x1a3   :  { %12878 = vst [vmem:[#allocation66_spill] sm:$0xff] %v8282_v41 }
 0x1a5   :  { %v8284_v35 = vpop.permute.xlu1 %1632 }
 0x1a6   :  { %12879 = vst [vmem:[#allocation67_spill] sm:$0xff] %v8284_v35  ;;  %v8286_v38 = vpop.permute.xlu0 %1628 }
 0x1a7   :  { %12880 = vst [vmem:[#allocation68_spill] sm:$0xff] %v8286_v38 }
 0x1a9   :  { %v8288_v6 = vpop.permute.xlu1 %1640 }
 0x1aa   :  { %12881 = vst [vmem:[#allocation69_spill] sm:$0xff] %v8288_v6  ;;  %v8290_v36 = vpop.permute.xlu0 %1636 }
 0x1ab   :  { %12882 = vst [vmem:[#allocation70_spill] sm:$0xff] %v8290_v36 }
 0x1ad   :  { %v8292_v32 = vpop.permute.xlu1 %1648 }
 0x1ae   :  { %12883 = vst [vmem:[#allocation71_spill] sm:$0xff] %v8292_v32  ;;  %v8294_v30 = vpop.permute.xlu0 %1644 }
 0x1af   :  { %12884 = vst [vmem:[#allocation72_spill] sm:$0xff] %v8294_v30 }
 0x1b1   :  { %v8296_v15 = vpop.permute.xlu1 %1656 }
 0x1b2   :  { %12885 = vst [vmem:[#allocation73_spill] sm:$0xff] %v8296_v15  ;;  %v8298_v9 = vpop.permute.xlu0 %1652 }
 0x1b3   :  { %12886 = vst [vmem:[#allocation74_spill] sm:$0xff] %v8298_v9 }
 0x1b5   :  { %v8300_v28 = vpop.permute.xlu1 %1664 }
 0x1b6   :  { %12887 = vst [vmem:[#allocation75_spill] sm:$0xff] %v8300_v28  ;;  %v8302_v34 = vpop.permute.xlu0 %1660 }
 0x1b7   :  { %12888 = vst [vmem:[#allocation76_spill] sm:$0xff] %v8302_v34 }
 0x1b9   :  { %v8304_v41 = vpop.permute.xlu1 %1675 }
 0x1ba   :  { %12889 = vst [vmem:[#allocation77_spill] sm:$0xff] %v8304_v41  ;;  %v8306_v35 = vpop.permute.xlu0 %1671 }
 0x1bb   :  { %12890 = vst [vmem:[#allocation78_spill] sm:$0xff] %v8306_v35 }
 0x1bd   :  { %v8308_v38 = vpop.permute.xlu1 %1683 }
 0x1be   :  { %12891 = vst [vmem:[#allocation79_spill] sm:$0xff] %v8308_v38  ;;  %v8310_v6 = vpop.permute.xlu0 %1679 }
 0x1bf   :  { %12892 = vst [vmem:[#allocation80_spill] sm:$0xff] %v8310_v6 }
 0x1c1   :  { %v8312_v36 = vpop.permute.xlu1 %1691 }
 0x1c2   :  { %12893 = vst [vmem:[#allocation81_spill] sm:$0xff] %v8312_v36  ;;  %v8314_v32 = vpop.permute.xlu0 %1687  ;;  %v926_v36 = vunpack.c.0.s8 %v925_v27 }
 0x1c3   :  { %12894 = vst [vmem:[#allocation82_spill] sm:$0xff] %v8314_v32 }
 0x1c4   :  { %v8333_v32 = vsub.s32 %v926_v36, %v8119_v40 }
 0x1c5   :  { %v8316_v30 = vpop.permute.xlu1 %1699 }
 0x1c6   :  { %12895 = vst [vmem:[#allocation83_spill] sm:$0xff] %v8316_v30  ;;  %v8318_v15 = vpop.permute.xlu0 %1695 }
 0x1c7   :  { %12896 = vst [vmem:[#allocation84_spill] sm:$0xff] %v8318_v15 }
 0x1c9   :  { %v8320_v9 = vpop.permute.xlu1 %1707 }
 0x1ca   :  { %12897 = vst [vmem:[#allocation85_spill] sm:$0xff] %v8320_v9  ;;  %v8322_v28 = vpop.permute.xlu0 %1703 }
 0x1cb   :  { %12898 = vst [vmem:[#allocation86_spill] sm:$0xff] %v8322_v28 }
 0x1cd   :  { %v8324_v34 = vpop.permute.xlu1 %1715 }
 0x1ce   :  { %12899 = vst [vmem:[#allocation87_spill] sm:$0xff] %v8324_v34  ;;  %v8326_v22 = vpop.permute.xlu0 %1711 }
 0x1cf   :  { %12900 = vst [vmem:[#allocation88_spill] sm:$0xff] %v8326_v22  ;;  %v794_v22 = vld [vmem:[#allocation7] sm:$0xff] }
 0x1d1   :  { %v8328_v38 = vpop.permute.xlu1 %1723 }
 0x1d2   :  { %12901 = vst [vmem:[#allocation89_spill] sm:$0xff] %v8328_v38  ;;  %v8330_v41 = vpop.permute.xlu0 %1719 }
 0x1d3   :  { %12902 = vst [vmem:[#allocation90_spill] sm:$0xff] %v8330_v41 }
 0x1d5   :  { %v8335_v30 = vpop.permute.xlu1 %1731 }
 0x1d6   :  { %12903 = vst [vmem:[#allocation91_spill] sm:$0xff] %v8335_v30  ;;  %v8337_v15 = vpop.permute.xlu0 %1727 }
 0x1d7   :  { %12904 = vst [vmem:[#allocation92_spill] sm:$0xff] %v8337_v15  ;;  %v796_v15 = vld [vmem:[#allocation7 + $0x10] sm:$0xff] }
 0x1d9   :  { %v8346_v27 = vpop.permute.xlu1 %1742 }
 0x1da   :  { %12906 = vst [vmem:[#allocation94_spill] sm:$0xff] %v8346_v27  ;;  %v8348_v36 = vpop.permute.xlu0 %1738 }
 0x1db   :  { %12907 = vst [vmem:[#allocation95_spill] sm:$0xff] %v8348_v36 }
 0x1dd   :  { %v8358_v27 = vpop.permute.xlu1 %1750 }
 0x1de   :  { %12908 = vst [vmem:[#allocation96_spill] sm:$0xff] %v8358_v27  ;;  %v8360_v36 = vpop.permute.xlu0 %1746  ;;  %v803_v27 = vld [vmem:[#allocation7 + $0x48] sm:$0xff] }
 0x1df   :  { %12909 = vst [vmem:[#allocation97_spill] sm:$0xff] %v8360_v36  ;;  %v802_v36 = vld [vmem:[#allocation7 + $0x40] sm:$0xff] }
 0x253   :  { %v787_v9 = vpop.f32.mrf.mxu0 }
 0x254   :  { %v923_v28 = vcombine.high %v787_v9, %v787_v9  ;;  %v930_v34 = vrot.slane %v787_v9, %v8333_v32 }
 0x255   :  { %v8340_v6 = vpop.f32.mrf.mxu0 }
 0x256   :  { %12905 = vst [vmem:[#allocation93_spill] sm:$0xff] %v8340_v6  ;;  %v937_v31 = vrot.slane %v923_v28, %v8333_v32  ;;  %v8344_v38 = vrot.slane %v930_v34, %v8333_v32 }
 0x257   :  { %v791_v41 = vpop.f32.mrf.mxu0 }
 0x258   :  { %v939_v40 = vcombine.high %v937_v31, %v937_v31  ;;  %v8351_v30 = vrot.slane %v937_v31, %v8333_v32  ;;  %v975_v9 = vrot.slane %v8344_v38, %v8122_v47  ;;  %v797_v41 = vld [vmem:[#allocation7 + $0x18] sm:$0xff] }
 0x259   :  { %v792_v6 = vpop.f32.mrf.mxu0 }
 0x25a   :  { %v8356_v28 = vrot.slane %v939_v40, %v8333_v32  ;;  %v1014_v19 = vmul.f32 %v975_v9, %v796_v15  ;;  %v1012_v35 = vmul.f32 %v975_v9, %v794_v22  ;;  %v1015_v31 = vmul.f32 %v975_v9, %v797_v41  ;;  %v8362_v40 = vpop.permute.xlu1 %1758  ;;  %v8364_v15 = vpop.permute.xlu0 %1754  ;;  %v801_v22 = vld [vmem:[#allocation7 + $0x38] sm:$0xff] }
 0x25b   :  { %v1013_v20 = vmul.f32 %v975_v9, %v795_v16  ;;  %v1017_v6 = vmul.f32 %v975_v9, %v799_v13  ;;  %v1016_v11 = vmul.f32 %v975_v9, %v798_v17  ;;  %12910 = vst [vmem:[#allocation98_spill] sm:$0xff] %v8362_v40  ;;  %12911 = vst [vmem:[#allocation99_spill] sm:$0xff] %v8364_v15 }
 0x25c   :  { %1144 = vadd.xlane.f32.xlu1 %v1014_v19  ;;  %1140 = vadd.xlane.f32.xlu0 %v1012_v35  ;;  %v1019_v35 = vmul.f32 %v975_v9, %v801_v22  ;;  %v1018_v19 = vmul.f32 %v975_v9, %v800_v14  ;;  %v1021_v13 = vmul.f32 %v975_v9, %v803_v27  ;;  %v807_v22 = vld [vmem:[#allocation7 + $0x68] sm:$0xff] }
 0x25d   :  { %v1020_v17 = vmul.f32 %v975_v9, %v802_v36  ;;  %v938_v40 = vcombine.high %v930_v34, %v930_v34  ;;  %v1025_v27 = vmul.f32 %v975_v9, %v807_v22 }
 0x25e   :  { %v8366_v16 = vpop.permute.xlu1 %1766  ;;  %v8368_v41 = vpop.permute.xlu0 %1762 }
 0x25f   :  { %12912 = vst [vmem:[#allocation100_spill] sm:$0xff] %v8366_v16  ;;  %12913 = vst [vmem:[#allocation101_spill] sm:$0xff] %v8368_v41  ;;  %v809_v16 = vld [vmem:[#allocation7 + $0x78] sm:$0xff]  ;;  %v808_v41 = vld [vmem:[#allocation7 + $0x70] sm:$0xff] }
 0x260   :  { %1146 = vadd.xlane.f32.xlu1 %v1015_v31  ;;  %1142 = vadd.xlane.f32.xlu0 %v1013_v20  ;;  %v805_v20 = vld [vmem:[#allocation7 + $0x58] sm:$0xff]  ;;  %v804_v31 = vld [vmem:[#allocation7 + $0x50] sm:$0xff] }
 0x261   :  { %v1023_v15 = vmul.f32 %v975_v9, %v805_v20  ;;  %v1027_v20 = vmul.f32 %v975_v9, %v809_v16 }
 0x262   :  { %v8372_v14 = vpop.permute.xlu0 %1770 }
 0x263   :  { %12915 = vst [vmem:[#allocation103_spill] sm:$0xff] %v8372_v14  ;;  %v814_v14 = vld [vmem:[#allocation7 + $0xa0] sm:$0xff] }
 0x264   :  { %1150 = vadd.xlane.f32.xlu1 %v1017_v6  ;;  %1148 = vadd.xlane.f32.xlu0 %v1016_v11  ;;  %v1022_v6 = vmul.f32 %v975_v9, %v804_v31  ;;  %v8370_v11 = vpop.permute.xlu1 %1774  ;;  %v1026_v31 = vmul.f32 %v975_v9, %v808_v41 }
 0x265   :  { %12914 = vst [vmem:[#allocation102_spill] sm:$0xff] %v8370_v11 }
 0x268   :  { %1154 = vadd.xlane.f32.xlu1 %v1019_v35  ;;  %1152 = vadd.xlane.f32.xlu0 %v1018_v19  ;;  %v806_v35 = vld [vmem:[#allocation7 + $0x60] sm:$0xff]  ;;  %v8375_v19 = vrot.slane %v938_v40, %v8333_v32  ;;  %v8377_v34 = vpop.permute.xlu1 %1782 }
 0x269   :  { %v1024_v36 = vmul.f32 %v975_v9, %v806_v35  ;;  %12916 = vst [vmem:[#allocation104_spill] sm:$0xff] %v8377_v34 }
 0x26c   :  { %1158 = vadd.xlane.f32.xlu1 %v1021_v13  ;;  %1156 = vadd.xlane.f32.xlu0 %v1020_v17  ;;  %v8379_v13 = vpop.permute.xlu0 %1778  ;;  %v979_v17 = vrot.slane %v8375_v19, %v8122_v47  ;;  %v8383_v22 = vpop.permute.xlu1 %1790 }
 0x26d   :  { %12917 = vst [vmem:[#allocation105_spill] sm:$0xff] %v8379_v13  ;;  %12918 = vst [vmem:[#allocation106_spill] sm:$0xff] %v8383_v22  ;;  %v815_v13 = vld [vmem:[#allocation7 + $0xa8] sm:$0xff] }
 0x26e   :  { %v1033_v41 = vmul.f32 %v979_v17, %v815_v13 }
 0x270   :  { %1162 = vadd.xlane.f32.xlu1 %v1023_v15  ;;  %1160 = vadd.xlane.f32.xlu0 %v1022_v6  ;;  %v811_v15 = vld [vmem:[#allocation7 + $0x88] sm:$0xff]  ;;  %v810_v6 = vld [vmem:[#allocation7 + $0x80] sm:$0xff]  ;;  %v8385_v35 = vpop.permute.xlu0 %1786  ;;  %v8387_v9 = vpop.permute.xlu1 %1798 }
 0x271   :  { %v1029_v32 = vmul.f32 %v979_v17, %v811_v15  ;;  %v1028_v40 = vmul.f32 %v979_v17, %v810_v6  ;;  %12919 = vst [vmem:[#allocation107_spill] sm:$0xff] %v8385_v35  ;;  %12920 = vst [vmem:[#allocation108_spill] sm:$0xff] %v8387_v9  ;;  %v816_v15 = vld [vmem:[#allocation7 + $0xb0] sm:$0xff]  ;;  %v821_v9 = vld [vmem:[#allocation7 + $0xd8] sm:$0xff] }
 0x272   :  { %v1034_v22 = vmul.f32 %v979_v17, %v816_v15  ;;  %v822_v15 = vld [vmem:[#allocation7 + $0xe0] sm:$0xff] }
 0x274   :  { %1166 = vadd.xlane.f32.xlu1 %v1025_v27  ;;  %1164 = vadd.xlane.f32.xlu0 %v1024_v36  ;;  %v813_v27 = vld [vmem:[#allocation7 + $0x98] sm:$0xff]  ;;  %v812_v36 = vld [vmem:[#allocation7 + $0x90] sm:$0xff]  ;;  %v8389_v16 = vpop.permute.xlu0 %1794 }
 0x275   :  { %v1031_v34 = vmul.f32 %v979_v17, %v813_v27  ;;  %v1030_v11 = vmul.f32 %v979_v17, %v812_v36  ;;  %12921 = vst [vmem:[#allocation109_spill] sm:$0xff] %v8389_v16  ;;  %v819_v27 = vld [vmem:[#allocation7 + $0xc8] sm:$0xff]  ;;  %v818_v36 = vld [vmem:[#allocation7 + $0xc0] sm:$0xff]  ;;  %v820_v16 = vld [vmem:[#allocation7 + $0xd0] sm:$0xff] }
 0x278   :  { %1170 = vadd.xlane.f32.xlu1 %v1027_v20  ;;  %1168 = vadd.xlane.f32.xlu0 %v1026_v31  ;;  %v1032_v20 = vmul.f32 %v979_v17, %v814_v14  ;;  %v817_v31 = vld [vmem:[#allocation7 + $0xb8] sm:$0xff] }
 0x279   :  { %v1035_v6 = vmul.f32 %v979_v17, %v817_v31  ;;  %v823_v31 = vld [vmem:[#allocation7 + $0xe8] sm:$0xff] }
 0x27c   :  { %1174 = vadd.xlane.f32.xlu1 %v1029_v32  ;;  %1172 = vadd.xlane.f32.xlu0 %v1028_v40  ;;  %v8391_v32 = vpop.permute.xlu1 %1809  ;;  %v8393_v40 = vpop.permute.xlu0 %1805 }
 0x27d   :  { %12922 = vst [vmem:[#allocation110_spill] sm:$0xff] %v8391_v32  ;;  %12923 = vst [vmem:[#allocation111_spill] sm:$0xff] %v8393_v40 }
 0x280   :  { %1178 = vadd.xlane.f32.xlu1 %v1031_v34  ;;  %1176 = vadd.xlane.f32.xlu0 %v1030_v11  ;;  %v1037_v11 = vmul.f32 %v979_v17, %v819_v27  ;;  %v1036_v34 = vmul.f32 %v979_v17, %v818_v36  ;;  %v8395_v14 = vpop.permute.xlu1 %1817  ;;  %v8397_v13 = vpop.permute.xlu0 %1813  ;;  %v1040_v27 = vmul.f32 %v979_v17, %v822_v15 }
 0x281   :  { %12924 = vst [vmem:[#allocation112_spill] sm:$0xff] %v8395_v14  ;;  %12925 = vst [vmem:[#allocation113_spill] sm:$0xff] %v8397_v13  ;;  %v827_v13 = vld [vmem:[#allocation7 + $0x108] sm:$0xff] }
 0x284   :  { %1182 = vadd.xlane.f32.xlu1 %v1033_v41  ;;  %1180 = vadd.xlane.f32.xlu0 %v1032_v20  ;;  %v1039_v41 = vmul.f32 %v979_v17, %v821_v9  ;;  %v1038_v20 = vmul.f32 %v979_v17, %v820_v16  ;;  %v8401_v36 = vpop.permute.xlu1 %1825  ;;  %v8403_v32 = vpop.permute.xlu0 %1821 }
 0x285   :  { %12926 = vst [vmem:[#allocation114_spill] sm:$0xff] %v8401_v36  ;;  %12927 = vst [vmem:[#allocation115_spill] sm:$0xff] %v8403_v32  ;;  %v829_v36 = vld [vmem:[#allocation7 + $0x118] sm:$0xff]  ;;  %v828_v32 = vld [vmem:[#allocation7 + $0x110] sm:$0xff] }
 0x288   :  { %1186 = vadd.xlane.f32.xlu1 %v1035_v6  ;;  %1184 = vadd.xlane.f32.xlu0 %v1034_v22  ;;  %v968_v6 = vcombine.high %v8344_v38, %v8344_v38  ;;  %v1041_v22 = vmul.f32 %v979_v17, %v823_v31  ;;  %v8408_v38 = vpop.permute.xlu0 %1829 }
 0x289   :  { %12929 = vst [vmem:[#allocation117_spill] sm:$0xff] %v8408_v38  ;;  %v856_v38 = vld [vmem:[#allocation7 + $0x1f0] sm:$0xff] }
 0x28a   :  { %v983_v9 = vrot.slane %v968_v6, %v8122_v47 }
 0x28c   :  { %1190 = vadd.xlane.f32.xlu1 %v1037_v11  ;;  %1188 = vadd.xlane.f32.xlu0 %v1036_v34  ;;  %v825_v11 = vld [vmem:[#allocation7 + $0xf8] sm:$0xff]  ;;  %v824_v34 = vld [vmem:[#allocation7 + $0xf0] sm:$0xff]  ;;  %v1045_v31 = vmul.f32 %v983_v9, %v827_v13  ;;  %v8412_v6 = vpop.permute.xlu0 %1837 }
 0x28d   :  { %v1043_v16 = vmul.f32 %v979_v17, %v825_v11  ;;  %v1042_v14 = vmul.f32 %v979_v17, %v824_v34  ;;  %12931 = vst [vmem:[#allocation119_spill] sm:$0xff] %v8412_v6  ;;  %v831_v17 = vld [vmem:[#allocation7 + $0x128] sm:$0xff]  ;;  %v830_v11 = vld [vmem:[#allocation7 + $0x120] sm:$0xff] }
 0x28e   :  { %v1048_v34 = vmul.f32 %v983_v9, %v830_v11  ;;  %v836_v11 = vld [vmem:[#allocation7 + $0x150] sm:$0xff] }
 0x290   :  { %1194 = vadd.xlane.f32.xlu1 %v1039_v41  ;;  %1192 = vadd.xlane.f32.xlu0 %v1038_v20  ;;  %v826_v41 = vld [vmem:[#allocation7 + $0x100] sm:$0xff]  ;;  %v8406_v20 = vpop.permute.xlu1 %1833 }
 0x291   :  { %12928 = vst [vmem:[#allocation116_spill] sm:$0xff] %v8406_v20  ;;  %v1044_v15 = vmul.f32 %v983_v9, %v826_v41  ;;  %v832_v20 = vld [vmem:[#allocation7 + $0x130] sm:$0xff]  ;;  %v8416_v41 = vpop.permute.xlu0 %1845 }
 0x292   :  { %12933 = vst [vmem:[#allocation121_spill] sm:$0xff] %v8416_v41  ;;  %v838_v41 = vld [vmem:[#allocation7 + $0x160] sm:$0xff] }
 0x294   :  { %1198 = vadd.xlane.f32.xlu1 %v1041_v22  ;;  %1196 = vadd.xlane.f32.xlu0 %v1040_v27  ;;  %v1047_v22 = vmul.f32 %v983_v9, %v829_v36  ;;  %v1046_v27 = vmul.f32 %v983_v9, %v828_v32  ;;  %v8410_v40 = vpop.permute.xlu1 %1841  ;;  %v1050_v32 = vmul.f32 %v983_v9, %v832_v20 }
 0x295   :  { %12930 = vst [vmem:[#allocation118_spill] sm:$0xff] %v8410_v40 }
 0x298   :  { %1202 = vadd.xlane.f32.xlu1 %v1043_v16  ;;  %1200 = vadd.xlane.f32.xlu0 %v1042_v14  ;;  %v1049_v14 = vmul.f32 %v983_v9, %v831_v17  ;;  %v833_v16 = vld [vmem:[#allocation7 + $0x138] sm:$0xff]  ;;  %v8414_v13 = vpop.permute.xlu1 %1849 }
 0x299   :  { %12932 = vst [vmem:[#allocation120_spill] sm:$0xff] %v8414_v13  ;;  %v1051_v36 = vmul.f32 %v983_v9, %v833_v16  ;;  %v837_v17 = vld [vmem:[#allocation7 + $0x158] sm:$0xff]  ;;  %v839_v13 = vld [vmem:[#allocation7 + $0x168] sm:$0xff] }
 0x29c   :  { %1206 = vadd.xlane.f32.xlu1 %v1045_v31  ;;  %1204 = vadd.xlane.f32.xlu0 %v1044_v15  ;;  %v835_v31 = vld [vmem:[#allocation7 + $0x148] sm:$0xff]  ;;  %v834_v15 = vld [vmem:[#allocation7 + $0x140] sm:$0xff] }
 0x29d   :  { %v1053_v40 = vmul.f32 %v983_v9, %v835_v31  ;;  %v1052_v6 = vmul.f32 %v983_v9, %v834_v15  ;;  %v841_v31 = vld [vmem:[#allocation7 + $0x178] sm:$0xff]  ;;  %v840_v15 = vld [vmem:[#allocation7 + $0x170] sm:$0xff] }
 0x2a0   :  { %1210 = vadd.xlane.f32.xlu1 %v1047_v22  ;;  %1208 = vadd.xlane.f32.xlu0 %v1046_v27  ;;  %v8418_v22 = vpop.permute.xlu1 %1857  ;;  %v8420_v27 = vpop.permute.xlu0 %1853 }
 0x2a1   :  { %12934 = vst [vmem:[#allocation122_spill] sm:$0xff] %v8418_v22  ;;  %12935 = vst [vmem:[#allocation123_spill] sm:$0xff] %v8420_v27 }
 0x2a4   :  { %1214 = vadd.xlane.f32.xlu1 %v1049_v14  ;;  %1212 = vadd.xlane.f32.xlu0 %v1048_v34  ;;  %v1055_v14 = vmul.f32 %v983_v9, %v837_v17  ;;  %v1054_v34 = vmul.f32 %v983_v9, %v836_v11  ;;  %v8422_v20 = vpop.permute.xlu1 %1865  ;;  %v8424_v16 = vpop.permute.xlu0 %1861  ;;  %v1058_v17 = vmul.f32 %v983_v9, %v840_v15 }
 0x2a5   :  { %12936 = vst [vmem:[#allocation124_spill] sm:$0xff] %v8422_v20  ;;  %12937 = vst [vmem:[#allocation125_spill] sm:$0xff] %v8424_v16  ;;  %v858_v20 = vld [vmem:[#allocation7 + $0x200] sm:$0xff] }
 0x2a6   :  { %v854_v16 = vld [vmem:[#allocation7 + $0x1e0] sm:$0xff] }
 0x2a8   :  { %1218 = vadd.xlane.f32.xlu1 %v1051_v36  ;;  %1216 = vadd.xlane.f32.xlu0 %v1050_v32  ;;  %v1057_v36 = vmul.f32 %v983_v9, %v839_v13  ;;  %v1056_v32 = vmul.f32 %v983_v9, %v838_v41  ;;  %v8430_v11 = vpop.permute.xlu1 %1876 }
 0x2a9   :  { %12938 = vst [vmem:[#allocation126_spill] sm:$0xff] %v8430_v11  ;;  %v863_v11 = vld [vmem:[#allocation7 + $0x228] sm:$0xff] }
 0x2ac   :  { %1222 = vadd.xlane.f32.xlu1 %v1053_v40  ;;  %1220 = vadd.xlane.f32.xlu0 %v1052_v6  ;;  %v8428_v40 = vrot.slane %v8351_v30, %v8122_v47  ;;  %v1059_v6 = vmul.f32 %v983_v9, %v841_v31  ;;  %v8436_v22 = vpop.permute.xlu1 %1884 }
 0x2ad   :  { %12940 = vst [vmem:[#allocation128_spill] sm:$0xff] %v8436_v22  ;;  %v867_v22 = vld [vmem:[#allocation7 + $0x248] sm:$0xff] }
 0x2ae   :  { %v1076_v41 = vmul.f32 %v8428_v40, %v858_v20 }
 0x2b0   :  { %1226 = vadd.xlane.f32.xlu1 %v1055_v14  ;;  %1224 = vadd.xlane.f32.xlu0 %v1054_v34  ;;  %v8432_v14 = vpop.permute.xlu0 %1872  ;;  %v859_v34 = vld [vmem:[#allocation7 + $0x208] sm:$0xff] }
 0x2b1   :  { %12939 = vst [vmem:[#allocation127_spill] sm:$0xff] %v8432_v14  ;;  %v1077_v13 = vmul.f32 %v8428_v40, %v859_v34  ;;  %v862_v14 = vld [vmem:[#allocation7 + $0x220] sm:$0xff] }
 0x2b2   :  { %v1080_v20 = vmul.f32 %v8428_v40, %v862_v14  ;;  %v1085_v14 = vmul.f32 %v8428_v40, %v867_v22  ;;  %v970_v22 = vcombine.high %v8375_v19, %v8375_v19  ;;  %v843_v19 = vld [vmem:[#allocation7 + $0x188] sm:$0xff] }
 0x2b4   :  { %1230 = vadd.xlane.f32.xlu1 %v1057_v36  ;;  %1228 = vadd.xlane.f32.xlu0 %v1056_v32  ;;  %v861_v36 = vld [vmem:[#allocation7 + $0x218] sm:$0xff]  ;;  %v860_v32 = vld [vmem:[#allocation7 + $0x210] sm:$0xff]  ;;  %v8438_v31 = vpop.permute.xlu0 %1880 }
 0x2b5   :  { %12941 = vst [vmem:[#allocation129_spill] sm:$0xff] %v8438_v31  ;;  %v1079_v9 = vmul.f32 %v8428_v40, %v861_v36  ;;  %v1078_v15 = vmul.f32 %v8428_v40, %v860_v32  ;;  %v866_v31 = vld [vmem:[#allocation7 + $0x240] sm:$0xff] }
 0x2b8   :  { %1234 = vadd.xlane.f32.xlu1 %v1059_v6  ;;  %1232 = vadd.xlane.f32.xlu0 %v1058_v17  ;;  %v1081_v6 = vmul.f32 %v8428_v40, %v863_v11  ;;  %v8444_v17 = vpop.permute.xlu1 %1892  ;;  %v8446_v34 = vpop.permute.xlu0 %1888 }
 0x2b9   :  { %12942 = vst [vmem:[#allocation130_spill] sm:$0xff] %v8444_v17  ;;  %12943 = vst [vmem:[#allocation131_spill] sm:$0xff] %v8446_v34  ;;  %v869_v17 = vld [vmem:[#allocation7 + $0x258] sm:$0xff]  ;;  %v868_v34 = vld [vmem:[#allocation7 + $0x250] sm:$0xff] }
 0x2bc   :  { %1270 = vadd.xlane.f32.xlu1 %v1077_v13  ;;  %1268 = vadd.xlane.f32.xlu0 %v1076_v41  ;;  %v865_v13 = vld [vmem:[#allocation7 + $0x238] sm:$0xff]  ;;  %v864_v41 = vld [vmem:[#allocation7 + $0x230] sm:$0xff]  ;;  %v8452_v11 = vpop.permute.xlu0 %1896 }
 0x2bd   :  { %v1083_v36 = vmul.f32 %v8428_v40, %v865_v13  ;;  %v1082_v32 = vmul.f32 %v8428_v40, %v864_v41  ;;  %12945 = vst [vmem:[#allocation133_spill] sm:$0xff] %v8452_v11 }
 0x2c0   :  { %1274 = vadd.xlane.f32.xlu1 %v1079_v9  ;;  %1272 = vadd.xlane.f32.xlu0 %v1078_v15  ;;  %v8450_v9 = vpop.permute.xlu1 %1900  ;;  %v1084_v15 = vmul.f32 %v8428_v40, %v866_v31  ;;  %v8460_v41 = vpop.permute.xlu0 %1904 }
 0x2c1   :  { %12944 = vst [vmem:[#allocation132_spill] sm:$0xff] %v8450_v9  ;;  %12947 = vst [vmem:[#allocation135_spill] sm:$0xff] %v8460_v41  ;;  %v872_v9 = vld [vmem:[#allocation7 + $0x270] sm:$0xff]  ;;  %v842_v41 = vld [vmem:[#allocation7 + $0x180] sm:$0xff] }
 0x2c4   :  { %1278 = vadd.xlane.f32.xlu1 %v1081_v6  ;;  %1276 = vadd.xlane.f32.xlu0 %v1080_v20  ;;  %v1087_v6 = vmul.f32 %v8428_v40, %v869_v17  ;;  %v1086_v20 = vmul.f32 %v8428_v40, %v868_v34  ;;  %v8458_v13 = vpop.permute.xlu1 %1908  ;;  %v8468_v34 = vpop.permute.xlu0 %1912 }
 0x2c5   :  { %12946 = vst [vmem:[#allocation134_spill] sm:$0xff] %v8458_v13  ;;  %12949 = vst [vmem:[#allocation137_spill] sm:$0xff] %v8468_v34  ;;  %v8471_v13 = vrot.slane %v970_v22, %v8122_v47  ;;  %v844_v34 = vld [vmem:[#allocation7 + $0x190] sm:$0xff] }
 0x2c8   :  { %1282 = vadd.xlane.f32.xlu1 %v1083_v36  ;;  %1280 = vadd.xlane.f32.xlu0 %v1082_v32  ;;  %v871_v36 = vld [vmem:[#allocation7 + $0x268] sm:$0xff]  ;;  %v870_v32 = vld [vmem:[#allocation7 + $0x260] sm:$0xff]  ;;  %v8466_v17 = vpop.permute.xlu1 %1916 }
 0x2c9   :  { %v1089_v31 = vmul.f32 %v8428_v40, %v871_v36  ;;  %12948 = vst [vmem:[#allocation136_spill] sm:$0xff] %v8466_v17  ;;  %v1061_v36 = vmul.f32 %v8471_v13, %v843_v19  ;;  %v845_v17 = vld [vmem:[#allocation7 + $0x198] sm:$0xff] }
 0x2ca   :  { %v1063_v22 = vmul.f32 %v8471_v13, %v845_v17 }
 0x2cc   :  { %1286 = vadd.xlane.f32.xlu1 %v1085_v14  ;;  %1284 = vadd.xlane.f32.xlu0 %v1084_v15  ;;  %v1088_v14 = vmul.f32 %v8428_v40, %v870_v32  ;;  %v873_v15 = vld [vmem:[#allocation7 + $0x278] sm:$0xff]  ;;  %v1060_v32 = vmul.f32 %v8471_v13, %v842_v41 }
 0x2d0   :  { %1290 = vadd.xlane.f32.xlu1 %v1087_v6  ;;  %1288 = vadd.xlane.f32.xlu0 %v1086_v20  ;;  %v1091_v6 = vmul.f32 %v8428_v40, %v873_v15  ;;  %v1090_v20 = vmul.f32 %v8428_v40, %v872_v9  ;;  %v1062_v40 = vmul.f32 %v8471_v13, %v844_v34  ;;  %v847_v9 = vld [vmem:[#allocation7 + $0x1a8] sm:$0xff]  ;;  %v846_v15 = vld [vmem:[#allocation7 + $0x1a0] sm:$0xff] }
 0x2d1   :  { %v1065_v41 = vmul.f32 %v8471_v13, %v847_v9  ;;  %v1064_v19 = vmul.f32 %v8471_v13, %v846_v15 }
 0x2d4   :  { %1294 = vadd.xlane.f32.xlu1 %v1089_v31  ;;  %1292 = vadd.xlane.f32.xlu0 %v1088_v14  ;;  %v8477_v31 = vpop.permute.xlu1 %1924  ;;  %v8479_v14 = vpop.permute.xlu0 %1920 }
 0x2d5   :  { %12950 = vst [vmem:[#allocation138_spill] sm:$0xff] %v8477_v31  ;;  %12951 = vst [vmem:[#allocation139_spill] sm:$0xff] %v8479_v14  ;;  %v849_v31 = vld [vmem:[#allocation7 + $0x1b8] sm:$0xff]  ;;  %v848_v14 = vld [vmem:[#allocation7 + $0x1b0] sm:$0xff] }
 0x2d6   :  { %v1067_v34 = vmul.f32 %v8471_v13, %v849_v31 }
 0x2d8   :  { %1298 = vadd.xlane.f32.xlu1 %v1091_v6  ;;  %1296 = vadd.xlane.f32.xlu0 %v1090_v20  ;;  %v8483_v6 = vpop.permute.xlu1 %1932  ;;  %v8485_v20 = vpop.permute.xlu0 %1928 }
 0x2d9   :  { %12952 = vst [vmem:[#allocation140_spill] sm:$0xff] %v8483_v6  ;;  %12953 = vst [vmem:[#allocation141_spill] sm:$0xff] %v8485_v20  ;;  %v852_v20 = vld [vmem:[#allocation7 + $0x1d0] sm:$0xff] }
 0x2dc   :  { %1238 = vadd.xlane.f32.xlu1 %v1061_v36  ;;  %1236 = vadd.xlane.f32.xlu0 %v1060_v32  ;;  %v1066_v32 = vmul.f32 %v8471_v13, %v848_v14 }
 0x2e0   :  { %1242 = vadd.xlane.f32.xlu1 %v1063_v22  ;;  %1240 = vadd.xlane.f32.xlu0 %v1062_v40  ;;  %v851_v22 = vld [vmem:[#allocation7 + $0x1c8] sm:$0xff]  ;;  %v850_v40 = vld [vmem:[#allocation7 + $0x1c0] sm:$0xff] }
 0x2e1   :  { %v1069_v15 = vmul.f32 %v8471_v13, %v851_v22 }
 0x2e4   :  { %1246 = vadd.xlane.f32.xlu1 %v1065_v41  ;;  %1244 = vadd.xlane.f32.xlu0 %v1064_v19  ;;  %v1068_v41 = vmul.f32 %v8471_v13, %v850_v40  ;;  %v853_v19 = vld [vmem:[#allocation7 + $0x1d8] sm:$0xff] }
 0x2e5   :  { %v8489_v36 = vpop.xlane.xlu1 %1144  ;;  %v8491_v17 = vpop.xlane.xlu0 %1140  ;;  %v1071_v14 = vmul.f32 %v8471_v13, %v853_v19 }
 0x2e8   :  { %1250 = vadd.xlane.f32.xlu1 %v1067_v34  ;;  %1248 = vadd.xlane.f32.xlu0 %v1066_v32  ;;  %v1070_v34 = vmul.f32 %v8471_v13, %v852_v20  ;;  %v855_v32 = vld [vmem:[#allocation7 + $0x1e8] sm:$0xff]  ;;  %v8519_v20 = vrot.slane %v8356_v28, %v8122_v47 }
 0x2e9   :  { %v8495_v6 = vpop.xlane.xlu1 %1146  ;;  %v8497_v9 = vpop.xlane.xlu0 %1142  ;;  %v1073_v40 = vmul.f32 %v8471_v13, %v855_v32  ;;  %v874_v32 = vld [vmem:[#allocation7 + $0x280] sm:$0xff] }
 0x2ea   :  { %v1092_v12 = vmul.f32 %v8519_v20, %v874_v32  ;;  %v1106_v46 = vmul.f32 %v8519_v20, %v888_v52 }
 0x2ec   :  { %1254 = vadd.xlane.f32.xlu1 %v1069_v15  ;;  %1252 = vadd.xlane.f32.xlu0 %v1068_v41  ;;  %v1072_v15 = vmul.f32 %v8471_v13, %v854_v16  ;;  %v857_v41 = vld [vmem:[#allocation7 + $0x1f8] sm:$0xff] }
 0x2ed   :  { %v8501_v11 = vpop.xlane.xlu1 %1150  ;;  %v8503_v31 = vpop.xlane.xlu0 %1148 }
 0x2f0   :  { %1258 = vadd.xlane.f32.xlu1 %v1071_v14  ;;  %1256 = vadd.xlane.f32.xlu0 %v1070_v34  ;;  %v1075_v14 = vmul.f32 %v8471_v13, %v857_v41  ;;  %v1074_v34 = vmul.f32 %v8471_v13, %v856_v38  ;;  %v1095_v38 = vmul.f32 %v8519_v20, %v877_v0 }
 0x2f1   :  { %v8507_v27 = vpop.xlane.xlu1 %1154  ;;  %v8509_v22 = vpop.xlane.xlu0 %1152  ;;  %v1094_v13 = vmul.f32 %v8519_v20, %v876_v10 }
 0x2f4   :  { %1262 = vadd.xlane.f32.xlu1 %v1073_v40  ;;  %1260 = vadd.xlane.f32.xlu0 %v1072_v15  ;;  %v1093_v15 = vmul.f32 %v8519_v20, %v875_v3 }
 0x2f5   :  { %v8513_v35 = vpop.xlane.xlu1 %1158  ;;  %v8515_v19 = vpop.xlane.xlu0 %1156 }
 0x2f8   :  { %1266 = vadd.xlane.f32.xlu1 %v1075_v14  ;;  %1264 = vadd.xlane.f32.xlu0 %v1074_v34  ;;  %v879_v14 = vld [vmem:[#allocation7 + $0x2a8] sm:$0xff]  ;;  %v878_v34 = vld [vmem:[#allocation7 + $0x2a0] sm:$0xff] }
 0x2f9   :  { %v8523_v16 = vpop.xlane.xlu1 %1162  ;;  %v8525_v40 = vpop.xlane.xlu0 %1160  ;;  %v1097_v32 = vmul.f32 %v8519_v20, %v879_v14 }
 0x2fc   :  { %1302 = vadd.xlane.f32.xlu1 %v1093_v15  ;;  %1300 = vadd.xlane.f32.xlu0 %v1092_v12  ;;  %v1096_v12 = vmul.f32 %v8519_v20, %v878_v34  ;;  %v881_v15 = vld [vmem:[#allocation7 + $0x2b8] sm:$0xff] }
 0x2fd   :  { %v8529_v61 = vpop.xlane.xlu1 %1166  ;;  %v8531_v41 = vpop.xlane.xlu0 %1164  ;;  %v1099_v10 = vmul.f32 %v8519_v20, %v881_v15 }
 0x300   :  { %1306 = vadd.xlane.f32.xlu1 %v1095_v38  ;;  %1304 = vadd.xlane.f32.xlu0 %v1094_v13  ;;  %v1098_v38 = vmul.f32 %v8519_v20, %v880_v58  ;;  %v883_v13 = vld [vmem:[#allocation7 + $0x2c8] sm:$0xff] }
 0x301   :  { %v8535_v2 = vpop.xlane.xlu1 %1170  ;;  %v8537_v3 = vpop.xlane.xlu0 %1168  ;;  %v1101_v34 = vmul.f32 %v8519_v20, %v883_v13 }
 0x304   :  { %1310 = vadd.xlane.f32.xlu1 %v1097_v32  ;;  %1308 = vadd.xlane.f32.xlu0 %v1096_v12  ;;  %v1100_v32 = vmul.f32 %v8519_v20, %v882_v56  ;;  %v885_v12 = vld [vmem:[#allocation7 + $0x2d8] sm:$0xff]  ;;  %v969_v56 = vcombine.high %v8351_v30, %v8351_v30  ;;  %v891_v30 = vld [vmem:[#allocation7 + $0x308] sm:$0xff] }
 0x305   :  { %v8541_v62 = vpop.xlane.xlu1 %1174  ;;  %v8543_v0 = vpop.xlane.xlu0 %1172  ;;  %v1103_v58 = vmul.f32 %v8519_v20, %v885_v12 }
 0x308   :  { %1314 = vadd.xlane.f32.xlu1 %v1099_v10  ;;  %1312 = vadd.xlane.f32.xlu0 %v1098_v38  ;;  %v1102_v10 = vmul.f32 %v8519_v20, %v884_v54  ;;  %v887_v38 = vld [vmem:[#allocation7 + $0x2e8] sm:$0xff] }
 0x309   :  { %v8547_v60 = vpop.xlane.xlu1 %1178  ;;  %v8549_v14 = vpop.xlane.xlu0 %1176 }
 0x30c   :  { %1318 = vadd.xlane.f32.xlu1 %v1101_v34  ;;  %1316 = vadd.xlane.f32.xlu0 %v1100_v32  ;;  %v1105_v34 = vmul.f32 %v8519_v20, %v887_v38  ;;  %v1104_v32 = vmul.f32 %v8519_v20, %v886_v50 }
 0x30d   :  { %v8553_v57 = vpop.xlane.xlu1 %1182  ;;  %v8555_v15 = vpop.xlane.xlu0 %1180 }
 0x310   :  { %1322 = vadd.xlane.f32.xlu1 %v1103_v58  ;;  %1320 = vadd.xlane.f32.xlu0 %v1102_v10  ;;  %v8572_v58 = vrot.slane %v969_v56, %v8122_v47  ;;  %v1107_v10 = vmul.f32 %v8519_v20, %v889_v53  ;;  %v895_v20 = vld [vmem:[#allocation7 + $0x328] sm:$0xff] }
 0x311   :  { %v8559_v55 = vpop.xlane.xlu1 %1186  ;;  %v8561_v13 = vpop.xlane.xlu0 %1184 }
 0x312   :  { %12954 = vst [vmem:[#allocation142_spill] sm:$0xff] %v8559_v55  ;;  %v890_v55 = vld [vmem:[#allocation7 + $0x300] sm:$0xff] }
 0x314   :  { %1326 = vadd.xlane.f32.xlu1 %v1105_v34  ;;  %1324 = vadd.xlane.f32.xlu0 %v1104_v32  ;;  %v1109_v34 = vmul.f32 %v8572_v58, %v891_v30  ;;  %v1108_v32 = vmul.f32 %v8572_v58, %v890_v55  ;;  %v1113_v55 = vmul.f32 %v8572_v58, %v895_v20 }
 0x315   :  { %v8567_v54 = vpop.xlane.xlu1 %1190  ;;  %v8569_v12 = vpop.xlane.xlu0 %1188 }
 0x316   :  { %12955 = vst [vmem:[#allocation143_spill] sm:$0xff] %v8567_v54  ;;  %v893_v54 = vld [vmem:[#allocation7 + $0x318] sm:$0xff] }
 0x317   :  { %v1111_v52 = vmul.f32 %v8572_v58, %v893_v54 }
 0x318   :  { %1330 = vadd.xlane.f32.xlu1 %v1107_v10  ;;  %1328 = vadd.xlane.f32.xlu0 %v1106_v46  ;;  %v1110_v46 = vmul.f32 %v8572_v58, %v892_v49  ;;  %v894_v10 = vld [vmem:[#allocation7 + $0x320] sm:$0xff] }
 0x319   :  { %v8576_v50 = vpop.xlane.xlu1 %1194  ;;  %v8578_v38 = vpop.xlane.xlu0 %1192 }
 0x31a   :  { %12956 = vst [vmem:[#allocation144_spill] sm:$0xff] %v8576_v50 }
 0x31c   :  { %1334 = vadd.xlane.f32.xlu1 %v1109_v34  ;;  %1332 = vadd.xlane.f32.xlu0 %v1108_v32  ;;  %v1112_v34 = vmul.f32 %v8572_v58, %v894_v10  ;;  %v897_v32 = vld [vmem:[#allocation7 + $0x338] sm:$0xff] }
 0x31d   :  { %v8582_v56 = vpop.xlane.xlu1 %1198  ;;  %v8584_v53 = vpop.xlane.xlu0 %1196  ;;  %v1115_v49 = vmul.f32 %v8572_v58, %v897_v32 }
 0x31e   :  { %12957 = vst [vmem:[#allocation145_spill] sm:$0xff] %v8582_v56  ;;  %12958 = vst [vmem:[#allocation146_spill] sm:$0xff] %v8584_v53  ;;  %v896_v56 = vld [vmem:[#allocation7 + $0x330] sm:$0xff] }
 0x320   :  { %1338 = vadd.xlane.f32.xlu1 %v1111_v52  ;;  %1336 = vadd.xlane.f32.xlu0 %v1110_v46  ;;  %v1114_v52 = vmul.f32 %v8572_v58, %v896_v56  ;;  %v899_v46 = vld [vmem:[#allocation7 + $0x348] sm:$0xff] }
 0x321   :  { %v8588_v50 = vpop.xlane.xlu1 %1202  ;;  %v8590_v30 = vpop.xlane.xlu0 %1200  ;;  %v1117_v10 = vmul.f32 %v8572_v58, %v899_v46 }
 0x322   :  { %12959 = vst [vmem:[#allocation147_spill] sm:$0xff] %v8588_v50  ;;  %12960 = vst [vmem:[#allocation148_spill] sm:$0xff] %v8590_v30  ;;  %v898_v50 = vld [vmem:[#allocation7 + $0x340] sm:$0xff] }
 0x324   :  { %1342 = vadd.xlane.f32.xlu1 %v1113_v55  ;;  %1340 = vadd.xlane.f32.xlu0 %v1112_v34  ;;  %v1116_v55 = vmul.f32 %v8572_v58, %v898_v50  ;;  %v901_v34 = vld [vmem:[#allocation7 + $0x358] sm:$0xff]  ;;  %v971_v50 = vcombine.high %v8356_v28, %v8356_v28  ;;  %v907_v28 = vld [vmem:[#allocation7 + $0x388] sm:$0xff] }
 0x325   :  { %v8594_v53 = vpop.xlane.xlu1 %1206  ;;  %v8596_v54 = vpop.xlane.xlu0 %1204  ;;  %v1119_v56 = vmul.f32 %v8572_v58, %v901_v34 }
 0x326   :  { %12961 = vst [vmem:[#allocation149_spill] sm:$0xff] %v8594_v53  ;;  %12962 = vst [vmem:[#allocation150_spill] sm:$0xff] %v8596_v54  ;;  %v900_v53 = vld [vmem:[#allocation7 + $0x350] sm:$0xff] }
 0x328   :  { %1346 = vadd.xlane.f32.xlu1 %v1115_v49  ;;  %1344 = vadd.xlane.f32.xlu0 %v1114_v52  ;;  %v1118_v49 = vmul.f32 %v8572_v58, %v900_v53  ;;  %v903_v52 = vld [vmem:[#allocation7 + $0x368] sm:$0xff] }
 0x329   :  { %v8600_v30 = vpop.xlane.xlu1 %1210  ;;  %v8602_v20 = vpop.xlane.xlu0 %1208 }
 0x32a   :  { %12963 = vst [vmem:[#allocation151_spill] sm:$0xff] %v8600_v30  ;;  %12964 = vst [vmem:[#allocation152_spill] sm:$0xff] %v8602_v20  ;;  %v902_v30 = vld [vmem:[#allocation7 + $0x360] sm:$0xff] }
 0x32c   :  { %1350 = vadd.xlane.f32.xlu1 %v1117_v10  ;;  %1348 = vadd.xlane.f32.xlu0 %v1116_v55  ;;  %v1121_v10 = vmul.f32 %v8572_v58, %v903_v52  ;;  %v1120_v55 = vmul.f32 %v8572_v58, %v902_v30 }
 0x32d   :  { %v8606_v54 = vpop.xlane.xlu1 %1214  ;;  %v8608_v32 = vpop.xlane.xlu0 %1212 }
 0x32e   :  { %12965 = vst [vmem:[#allocation153_spill] sm:$0xff] %v8606_v54  ;;  %12966 = vst [vmem:[#allocation154_spill] sm:$0xff] %v8608_v32  ;;  %v905_v54 = vld [vmem:[#allocation7 + $0x378] sm:$0xff]  ;;  %v904_v32 = vld [vmem:[#allocation7 + $0x370] sm:$0xff] }
 0x330   :  { %1354 = vadd.xlane.f32.xlu1 %v1119_v56  ;;  %1352 = vadd.xlane.f32.xlu0 %v1118_v49  ;;  %v8625_v56 = vrot.slane %v971_v50, %v8122_v47  ;;  %v1123_v49 = vmul.f32 %v8572_v58, %v905_v54 }
 0x331   :  { %v8612_v20 = vpop.xlane.xlu1 %1218  ;;  %v8614_v46 = vpop.xlane.xlu0 %1216 }
 0x332   :  { %12967 = vst [vmem:[#allocation155_spill] sm:$0xff] %v8612_v20  ;;  %12968 = vst [vmem:[#allocation156_spill] sm:$0xff] %v8614_v46  ;;  %v1122_v20 = vmul.f32 %v8572_v58, %v904_v32  ;;  %v906_v46 = vld [vmem:[#allocation7 + $0x380] sm:$0xff]  ;;  %v911_v32 = vld [vmem:[#allocation7 + $0x3a8] sm:$0xff] }
 0x334   :  { %1358 = vadd.xlane.f32.xlu1 %v1121_v10  ;;  %1356 = vadd.xlane.f32.xlu0 %v1120_v55  ;;  %v1125_v10 = vmul.f32 %v8625_v56, %v907_v28  ;;  %v1124_v55 = vmul.f32 %v8625_v56, %v906_v46  ;;  %v1129_v46 = vmul.f32 %v8625_v56, %v911_v32 }
 0x335   :  { %v8620_v53 = vpop.xlane.xlu1 %1222  ;;  %v8622_v34 = vpop.xlane.xlu0 %1220 }
 0x336   :  { %12969 = vst [vmem:[#allocation157_spill] sm:$0xff] %v8620_v53  ;;  %12970 = vst [vmem:[#allocation158_spill] sm:$0xff] %v8622_v34  ;;  %v909_v53 = vld [vmem:[#allocation7 + $0x398] sm:$0xff]  ;;  %v908_v34 = vld [vmem:[#allocation7 + $0x390] sm:$0xff] }
 0x337   :  { %v1127_v58 = vmul.f32 %v8625_v56, %v909_v53 }
 0x338   :  { %1362 = vadd.xlane.f32.xlu1 %v1123_v49  ;;  %1360 = vadd.xlane.f32.xlu0 %v1122_v20  ;;  %v1126_v20 = vmul.f32 %v8625_v56, %v908_v34  ;;  %v910_v49 = vld [vmem:[#allocation7 + $0x3a0] sm:$0xff] }
 0x339   :  { %v8629_v30 = vpop.xlane.xlu1 %1226  ;;  %v8631_v52 = vpop.xlane.xlu0 %1224 }
 0x33a   :  { %12971 = vst [vmem:[#allocation159_spill] sm:$0xff] %v8629_v30 }
 0x33c   :  { %1366 = vadd.xlane.f32.xlu1 %v1125_v10  ;;  %1364 = vadd.xlane.f32.xlu0 %v1124_v55  ;;  %v1128_v10 = vmul.f32 %v8625_v56, %v910_v49  ;;  %v913_v55 = vld [vmem:[#allocation7 + $0x3b8] sm:$0xff] }
 0x33d   :  { %v8635_v50 = vpop.xlane.xlu1 %1230  ;;  %v8637_v54 = vpop.xlane.xlu0 %1228  ;;  %v1131_v34 = vmul.f32 %v8625_v56, %v913_v55 }
 0x33e   :  { %12972 = vst [vmem:[#allocation160_spill] sm:$0xff] %v8635_v50  ;;  %v912_v50 = vld [vmem:[#allocation7 + $0x3b0] sm:$0xff] }
 0x340   :  { %1370 = vadd.xlane.f32.xlu1 %v1127_v58  ;;  %1368 = vadd.xlane.f32.xlu0 %v1126_v20  ;;  %v1130_v58 = vmul.f32 %v8625_v56, %v912_v50  ;;  %v915_v20 = vld [vmem:[#allocation7 + $0x3c8] sm:$0xff] }
 0x341   :  { %v8641_v47 = vpop.xlane.xlu1 %1234  ;;  %v8643_v28 = vpop.xlane.xlu0 %1232  ;;  %v1133_v49 = vmul.f32 %v8625_v56, %v915_v20 }
 0x342   :  { %12973 = vst [vmem:[#allocation161_spill] sm:$0xff] %v8641_v47  ;;  %12974 = vst [vmem:[#allocation162_spill] sm:$0xff] %v8643_v28  ;;  %v914_v47 = vld [vmem:[#allocation7 + $0x3c0] sm:$0xff] }
 0x344   :  { %1374 = vadd.xlane.f32.xlu1 %v1129_v46  ;;  %1372 = vadd.xlane.f32.xlu0 %v1128_v10  ;;  %v1132_v46 = vmul.f32 %v8625_v56, %v914_v47  ;;  %v917_v10 = vld [vmem:[#allocation7 + $0x3d8] sm:$0xff] }
 0x345   :  { %v8647_v30 = vpop.xlane.xlu1 %1270  ;;  %v8649_v53 = vpop.xlane.xlu0 %1268  ;;  %v1135_v50 = vmul.f32 %v8625_v56, %v917_v10 }
 0x346   :  { %12975 = vst [vmem:[#allocation163_spill] sm:$0xff] %v8647_v30  ;;  %12976 = vst [vmem:[#allocation164_spill] sm:$0xff] %v8649_v53  ;;  %v916_v30 = vld [vmem:[#allocation7 + $0x3d0] sm:$0xff] }
 0x348   :  { %1378 = vadd.xlane.f32.xlu1 %v1131_v34  ;;  %1376 = vadd.xlane.f32.xlu0 %v1130_v58  ;;  %v1134_v34 = vmul.f32 %v8625_v56, %v916_v30  ;;  %v919_v58 = vld [vmem:[#allocation7 + $0x3e8] sm:$0xff] }
 0x349   :  { %v8653_v28 = vpop.xlane.xlu1 %1274  ;;  %v8655_v32 = vpop.xlane.xlu0 %1272  ;;  %v1137_v47 = vmul.f32 %v8625_v56, %v919_v58 }
 0x34a   :  { %12977 = vst [vmem:[#allocation165_spill] sm:$0xff] %v8653_v28  ;;  %12978 = vst [vmem:[#allocation166_spill] sm:$0xff] %v8655_v32  ;;  %v918_v28 = vld [vmem:[#allocation7 + $0x3e0] sm:$0xff] }
 0x34c   :  { %1382 = vadd.xlane.f32.xlu1 %v1133_v49  ;;  %1380 = vadd.xlane.f32.xlu0 %v1132_v46  ;;  %v1136_v49 = vmul.f32 %v8625_v56, %v918_v28  ;;  %v921_v46 = vld [vmem:[#allocation7 + $0x3f8] sm:$0xff] }
 0x34d   :  { %v8659_v53 = vpop.xlane.xlu1 %1278  ;;  %v8661_v55 = vpop.xlane.xlu0 %1276  ;;  %v1139_v30 = vmul.f32 %v8625_v56, %v921_v46 }
 0x34e   :  { %12979 = vst [vmem:[#allocation167_spill] sm:$0xff] %v8659_v53  ;;  %12980 = vst [vmem:[#allocation168_spill] sm:$0xff] %v8661_v55  ;;  %v920_v53 = vld [vmem:[#allocation7 + $0x3f0] sm:$0xff] }
 0x350   :  { %1386 = vadd.xlane.f32.xlu1 %v1135_v50  ;;  %1384 = vadd.xlane.f32.xlu0 %v1134_v34  ;;  %v1138_v50 = vmul.f32 %v8625_v56, %v920_v53  ;;  %v8695_v56 = vadd.f32 %v8164_v51, %v8497_v9  ;;  %v8718_v51 = vadd.f32 %v8176_v5, %v8503_v31 }
 0x351   :  { %v8665_v32 = vpop.xlane.xlu1 %1282  ;;  %v8667_v20 = vpop.xlane.xlu0 %1280  ;;  %v8736_v5 = vadd.f32 %v8174_v4, %v8501_v11  ;;  %v8760_v11 = vadd.f32 %v8193_v24, %v8525_v40  ;;  %v8778_v24 = vadd.f32 %v8191_v23, %v8523_v16  ;;  %v8802_v16 = vadd.f32 %v8208_v39, %v8543_v0 }
 0x352   :  { %12981 = vst [vmem:[#allocation169_spill] sm:$0xff] %v8665_v32  ;;  %12986 = vst [vmem:[#allocation174_spill] sm:$0xff] %v8695_v56  ;;  %v8820_v39 = vadd.f32 %v8203_v37, %v8541_v62  ;;  %v8844_v62 = vadd.f32 %v8222_v48, %v8561_v13 }
 0x353   :  { %12989 = vst [vmem:[#allocation177_spill] sm:$0xff] %v8718_v51  ;;  %12992 = vst [vmem:[#allocation180_spill] sm:$0xff] %v8736_v5 }
 0x354   :  { %1390 = vadd.xlane.f32.xlu1 %v1137_v47  ;;  %1388 = vadd.xlane.f32.xlu0 %v1136_v49  ;;  %12995 = vst [vmem:[#allocation183_spill] sm:$0xff] %v8760_v11  ;;  %12998 = vst [vmem:[#allocation186_spill] sm:$0xff] %v8778_v24 }
 0x355   :  { %v8671_v55 = vpop.xlane.xlu1 %1286  ;;  %v8673_v10 = vpop.xlane.xlu0 %1284  ;;  %13001 = vst [vmem:[#allocation189_spill] sm:$0xff] %v8802_v16  ;;  %13004 = vst [vmem:[#allocation192_spill] sm:$0xff] %v8820_v39 }
 0x356   :  { %12982 = vst [vmem:[#allocation170_spill] sm:$0xff] %v8671_v55  ;;  %12983 = vst [vmem:[#allocation171_spill] sm:$0xff] %v8673_v10 }
 0x357   :  { %13007 = vst [vmem:[#allocation195_spill] sm:$0xff] %v8844_v62 }
 0x358   :  { %1394 = vadd.xlane.f32.xlu1 %v1139_v30  ;;  %1392 = vadd.xlane.f32.xlu0 %v1138_v50  ;;  %v8704_v30 = vadd.f32 %v8168_v59, %v8489_v36  ;;  %v8708_v50 = vadd.f32 %v8172_v1, %v8491_v17  ;;  %v8722_v59 = vadd.f32 %v8170_v63, %v8495_v6 }
 0x359   :  { %v8677_v34 = vpop.xlane.xlu1 %1290  ;;  %v8679_v32 = vpop.xlane.xlu0 %1288  ;;  %v8732_v17 = vadd.f32 %v8183_v8, %v8509_v22  ;;  %v8746_v6 = vadd.f32 %v8189_v21, %v8515_v19  ;;  %v8750_v8 = vadd.f32 %v8181_v7, %v8507_v27  ;;  %v8764_v21 = vadd.f32 %v8187_v18, %v8513_v35 }
 0x35a   :  { %12987 = vst [vmem:[#allocation175_spill] sm:$0xff] %v8704_v30  ;;  %12988 = vst [vmem:[#allocation176_spill] sm:$0xff] %v8708_v50  ;;  %v8774_v27 = vadd.f32 %v8197_v26, %v8531_v41  ;;  %v8788_v35 = vadd.f32 %v8201_v33, %v8537_v3  ;;  %v8792_v26 = vadd.f32 %v8195_v25, %v8529_v61 }
 0x35b   :  { %12990 = vst [vmem:[#allocation178_spill] sm:$0xff] %v8722_v59  ;;  %12991 = vst [vmem:[#allocation179_spill] sm:$0xff] %v8732_v17  ;;  %v8806_v33 = vadd.f32 %v8199_v29, %v8535_v2  ;;  %v8816_v61 = vadd.f32 %v8214_v43, %v8549_v14  ;;  %v8830_v2 = vadd.f32 %v8218_v45, %v8555_v15 }
 0x35c   :  { %12993 = vst [vmem:[#allocation181_spill] sm:$0xff] %v8746_v6  ;;  %12994 = vst [vmem:[#allocation182_spill] sm:$0xff] %v8750_v8  ;;  %v8834_v43 = vadd.f32 %v8212_v42, %v8547_v60  ;;  %v8848_v45 = vadd.f32 %v8216_v44, %v8553_v57  ;;  %v13009_v60 = vld [vmem:[#allocation38_spill] sm:$0xff]  ;;  %v13014_v57 = vld [vmem:[#allocation40_spill] sm:$0xff] }
 0x35d   :  { %v8681_v58 = vpop.xlane.xlu1 %1294  ;;  %v8683_v28 = vpop.xlane.xlu0 %1292  ;;  %12996 = vst [vmem:[#allocation184_spill] sm:$0xff] %v8764_v21  ;;  %12997 = vst [vmem:[#allocation185_spill] sm:$0xff] %v8774_v27  ;;  %v8858_v15 = vadd.f32 %v13009_v60, %v8569_v12 }
 0x35e   :  { %12984 = vst [vmem:[#allocation172_spill] sm:$0xff] %v8681_v58  ;;  %12999 = vst [vmem:[#allocation187_spill] sm:$0xff] %v8788_v35 }
 0x35f   :  { %13000 = vst [vmem:[#allocation188_spill] sm:$0xff] %v8792_v26  ;;  %13002 = vst [vmem:[#allocation190_spill] sm:$0xff] %v8806_v33 }
 0x360   :  { %13003 = vst [vmem:[#allocation191_spill] sm:$0xff] %v8816_v61  ;;  %13005 = vst [vmem:[#allocation193_spill] sm:$0xff] %v8830_v2 }
 0x361   :  { %v8685_v47 = vpop.xlane.xlu1 %1298  ;;  %v8687_v49 = vpop.xlane.xlu0 %1296  ;;  %13006 = vst [vmem:[#allocation194_spill] sm:$0xff] %v8834_v43  ;;  %13008 = vst [vmem:[#allocation196_spill] sm:$0xff] %v8848_v45 }
 0x362   :  { %12985 = vst [vmem:[#allocation173_spill] sm:$0xff] %v8685_v47  ;;  %13010 = vst [vmem:[#allocation38_spill] sm:$0xff] %v8858_v15 }
 0x365   :  { %v8689_v55 = vpop.xlane.xlu1 %1238  ;;  %v8691_v10 = vpop.xlane.xlu0 %1236 }
 0x369   :  { %v8697_v53 = vpop.xlane.xlu1 %1242  ;;  %v8699_v46 = vpop.xlane.xlu0 %1240  ;;  %2322 = vperm.xlu1 %7206, %v8695_v56   ;;  %v13064_v56 = vld [vmem:[#allocation53_spill] sm:$0xff] }
 0x36d   :  { %v8710_v47 = vpop.xlane.xlu1 %1246  ;;  %v8712_v58 = vpop.xlane.xlu0 %1244  ;;  %2325 = vperm.xlu1 %7206, %v8704_v30  }
 0x36e   :  { %2319 = vperm.xlu0 %7205, %v8708_v50  }
 0x371   :  { %v8724_v36 = vpop.xlane.xlu1 %1250  ;;  %v8726_v1 = vpop.xlane.xlu0 %1248  ;;  %2331 = vperm.xlu1 %7206, %v8718_v51  }
 0x372   :  { %2328 = vperm.xlu0 %7205, %v8722_v59  }
 0x375   :  { %v8738_v9 = vpop.xlane.xlu1 %1254  ;;  %v8740_v63 = vpop.xlane.xlu0 %1252  ;;  %2337 = vperm.xlu1 %7206, %v8732_v17  }
 0x376   :  { %2334 = vperm.xlu0 %7205, %v8736_v5  }
 0x379   :  { %v8752_v31 = vpop.xlane.xlu1 %1258  ;;  %v8754_v4 = vpop.xlane.xlu0 %1256  ;;  %2343 = vperm.xlu1 %7206, %v8746_v6   ;;  %v13028_v6 = vld [vmem:[#allocation145_spill] sm:$0xff] }
 0x37a   :  { %2340 = vperm.xlu0 %7205, %v8750_v8   ;;  %v13029_v8 = vld [vmem:[#allocation41_spill] sm:$0xff] }
 0x37d   :  { %v8766_v22 = vpop.xlane.xlu1 %1262  ;;  %v8768_v7 = vpop.xlane.xlu0 %1260  ;;  %2349 = vperm.xlu1 %7206, %v8760_v11  }
 0x37e   :  { %2346 = vperm.xlu0 %7205, %v8764_v21   ;;  %v13077_v21 = vld [vmem:[#allocation57_spill] sm:$0xff] }
 0x381   :  { %v8780_v19 = vpop.xlane.xlu1 %1266  ;;  %v8782_v18 = vpop.xlane.xlu0 %1264  ;;  %2355 = vperm.xlu1 %7206, %v8774_v27   ;;  %v13022_v27 = vld [vmem:[#allocation144_spill] sm:$0xff] }
 0x382   :  { %2352 = vperm.xlu0 %7205, %v8778_v24   ;;  %v13023_v24 = vld [vmem:[#allocation39_spill] sm:$0xff] }
 0x385   :  { %v8794_v40 = vpop.xlane.xlu1 %1302  ;;  %v8796_v23 = vpop.xlane.xlu0 %1300  ;;  %2361 = vperm.xlu1 %7206, %v8788_v35   ;;  %v13017_v35 = vld [vmem:[#allocation37_spill] sm:$0xff] }
 0x386   :  { %2358 = vperm.xlu0 %7205, %v8792_v26  }
 0x389   :  { %v8808_v41 = vpop.xlane.xlu1 %1306  ;;  %v8810_v25 = vpop.xlane.xlu0 %1304  ;;  %2367 = vperm.xlu1 %7206, %v8802_v16   ;;  %v13016_v16 = vld [vmem:[#allocation143_spill] sm:$0xff] }
 0x38a   :  { %2364 = vperm.xlu0 %7205, %v8806_v33   ;;  %v8876_v12 = vadd.f32 %v13017_v35, %v13016_v16  ;;  %v13025_v16 = vld [vmem:[#allocation148_spill] sm:$0xff]  ;;  %v13070_v33 = vld [vmem:[#allocation55_spill] sm:$0xff] }
 0x38c   :  { %13018 = vst [vmem:[#allocation40_spill] sm:$0xff] %v8876_v12 }
 0x38d   :  { %v8822_v3 = vpop.xlane.xlu1 %1310  ;;  %v8824_v29 = vpop.xlane.xlu0 %1308  ;;  %2373 = vperm.xlu1 %7206, %v8816_v61   ;;  %v13012_v61 = vld [vmem:[#allocation36_spill] sm:$0xff] }
 0x38e   :  { %2370 = vperm.xlu0 %7205, %v8820_v39   ;;  %v13059_v39 = vld [vmem:[#allocation51_spill] sm:$0xff] }
 0x391   :  { %v8836_v0 = vpop.xlane.xlu1 %1314  ;;  %v8838_v37 = vpop.xlane.xlu0 %1312  ;;  %2379 = vperm.xlu1 %7206, %v8830_v2   ;;  %v13011_v2 = vld [vmem:[#allocation142_spill] sm:$0xff] }
 0x392   :  { %2376 = vperm.xlu0 %7205, %v8834_v43   ;;  %v8862_v48 = vadd.f32 %v13012_v61, %v13011_v2  ;;  %v13019_v2 = vld [vmem:[#allocation146_spill] sm:$0xff]  ;;  %v13053_v43 = vld [vmem:[#allocation49_spill] sm:$0xff] }
 0x394   :  { %13013 = vst [vmem:[#allocation142_spill] sm:$0xff] %v8862_v48 }
 0x395   :  { %v8850_v14 = vpop.xlane.xlu1 %1318  ;;  %v8852_v42 = vpop.xlane.xlu0 %1316  ;;  %2385 = vperm.xlu1 %7206, %v8844_v62   ;;  %v8872_v62 = vadd.f32 %v13014_v57, %v8578_v38  ;;  %v8890_v38 = vadd.f32 %v13023_v24, %v13022_v27  ;;  %v13031_v24 = vld [vmem:[#allocation150_spill] sm:$0xff] }
 0x396   :  { %2382 = vperm.xlu0 %7205, %v8848_v45   ;;  %v13047_v45 = vld [vmem:[#allocation47_spill] sm:$0xff] }
 0x397   :  { %13015 = vst [vmem:[#allocation36_spill] sm:$0xff] %v8872_v62  ;;  %13024 = vst [vmem:[#allocation37_spill] sm:$0xff] %v8890_v38 }
 0x399   :  { %v8864_v13 = vpop.xlane.xlu1 %1322  ;;  %v8866_v44 = vpop.xlane.xlu0 %1320  ;;  %2391 = vperm.xlu1 %7206, %v8858_v15   ;;  %v13020_v15 = vld [vmem:[#allocation42_spill] sm:$0xff] }
 0x39a   :  { %2388 = vperm.xlu0 %7205, %v8862_v48   ;;  %v8886_v26 = vadd.f32 %v13020_v15, %v13019_v2  ;;  %v8904_v15 = vadd.f32 %v13029_v8, %v13028_v6  ;;  %v13037_v8 = vld [vmem:[#allocation152_spill] sm:$0xff]  ;;  %v13041_v48 = vld [vmem:[#allocation45_spill] sm:$0xff] }
 0x39c   :  { %13021 = vst [vmem:[#allocation143_spill] sm:$0xff] %v8886_v26  ;;  %13030 = vst [vmem:[#allocation42_spill] sm:$0xff] %v8904_v15 }
 0x39d   :  { %v8878_v60 = vpop.xlane.xlu1 %1326  ;;  %v8880_v61 = vpop.xlane.xlu0 %1324  ;;  %2397 = vperm.xlu1 %7206, %v8872_v62   ;;  %v13026_v62 = vld [vmem:[#allocation44_spill] sm:$0xff] }
 0x39e   :  { %2394 = vperm.xlu0 %7205, %v8876_v12   ;;  %v8900_v11 = vadd.f32 %v13026_v62, %v13025_v16  ;;  %v13035_v12 = vld [vmem:[#allocation43_spill] sm:$0xff] }
 0x3a0   :  { %13027 = vst [vmem:[#allocation146_spill] sm:$0xff] %v8900_v11 }
 0x3a1   :  { %v8892_v57 = vpop.xlane.xlu1 %1330  ;;  %v8894_v35 = vpop.xlane.xlu0 %1328  ;;  %2403 = vperm.xlu1 %7206, %v8886_v26   ;;  %v13032_v26 = vld [vmem:[#allocation46_spill] sm:$0xff] }
 0x3a2   :  { %2400 = vperm.xlu0 %7205, %v8890_v38   ;;  %v8914_v17 = vadd.f32 %v13032_v26, %v13031_v24  ;;  %v13034_v38 = vld [vmem:[#allocation147_spill] sm:$0xff] }
 0x3a3   :  { %v8918_v62 = vadd.f32 %v13035_v12, %v13034_v38  ;;  %v13043_v38 = vld [vmem:[#allocation154_spill] sm:$0xff] }
 0x3a4   :  { %13033 = vst [vmem:[#allocation144_spill] sm:$0xff] %v8914_v17 }
 0x3a5   :  { %v8906_v2 = vpop.xlane.xlu1 %1334  ;;  %v8908_v27 = vpop.xlane.xlu0 %1332  ;;  %2409 = vperm.xlu1 %7206, %v8900_v11   ;;  %13036 = vst [vmem:[#allocation39_spill] sm:$0xff] %v8918_v62  ;;  %v13038_v11 = vld [vmem:[#allocation48_spill] sm:$0xff] }
 0x3a6   :  { %2406 = vperm.xlu0 %7205, %v8904_v15   ;;  %v8928_v5 = vadd.f32 %v13038_v11, %v13037_v8  ;;  %v13040_v15 = vld [vmem:[#allocation149_spill] sm:$0xff] }
 0x3a7   :  { %v8932_v26 = vadd.f32 %v13041_v48, %v13040_v15  ;;  %v13049_v15 = vld [vmem:[#allocation156_spill] sm:$0xff] }
 0x3a8   :  { %13039 = vst [vmem:[#allocation148_spill] sm:$0xff] %v8928_v5 }
 0x3a9   :  { %v8920_v16 = vpop.xlane.xlu1 %1338  ;;  %v8922_v6 = vpop.xlane.xlu0 %1336  ;;  %2415 = vperm.xlu1 %7206, %v8914_v17   ;;  %13042 = vst [vmem:[#allocation44_spill] sm:$0xff] %v8932_v26  ;;  %v13044_v17 = vld [vmem:[#allocation50_spill] sm:$0xff] }
 0x3aa   :  { %2412 = vperm.xlu0 %7205, %v8918_v62   ;;  %v8942_v51 = vadd.f32 %v13044_v17, %v13043_v38  ;;  %v13046_v62 = vld [vmem:[#allocation151_spill] sm:$0xff] }
 0x3ab   :  { %v8946_v11 = vadd.f32 %v13047_v45, %v13046_v62  ;;  %v13055_v62 = vld [vmem:[#allocation158_spill] sm:$0xff] }
 0x3ac   :  { %13045 = vst [vmem:[#allocation145_spill] sm:$0xff] %v8942_v51 }
 0x3ad   :  { %v8934_v24 = vpop.xlane.xlu1 %1342  ;;  %v8936_v12 = vpop.xlane.xlu0 %1340  ;;  %2421 = vperm.xlu1 %7206, %v8928_v5   ;;  %13048 = vst [vmem:[#allocation41_spill] sm:$0xff] %v8946_v11  ;;  %v13050_v5 = vld [vmem:[#allocation52_spill] sm:$0xff] }
 0x3ae   :  { %2418 = vperm.xlu0 %7205, %v8932_v26   ;;  %v8956_v59 = vadd.f32 %v13050_v5, %v13049_v15  ;;  %v13052_v26 = vld [vmem:[#allocation153_spill] sm:$0xff] }
 0x3af   :  { %v8960_v17 = vadd.f32 %v13053_v43, %v13052_v26  ;;  %v13061_v26 = vld [vmem:[#allocation56_spill] sm:$0xff] }
 0x3b0   :  { %13051 = vst [vmem:[#allocation150_spill] sm:$0xff] %v8956_v59 }
 0x3b1   :  { %v8948_v8 = vpop.xlane.xlu1 %1346  ;;  %v8950_v48 = vpop.xlane.xlu0 %1344  ;;  %2427 = vperm.xlu1 %7206, %v8942_v51   ;;  %13054 = vst [vmem:[#allocation46_spill] sm:$0xff] %v8960_v17  ;;  %v13056_v51 = vld [vmem:[#allocation54_spill] sm:$0xff] }
 0x3b2   :  { %2424 = vperm.xlu0 %7205, %v8946_v11   ;;  %v8970_v30 = vadd.f32 %v13056_v51, %v13055_v62  ;;  %v13058_v11 = vld [vmem:[#allocation155_spill] sm:$0xff] }
 0x3b3   :  { %v8974_v5 = vadd.f32 %v13059_v39, %v13058_v11  ;;  %v13067_v11 = vld [vmem:[#allocation58_spill] sm:$0xff] }
 0x3b4   :  { %13057 = vst [vmem:[#allocation147_spill] sm:$0xff] %v8970_v30 }
 0x3b5   :  { %v8962_v38 = vpop.xlane.xlu1 %1350  ;;  %v8964_v45 = vpop.xlane.xlu0 %1348  ;;  %2433 = vperm.xlu1 %7206, %v8956_v59   ;;  %13060 = vst [vmem:[#allocation43_spill] sm:$0xff] %v8974_v5  ;;  %v8984_v59 = vadd.f32 %v13061_v26, %v8631_v52 }
 0x3b6   :  { %2430 = vperm.xlu0 %7205, %v8960_v17   ;;  %v13063_v17 = vld [vmem:[#allocation157_spill] sm:$0xff] }
 0x3b7   :  { %13062 = vst [vmem:[#allocation152_spill] sm:$0xff] %v8984_v59  ;;  %v8988_v51 = vadd.f32 %v13064_v56, %v13063_v17  ;;  %v13073_v17 = vld [vmem:[#allocation162_spill] sm:$0xff] }
 0x3b9   :  { %v8976_v15 = vpop.xlane.xlu1 %1354  ;;  %v8978_v43 = vpop.xlane.xlu0 %1352  ;;  %2439 = vperm.xlu1 %7206, %v8970_v30   ;;  %13065 = vst [vmem:[#allocation48_spill] sm:$0xff] %v8988_v51  ;;  %v8998_v30 = vadd.f32 %v13067_v11, %v8637_v54  ;;  %v13081_v11 = vld [vmem:[#allocation164_spill] sm:$0xff] }
 0x3ba   :  { %2436 = vperm.xlu0 %7205, %v8974_v5   ;;  %v13069_v5 = vld [vmem:[#allocation159_spill] sm:$0xff] }
 0x3bb   :  { %13068 = vst [vmem:[#allocation45_spill] sm:$0xff] %v8998_v30  ;;  %v9002_v52 = vadd.f32 %v13070_v33, %v13069_v5 }
 0x3bd   :  { %v8990_v62 = vpop.xlane.xlu1 %1358  ;;  %v8992_v39 = vpop.xlane.xlu0 %1356  ;;  %2445 = vperm.xlu1 %7206, %v8984_v59   ;;  %13071 = vst [vmem:[#allocation154_spill] sm:$0xff] %v9002_v52  ;;  %v13074_v59 = vld [vmem:[#allocation60_spill] sm:$0xff] }
 0x3be   :  { %13066 = vst [vmem:[#allocation149_spill] sm:$0xff] %v8990_v62  ;;  %2442 = vperm.xlu0 %7205, %v8988_v51   ;;  %v9012_v50 = vadd.f32 %v13074_v59, %v13073_v17  ;;  %v13076_v51 = vld [vmem:[#allocation160_spill] sm:$0xff]  ;;  %v13085_v62 = vld [vmem:[#allocation59_spill] sm:$0xff]  ;;  %v13089_v17 = vld [vmem:[#allocation166_spill] sm:$0xff] }
 0x3bf   :  { %v9016_v54 = vadd.f32 %v13077_v21, %v13076_v51 }
 0x3c0   :  { %13075 = vst [vmem:[#allocation151_spill] sm:$0xff] %v9012_v50 }
 0x3c1   :  { %v9004_v26 = vpop.xlane.xlu1 %1362  ;;  %v9006_v56 = vpop.xlane.xlu0 %1360  ;;  %2451 = vperm.xlu1 %7206, %v8998_v30   ;;  %13078 = vst [vmem:[#allocation47_spill] sm:$0xff] %v9016_v54  ;;  %v13082_v30 = vld [vmem:[#allocation78_spill] sm:$0xff] }
 0x3c2   :  { %13072 = vst [vmem:[#allocation50_spill] sm:$0xff] %v9004_v26  ;;  %2448 = vperm.xlu0 %7205, %v9002_v52   ;;  %v9026_v26 = vadd.f32 %v13082_v30, %v13081_v11  ;;  %v13084_v52 = vld [vmem:[#allocation161_spill] sm:$0xff]  ;;  %v13096_v11 = vld [vmem:[#allocation168_spill] sm:$0xff] }
 0x3c3   :  { %v9030_v59 = vadd.f32 %v13085_v62, %v13084_v52 }
 0x3c4   :  { %13083 = vst [vmem:[#allocation153_spill] sm:$0xff] %v9026_v26 }
 0x3c5   :  { %2457 = vperm.xlu1 %7206, %v9012_v50   ;;  %v9019_v33 = vpop.xlane.xlu1 %1366  ;;  %v9021_v5 = vpop.xlane.xlu0 %1364  ;;  %13086 = vst [vmem:[#allocation49_spill] sm:$0xff] %v9030_v59  ;;  %v13090_v50 = vld [vmem:[#allocation80_spill] sm:$0xff] }
 0x3c6   :  { %13079 = vst [vmem:[#allocation156_spill] sm:$0xff] %v9019_v33  ;;  %13080 = vst [vmem:[#allocation52_spill] sm:$0xff] %v9021_v5  ;;  %2454 = vperm.xlu0 %7205, %v9016_v54   ;;  %v9040_v33 = vadd.f32 %v13090_v50, %v13089_v17  ;;  %v13092_v54 = vld [vmem:[#allocation163_spill] sm:$0xff]  ;;  %v13093_v5 = vld [vmem:[#allocation77_spill] sm:$0xff] }
 0x3c7   :  { %v9044_v30 = vadd.f32 %v13093_v5, %v13092_v54  ;;  %v13103_v17 = vld [vmem:[#allocation84_spill] sm:$0xff] }
 0x3c8   :  { %13091 = vst [vmem:[#allocation155_spill] sm:$0xff] %v9040_v33 }
 0x3c9   :  { %2511 = vperm.xlu1 %7206, %v9026_v26   ;;  %v9033_v21 = vpop.xlane.xlu1 %1370  ;;  %v9035_v51 = vpop.xlane.xlu0 %1368  ;;  %13094 = vst [vmem:[#allocation51_spill] sm:$0xff] %v9044_v30  ;;  %v13097_v26 = vld [vmem:[#allocation82_spill] sm:$0xff] }
 0x3ca   :  { %13087 = vst [vmem:[#allocation158_spill] sm:$0xff] %v9033_v21  ;;  %13088 = vst [vmem:[#allocation54_spill] sm:$0xff] %v9035_v51  ;;  %2460 = vperm.xlu0 %7205, %v9030_v59   ;;  %v9054_v21 = vadd.f32 %v13097_v26, %v13096_v11  ;;  %v13099_v59 = vld [vmem:[#allocation165_spill] sm:$0xff]  ;;  %v13100_v51 = vld [vmem:[#allocation79_spill] sm:$0xff] }
 0x3cb   :  { %v9058_v50 = vadd.f32 %v13100_v51, %v13099_v59  ;;  %v13108_v11 = vld [vmem:[#allocation62_spill] sm:$0xff] }
 0x3cc   :  { %13098 = vst [vmem:[#allocation157_spill] sm:$0xff] %v9054_v21 }
 0x3cd   :  { %2517 = vperm.xlu1 %7206, %v9040_v33   ;;  %v9047_v62 = vpop.xlane.xlu1 %1374  ;;  %v9049_v52 = vpop.xlane.xlu0 %1372  ;;  %13101 = vst [vmem:[#allocation53_spill] sm:$0xff] %v9058_v50  ;;  %v9068_v33 = vadd.f32 %v13103_v17, %v8667_v20  ;;  %v13113_v17 = vld [vmem:[#allocation64_spill] sm:$0xff] }
 0x3ce   :  { %13095 = vst [vmem:[#allocation56_spill] sm:$0xff] %v9047_v62  ;;  %2514 = vperm.xlu0 %7205, %v9044_v30   ;;  %v13105_v30 = vld [vmem:[#allocation167_spill] sm:$0xff]  ;;  %v13106_v62 = vld [vmem:[#allocation81_spill] sm:$0xff] }
 0x3cf   :  { %13104 = vst [vmem:[#allocation159_spill] sm:$0xff] %v9068_v33  ;;  %v9072_v26 = vadd.f32 %v13106_v62, %v13105_v30 }
 0x3d1   :  { %2523 = vperm.xlu1 %7206, %v9054_v21   ;;  %v9061_v54 = vpop.xlane.xlu1 %1378  ;;  %v9063_v5 = vpop.xlane.xlu0 %1376  ;;  %13107 = vst [vmem:[#allocation55_spill] sm:$0xff] %v9072_v26  ;;  %v9082_v21 = vadd.f32 %v13108_v11, %v8691_v10 }
 0x3d2   :  { %13102 = vst [vmem:[#allocation58_spill] sm:$0xff] %v9061_v54  ;;  %2520 = vperm.xlu0 %7205, %v9058_v50   ;;  %v13110_v50 = vld [vmem:[#allocation169_spill] sm:$0xff]  ;;  %v13111_v54 = vld [vmem:[#allocation83_spill] sm:$0xff] }
 0x3d3   :  { %13109 = vst [vmem:[#allocation162_spill] sm:$0xff] %v9082_v21  ;;  %v9086_v20 = vadd.f32 %v13111_v54, %v13110_v50  ;;  %v13117_v54 = vld [vmem:[#allocation66_spill] sm:$0xff] }
 0x3d4   :  { %v9108_v11 = vadd.f32 %v13117_v54, %v8712_v58 }
 0x3d5   :  { %2529 = vperm.xlu1 %7206, %v9068_v33   ;;  %v9075_v59 = vpop.xlane.xlu1 %1382  ;;  %v9077_v51 = vpop.xlane.xlu0 %1380  ;;  %13112 = vst [vmem:[#allocation60_spill] sm:$0xff] %v9086_v20  ;;  %v9096_v33 = vadd.f32 %v13113_v17, %v8699_v46 }
 0x3d6   :  { %2526 = vperm.xlu0 %7205, %v9072_v26   ;;  %v13115_v26 = vld [vmem:[#allocation61_spill] sm:$0xff]  ;;  %13118 = vst [vmem:[#allocation164_spill] sm:$0xff] %v9108_v11 }
 0x3d7   :  { %13114 = vst [vmem:[#allocation160_spill] sm:$0xff] %v9096_v33  ;;  %v9100_v10 = vadd.f32 %v13115_v26, %v8689_v55  ;;  %v13121_v26 = vld [vmem:[#allocation68_spill] sm:$0xff] }
 0x3d8   :  { %v9122_v17 = vadd.f32 %v13121_v26, %v8726_v1  ;;  %v13129_v26 = vld [vmem:[#allocation72_spill] sm:$0xff] }
 0x3d9   :  { %2463 = vperm.xlu1 %7206, %v9082_v21   ;;  %v9089_v30 = vpop.xlane.xlu1 %1386  ;;  %v9091_v62 = vpop.xlane.xlu0 %1384  ;;  %13116 = vst [vmem:[#allocation57_spill] sm:$0xff] %v9100_v10 }
 0x3da   :  { %2532 = vperm.xlu0 %7205, %v9086_v20   ;;  %v13119_v20 = vld [vmem:[#allocation63_spill] sm:$0xff]  ;;  %13122 = vst [vmem:[#allocation161_spill] sm:$0xff] %v9122_v17 }
 0x3db   :  { %v9114_v46 = vadd.f32 %v13119_v20, %v8697_v53  ;;  %v13125_v20 = vld [vmem:[#allocation70_spill] sm:$0xff] }
 0x3dd   :  { %2469 = vperm.xlu1 %7206, %v9096_v33   ;;  %v9103_v50 = vpop.xlane.xlu1 %1390  ;;  %v9110_v21 = vpop.xlane.xlu0 %1388  ;;  %13120 = vst [vmem:[#allocation78_spill] sm:$0xff] %v9114_v46  ;;  %v13123_v33 = vld [vmem:[#allocation65_spill] sm:$0xff] }
 0x3de   :  { %2466 = vperm.xlu0 %7205, %v9100_v10   ;;  %v9126_v58 = vadd.f32 %v13123_v33, %v8710_v47 }
 0x3e0   :  { %13124 = vst [vmem:[#allocation59_spill] sm:$0xff] %v9126_v58 }
 0x3e1   :  { %2475 = vperm.xlu1 %7206, %v9108_v11   ;;  %v9117_v55 = vpop.xlane.xlu1 %1394  ;;  %v9128_v54 = vpop.xlane.xlu0 %1392  ;;  %v9136_v11 = vadd.f32 %v13125_v20, %v8740_v63  ;;  %v13133_v20 = vld [vmem:[#allocation74_spill] sm:$0xff] }
 0x3e2   :  { %2472 = vperm.xlu0 %7205, %v9114_v46   ;;  %v13127_v46 = vld [vmem:[#allocation67_spill] sm:$0xff] }
 0x3e3   :  { %13126 = vst [vmem:[#allocation166_spill] sm:$0xff] %v9136_v11  ;;  %v9140_v1 = vadd.f32 %v13127_v46, %v8724_v36 }
 0x3e5   :  { %2481 = vperm.xlu1 %7206, %v9122_v17   ;;  %v9131_v53 = vpop.permute.xlu1 %2322  ;;  %13128 = vst [vmem:[#allocation80_spill] sm:$0xff] %v9140_v1  ;;  %v9150_v17 = vadd.f32 %v13129_v26, %v8754_v4  ;;  %v13137_v26 = vld [vmem:[#allocation76_spill] sm:$0xff] }
 0x3e6   :  { %2478 = vperm.xlu0 %7205, %v9126_v58   ;;  %v13131_v58 = vld [vmem:[#allocation69_spill] sm:$0xff] }
 0x3e7   :  { %13130 = vst [vmem:[#allocation163_spill] sm:$0xff] %v9150_v17  ;;  %v9154_v63 = vadd.f32 %v13131_v58, %v8738_v9 }
 0x3e9   :  { %2487 = vperm.xlu1 %7206, %v9136_v11   ;;  %v9143_v47 = vpop.permute.xlu1 %2325  ;;  %v9145_v33 = vpop.permute.xlu0 %2319  ;;  %13132 = vst [vmem:[#allocation77_spill] sm:$0xff] %v9154_v63  ;;  %v9164_v11 = vadd.f32 %v13133_v20, %v8768_v7  ;;  %v13142_v20 = vld [vmem:[#allocation171_spill] sm:$0xff] }
 0x3ea   :  { %2484 = vperm.xlu0 %7205, %v9140_v1   ;;  %v13135_v1 = vld [vmem:[#allocation71_spill] sm:$0xff] }
 0x3eb   :  { %13134 = vst [vmem:[#allocation168_spill] sm:$0xff] %v9164_v11  ;;  %v9168_v4 = vadd.f32 %v13135_v1, %v8752_v31 }
 0x3ed   :  { %2493 = vperm.xlu1 %7206, %v9150_v17   ;;  %v9157_v36 = vpop.permute.xlu1 %2331  ;;  %v9159_v46 = vpop.permute.xlu0 %2328  ;;  %13136 = vst [vmem:[#allocation82_spill] sm:$0xff] %v9168_v4  ;;  %v9178_v17 = vadd.f32 %v13137_v26, %v8782_v18  ;;  %v13147_v26 = vld [vmem:[#allocation88_spill] sm:$0xff] }
 0x3ee   :  { %2490 = vperm.xlu0 %7205, %v9154_v63   ;;  %v13139_v63 = vld [vmem:[#allocation73_spill] sm:$0xff] }
 0x3ef   :  { %13138 = vst [vmem:[#allocation165_spill] sm:$0xff] %v9178_v17  ;;  %v9182_v7 = vadd.f32 %v13139_v63, %v8766_v22 }
 0x3f1   :  { %2499 = vperm.xlu1 %7206, %v9164_v11   ;;  %v9171_v9 = vpop.permute.xlu1 %2337  ;;  %v9173_v58 = vpop.permute.xlu0 %2334  ;;  %13140 = vst [vmem:[#allocation79_spill] sm:$0xff] %v9182_v7  ;;  %v13143_v11 = vld [vmem:[#allocation86_spill] sm:$0xff] }
 0x3f2   :  { %2496 = vperm.xlu0 %7205, %v9168_v4   ;;  %v9192_v10 = vadd.f32 %v13143_v11, %v13142_v20  ;;  %v13145_v4 = vld [vmem:[#allocation75_spill] sm:$0xff]  ;;  %v13153_v20 = vld [vmem:[#allocation90_spill] sm:$0xff] }
 0x3f3   :  { %v9196_v18 = vadd.f32 %v13145_v4, %v8780_v19 }
 0x3f4   :  { %13144 = vst [vmem:[#allocation167_spill] sm:$0xff] %v9192_v10 }
 0x3f5   :  { %2505 = vperm.xlu1 %7206, %v9178_v17   ;;  %v9185_v31 = vpop.permute.xlu1 %2343  ;;  %v9187_v1 = vpop.permute.xlu0 %2340  ;;  %13146 = vst [vmem:[#allocation81_spill] sm:$0xff] %v9196_v18  ;;  %v9206_v17 = vadd.f32 %v13147_v26, %v8679_v32  ;;  %v13158_v26 = vld [vmem:[#allocation92_spill] sm:$0xff] }
 0x3f6   :  { %13141 = vst [vmem:[#allocation84_spill] sm:$0xff] %v9185_v31  ;;  %2502 = vperm.xlu0 %7205, %v9182_v7   ;;  %v13149_v7 = vld [vmem:[#allocation170_spill] sm:$0xff]  ;;  %v13150_v31 = vld [vmem:[#allocation85_spill] sm:$0xff] }
 0x3f7   :  { %13148 = vst [vmem:[#allocation62_spill] sm:$0xff] %v9206_v17  ;;  %v9210_v11 = vadd.f32 %v13150_v31, %v13149_v7 }
 0x3f9   :  { %2535 = vperm.xlu1 %7206, %v9192_v10   ;;  %v9199_v22 = vpop.permute.xlu1 %2349  ;;  %v9201_v63 = vpop.permute.xlu0 %2346  ;;  %13151 = vst [vmem:[#allocation169_spill] sm:$0xff] %v9210_v11  ;;  %v9220_v10 = vadd.f32 %v13153_v20, %v8683_v28  ;;  %v13164_v20 = vld [vmem:[#allocation95_spill] sm:$0xff] }
 0x3fa   :  { %2508 = vperm.xlu0 %7205, %v9196_v18   ;;  %v13155_v18 = vld [vmem:[#allocation87_spill] sm:$0xff] }
 0x3fb   :  { %13154 = vst [vmem:[#allocation64_spill] sm:$0xff] %v9220_v10  ;;  %v9224_v32 = vadd.f32 %v13155_v18, %v8677_v34 }
 0x3fd   :  { %2541 = vperm.xlu1 %7206, %v9206_v17   ;;  %v9213_v19 = vpop.permute.xlu1 %2355  ;;  %v9215_v4 = vpop.permute.xlu0 %2352  ;;  %13156 = vst [vmem:[#allocation61_spill] sm:$0xff] %v9224_v32  ;;  %v9234_v17 = vadd.f32 %v13158_v26, %v8687_v49  ;;  %v13169_v26 = vld [vmem:[#allocation97_spill] sm:$0xff] }
 0x3fe   :  { %13152 = vst [vmem:[#allocation83_spill] sm:$0xff] %v9213_v19  ;;  %2538 = vperm.xlu0 %7205, %v9210_v11   ;;  %v13160_v11 = vld [vmem:[#allocation172_spill] sm:$0xff]  ;;  %v13161_v19 = vld [vmem:[#allocation89_spill] sm:$0xff] }
 0x3ff   :  { %13159 = vst [vmem:[#allocation63_spill] sm:$0xff] %v9234_v17  ;;  %v9238_v28 = vadd.f32 %v13161_v19, %v13160_v11 }
 0x401   :  { %2547 = vperm.xlu1 %7206, %v9220_v10   ;;  %v9227_v7 = vpop.permute.xlu1 %2361  ;;  %v9229_v31 = vpop.permute.xlu0 %2358  ;;  %13162 = vst [vmem:[#allocation68_spill] sm:$0xff] %v9238_v28  ;;  %v9248_v10 = vadd.f32 %v13164_v20, %v8796_v23  ;;  %v13173_v20 = vld [vmem:[#allocation99_spill] sm:$0xff] }
 0x402   :  { %13157 = vst [vmem:[#allocation66_spill] sm:$0xff] %v9227_v7  ;;  %2544 = vperm.xlu0 %7205, %v9224_v32   ;;  %v13166_v32 = vld [vmem:[#allocation173_spill] sm:$0xff]  ;;  %v13167_v7 = vld [vmem:[#allocation91_spill] sm:$0xff] }
 0x403   :  { %13165 = vst [vmem:[#allocation70_spill] sm:$0xff] %v9248_v10  ;;  %v9252_v49 = vadd.f32 %v13167_v7, %v13166_v32 }
 0x405   :  { %2553 = vperm.xlu1 %7206, %v9234_v17   ;;  %v9241_v34 = vpop.permute.xlu1 %2367  ;;  %v9243_v18 = vpop.permute.xlu0 %2364  ;;  %13168 = vst [vmem:[#allocation67_spill] sm:$0xff] %v9252_v49  ;;  %v9262_v17 = vadd.f32 %v13169_v26, %v8810_v25  ;;  %v13177_v26 = vld [vmem:[#allocation101_spill] sm:$0xff] }
 0x406   :  { %13163 = vst [vmem:[#allocation65_spill] sm:$0xff] %v9243_v18  ;;  %2550 = vperm.xlu0 %7205, %v9238_v28   ;;  %v13171_v28 = vld [vmem:[#allocation94_spill] sm:$0xff] }
 0x407   :  { %13170 = vst [vmem:[#allocation72_spill] sm:$0xff] %v9262_v17  ;;  %v9266_v23 = vadd.f32 %v13171_v28, %v8794_v40  ;;  %v13233_v18 = vld [vmem:[#allocation122_spill] sm:$0xff] }
 0x409   :  { %2559 = vperm.xlu1 %7206, %v9248_v10   ;;  %v9255_v11 = vpop.permute.xlu1 %2373  ;;  %v9257_v19 = vpop.permute.xlu0 %2370  ;;  %13172 = vst [vmem:[#allocation69_spill] sm:$0xff] %v9266_v23  ;;  %v9276_v10 = vadd.f32 %v13173_v20, %v8824_v29  ;;  %v13181_v20 = vld [vmem:[#allocation103_spill] sm:$0xff] }
 0x40a   :  { %2556 = vperm.xlu0 %7205, %v9252_v49   ;;  %v13175_v49 = vld [vmem:[#allocation96_spill] sm:$0xff] }
 0x40b   :  { %13174 = vst [vmem:[#allocation74_spill] sm:$0xff] %v9276_v10  ;;  %v9280_v25 = vadd.f32 %v13175_v49, %v8808_v41 }
 0x40d   :  { %2565 = vperm.xlu1 %7206, %v9262_v17   ;;  %v9269_v32 = vpop.permute.xlu1 %2379  ;;  %v9271_v7 = vpop.permute.xlu0 %2376  ;;  %13176 = vst [vmem:[#allocation71_spill] sm:$0xff] %v9280_v25  ;;  %v9290_v17 = vadd.f32 %v13177_v26, %v8838_v37  ;;  %v13185_v26 = vld [vmem:[#allocation105_spill] sm:$0xff] }
 0x40e   :  { %2562 = vperm.xlu0 %7205, %v9266_v23   ;;  %v13179_v23 = vld [vmem:[#allocation98_spill] sm:$0xff] }
 0x40f   :  { %13178 = vst [vmem:[#allocation76_spill] sm:$0xff] %v9290_v17  ;;  %v9294_v29 = vadd.f32 %v13179_v23, %v8822_v3 }
 0x411   :  { %2571 = vperm.xlu1 %7206, %v9276_v10   ;;  %v9283_v40 = vpop.permute.xlu1 %2385  ;;  %v9285_v28 = vpop.permute.xlu0 %2382  ;;  %13180 = vst [vmem:[#allocation73_spill] sm:$0xff] %v9294_v29  ;;  %v9304_v10 = vadd.f32 %v13181_v20, %v8852_v42  ;;  %v13189_v20 = vld [vmem:[#allocation107_spill] sm:$0xff] }
 0x412   :  { %2568 = vperm.xlu0 %7205, %v9280_v25   ;;  %v13183_v25 = vld [vmem:[#allocation100_spill] sm:$0xff] }
 0x413   :  { %13182 = vst [vmem:[#allocation171_spill] sm:$0xff] %v9304_v10  ;;  %v9308_v37 = vadd.f32 %v13183_v25, %v8836_v0 }
 0x415   :  { %2577 = vperm.xlu1 %7206, %v9290_v17   ;;  %v9297_v41 = vpop.permute.xlu1 %2391  ;;  %v9299_v49 = vpop.permute.xlu0 %2388  ;;  %13184 = vst [vmem:[#allocation86_spill] sm:$0xff] %v9308_v37  ;;  %v9318_v17 = vadd.f32 %v13185_v26, %v8866_v44  ;;  %v13194_v26 = vld [vmem:[#allocation109_spill] sm:$0xff] }
 0x416   :  { %2574 = vperm.xlu0 %7205, %v9294_v29   ;;  %v13187_v29 = vld [vmem:[#allocation102_spill] sm:$0xff] }
 0x417   :  { %13186 = vst [vmem:[#allocation75_spill] sm:$0xff] %v9318_v17  ;;  %v9322_v42 = vadd.f32 %v13187_v29, %v8850_v14 }
 0x419   :  { %2583 = vperm.xlu1 %7206, %v9304_v10   ;;  %v9311_v3 = vpop.permute.xlu1 %2397  ;;  %v9313_v23 = vpop.permute.xlu0 %2394  ;;  %13188 = vst [vmem:[#allocation88_spill] sm:$0xff] %v9322_v42  ;;  %v9332_v10 = vadd.f32 %v13189_v20, %v8880_v61  ;;  %v13199_v20 = vld [vmem:[#allocation111_spill] sm:$0xff] }
 0x41a   :  { %2580 = vperm.xlu0 %7205, %v9308_v37   ;;  %v13191_v37 = vld [vmem:[#allocation104_spill] sm:$0xff] }
 0x41b   :  { %13190 = vst [vmem:[#allocation170_spill] sm:$0xff] %v9332_v10  ;;  %v9336_v44 = vadd.f32 %v13191_v37, %v8864_v13 }
 0x41d   :  { %2589 = vperm.xlu1 %7206, %v9318_v17   ;;  %v9325_v0 = vpop.permute.xlu1 %2403  ;;  %v9327_v25 = vpop.permute.xlu0 %2400  ;;  %13192 = vst [vmem:[#allocation85_spill] sm:$0xff] %v9336_v44  ;;  %v9346_v17 = vadd.f32 %v13194_v26, %v8894_v35  ;;  %v13203_v26 = vld [vmem:[#allocation113_spill] sm:$0xff] }
 0x41e   :  { %2586 = vperm.xlu0 %7205, %v9322_v42   ;;  %v13196_v42 = vld [vmem:[#allocation106_spill] sm:$0xff] }
 0x41f   :  { %13195 = vst [vmem:[#allocation87_spill] sm:$0xff] %v9346_v17  ;;  %v9350_v61 = vadd.f32 %v13196_v42, %v8878_v60 }
 0x421   :  { %2595 = vperm.xlu1 %7206, %v9332_v10   ;;  %v9339_v14 = vpop.permute.xlu1 %2409  ;;  %v9341_v29 = vpop.permute.xlu0 %2406  ;;  %13197 = vst [vmem:[#allocation92_spill] sm:$0xff] %v9350_v61  ;;  %v9360_v10 = vadd.f32 %v13199_v20, %v8908_v27  ;;  %v13207_v20 = vld [vmem:[#allocation115_spill] sm:$0xff] }
 0x422   :  { %13193 = vst [vmem:[#allocation90_spill] sm:$0xff] %v9339_v14  ;;  %2592 = vperm.xlu0 %7205, %v9336_v44   ;;  %v13201_v44 = vld [vmem:[#allocation108_spill] sm:$0xff] }
 0x423   :  { %13200 = vst [vmem:[#allocation89_spill] sm:$0xff] %v9360_v10  ;;  %v9364_v35 = vadd.f32 %v13201_v44, %v8892_v57 }
 0x425   :  { %2601 = vperm.xlu1 %7206, %v9346_v17   ;;  %v9353_v13 = vpop.permute.xlu1 %2415  ;;  %v9355_v37 = vpop.permute.xlu0 %2412  ;;  %13202 = vst [vmem:[#allocation95_spill] sm:$0xff] %v9364_v35  ;;  %v9374_v17 = vadd.f32 %v13203_v26, %v8922_v6  ;;  %v13211_v26 = vld [vmem:[#allocation117_spill] sm:$0xff] }
 0x426   :  { %13198 = vst [vmem:[#allocation172_spill] sm:$0xff] %v9355_v37  ;;  %2598 = vperm.xlu0 %7205, %v9350_v61   ;;  %v13205_v61 = vld [vmem:[#allocation110_spill] sm:$0xff] }
 0x427   :  { %13204 = vst [vmem:[#allocation173_spill] sm:$0xff] %v9374_v17  ;;  %v9378_v27 = vadd.f32 %v13205_v61, %v8906_v2 }
 0x429   :  { %2607 = vperm.xlu1 %7206, %v9360_v10   ;;  %v9367_v60 = vpop.permute.xlu1 %2421  ;;  %v9369_v42 = vpop.permute.xlu0 %2418  ;;  %13206 = vst [vmem:[#allocation91_spill] sm:$0xff] %v9378_v27  ;;  %v9388_v10 = vadd.f32 %v13207_v20, %v8936_v12  ;;  %v13215_v20 = vld [vmem:[#allocation119_spill] sm:$0xff] }
 0x42a   :  { %2604 = vperm.xlu0 %7205, %v9364_v35   ;;  %v13209_v35 = vld [vmem:[#allocation112_spill] sm:$0xff] }
 0x42b   :  { %13208 = vst [vmem:[#allocation97_spill] sm:$0xff] %v9388_v10  ;;  %v9392_v6 = vadd.f32 %v13209_v35, %v8920_v16 }
 0x42d   :  { %2613 = vperm.xlu1 %7206, %v9374_v17   ;;  %v9381_v57 = vpop.permute.xlu1 %2427  ;;  %v9383_v44 = vpop.permute.xlu0 %2424  ;;  %13210 = vst [vmem:[#allocation94_spill] sm:$0xff] %v9392_v6  ;;  %v9402_v17 = vadd.f32 %v13211_v26, %v8950_v48  ;;  %v13219_v26 = vld [vmem:[#allocation121_spill] sm:$0xff] }
 0x42e   :  { %2610 = vperm.xlu0 %7205, %v9378_v27   ;;  %v13213_v27 = vld [vmem:[#allocation114_spill] sm:$0xff] }
 0x42f   :  { %13212 = vst [vmem:[#allocation99_spill] sm:$0xff] %v9402_v17  ;;  %v9406_v12 = vadd.f32 %v13213_v27, %v8934_v24 }
 0x431   :  { %2619 = vperm.xlu1 %7206, %v9388_v10   ;;  %v9395_v2 = vpop.permute.xlu1 %2433  ;;  %v9397_v61 = vpop.permute.xlu0 %2430  ;;  %13214 = vst [vmem:[#allocation96_spill] sm:$0xff] %v9406_v12  ;;  %v9416_v10 = vadd.f32 %v13215_v20, %v8964_v45  ;;  %v13224_v20 = vld [vmem:[#allocation123_spill] sm:$0xff] }
 0x432   :  { %2616 = vperm.xlu0 %7205, %v9392_v6   ;;  %v13217_v6 = vld [vmem:[#allocation116_spill] sm:$0xff] }
 0x433   :  { %13216 = vst [vmem:[#allocation101_spill] sm:$0xff] %v9416_v10  ;;  %v9420_v48 = vadd.f32 %v13217_v6, %v8948_v8 }
 0x435   :  { %2625 = vperm.xlu1 %7206, %v9402_v17   ;;  %v9409_v16 = vpop.permute.xlu1 %2439  ;;  %v9411_v35 = vpop.permute.xlu0 %2436  ;;  %13218 = vst [vmem:[#allocation98_spill] sm:$0xff] %v9420_v48  ;;  %v9430_v17 = vadd.f32 %v13219_v26, %v8978_v43  ;;  %v13230_v26 = vld [vmem:[#allocation125_spill] sm:$0xff] }
 0x436   :  { %2622 = vperm.xlu0 %7205, %v9406_v12   ;;  %v13221_v12 = vld [vmem:[#allocation118_spill] sm:$0xff] }
 0x437   :  { %13220 = vst [vmem:[#allocation103_spill] sm:$0xff] %v9430_v17  ;;  %v9434_v45 = vadd.f32 %v13221_v12, %v8962_v38 }
 0x439   :  { %2631 = vperm.xlu1 %7206, %v9416_v10   ;;  %v9423_v24 = vpop.permute.xlu1 %2445  ;;  %v9425_v27 = vpop.permute.xlu0 %2442  ;;  %13222 = vst [vmem:[#allocation100_spill] sm:$0xff] %v9434_v45  ;;  %v9444_v10 = vadd.f32 %v13224_v20, %v8992_v39  ;;  %v13237_v20 = vld [vmem:[#allocation52_spill] sm:$0xff] }
 0x43a   :  { %2628 = vperm.xlu0 %7205, %v9420_v48   ;;  %v13226_v48 = vld [vmem:[#allocation120_spill] sm:$0xff] }
 0x43b   :  { %13225 = vst [vmem:[#allocation102_spill] sm:$0xff] %v9444_v10  ;;  %v9448_v43 = vadd.f32 %v13226_v48, %v8976_v15 }
 0x43d   :  { %2637 = vperm.xlu1 %7206, %v9430_v17   ;;  %v9437_v8 = vpop.permute.xlu1 %2451  ;;  %v9439_v6 = vpop.permute.xlu0 %2448  ;;  %13227 = vst [vmem:[#allocation107_spill] sm:$0xff] %v9448_v43  ;;  %v9458_v17 = vadd.f32 %v13230_v26, %v9006_v56 }
 0x43e   :  { %13223 = vst [vmem:[#allocation105_spill] sm:$0xff] %v9437_v8  ;;  %2634 = vperm.xlu0 %7205, %v9434_v45   ;;  %v13232_v45 = vld [vmem:[#allocation149_spill] sm:$0xff]  ;;  %v13249_v8 = vld [vmem:[#allocation126_spill] sm:$0xff] }
 0x43f   :  { %13231 = vst [vmem:[#allocation106_spill] sm:$0xff] %v9458_v17  ;;  %v9462_v39 = vadd.f32 %v13233_v18, %v13232_v45  ;;  %v13245_v45 = vld [vmem:[#allocation54_spill] sm:$0xff] }
 0x441   :  { %2643 = vperm.xlu1 %7206, %v9444_v10   ;;  %v9451_v38 = vpop.permute.xlu1 %2457  ;;  %v9453_v12 = vpop.permute.xlu0 %2454  ;;  %13234 = vst [vmem:[#allocation111_spill] sm:$0xff] %v9462_v39  ;;  %v13238_v10 = vld [vmem:[#allocation127_spill] sm:$0xff] }
 0x442   :  { %13228 = vst [vmem:[#allocation104_spill] sm:$0xff] %v9451_v38  ;;  %13229 = vst [vmem:[#allocation109_spill] sm:$0xff] %v9453_v12  ;;  %2640 = vperm.xlu0 %7205, %v9448_v43   ;;  %v9472_v38 = vadd.f32 %v13238_v10, %v13237_v20  ;;  %v13240_v43 = vld [vmem:[#allocation50_spill] sm:$0xff]  ;;  %v13241_v12 = vld [vmem:[#allocation124_spill] sm:$0xff] }
 0x443   :  { %v9476_v56 = vadd.f32 %v13241_v12, %v13240_v43  ;;  %v13253_v12 = vld [vmem:[#allocation131_spill] sm:$0xff] }
 0x444   :  { %13239 = vst [vmem:[#allocation110_spill] sm:$0xff] %v9472_v38 }
 0x445   :  { %2649 = vperm.xlu1 %7206, %v9458_v17   ;;  %v9465_v15 = vpop.permute.xlu1 %2511  ;;  %v9467_v48 = vpop.permute.xlu0 %2460  ;;  %13242 = vst [vmem:[#allocation115_spill] sm:$0xff] %v9476_v56  ;;  %v13246_v17 = vld [vmem:[#allocation129_spill] sm:$0xff] }
 0x446   :  { %13235 = vst [vmem:[#allocation108_spill] sm:$0xff] %v9465_v15  ;;  %13236 = vst [vmem:[#allocation113_spill] sm:$0xff] %v9467_v48  ;;  %2646 = vperm.xlu0 %7205, %v9462_v39   ;;  %v9486_v48 = vadd.f32 %v13246_v17, %v13245_v45  ;;  %v13248_v39 = vld [vmem:[#allocation156_spill] sm:$0xff] }
 0x447   :  { %v9490_v10 = vadd.f32 %v13249_v8, %v13248_v39  ;;  %v13260_v39 = vld [vmem:[#allocation133_spill] sm:$0xff] }
 0x448   :  { %13247 = vst [vmem:[#allocation114_spill] sm:$0xff] %v9486_v48 }
 0x449   :  { %v9478_v26 = vpop.permute.xlu1 %2517  ;;  %2655 = vperm.xlu1 %7206, %v9472_v38   ;;  %v9481_v18 = vpop.permute.xlu0 %2514  ;;  %13250 = vst [vmem:[#allocation119_spill] sm:$0xff] %v9490_v10  ;;  %v9500_v38 = vadd.f32 %v13253_v12, %v9049_v52 }
 0x44a   :  { %13243 = vst [vmem:[#allocation112_spill] sm:$0xff] %v9478_v26  ;;  %13244 = vst [vmem:[#allocation117_spill] sm:$0xff] %v9481_v18  ;;  %2652 = vperm.xlu0 %7205, %v9476_v56   ;;  %v13255_v56 = vld [vmem:[#allocation158_spill] sm:$0xff]  ;;  %v13256_v26 = vld [vmem:[#allocation128_spill] sm:$0xff] }
 0x44b   :  { %13254 = vst [vmem:[#allocation118_spill] sm:$0xff] %v9500_v38  ;;  %v9504_v17 = vadd.f32 %v13256_v26, %v13255_v56  ;;  %v13266_v26 = vld [vmem:[#allocation135_spill] sm:$0xff] }
 0x44d   :  { %v9492_v20 = vpop.permute.xlu1 %2523  ;;  %2661 = vperm.xlu1 %7206, %v9486_v48   ;;  %v9495_v43 = vpop.permute.xlu0 %2520  ;;  %13257 = vst [vmem:[#allocation123_spill] sm:$0xff] %v9504_v17  ;;  %v9514_v48 = vadd.f32 %v13260_v39, %v9063_v5 }
 0x44e   :  { %13251 = vst [vmem:[#allocation116_spill] sm:$0xff] %v9492_v20  ;;  %13252 = vst [vmem:[#allocation121_spill] sm:$0xff] %v9495_v43  ;;  %2658 = vperm.xlu0 %7205, %v9490_v10   ;;  %v13262_v10 = vld [vmem:[#allocation56_spill] sm:$0xff]  ;;  %v13263_v20 = vld [vmem:[#allocation130_spill] sm:$0xff] }
 0x44f   :  { %13261 = vst [vmem:[#allocation149_spill] sm:$0xff] %v9514_v48  ;;  %v9518_v52 = vadd.f32 %v13263_v20, %v13262_v10  ;;  %v13271_v20 = vld [vmem:[#allocation137_spill] sm:$0xff] }
 0x451   :  { %v9506_v45 = vpop.permute.xlu1 %2529  ;;  %2667 = vperm.xlu1 %7206, %v9500_v38   ;;  %v9509_v8 = vpop.permute.xlu0 %2526  ;;  %13264 = vst [vmem:[#allocation122_spill] sm:$0xff] %v9518_v52  ;;  %v9528_v38 = vadd.f32 %v13266_v26, %v9077_v51 }
 0x452   :  { %13258 = vst [vmem:[#allocation120_spill] sm:$0xff] %v9506_v45  ;;  %13259 = vst [vmem:[#allocation125_spill] sm:$0xff] %v9509_v8  ;;  %2664 = vperm.xlu0 %7205, %v9504_v17   ;;  %v13268_v17 = vld [vmem:[#allocation58_spill] sm:$0xff]  ;;  %v13269_v45 = vld [vmem:[#allocation132_spill] sm:$0xff] }
 0x453   :  { %13267 = vst [vmem:[#allocation127_spill] sm:$0xff] %v9528_v38  ;;  %v9532_v5 = vadd.f32 %v13269_v45, %v13268_v17  ;;  %v13275_v45 = vld [vmem:[#allocation139_spill] sm:$0xff] }
 0x455   :  { %v9520_v12 = vpop.permute.xlu1 %2463  ;;  %2673 = vperm.xlu1 %7206, %v9514_v48   ;;  %v9523_v56 = vpop.permute.xlu0 %2532  ;;  %13270 = vst [vmem:[#allocation50_spill] sm:$0xff] %v9532_v5  ;;  %v9542_v48 = vadd.f32 %v13271_v20, %v9091_v62 }
 0x456   :  { %13265 = vst [vmem:[#allocation52_spill] sm:$0xff] %v9523_v56  ;;  %2670 = vperm.xlu0 %7205, %v9518_v52   ;;  %v13273_v52 = vld [vmem:[#allocation134_spill] sm:$0xff] }
 0x457   :  { %13272 = vst [vmem:[#allocation124_spill] sm:$0xff] %v9542_v48  ;;  %v9546_v51 = vadd.f32 %v13273_v52, %v9075_v59  ;;  %v13280_v52 = vld [vmem:[#allocation141_spill] sm:$0xff] }
 0x459   :  { %v9534_v39 = vpop.permute.xlu1 %2469  ;;  %2679 = vperm.xlu1 %7206, %v9528_v38   ;;  %v9537_v10 = vpop.permute.xlu0 %2466  ;;  %13274 = vst [vmem:[#allocation54_spill] sm:$0xff] %v9546_v51  ;;  %v9556_v38 = vadd.f32 %v13275_v45, %v9110_v21 }
 0x45a   :  { %2676 = vperm.xlu0 %7205, %v9532_v5   ;;  %v13277_v5 = vld [vmem:[#allocation136_spill] sm:$0xff] }
 0x45b   :  { %13276 = vst [vmem:[#allocation129_spill] sm:$0xff] %v9556_v38  ;;  %v9560_v62 = vadd.f32 %v13277_v5, %v9089_v30  ;;  %v13286_v5 = vld [vmem:[#allocation140_spill] sm:$0xff] }
 0x45d   :  { %v9548_v26 = vpop.permute.xlu1 %2475  ;;  %2685 = vperm.xlu1 %7206, %v9542_v48   ;;  %v9551_v17 = vpop.permute.xlu0 %2472  ;;  %13278 = vst [vmem:[#allocation156_spill] sm:$0xff] %v9560_v62  ;;  %v9570_v48 = vadd.f32 %v13280_v52, %v9128_v54 }
 0x45e   :  { %2682 = vperm.xlu0 %7205, %v9546_v51   ;;  %v13282_v51 = vld [vmem:[#allocation138_spill] sm:$0xff] }
 0x45f   :  { %13281 = vst [vmem:[#allocation131_spill] sm:$0xff] %v9570_v48  ;;  %v9574_v21 = vadd.f32 %v13282_v51, %v9103_v50 }
 0x461   :  { %v9562_v20 = vpop.permute.xlu1 %2481  ;;  %2691 = vperm.xlu1 %7206, %v9556_v38   ;;  %v9565_v59 = vpop.permute.xlu0 %2478  ;;  %13283 = vst [vmem:[#allocation158_spill] sm:$0xff] %v9574_v21  ;;  %v9584_v38 = vadd.f32 %v13286_v5, %v9117_v55 }
 0x462   :  { %13279 = vst [vmem:[#allocation126_spill] sm:$0xff] %v9562_v20  ;;  %2688 = vperm.xlu0 %7205, %v9560_v62  }
 0x463   :  { %13287 = vst [vmem:[#allocation56_spill] sm:$0xff] %v9584_v38 }
 0x465   :  { %v9576_v45 = vpop.permute.xlu1 %2487  ;;  %2697 = vperm.xlu1 %7206, %v9570_v48   ;;  %v9579_v30 = vpop.permute.xlu0 %2484 }
 0x466   :  { %13284 = vst [vmem:[#allocation128_spill] sm:$0xff] %v9576_v45  ;;  %13285 = vst [vmem:[#allocation133_spill] sm:$0xff] %v9579_v30  ;;  %2694 = vperm.xlu0 %7205, %v9574_v21  }
 0x469   :  { %v9586_v62 = vpop.permute.xlu1 %2493  ;;  %v9588_v54 = vpop.permute.xlu0 %2490 }
 0x46a   :  { %13288 = vst [vmem:[#allocation130_spill] sm:$0xff] %v9586_v62  ;;  %13289 = vst [vmem:[#allocation135_spill] sm:$0xff] %v9588_v54  ;;  %2700 = vperm.xlu0 %7205, %v9584_v38  }
 0x46d   :  { %v9591_v50 = vpop.permute.xlu1 %2499  ;;  %v9593_v51 = vpop.permute.xlu0 %2496 }
 0x46e   :  { %13290 = vst [vmem:[#allocation58_spill] sm:$0xff] %v9591_v50  ;;  %13291 = vst [vmem:[#allocation132_spill] sm:$0xff] %v9593_v51 }
 0x471   :  { %v9595_v52 = vpop.permute.xlu1 %2505  ;;  %v9597_v48 = vpop.permute.xlu0 %2502 }
 0x472   :  { %13292 = vst [vmem:[#allocation137_spill] sm:$0xff] %v9595_v52  ;;  %13293 = vst [vmem:[#allocation134_spill] sm:$0xff] %v9597_v48 }
 0x475   :  { %v9599_v56 = vpop.permute.xlu1 %2535  ;;  %v9601_v21 = vpop.permute.xlu0 %2508 }
 0x476   :  { %13294 = vst [vmem:[#allocation139_spill] sm:$0xff] %v9599_v56  ;;  %13295 = vst [vmem:[#allocation136_spill] sm:$0xff] %v9601_v21 }
 0x479   :  { %v9603_v55 = vpop.permute.xlu1 %2541  ;;  %v9605_v5 = vpop.permute.xlu0 %2538 }
 0x47a   :  { %13296 = vst [vmem:[#allocation141_spill] sm:$0xff] %v9603_v55  ;;  %13297 = vst [vmem:[#allocation138_spill] sm:$0xff] %v9605_v5 }
 0x47d   :  { %v9607_v62 = vpop.permute.xlu1 %2547  ;;  %v9609_v8 = vpop.permute.xlu0 %2544 }
 0x47e   :  { %13298 = vst [vmem:[#allocation140_spill] sm:$0xff] %v9607_v62  ;;  %13299 = vst [vmem:[#allocation197_spill] sm:$0xff] %v9609_v8  ;;  %v13310_v8 = vlaneseq }
 0x481   :  { %v9611_v38 = vpop.permute.xlu1 %2553  ;;  %v9613_v50 = vpop.permute.xlu0 %2550 }
 0x482   :  { %13300 = vst [vmem:[#allocation198_spill] sm:$0xff] %v9611_v38  ;;  %13301 = vst [vmem:[#allocation199_spill] sm:$0xff] %v9613_v50  ;;  %v9632_v38 = vand.u32 127, %v13310_v8 }
 0x485   :  { %v9615_v51 = vpop.permute.xlu1 %2559  ;;  %v9617_v52 = vpop.permute.xlu0 %2556 }
 0x486   :  { %13302 = vst [vmem:[#allocation200_spill] sm:$0xff] %v9615_v51  ;;  %13303 = vst [vmem:[#allocation201_spill] sm:$0xff] %v9617_v52  ;;  %v2708_v52 = vadd.s32 4294967288, %v9632_v38 }
 0x489   :  { %v9619_v48 = vpop.permute.xlu1 %2565  ;;  %v9621_v56 = vpop.permute.xlu0 %2562 }
 0x48a   :  { %13304 = vst [vmem:[#allocation202_spill] sm:$0xff] %v9619_v48  ;;  %13305 = vst [vmem:[#allocation203_spill] sm:$0xff] %v9621_v56  ;;  %v2715_v48 = vadd.s32 4294967280, %v9632_v38  ;;  %v13313_v56 = vld [vmem:[#allocation27_spill] sm:$0xff] }
 0x48b   :  { %v9650_v8 = vsub.s32 %v2708_v52, %v13313_v56  ;;  %v2736_v52 = vadd.s32 4294967256, %v9632_v38 }
 0x48d   :  { %v9623_v21 = vpop.permute.xlu1 %2571  ;;  %v9625_v55 = vpop.permute.xlu0 %2568  ;;  %v2820_v30 = vrot.slane %v9257_v19, %v9650_v8 }
 0x48e   :  { %13306 = vst [vmem:[#allocation204_spill] sm:$0xff] %v9623_v21  ;;  %13307 = vst [vmem:[#allocation205_spill] sm:$0xff] %v9625_v55  ;;  %v9642_v21 = vsub.s32 %v9632_v38, %v13313_v56  ;;  %v2722_v55 = vadd.s32 4294967272, %v9632_v38 }
 0x490   :  { %v2707_v54 = vrot.slane %v9145_v33, %v9642_v21  ;;  %v9659_v45 = vsub.s32 %v2722_v55, %v13313_v56  ;;  %v2757_v55 = vadd.s32 4294967232, %v9632_v38  ;;  %v2816_v19 = vrot.slane %v9241_v34, %v9642_v21 }
 0x491   :  { %v9627_v5 = vpop.permute.xlu1 %2577  ;;  %v9629_v62 = vpop.permute.xlu0 %2574 }
 0x492   :  { %13308 = vst [vmem:[#allocation206_spill] sm:$0xff] %v9627_v5  ;;  %13309 = vst [vmem:[#allocation207_spill] sm:$0xff] %v9629_v62  ;;  %v2821_v20 = vsel %vm2713_vm0, %v2820_v30, %v2816_v19  ;;  %v2830_v14 = vrot.slane %v9271_v7, %v9659_v45  ;;  %v2899_v7 = vrot.slane %v9369_v42, %v9650_v8  ;;  %v2778_v30 = vadd.s32 4294967208, %v9632_v38 }
 0x493   :  { %v2895_v42 = vrot.slane %v9353_v13, %v9642_v21 }
 0x495   :  { %v9634_v50 = vpop.permute.xlu1 %2583  ;;  %v9636_v51 = vpop.permute.xlu0 %2580  ;;  %v2900_v13 = vsel %vm2713_vm0, %v2899_v7, %v2895_v42 }
 0x496   :  { %13311 = vst [vmem:[#allocation208_spill] sm:$0xff] %v9634_v50  ;;  %13312 = vst [vmem:[#allocation209_spill] sm:$0xff] %v9636_v51  ;;  %v9653_v50 = vsub.s32 %v2715_v48, %v13313_v56  ;;  %v2729_v51 = vadd.s32 4294967264, %v9632_v38  ;;  %v2712_v48 = vrot.slane %v9131_v53, %v9650_v8 }
 0x498   :  { %v9672_v33 = vsub.s32 %v2729_v51, %v13313_v56  ;;  %v9688_v51 = vsub.s32 %v2736_v52, %v13313_v56  ;;  %v2825_v52 = vrot.slane %v9255_v11, %v9653_v50  ;;  %v2764_v11 = vadd.s32 4294967224, %v9632_v38 }
 0x499   :  { %v9645_v5 = vpop.permute.xlu1 %2589  ;;  %v9647_v62 = vpop.permute.xlu0 %2586 }
 0x49a   :  { %13314 = vst [vmem:[#allocation27_spill] sm:$0xff] %v9645_v5  ;;  %13315 = vst [vmem:[#allocation210_spill] sm:$0xff] %v9647_v62  ;;  %v2743_v5 = vadd.s32 4294967248, %v9632_v38  ;;  %v2719_v62 = vrot.slane %v9143_v47, %v9653_v50  ;;  %v2840_v19 = vrot.slane %v9285_v28, %v9688_v51 }
 0x49c   :  { %v9685_v47 = vsub.s32 %v2743_v5, %v13313_v56  ;;  %v9698_v5 = vsub.s32 %v2757_v55, %v13313_v56  ;;  %v2826_v55 = vsel %vm2720_vm1, %v2825_v52, %v2821_v20  ;;  %v9742_v20 = vsub.s32 %v2764_v11, %v13313_v56 }
 0x49d   :  { %v9661_v43 = vpop.permute.xlu1 %2595  ;;  %v9663_v37 = vpop.permute.xlu0 %2592  ;;  %v2909_v52 = vrot.slane %v9383_v44, %v9659_v45 }
 0x49e   :  { %13316 = vst [vmem:[#allocation211_spill] sm:$0xff] %v9661_v43  ;;  %13317 = vst [vmem:[#allocation212_spill] sm:$0xff] %v9663_v37  ;;  %v2714_v43 = vsel %vm2713_vm0, %v2712_v48, %v2707_v54  ;;  %v2726_v37 = vrot.slane %v9159_v46, %v9659_v45  ;;  %v2750_v54 = vadd.s32 4294967240, %v9632_v38  ;;  %v2771_v46 = vadd.s32 4294967216, %v9632_v38 }
 0x49f   :  { %v2733_v48 = vrot.slane %v9157_v36, %v9672_v33  ;;  %v2740_v36 = vrot.slane %v9173_v58, %v9688_v51  ;;  %v2835_v58 = vrot.slane %v9269_v32, %v9672_v33  ;;  %13323 = vst [vmem:[#allocation218_spill] sm:$0xff] %v9742_v20 }
 0x4a1   :  { %v9680_v15 = vpop.permute.xlu1 %2601  ;;  %v9682_v53 = vpop.permute.xlu0 %2598 }
 0x4a2   :  { %13318 = vst [vmem:[#allocation213_spill] sm:$0xff] %v9680_v15  ;;  %13319 = vst [vmem:[#allocation214_spill] sm:$0xff] %v9682_v53  ;;  %v2721_v15 = vsel %vm2720_vm1, %v2719_v62, %v2714_v43  ;;  %v9713_v43 = vsub.s32 %v2750_v54, %v13313_v56  ;;  %v2747_v54 = vrot.slane %v9171_v9, %v9685_v47 }
 0x4a3   :  { %v2728_v53 = vsel %vm2727_vm2, %v2726_v37, %v2721_v15  ;;  %v9717_v37 = vsub.s32 %v2771_v46, %v13313_v56  ;;  %v2785_v15 = vadd.s32 4294967200, %v9632_v38  ;;  %v2831_v46 = vsel %vm2727_vm2, %v2830_v14, %v2826_v55 }
 0x4a4   :  { %v2735_v62 = vsel %vm2734_vm3, %v2733_v48, %v2728_v53  ;;  %v2754_v32 = vrot.slane %v9187_v1, %v9713_v43  ;;  %v2904_v9 = vrot.slane %v9367_v60, %v9653_v50  ;;  %v2799_v14 = vadd.s32 4294967184, %v9632_v38 }
 0x4a5   :  { %v9706_v34 = vpop.permute.xlu1 %2607  ;;  %v9708_v18 = vpop.permute.xlu0 %2604  ;;  %13321 = vst [vmem:[#allocation216_spill] sm:$0xff] %v9717_v37  ;;  %v2742_v48 = vsel %vm2741_vm4, %v2740_v36, %v2735_v62  ;;  %v9747_v28 = vsub.s32 %v2785_v15, %v13313_v56  ;;  %v9754_v36 = vsub.s32 %v2778_v30, %v13313_v56  ;;  %v2792_v1 = vadd.s32 4294967192, %v9632_v38  ;;  %v13326_v15 = vld [vmem:[#allocation84_spill] sm:$0xff] }
 0x4a6   :  { %13320 = vst [vmem:[#allocation215_spill] sm:$0xff] %v9708_v18  ;;  %v2845_v60 = vrot.slane %v9283_v40, %v9685_v47  ;;  %v2836_v11 = vsel %vm2734_vm3, %v2835_v58, %v2831_v46  ;;  %v2761_v62 = vrot.slane %v13326_v15, %v9698_v5  ;;  %v2749_v55 = vsel %vm12674_vm5, %v2747_v54, %v2742_v48 }
 0x4a7   :  { %13324 = vst [vmem:[#allocation219_spill] sm:$0xff] %v9747_v28  ;;  %13325 = vst [vmem:[#allocation220_spill] sm:$0xff] %v9754_v36  ;;  %v2841_v7 = vsel %vm2741_vm4, %v2840_v19, %v2836_v11  ;;  %v2850_v44 = vrot.slane %v9299_v49, %v9713_v43  ;;  %v2768_v40 = vrot.slane %v9201_v63, %v9742_v20  ;;  %v2806_v63 = vadd.s32 4294967176, %v9632_v38 }
 0x4a8   :  { %v2914_v58 = vrot.slane %v9381_v57, %v9672_v33  ;;  %v2905_v46 = vsel %vm2720_vm1, %v2904_v9, %v2900_v13  ;;  %v9777_v54 = vsub.s32 %v2799_v14, %v13313_v56  ;;  %v2919_v19 = vrot.slane %v9397_v61, %v9688_v51 }
 0x4a9   :  { %v9734_v18 = vpop.permute.xlu1 %2613  ;;  %v9736_v53 = vpop.permute.xlu0 %2610  ;;  %v2910_v49 = vsel %vm2727_vm2, %v2909_v52, %v2905_v46  ;;  %v9783_v48 = vsub.s32 %v2792_v1, %v13313_v56  ;;  %v2855_v57 = vrot.slane %v9297_v41, %v9698_v5  ;;  %v2860_v13 = vrot.slane %v9313_v23, %v9742_v20 }
 0x4aa   :  { %13322 = vst [vmem:[#allocation217_spill] sm:$0xff] %v9734_v18  ;;  %v2756_v18 = vsel %vm12675_vm6, %v2754_v32, %v2749_v55  ;;  %13327 = vst [vmem:[#allocation84_spill] sm:$0xff] %v9777_v54  ;;  %v2846_v32 = vsel %vm12674_vm5, %v2845_v60, %v2841_v7  ;;  %v2978_v61 = vrot.slane %v9537_v10, %v9650_v8 }
 0x4ab   :  { %13328 = vst [vmem:[#allocation221_spill] sm:$0xff] %v9783_v48  ;;  %v2763_v9 = vsel %vm2762_vm7, %v2761_v62, %v2756_v18  ;;  %v2851_v14 = vsel %vm12675_vm6, %v2850_v44, %v2846_v32  ;;  %v2775_v38 = vrot.slane %v9199_v22, %v9717_v37  ;;  %v2924_v18 = vrot.slane %v9395_v2, %v9685_v47 }
 0x4ac   :  { %v2770_v41 = vsel %vm2769_vm8, %v2768_v40, %v2763_v9  ;;  %v2915_v60 = vsel %vm2734_vm3, %v2914_v58, %v2910_v49  ;;  %v2782_v23 = vrot.slane %v9215_v4, %v9754_v36  ;;  %v2929_v10 = vrot.slane %v9411_v35, %v9713_v43 }
 0x4ad   :  { %v9766_v30 = vpop.permute.xlu1 %2619  ;;  %v9768_v42 = vpop.permute.xlu0 %2616  ;;  %v2920_v11 = vsel %vm2741_vm4, %v2919_v19, %v2915_v60  ;;  %v2974_v15 = vrot.slane %v9520_v12, %v9642_v21  ;;  %v9813_v22 = vsub.s32 %v2806_v63, %v13313_v56  ;;  %v2865_v62 = vrot.slane %v9311_v3, %v9717_v37  ;;  %v13330_v3 = vld [vmem:[#allocation83_spill] sm:$0xff] }
 0x4ae   :  { %v2856_v2 = vsel %vm2762_vm7, %v2855_v57, %v2851_v14  ;;  %v2983_v55 = vrot.slane %v9534_v39, %v9653_v50  ;;  %v2870_v7 = vrot.slane %v9327_v25, %v9754_v36  ;;  %v2988_v12 = vrot.slane %v9551_v17, %v9659_v45 }
 0x4af   :  { %13329 = vst [vmem:[#allocation222_spill] sm:$0xff] %v9813_v22  ;;  %v2861_v4 = vsel %vm2769_vm8, %v2860_v13, %v2856_v2  ;;  %v2979_v35 = vsel %vm2713_vm0, %v2978_v61, %v2974_v15  ;;  %v2789_v40 = vrot.slane %v13330_v3, %v9747_v28  ;;  %v2777_v58 = vsel %vm12677_vm9, %v2775_v38, %v2770_v41  ;;  %v13331_v61 = vld [vmem:[#allocation66_spill] sm:$0xff] }
 0x4b0   :  { %v2934_v39 = vrot.slane %v9409_v16, %v9698_v5  ;;  %v2925_v25 = vsel %vm12674_vm5, %v2924_v18, %v2920_v11  ;;  %v2784_v46 = vsel %vm12676_vm10, %v2782_v23, %v2777_v58  ;;  %v2796_v17 = vrot.slane %v9229_v31, %v9783_v48  ;;  %v13332_v23 = vld [vmem:[#allocation117_spill] sm:$0xff]  ;;  %v13334_v2 = vld [vmem:[#allocation126_spill] sm:$0xff] }
 0x4b1   :  { %v9795_v52 = vpop.permute.xlu1 %2625  ;;  %v9797_v1 = vpop.permute.xlu0 %2622  ;;  %v2930_v49 = vsel %vm12675_vm6, %v2929_v10, %v2925_v25  ;;  %v2939_v19 = vrot.slane %v9425_v27, %v9742_v20  ;;  %v2875_v63 = vrot.slane %v9325_v0, %v9747_v28  ;;  %v2866_v57 = vsel %vm12677_vm9, %v2865_v62, %v2861_v4  ;;  %v13333_v10 = vld [vmem:[#allocation90_spill] sm:$0xff] }
 0x4b2   :  { %v2993_v16 = vrot.slane %v9548_v26, %v9672_v33  ;;  %v2984_v32 = vsel %vm2720_vm1, %v2983_v55, %v2979_v35  ;;  %v2871_v9 = vsel %vm12676_vm10, %v2870_v7, %v2866_v57  ;;  %v2880_v31 = vrot.slane %v9341_v29, %v9783_v48  ;;  %v13335_v7 = vld [vmem:[#allocation108_spill] sm:$0xff] }
 0x4b3   :  { %v2989_v14 = vsel %vm2727_vm2, %v2988_v12, %v2984_v32  ;;  %v2998_v27 = vrot.slane %v9565_v59, %v9688_v51  ;;  %v2803_v26 = vrot.slane %v13331_v61, %v9777_v54  ;;  %v2791_v38 = vsel %vm12678_vm11, %v2789_v40, %v2784_v46  ;;  %v13336_v12 = vld [vmem:[#allocation133_spill] sm:$0xff] }
 0x4b4   :  { %v2944_v41 = vrot.slane %v9423_v24, %v9717_v37  ;;  %v2935_v18 = vsel %vm2762_vm7, %v2934_v39, %v2930_v49  ;;  %v2798_v29 = vsel %vm2797_vm12, %v2796_v17, %v2791_v38  ;;  %v2949_v59 = vrot.slane %v9439_v6, %v9754_v36  ;;  %v13337_v39 = vld [vmem:[#allocation172_spill] sm:$0xff]  ;;  %v13338_v46 = vld [vmem:[#allocation105_spill] sm:$0xff] }
 0x4b5   :  { %v9826_v56 = vpop.permute.xlu1 %2631  ;;  %v9828_v44 = vpop.permute.xlu0 %2628  ;;  %v2940_v60 = vsel %vm2769_vm8, %v2939_v19, %v2935_v18  ;;  %v3057_v11 = vrot.slane %v13332_v23, %v9650_v8  ;;  %v2885_v15 = vrot.slane %v13333_v10, %v9777_v54  ;;  %v2876_v62 = vsel %vm12678_vm11, %v2875_v63, %v2871_v9  ;;  %v13339_v19 = vld [vmem:[#allocation112_spill] sm:$0xff] }
 0x4b6   :  { %v3003_v24 = vrot.slane %v13334_v2, %v9685_v47  ;;  %v2994_v55 = vsel %vm2734_vm3, %v2993_v16, %v2989_v14  ;;  %v2881_v4 = vsel %vm2797_vm12, %v2880_v31, %v2876_v62  ;;  %v3053_v35 = vrot.slane %v13335_v7, %v9642_v21  ;;  %v13340_v16 = vld [vmem:[#allocation109_spill] sm:$0xff]  ;;  %v13343_v38 = vld [vmem:[#allocation128_spill] sm:$0xff] }
 0x4b7   :  { %v2999_v6 = vsel %vm2741_vm4, %v2998_v27, %v2994_v55  ;;  %v3008_v3 = vrot.slane %v13336_v12, %v9713_v43  ;;  %v2890_v25 = vrot.slane %v13337_v39, %v9813_v22  ;;  %v2954_v17 = vrot.slane %v13338_v46, %v9747_v28  ;;  %v13341_v31 = vld [vmem:[#allocation121_spill] sm:$0xff]  ;;  %v13345_v55 = vld [vmem:[#allocation104_spill] sm:$0xff]  ;;  %v13347_v12 = vld [vmem:[#allocation203_spill] sm:$0xff] }
 0x4b8   :  { %v2945_v49 = vsel %vm12677_vm9, %v2944_v41, %v2940_v60  ;;  %v3062_v63 = vrot.slane %v13339_v19, %v9653_v50  ;;  %v2959_v32 = vrot.slane %v13340_v16, %v9783_v48  ;;  %v3058_v9 = vsel %vm2713_vm0, %v3057_v11, %v3053_v35  ;;  %v13342_v27 = vld [vmem:[#allocation65_spill] sm:$0xff]  ;;  %v13344_v11 = vld [vmem:[#allocation135_spill] sm:$0xff] }
 0x4b9   :  { %v9854_v13 = vpop.permute.xlu1 %2637  ;;  %v9856_v0 = vpop.permute.xlu0 %2634  ;;  %v2950_v57 = vsel %vm12676_vm10, %v2949_v59, %v2945_v49  ;;  %v3067_v14 = vrot.slane %v13341_v31, %v9659_v45  ;;  %v2810_v61 = vrot.slane %v13342_v27, %v9813_v22  ;;  %v3013_v41 = vrot.slane %v13343_v38, %v9698_v5  ;;  %v13348_v46 = vld [vmem:[#allocation125_spill] sm:$0xff] }
 0x4ba   :  { %v3004_v18 = vsel %vm12674_vm5, %v3003_v24, %v2999_v6  ;;  %v2805_v60 = vsel %vm2804_vm13, %v2803_v26, %v2798_v29  ;;  %v2886_v59 = vsel %vm2804_vm13, %v2885_v15, %v2881_v4  ;;  %v3018_v10 = vrot.slane %v13344_v11, %v9742_v20  ;;  %v13346_v24 = vld [vmem:[#allocation116_spill] sm:$0xff] }
 0x4bb   :  { %v3009_v23 = vsel %vm12675_vm6, %v3008_v3, %v3004_v18  ;;  %v2964_v7 = vrot.slane %v13345_v55, %v9777_v54  ;;  %v2955_v35 = vsel %vm12678_vm11, %v2954_v17, %v2950_v57  ;;  %v3072_v6 = vrot.slane %v13346_v24, %v9672_v33  ;;  %v13349_v17 = vld [vmem:[#allocation130_spill] sm:$0xff] }
 0x4bc   :  { %v3063_v26 = vsel %vm2720_vm1, %v3062_v63, %v3058_v9  ;;  %v2891_v29 = vsel %vm2811_vm14, %v2890_v25, %v2886_v59  ;;  %v2960_v15 = vsel %vm2797_vm12, %v2959_v32, %v2955_v35  ;;  %v3136_v3 = vrot.slane %v13347_v12, %v9650_v8  ;;  %v13350_v25 = vld [vmem:[#allocation132_spill] sm:$0xff]  ;;  %v13352_v18 = vld [vmem:[#allocation202_spill] sm:$0xff] }
 0x4bd   :  { %v9882_v40 = vpop.permute.xlu1 %2643  ;;  %v9884_v58 = vpop.permute.xlu0 %2640  ;;  %v3068_v4 = vsel %vm2727_vm2, %v3067_v14, %v3063_v26  ;;  %v2812_v39 = vsel %vm2811_vm14, %v2810_v61, %v2805_v60  ;;  %v3077_v49 = vrot.slane %v13348_v46, %v9688_v51  ;;  %v3023_v19 = vrot.slane %v13349_v17, %v9717_v37  ;;  %v13351_v32 = vld [vmem:[#allocation200_spill] sm:$0xff]  ;;  %v13356_v26 = vld [vmem:[#allocation217_spill] sm:$0xff] }
 0x4be   :  { %v3014_v57 = vsel %vm2762_vm7, %v3013_v41, %v3009_v23  ;;  %v3028_v16 = vrot.slane %v13350_v25, %v9754_v36  ;;  %v3132_v9 = vrot.slane %v13351_v32, %v9642_v21  ;;  %v3215_v31 = vrot.slane %v9736_v53, %v9650_v8  ;;  %v13353_v59 = vld [vmem:[#allocation120_spill] sm:$0xff]  ;;  %v13354_v53 = vld [vmem:[#allocation205_spill] sm:$0xff] }
 0x4bf   :  { %v3019_v63 = vsel %vm2769_vm8, %v3018_v10, %v3014_v57  ;;  %v9940_v61 = vsel %vm12673_vm15, %v2891_v29, %v2812_v39  ;;  %v9943_v38 = vsel %vm2804_vm13, %v2964_v7, %v2960_v15  ;;  %v3073_v41 = vsel %vm2734_vm3, %v3072_v6, %v3068_v4  ;;  %v13355_v7 = vld [vmem:[#allocation52_spill] sm:$0xff]  ;;  %v13357_v15 = vld [vmem:[#allocation58_spill] sm:$0xff]  ;;  %v13359_v25 = vld [vmem:[#allocation113_spill] sm:$0xff] }
 0x4c0   :  { %v3141_v60 = vrot.slane %v13352_v18, %v9653_v50  ;;  %v3082_v23 = vrot.slane %v13353_v59, %v9685_v47  ;;  %v3137_v11 = vsel %vm2713_vm0, %v3136_v3, %v3132_v9  ;;  %v3146_v10 = vrot.slane %v13354_v53, %v9659_v45  ;;  %v13360_v9 = vld [vmem:[#allocation207_spill] sm:$0xff] }
 0x4c1   :  { %v9909_v62 = vpop.permute.xlu1 %2649  ;;  %v9911_v2 = vpop.permute.xlu0 %2646  ;;  %v3211_v55 = vrot.slane %v9706_v34, %v9642_v21  ;;  %v3078_v35 = vsel %vm2741_vm4, %v3077_v49, %v3073_v41  ;;  %v3087_v24 = vrot.slane %v13355_v7, %v9713_v43  ;;  %v3024_v6 = vsel %vm12677_vm9, %v3023_v19, %v3019_v63  ;;  %v13358_v49 = vld [vmem:[#allocation204_spill] sm:$0xff] }
 0x4c2   :  { %v3220_v29 = vrot.slane %v13356_v26, %v9653_v50  ;;  %v3033_v4 = vrot.slane %v13357_v15, %v9747_v28  ;;  %v3029_v12 = vsel %vm12676_vm10, %v3028_v16, %v3024_v6  ;;  %v3225_v34 = vrot.slane %v9768_v42, %v9659_v45  ;;  %v13363_v15 = vld [vmem:[#allocation209_spill] sm:$0xff] }
 0x4c3   :  { %v3216_v3 = vsel %vm2713_vm0, %v3215_v31, %v3211_v55  ;;  %v3151_v17 = vrot.slane %v13358_v49, %v9672_v33  ;;  %v3142_v19 = vsel %vm2720_vm1, %v3141_v60, %v3137_v11  ;;  %v2969_v32 = vrot.slane %v13359_v25, %v9813_v22 }
 0x4c4   :  { %v3147_v16 = vsel %vm2727_vm2, %v3146_v10, %v3142_v19  ;;  %v3156_v31 = vrot.slane %v13360_v9, %v9688_v51  ;;  %v3083_v41 = vsel %vm12674_vm5, %v3082_v23, %v3078_v35  ;;  %v3230_v18 = vrot.slane %v9766_v30, %v9672_v33  ;;  %v13361_v23 = vld [vmem:[#allocation139_spill] sm:$0xff]  ;;  %v13362_v30 = vld [vmem:[#allocation206_spill] sm:$0xff] }
 0x4c5   :  { %v2656_v14 = vpop.permute.xlu1 %2655  ;;  %v9937_v27 = vpop.permute.xlu0 %2652  ;;  %v3221_v60 = vsel %vm2720_vm1, %v3220_v29, %v3216_v3  ;;  %v3088_v59 = vsel %vm12675_vm6, %v3087_v24, %v3083_v41  ;;  %v3034_v11 = vsel %vm12678_vm11, %v3033_v4, %v3029_v12  ;;  %v3235_v10 = vrot.slane %v9797_v1, %v9688_v51  ;;  %v13364_v3 = vld [vmem:[#allocation137_spill] sm:$0xff] }
 0x4c6   :  { %v3290_v57 = vrot.slane %v2656_v14, %v9642_v21  ;;  %v3226_v53 = vsel %vm2727_vm2, %v3225_v34, %v3221_v60  ;;  %v3092_v35 = vrot.slane %v13361_v23, %v9698_v5  ;;  %v3161_v6 = vrot.slane %v13362_v30, %v9685_v47  ;;  %v13369_v23 = vld [vmem:[#allocation141_spill] sm:$0xff] }
 0x4c7   :  { %v3152_v26 = vsel %vm2734_vm3, %v3151_v17, %v3147_v16  ;;  %v3166_v4 = vrot.slane %v13363_v15, %v9713_v43  ;;  %v3043_v34 = vrot.slane %v13364_v3, %v9777_v54  ;;  %v13365_v17 = vld [vmem:[#allocation134_spill] sm:$0xff]  ;;  %v3245_v9 = vrot.slane %v9828_v44, %v9713_v43 }
 0x4c8   :  { %v3157_v24 = vsel %vm2741_vm4, %v3156_v31, %v3152_v26  ;;  %v3038_v19 = vrot.slane %v13365_v17, %v9783_v48  ;;  %v3093_v41 = vsel %vm2762_vm7, %v3092_v35, %v3088_v59  ;;  %v3102_v30 = vrot.slane %v13369_v23, %v9717_v37 }
 0x4c9   :  { %v2662_v39 = vpop.permute.xlu1 %2661  ;;  %v2659_v46 = vpop.permute.xlu0 %2658  ;;  %v3162_v60 = vsel %vm12674_vm5, %v3161_v6, %v3157_v24  ;;  %v3250_v59 = vrot.slane %v9826_v56, %v9698_v5  ;;  %v13371_v56 = vld [vmem:[#allocation27_spill] sm:$0xff]  ;;  %vm3368_vm15 = vcmask 1042434  }
 0x4ca   :  { %v3294_v63 = vrot.slane %v2659_v46, %v9650_v8  ;;  %v3299_v42 = vrot.slane %v2662_v39, %v9653_v50  ;;  %v3240_v39 = vrot.slane %v9795_v52, %v9685_v47  ;;  %v3231_v46 = vsel %vm2734_vm3, %v3230_v18, %v3226_v53  ;;  %v13367_v52 = vld [vmem:[#allocation208_spill] sm:$0xff] }
 0x4cb   :  { %v3236_v16 = vsel %vm2741_vm4, %v3235_v10, %v3231_v46  ;;  %v3171_v18 = vrot.slane %v13367_v52, %v9698_v5  ;;  %v3167_v53 = vsel %vm12675_vm6, %v3166_v4, %v3162_v60  ;;  %v3255_v4 = vrot.slane %v9856_v0, %v9742_v20 }
 0x4cc   :  { %v3295_v14 = vsel %vm2713_vm0, %v3294_v63, %v3290_v57  ;;  %v13366_v57 = vld [vmem:[#allocation138_spill] sm:$0xff]  ;;  %v3241_v35 = vsel %vm12674_vm5, %v3240_v39, %v3236_v16  ;;  %v3039_v46 = vsel %vm2797_vm12, %v3038_v19, %v3034_v11  ;;  %v3260_v11 = vrot.slane %v9854_v13, %v9717_v37  ;;  %v13374_v13 = vld [vmem:[#allocation199_spill] sm:$0xff] }
 0x4cd   :  { %v2668_v55 = vpop.permute.xlu1 %2667  ;;  %v2665_v7 = vpop.permute.xlu0 %2664  ;;  %v3300_v1 = vsel %vm2720_vm1, %v3299_v42, %v3295_v14  ;;  %v3097_v63 = vrot.slane %v13366_v57, %v9742_v20  ;;  %v3246_v15 = vsel %vm12675_vm6, %v3245_v9, %v3241_v35  ;;  %v3172_v39 = vsel %vm2762_vm7, %v3171_v18, %v3167_v53  ;;  %v13376_v35 = vld [vmem:[#allocation214_spill] sm:$0xff] }
 0x4ce   :  { %v3304_v29 = vrot.slane %v2665_v7, %v9659_v45  ;;  %v3309_v12 = vrot.slane %v2668_v55, %v9672_v33  ;;  %v13368_v55 = vld [vmem:[#allocation210_spill] sm:$0xff]  ;;  %v3251_v19 = vsel %vm2762_vm7, %v3250_v59, %v3246_v15  ;;  %v3270_v15 = vrot.slane %v9882_v40, %v9747_v28  ;;  %v13379_v40 = vld [vmem:[#allocation201_spill] sm:$0xff] }
 0x4cf   :  { %v3176_v7 = vrot.slane %v13368_v55, %v9742_v20  ;;  %v3098_v26 = vsel %vm2769_vm8, %v3097_v63, %v3093_v41  ;;  %v13372_v63 = vld [vmem:[#allocation212_spill] sm:$0xff]  ;;  %v3256_v60 = vsel %vm2769_vm8, %v3255_v4, %v3251_v19 }
 0x4d0   :  { %v3305_v49 = vsel %vm2727_vm2, %v3304_v29, %v3300_v1  ;;  %v13370_v29 = vld [vmem:[#allocation197_spill] sm:$0xff]  ;;  %v3186_v16 = vrot.slane %v13372_v63, %v9754_v36  ;;  %v13373_v41 = vld [vmem:[#allocation140_spill] sm:$0xff]  ;;  %v3261_v4 = vsel %vm12677_vm9, %v3260_v11, %v3256_v60  ;;  %v3280_v60 = vrot.slane %v9909_v62, %v9777_v54 }
 0x4d1   :  { %v2674_v31 = vpop.permute.xlu1 %2673  ;;  %v2671_v42 = vpop.permute.xlu0 %2670  ;;  %v3310_v44 = vsel %vm2734_vm3, %v3309_v12, %v3305_v49  ;;  %v3107_v24 = vrot.slane %v13370_v29, %v9754_v36  ;;  %v3181_v49 = vrot.slane %v13371_v56, %v9717_v37  ;;  %v3177_v57 = vsel %vm2769_vm8, %v3176_v7, %v3172_v39  ;;  %v13377_v29 = vld [vmem:[#allocation136_spill] sm:$0xff]  ;;  %v13380_v11 = vld [vmem:[#allocation213_spill] sm:$0xff] }
 0x4d2   :  { %v3314_v14 = vrot.slane %v2671_v42, %v9688_v51  ;;  %v3319_v10 = vrot.slane %v2674_v31, %v9685_v47  ;;  %v3103_v31 = vsel %vm12677_vm9, %v3102_v30, %v3098_v26  ;;  %v3112_v52 = vrot.slane %v13373_v41, %v9747_v28 }
 0x4d3   :  { %v3108_v18 = vsel %vm12676_vm10, %v3107_v24, %v3103_v31  ;;  %v3117_v7 = vrot.slane %v13374_v13, %v9783_v48  ;;  %v3182_v23 = vsel %vm12677_vm9, %v3181_v49, %v3177_v57  ;;  %v3048_v24 = vrot.slane %v13377_v29, %v9813_v22 }
 0x4d4   :  { %v3315_v6 = vsel %vm2741_vm4, %v3314_v14, %v3310_v44  ;;  %v3265_v14 = vrot.slane %v9884_v58, %v9754_v36  ;;  %v3187_v59 = vsel %vm12676_vm10, %v3186_v16, %v3182_v23  ;;  %v3113_v49 = vsel %vm12678_vm11, %v3112_v52, %v3108_v18  ;;  %v13381_v52 = vld [vmem:[#allocation215_spill] sm:$0xff] }
 0x4d5   :  { %v2680_v12 = vpop.permute.xlu1 %2679  ;;  %v2677_v1 = vpop.permute.xlu0 %2676  ;;  %v3320_v0 = vsel %vm12674_vm5, %v3319_v10, %v3315_v6  ;;  %vm3370_vm5 = vcmask 1043459   ;;  %v13375_v10 = vld [vmem:[#allocation211_spill] sm:$0xff]  ;;  %v3196_v6 = vrot.slane %v13376_v35, %v9783_v48  ;;  %v3118_v16 = vsel %vm2797_vm12, %v3117_v7, %v3113_v49  ;;  %v13382_v49 = vld [vmem:[#allocation28_spill] sm:$0xff] }
 0x4d6   :  { %v3324_v17 = vrot.slane %v2677_v1, %v9713_v43  ;;  %v3329_v9 = vrot.slane %v2680_v12, %v9698_v5  ;;  %v3191_v44 = vrot.slane %v13375_v10, %v9747_v28  ;;  %v13378_v1 = vld [vmem:[#allocation198_spill] sm:$0xff]  ;;  %v3266_v39 = vsel %vm12676_vm10, %v3265_v14, %v3261_v4 }
 0x4d7   :  { %v3122_v56 = vrot.slane %v13378_v1, %v9777_v54  ;;  %v3201_v19 = vrot.slane %v13380_v11, %v9777_v54  ;;  %v3206_v18 = vrot.slane %v13381_v52, %v9813_v22  ;;  %v3271_v14 = vsel %vm12678_vm11, %v3270_v15, %v3266_v39  ;;  %v13387_v11 = vld [vmem:[#allocation174_spill] sm:$0xff]  ;;  %v13388_v52 = vld [vmem:[#allocation192_spill] sm:$0xff] }
 0x4d8   :  { %v3325_v42 = vsel %vm12675_vm6, %v3324_v17, %v3320_v0  ;;  %vm12814_vm6 = vcmask 1044484   ;;  %v3275_v17 = vrot.slane %v9911_v2, %v9783_v48  ;;  %v3192_v0 = vsel %vm12678_vm11, %v3191_v44, %v3187_v59 }
 0x4d9   :  { %v2686_v53 = vpop.permute.xlu1 %2685  ;;  %v2683_v55 = vpop.permute.xlu0 %2682  ;;  %v3330_v26 = vsel %vm2762_vm7, %v3329_v9, %v3325_v42  ;;  %v3127_v9 = vrot.slane %v13379_v40, %v9813_v22  ;;  %v3197_v42 = vsel %vm2797_vm12, %v3196_v6, %v3192_v0  ;;  %v3044_v13 = vsel %vm2804_vm13, %v3043_v34, %v3039_v46  ;;  %v13385_v40 = vld [vmem:[#allocation176_spill] sm:$0xff]  ;;  %v13386_v0 = vld [vmem:[#allocation190_spill] sm:$0xff] }
 0x4da   :  { %v3334_v30 = vrot.slane %v2683_v55, %v9742_v20  ;;  %v3339_v58 = vrot.slane %v2686_v53, %v9717_v37  ;;  %v2970_v55 = vsel %vm2811_vm14, %v2969_v32, %v9943_v38  ;;  %v3276_v7 = vsel %vm2797_vm12, %v3275_v17, %v3271_v14  ;;  %v13383_v17 = vld [vmem:[#allocation29_spill] sm:$0xff]  ;;  %v13389_v14 = vld [vmem:[#allocation175_spill] sm:$0xff] }
 0x4db   :  { %v3285_v62 = vrot.slane %v9937_v27, %v9813_v22  ;;  %v3049_v23 = vsel %vm2811_vm14, %v3048_v24, %v3044_v13  ;;  %v3202_v32 = vsel %vm2804_vm13, %v3201_v19, %v3197_v42  ;;  %v3369_v27 = vsel %vm3368_vm15, %v2970_v55, %v9940_v61  ;;  %v13390_v13 = vld [vmem:[#allocation194_spill] sm:$0xff] }
 0x4dc   :  { %v3335_v12 = vsel %vm2769_vm8, %v3334_v30, %v3330_v26  ;;  %v3123_v30 = vsel %vm2804_vm13, %v3122_v56, %v3118_v16  ;;  %v3207_v46 = vsel %vm2811_vm14, %v3206_v18, %v3202_v32  ;;  %v3281_v35 = vsel %vm2804_vm13, %v3280_v60, %v3276_v7  ;;  %v13393_v32 = vld [vmem:[#allocation177_spill] sm:$0xff] }
 0x4dd   :  { %v2692_v57 = vpop.permute.xlu1 %2691  ;;  %v2689_v63 = vpop.permute.xlu0 %2688  ;;  %v3340_v2 = vsel %vm12677_vm9, %v3339_v58, %v3335_v12  ;;  %v3128_v38 = vsel %vm2811_vm14, %v3127_v9, %v3123_v30  ;;  %v3371_v6 = vsel %vm3370_vm5, %v3049_v23, %v3369_v27  ;;  %v3286_v26 = vsel %vm2811_vm14, %v3285_v62, %v3281_v35  ;;  %v13392_v30 = vld [vmem:[#allocation196_spill] sm:$0xff]  ;;  %v13394_v27 = vld [vmem:[#allocation142_spill] sm:$0xff] }
 0x4de   :  { %v3344_v31 = vrot.slane %v2689_v63, %v9754_v36  ;;  %v3349_v41 = vrot.slane %v2692_v57, %v9747_v28  ;;  %vm12812_vm9 = vcmask 1046534   ;;  %v3373_v24 = vsel %vm12814_vm6, %v3128_v38, %v3371_v6  ;;  %v13384_v63 = vld [vmem:[#allocation184_spill] sm:$0xff] }
 0x4df   :  { %v13396_v6 = vld [vmem:[#allocation180_spill] sm:$0xff]  ;;  %vm13715_vm6 = vcmask 458112  }
 0x4e0   :  { %v3345_v53 = vsel %vm12676_vm10, %v3344_v31, %v3340_v2  ;;  %vm12813_vm10 = vcmask 1045509  }
 0x4e1   :  { %v2698_v10 = vpop.permute.xlu1 %2697  ;;  %v2695_v44 = vpop.permute.xlu0 %2694  ;;  %v3350_v34 = vsel %vm12678_vm11, %v3349_v41, %v3345_v53  ;;  %vm12811_vm11 = vcmask 1047559   ;;  %v3375_v61 = vsel %vm12813_vm10, %v3207_v46, %v3373_v24  ;;  %v13398_v24 = vld [vmem:[#allocation40_spill] sm:$0xff]  ;;  %vm13707_vm10 = vcmask 523712  }
 0x4e2   :  { %v3354_v25 = vrot.slane %v2695_v44, %v9783_v48  ;;  %v3359_v3 = vrot.slane %v2698_v10, %v9777_v54  ;;  %v3377_v12 = vsel %vm12812_vm9, %v3286_v26, %v3375_v61  ;;  %v13391_v10 = vld [vmem:[#allocation178_spill] sm:$0xff] }
 0x4e4   :  { %v3355_v59 = vsel %vm2797_vm12, %v3354_v25, %v3350_v34 }
 0x4e5   :  { %v2701_v58 = vpop.permute.xlu0 %2700  ;;  %v3360_v15 = vsel %vm2804_vm13, %v3359_v3, %v3355_v59 }
 0x4e6   :  { %v3364_v29 = vrot.slane %v2701_v58, %v9813_v22 }
 0x4e8   :  { %v3365_v4 = vsel %vm2811_vm14, %v3364_v29, %v3360_v15 }
 0x4e9   :  { %v3379_v1 = vsel %vm12811_vm11, %v3365_v4, %v3377_v12  ;;  %v13400_v12 = vld [vmem:[#allocation179_spill] sm:$0xff]  ;;  %vm13705_vm11 = vcmask 458112  }
 0x4ea   :  { %3381 = vmax.xlane.f32.xlu1 %v3379_v1  ;;  %vm13706_vm9 = vmmov %vm13705_vm11 }
 0x573   :  { %v10127_v56 = vpop.xlane.xlu1 %3381 }
 0x574   :  { %v10131_v39 = vrot.slane %v10127_v56, %v13382_v49  ;;  %v10135_v57 = vrot.slane %v10127_v56, %v13383_v17 }
 0x576   :  { %v3433_v16 = vsub.f32 %v13384_v63, %v10131_v39  ;;  %v3424_v9 = vsub.f32 %v13385_v40, %v10131_v39  ;;  %v3439_v31 = vsub.f32 %v13386_v0, %v10131_v39  ;;  %v3425_v19 = vsub.f32 %v13387_v11, %v10131_v39  ;;  %v13402_v40 = vld [vmem:[#allocation37_spill] sm:$0xff]  ;;  %v13404_v11 = vld [vmem:[#allocation182_spill] sm:$0xff] }
 0x577   :  { %v3441_v18 = vsub.f32 %v13388_v52, %v10135_v57  ;;  %v3426_v53 = vsub.f32 %v13389_v14, %v10131_v39  ;;  %v3443_v7 = vsub.f32 %v13390_v13, %v10135_v57  ;;  %v3427_v44 = vsub.f32 %v13391_v10, %v10131_v39  ;;  %v13408_v14 = vld [vmem:[#allocation181_spill] sm:$0xff]  ;;  %v13410_v13 = vld [vmem:[#allocation30_spill] sm:$0xff]  ;;  %v13411_v10 = vld [vmem:[#allocation39_spill] sm:$0xff] }
 0x578   :  { %v3570_v42 = vmul.f32 1.442695, %v3433_v16  ;;  %v3552_v41 = vmul.f32 1.442695, %v3424_v9  ;;  %v3582_v2 = vmul.f32 1.442695, %v3439_v31  ;;  %v3445_v25 = vsub.f32 %v13392_v30, %v10135_v57 }
 0x579   :  { %v3554_v60 = vmul.f32 1.442695, %v3425_v19  ;;  %v3586_v55 = vmul.f32 1.442695, %v3441_v18  ;;  %v3556_v62 = vmul.f32 1.442695, %v3426_v53  ;;  %v3428_v3 = vsub.f32 %v13393_v32, %v10131_v39 }
 0x57a   :  { %7359 = vpow2.f32 %v3570_v42  ;;  %v3590_v23 = vmul.f32 1.442695, %v3443_v7  ;;  %v3558_v38 = vmul.f32 1.442695, %v3427_v44  ;;  %v3594_v34 = vmul.f32 1.442695, %v3445_v25 }
 0x57b   :  { %7361 = vpow2.f32 %v3552_v41  ;;  %v3447_v46 = vsub.f32 %v13394_v27, %v10135_v57  ;;  %v3560_v35 = vmul.f32 1.442695, %v3428_v3  ;;  %v3429_v58 = vsub.f32 %v13396_v6, %v10131_v39  ;;  %v13413_v25 = vld [vmem:[#allocation183_spill] sm:$0xff]  ;;  %v13417_v6 = vld [vmem:[#allocation186_spill] sm:$0xff] }
 0x57c   :  { %7363 = vpow2.f32 %v3582_v2  ;;  %v3449_v15 = vsub.f32 %v13398_v24, %v10135_v57  ;;  %v3430_v1 = vsub.f32 %v13400_v12, %v10131_v39  ;;  %v3451_v9 = vsub.f32 %v13402_v40, %v10135_v57  ;;  %v13406_v2 = vld [vmem:[#allocation42_spill] sm:$0xff] }
 0x57d   :  { %7365 = vpow2.f32 %v3554_v60  ;;  %v3598_v29 = vmul.f32 1.442695, %v3447_v46  ;;  %v3562_v4 = vmul.f32 1.442695, %v3429_v58  ;;  %v3431_v19 = vsub.f32 %v13404_v11, %v10131_v39  ;;  %v13423_v11 = vld [vmem:[#allocation46_spill] sm:$0xff] }
 0x57e   :  { %7367 = vpow2.f32 %v3586_v55  ;;  %v3602_v16 = vmul.f32 1.442695, %v3449_v15  ;;  %v3564_v31 = vmul.f32 1.442695, %v3430_v1  ;;  %v3606_v41 = vmul.f32 1.442695, %v3451_v9 }
 0x57f   :  { %7369 = vpow2.f32 %v3556_v62  ;;  %v3453_v52 = vsub.f32 %v13406_v2, %v10135_v57  ;;  %v3566_v60 = vmul.f32 1.442695, %v3431_v19  ;;  %v3432_v53 = vsub.f32 %v13408_v14, %v10131_v39  ;;  %v13419_v15 = vld [vmem:[#allocation41_spill] sm:$0xff] }
 0x580   :  { %7371 = vpow2.f32 %v3590_v23  ;;  %v10199_v7 = vrot.slane %v10127_v56, %v13410_v13  ;;  %v3455_v44 = vsub.f32 %v13411_v10, %v10135_v57  ;;  %v3435_v58 = vsub.f32 %v13417_v6, %v10131_v39 }
 0x581   :  { %7373 = vpow2.f32 %v3558_v38  ;;  %v3610_v62 = vmul.f32 1.442695, %v3453_v52  ;;  %v3568_v30 = vmul.f32 1.442695, %v3432_v53  ;;  %v3434_v38 = vsub.f32 %v13413_v25, %v10131_v39  ;;  %v13425_v52 = vld [vmem:[#allocation188_spill] sm:$0xff]  ;;  %v13429_v25 = vld [vmem:[#allocation187_spill] sm:$0xff] }
 0x582   :  { %7375 = vpow2.f32 %v3594_v34  ;;  %v3614_v3 = vmul.f32 1.442695, %v3455_v44  ;;  %v13415_v34 = vld [vmem:[#allocation44_spill] sm:$0xff]  ;;  %v3574_v1 = vmul.f32 1.442695, %v3435_v58  ;;  %v3461_v19 = vsub.f32 %v13423_v11, %v10199_v7  ;;  %v13437_v11 = vld [vmem:[#allocation191_spill] sm:$0xff] }
 0x583   :  { %7377 = vpow2.f32 %v3560_v35  ;;  %v3457_v27 = vsub.f32 %v13415_v34, %v10199_v7  ;;  %v3572_v35 = vmul.f32 1.442695, %v3434_v38  ;;  %v3438_v38 = vsub.f32 %v13429_v25, %v10131_v39 }
 0x584   :  { %7379 = vpow2.f32 %v3598_v29  ;;  %v3626_v53 = vmul.f32 1.442695, %v3461_v19  ;;  %v3442_v19 = vsub.f32 %v13437_v11, %v10135_v57 }
 0x585   :  { %7381 = vpow2.f32 %v3562_v4  ;;  %v3618_v24 = vmul.f32 1.442695, %v3457_v27  ;;  %v3459_v4 = vsub.f32 %v13419_v15, %v10199_v7  ;;  %v13431_v27 = vld [vmem:[#allocation48_spill] sm:$0xff]  ;;  %v3580_v58 = vmul.f32 1.442695, %v3438_v38 }
 0x586   :  { %7383 = vpow2.f32 %v3602_v16  ;;  %v13421_v16 = vld [vmem:[#allocation185_spill] sm:$0xff] }
 0x587   :  { %v10159_v59 = vpop.eup %7359  ;;  %7385 = vpow2.f32 %v3564_v31  ;;  %v3436_v40 = vsub.f32 %v13421_v16, %v10131_v39  ;;  %v3622_v31 = vmul.f32 1.442695, %v3459_v4 }
 0x588   :  { %13395 = vst [vmem:[#allocation83_spill] sm:$0xff] %v10159_v59  ;;  %v10163_v26 = vpop.eup %7361  ;;  %3964 = vperm.xlu1 %7206, %v10159_v59   ;;  %7387 = vpow2.f32 %v3606_v41 }
 0x589   :  { %13397 = vst [vmem:[#allocation66_spill] sm:$0xff] %v10163_v26  ;;  %3937 = vperm.xlu0 %7205, %v10163_v26   ;;  %v10169_v61 = vpop.eup %7363  ;;  %7389 = vpow2.f32 %v3566_v60  ;;  %v3576_v2 = vmul.f32 1.442695, %v3436_v40  ;;  %v3437_v60 = vsub.f32 %v13425_v52, %v10131_v39 }
 0x58a   :  { %13399 = vst [vmem:[#allocation117_spill] sm:$0xff] %v10169_v61  ;;  %v10173_v63 = vpop.eup %7365  ;;  %7391 = vpow2.f32 %v3610_v62  ;;  %v13427_v62 = vld [vmem:[#allocation43_spill] sm:$0xff] }
 0x58b   :  { %13401 = vst [vmem:[#allocation90_spill] sm:$0xff] %v10173_v63  ;;  %v10179_v0 = vpop.eup %7367  ;;  %7393 = vpow2.f32 %v3568_v30  ;;  %v3463_v10 = vsub.f32 %v13427_v62, %v10199_v7  ;;  %v3578_v30 = vmul.f32 1.442695, %v3437_v60  ;;  %v13439_v60 = vld [vmem:[#allocation47_spill] sm:$0xff] }
 0x58c   :  { %3982 = vperm.xlu1 %7206, %v10169_v61   ;;  %13403 = vst [vmem:[#allocation126_spill] sm:$0xff] %v10179_v0  ;;  %v10183_v42 = vpop.eup %7369  ;;  %7395 = vpow2.f32 %v3614_v3 }
 0x58d   :  { %3940 = vperm.xlu0 %7205, %v10173_v63   ;;  %13405 = vst [vmem:[#allocation108_spill] sm:$0xff] %v10183_v42  ;;  %v10189_v18 = vpop.eup %7371  ;;  %7397 = vpow2.f32 %v3572_v35  ;;  %v3630_v34 = vmul.f32 1.442695, %v3463_v10  ;;  %v3465_v35 = vsub.f32 %v13431_v27, %v10199_v7  ;;  %v3588_v10 = vmul.f32 1.442695, %v3442_v19  ;;  %v13448_v19 = vld [vmem:[#allocation57_spill] sm:$0xff] }
 0x58e   :  { %13407 = vst [vmem:[#allocation133_spill] sm:$0xff] %v10189_v18  ;;  %v10193_v55 = vpop.eup %7373  ;;  %7399 = vpow2.f32 %v3618_v24  ;;  %v13433_v24 = vld [vmem:[#allocation189_spill] sm:$0xff] }
 0x58f   :  { %13409 = vst [vmem:[#allocation172_spill] sm:$0xff] %v10193_v55  ;;  %v10203_v23 = vpop.eup %7375  ;;  %7401 = vpow2.f32 %v3574_v1  ;;  %v3440_v15 = vsub.f32 %v13433_v24, %v10135_v57  ;;  %v3634_v39 = vmul.f32 1.442695, %v3465_v35  ;;  %v13435_v1 = vld [vmem:[#allocation154_spill] sm:$0xff] }
 0x590   :  { %3988 = vperm.xlu1 %7206, %v10179_v0   ;;  %13412 = vst [vmem:[#allocation105_spill] sm:$0xff] %v10203_v23  ;;  %v10207_v32 = vpop.eup %7377  ;;  %7403 = vpow2.f32 %v3622_v31  ;;  %v3467_v16 = vsub.f32 %v13435_v1, %v10199_v7  ;;  %v13446_v1 = vld [vmem:[#allocation195_spill] sm:$0xff] }
 0x591   :  { %3943 = vperm.xlu0 %7205, %v10183_v42   ;;  %13414 = vst [vmem:[#allocation112_spill] sm:$0xff] %v10207_v32  ;;  %v10213_v46 = vpop.eup %7379  ;;  %7405 = vpow2.f32 %v3576_v2  ;;  %v3584_v31 = vmul.f32 1.442695, %v3440_v15 }
 0x592   :  { %13416 = vst [vmem:[#allocation109_spill] sm:$0xff] %v10213_v46  ;;  %v10217_v29 = vpop.eup %7381  ;;  %7407 = vpow2.f32 %v3626_v53  ;;  %v3638_v52 = vmul.f32 1.442695, %v3467_v16  ;;  %v3469_v53 = vsub.f32 %v13439_v60, %v10199_v7  ;;  %v3446_v16 = vsub.f32 %v13446_v1, %v10135_v57 }
 0x593   :  { %13418 = vst [vmem:[#allocation121_spill] sm:$0xff] %v10217_v29  ;;  %v10223_v12 = vpop.eup %7383  ;;  %7409 = vpow2.f32 %v3578_v30  ;;  %v13441_v30 = vld [vmem:[#allocation193_spill] sm:$0xff] }
 0x594   :  { %3994 = vperm.xlu1 %7206, %v10189_v18   ;;  %13420 = vst [vmem:[#allocation65_spill] sm:$0xff] %v10223_v12  ;;  %v10227_v9 = vpop.eup %7385  ;;  %7411 = vpow2.f32 %v3630_v34  ;;  %v3444_v25 = vsub.f32 %v13441_v30, %v10135_v57  ;;  %v13443_v34 = vld [vmem:[#allocation31_spill] sm:$0xff]  ;;  %v3642_v35 = vmul.f32 1.442695, %v3469_v53  ;;  %v3596_v53 = vmul.f32 1.442695, %v3446_v16 }
 0x595   :  { %3946 = vperm.xlu0 %7205, %v10193_v55   ;;  %13422 = vst [vmem:[#allocation128_spill] sm:$0xff] %v10227_v9  ;;  %v10233_v41 = vpop.eup %7387  ;;  %7413 = vpow2.f32 %v3580_v58  ;;  %v10283_v27 = vrot.slane %v10127_v56, %v13443_v34  ;;  %v13444_v58 = vld [vmem:[#allocation49_spill] sm:$0xff] }
 0x596   :  { %13424 = vst [vmem:[#allocation135_spill] sm:$0xff] %v10233_v41  ;;  %v10237_v14 = vpop.eup %7389  ;;  %7415 = vpow2.f32 %v3634_v39  ;;  %v3471_v24 = vsub.f32 %v13444_v58, %v10199_v7  ;;  %v3592_v39 = vmul.f32 1.442695, %v3444_v25 }
 0x597   :  { %13426 = vst [vmem:[#allocation104_spill] sm:$0xff] %v10237_v14  ;;  %v10243_v44 = vpop.eup %7391  ;;  %7417 = vpow2.f32 %v3584_v31 }
 0x598   :  { %4000 = vperm.xlu1 %7206, %v10203_v23   ;;  %13428 = vst [vmem:[#allocation116_spill] sm:$0xff] %v10243_v44  ;;  %v10247_v3 = vpop.eup %7393  ;;  %7419 = vpow2.f32 %v3638_v52  ;;  %v3646_v11 = vmul.f32 1.442695, %v3471_v24  ;;  %v3473_v52 = vsub.f32 %v13448_v19, %v10283_v27 }
 0x599   :  { %3949 = vperm.xlu0 %7205, %v10207_v32   ;;  %13430 = vst [vmem:[#allocation203_spill] sm:$0xff] %v10247_v3  ;;  %v10253_v6 = vpop.eup %7395  ;;  %7421 = vpow2.f32 %v3588_v10  ;;  %v13450_v10 = vld [vmem:[#allocation38_spill] sm:$0xff] }
 0x59a   :  { %13432 = vst [vmem:[#allocation125_spill] sm:$0xff] %v10253_v6  ;;  %v10257_v4 = vpop.eup %7397  ;;  %7423 = vpow2.f32 %v3642_v35  ;;  %v3448_v30 = vsub.f32 %v13450_v10, %v10135_v57  ;;  %v3650_v58 = vmul.f32 1.442695, %v3473_v52  ;;  %v13452_v35 = vld [vmem:[#allocation78_spill] sm:$0xff] }
 0x59b   :  { %13434 = vst [vmem:[#allocation130_spill] sm:$0xff] %v10257_v4  ;;  %v10263_v40 = vpop.eup %7399  ;;  %7425 = vpow2.f32 %v3592_v39  ;;  %v3475_v24 = vsub.f32 %v13452_v35, %v10283_v27  ;;  %v13454_v39 = vld [vmem:[#allocation36_spill] sm:$0xff] }
 0x59c   :  { %4006 = vperm.xlu1 %7206, %v10213_v46   ;;  %13436 = vst [vmem:[#allocation132_spill] sm:$0xff] %v10263_v40  ;;  %v10267_v2 = vpop.eup %7401  ;;  %7427 = vpow2.f32 %v3646_v11  ;;  %v3600_v19 = vmul.f32 1.442695, %v3448_v30  ;;  %v3450_v16 = vsub.f32 %v13454_v39, %v10135_v57  ;;  %v13456_v11 = vld [vmem:[#allocation59_spill] sm:$0xff] }
 0x59d   :  { %3952 = vperm.xlu0 %7205, %v10217_v29   ;;  %13438 = vst [vmem:[#allocation200_spill] sm:$0xff] %v10267_v2  ;;  %v10273_v62 = vpop.eup %7403  ;;  %7429 = vpow2.f32 %v3596_v53  ;;  %v3654_v10 = vmul.f32 1.442695, %v3475_v24  ;;  %v3477_v52 = vsub.f32 %v13456_v11, %v10283_v27  ;;  %v13458_v53 = vld [vmem:[#allocation143_spill] sm:$0xff] }
 0x59e   :  { %13440 = vst [vmem:[#allocation202_spill] sm:$0xff] %v10273_v62  ;;  %v10277_v38 = vpop.eup %7405  ;;  %7431 = vpow2.f32 %v3650_v58  ;;  %v3604_v35 = vmul.f32 1.442695, %v3450_v16  ;;  %v3452_v30 = vsub.f32 %v13458_v53, %v10135_v57  ;;  %v13460_v58 = vld [vmem:[#allocation80_spill] sm:$0xff] }
 0x59f   :  { %13442 = vst [vmem:[#allocation120_spill] sm:$0xff] %v10277_v38  ;;  %v10287_v15 = vpop.eup %7407  ;;  %7433 = vpow2.f32 %v3600_v19  ;;  %v3658_v39 = vmul.f32 1.442695, %v3477_v52  ;;  %v3479_v24 = vsub.f32 %v13460_v58, %v10283_v27  ;;  %v13462_v19 = vld [vmem:[#allocation146_spill] sm:$0xff] }
 0x5a0   :  { %4012 = vperm.xlu1 %7206, %v10223_v12   ;;  %13445 = vst [vmem:[#allocation205_spill] sm:$0xff] %v10287_v15  ;;  %v10291_v31 = vpop.eup %7409  ;;  %7435 = vpow2.f32 %v3654_v10  ;;  %v3608_v11 = vmul.f32 1.442695, %v3452_v30  ;;  %v3454_v16 = vsub.f32 %v13462_v19, %v10135_v57  ;;  %v13464_v10 = vld [vmem:[#allocation77_spill] sm:$0xff] }
 0x5a1   :  { %3955 = vperm.xlu0 %7205, %v10227_v9   ;;  %13447 = vst [vmem:[#allocation52_spill] sm:$0xff] %v10291_v31  ;;  %v10297_v60 = vpop.eup %7411  ;;  %7437 = vpow2.f32 %v3604_v35  ;;  %v3662_v53 = vmul.f32 1.442695, %v3479_v24  ;;  %v3481_v52 = vsub.f32 %v13464_v10, %v10283_v27  ;;  %v13466_v35 = vld [vmem:[#allocation144_spill] sm:$0xff] }
 0x5a2   :  { %13449 = vst [vmem:[#allocation217_spill] sm:$0xff] %v10297_v60  ;;  %v10301_v25 = vpop.eup %7413  ;;  %7439 = vpow2.f32 %v3658_v39  ;;  %v3612_v58 = vmul.f32 1.442695, %v3454_v16  ;;  %v3456_v30 = vsub.f32 %v13466_v35, %v10199_v7  ;;  %v13468_v39 = vld [vmem:[#allocation82_spill] sm:$0xff] }
 0x5a3   :  { %13451 = vst [vmem:[#allocation58_spill] sm:$0xff] %v10301_v25  ;;  %v10307_v1 = vpop.eup %7415  ;;  %7441 = vpow2.f32 %v3608_v11  ;;  %v3666_v57 = vmul.f32 1.442695, %v3481_v52  ;;  %v3483_v24 = vsub.f32 %v13468_v39, %v10283_v27  ;;  %v13470_v11 = vld [vmem:[#allocation148_spill] sm:$0xff] }
 0x5a4   :  { %4018 = vperm.xlu1 %7206, %v10233_v41   ;;  %13453 = vst [vmem:[#allocation204_spill] sm:$0xff] %v10307_v1  ;;  %7443 = vpow2.f32 %v3662_v53  ;;  %v3616_v10 = vmul.f32 1.442695, %v3456_v30  ;;  %v3458_v16 = vsub.f32 %v13470_v11, %v10199_v7  ;;  %v13472_v53 = vld [vmem:[#allocation79_spill] sm:$0xff]  ;;  %v13476_v11 = vld [vmem:[#allocation32_spill] sm:$0xff] }
 0x5a5   :  { %3958 = vperm.xlu0 %7205, %v10237_v14   ;;  %7445 = vpow2.f32 %v3612_v58  ;;  %v3670_v35 = vmul.f32 1.442695, %v3483_v24  ;;  %v3485_v52 = vsub.f32 %v13472_v53, %v10283_v27  ;;  %v13474_v58 = vld [vmem:[#allocation145_spill] sm:$0xff] }
 0x5a6   :  { %7447 = vpow2.f32 %v3666_v57  ;;  %v3620_v39 = vmul.f32 1.442695, %v3458_v16  ;;  %v3460_v30 = vsub.f32 %v13474_v58, %v10199_v7  ;;  %v10367_v57 = vrot.slane %v10127_v56, %v13476_v11  ;;  %v13477_v53 = vld [vmem:[#allocation81_spill] sm:$0xff]  ;;  %v13479_v58 = vld [vmem:[#allocation150_spill] sm:$0xff] }
 0x5a7   :  { %v3674_v24 = vmul.f32 1.442695, %v3485_v52  ;;  %v3487_v12 = vsub.f32 %v13477_v53, %v10283_v27 }
 0x5a8   :  { %4024 = vperm.xlu1 %7206, %v10243_v44   ;;  %v3624_v16 = vmul.f32 1.442695, %v3460_v30 }
 0x5a9   :  { %3961 = vperm.xlu0 %7205, %v10247_v3  }
 0x5ac   :  { %4030 = vperm.xlu1 %7206, %v10253_v6   ;;  %v10311_v6 = vpop.eup %7417  ;;  %7449 = vpow2.f32 %v3616_v10 }
 0x5ad   :  { %3967 = vperm.xlu0 %7205, %v10257_v4   ;;  %13455 = vst [vmem:[#allocation113_spill] sm:$0xff] %v10311_v6  ;;  %v10317_v44 = vpop.eup %7419  ;;  %7451 = vpow2.f32 %v3670_v35  ;;  %v13481_v35 = vld [vmem:[#allocation51_spill] sm:$0xff] }
 0x5ae   :  { %13457 = vst [vmem:[#allocation207_spill] sm:$0xff] %v10317_v44  ;;  %v10321_v61 = vpop.eup %7421  ;;  %7453 = vpow2.f32 %v3620_v39  ;;  %v3489_v52 = vsub.f32 %v13481_v35, %v10367_v57  ;;  %v13483_v39 = vld [vmem:[#allocation147_spill] sm:$0xff] }
 0x5af   :  { %13459 = vst [vmem:[#allocation139_spill] sm:$0xff] %v10321_v61  ;;  %v10327_v41 = vpop.eup %7423  ;;  %7455 = vpow2.f32 %v3674_v24  ;;  %v3464_v30 = vsub.f32 %v13483_v39, %v10199_v7 }
 0x5b0   :  { %4036 = vperm.xlu1 %7206, %v10263_v40   ;;  %13461 = vst [vmem:[#allocation206_spill] sm:$0xff] %v10327_v41 }
 0x5b1   :  { %3970 = vperm.xlu0 %7205, %v10267_v2   ;;  %v3632_v35 = vmul.f32 1.442695, %v3464_v30 }
 0x5b4   :  { %4042 = vperm.xlu1 %7206, %v10273_v62   ;;  %v13534_v62 = vld [vmem:[#allocation153_spill] sm:$0xff] }
 0x5b5   :  { %3973 = vperm.xlu0 %7205, %v10277_v38   ;;  %v3462_v38 = vsub.f32 %v13479_v58, %v10199_v7  ;;  %v3682_v58 = vmul.f32 1.442695, %v3489_v52 }
 0x5b7   :  { %v3628_v53 = vmul.f32 1.442695, %v3462_v38  ;;  %v13487_v38 = vld [vmem:[#allocation152_spill] sm:$0xff] }
 0x5b8   :  { %4048 = vperm.xlu1 %7206, %v10287_v15  }
 0x5b9   :  { %3976 = vperm.xlu0 %7205, %v10291_v31  }
 0x5bc   :  { %4054 = vperm.xlu1 %7206, %v10297_v60  }
 0x5bd   :  { %3979 = vperm.xlu0 %7205, %v10301_v25   ;;  %v10331_v25 = vpop.eup %7425  ;;  %7457 = vpow2.f32 %v3624_v16  ;;  %v3466_v16 = vsub.f32 %v13487_v38, %v10199_v7 }
 0x5be   :  { %13463 = vst [vmem:[#allocation209_spill] sm:$0xff] %v10331_v25 }
 0x5c0   :  { %4060 = vperm.xlu1 %7206, %v10307_v1  }
 0x5c1   :  { %3985 = vperm.xlu0 %7205, %v10311_v6  }
 0x5c4   :  { %4066 = vperm.xlu1 %7206, %v10317_v44   ;;  %v10337_v44 = vpop.eup %7427 }
 0x5c5   :  { %3991 = vperm.xlu0 %7205, %v10321_v61   ;;  %13465 = vst [vmem:[#allocation137_spill] sm:$0xff] %v10337_v44  ;;  %v10341_v31 = vpop.eup %7429 }
 0x5c6   :  { %13467 = vst [vmem:[#allocation134_spill] sm:$0xff] %v10341_v31  ;;  %v10347_v19 = vpop.eup %7431 }
 0x5c7   :  { %13469 = vst [vmem:[#allocation138_spill] sm:$0xff] %v10347_v19 }
 0x5c8   :  { %4072 = vperm.xlu1 %7206, %v10327_v41   ;;  %v10351_v41 = vpop.eup %7433 }
 0x5c9   :  { %3997 = vperm.xlu0 %7205, %v10331_v25   ;;  %13471 = vst [vmem:[#allocation208_spill] sm:$0xff] %v10351_v41 }
 0x5cc   :  { %4078 = vperm.xlu1 %7206, %v10337_v44   ;;  %v10357_v44 = vpop.eup %7435 }
 0x5cd   :  { %4003 = vperm.xlu0 %7205, %v10341_v31   ;;  %13473 = vst [vmem:[#allocation210_spill] sm:$0xff] %v10357_v44  ;;  %v10361_v1 = vpop.eup %7437 }
 0x5ce   :  { %13475 = vst [vmem:[#allocation141_spill] sm:$0xff] %v10361_v1  ;;  %v10371_v10 = vpop.eup %7439 }
 0x5cf   :  { %13478 = vst [vmem:[#allocation197_spill] sm:$0xff] %v10371_v10 }
 0x5d0   :  { %4084 = vperm.xlu1 %7206, %v10347_v19  }
 0x5d1   :  { %4009 = vperm.xlu0 %7205, %v10351_v41   ;;  %v10375_v41 = vpop.eup %7441 }
 0x5d2   :  { %13480 = vst [vmem:[#allocation27_spill] sm:$0xff] %v10375_v41  ;;  %v10381_v2 = vpop.eup %7443 }
 0x5d3   :  { %13482 = vst [vmem:[#allocation212_spill] sm:$0xff] %v10381_v2  ;;  %v10385_v60 = vpop.eup %7445 }
 0x5d4   :  { %4090 = vperm.xlu1 %7206, %v10357_v44   ;;  %13484 = vst [vmem:[#allocation140_spill] sm:$0xff] %v10385_v60 }
 0x5d5   :  { %4015 = vperm.xlu0 %7205, %v10361_v1   ;;  %v3678_v1 = vmul.f32 1.442695, %v3487_v12  ;;  %v13485_v12 = vld [vmem:[#allocation53_spill] sm:$0xff] }
 0x5d6   :  { %v3491_v24 = vsub.f32 %v13485_v12, %v10367_v57  ;;  %v3636_v12 = vmul.f32 1.442695, %v3466_v16 }
 0x5d7   :  { %7459 = vpow2.f32 %v3678_v1  ;;  %v13489_v1 = vld [vmem:[#allocation55_spill] sm:$0xff] }
 0x5d8   :  { %4096 = vperm.xlu1 %7206, %v10371_v10   ;;  %7461 = vpow2.f32 %v3628_v53  ;;  %v3686_v39 = vmul.f32 1.442695, %v3491_v24  ;;  %v3493_v52 = vsub.f32 %v13489_v1, %v10367_v57  ;;  %v13491_v53 = vld [vmem:[#allocation45_spill] sm:$0xff] }
 0x5d9   :  { %4021 = vperm.xlu0 %7205, %v10375_v41   ;;  %v10391_v41 = vpop.eup %7447  ;;  %7463 = vpow2.f32 %v3682_v58  ;;  %v3468_v30 = vsub.f32 %v13491_v53, %v10199_v7  ;;  %v13493_v58 = vld [vmem:[#allocation60_spill] sm:$0xff] }
 0x5da   :  { %13486 = vst [vmem:[#allocation199_spill] sm:$0xff] %v10391_v41  ;;  %v10395_v46 = vpop.eup %7449  ;;  %7465 = vpow2.f32 %v3632_v35  ;;  %v3690_v38 = vmul.f32 1.442695, %v3493_v52  ;;  %v3495_v24 = vsub.f32 %v13493_v58, %v10367_v57  ;;  %v13495_v35 = vld [vmem:[#allocation151_spill] sm:$0xff] }
 0x5db   :  { %13488 = vst [vmem:[#allocation211_spill] sm:$0xff] %v10395_v46  ;;  %7467 = vpow2.f32 %v3686_v39  ;;  %v3640_v1 = vmul.f32 1.442695, %v3468_v30  ;;  %v3470_v16 = vsub.f32 %v13495_v35, %v10199_v7  ;;  %v13497_v39 = vld [vmem:[#allocation169_spill] sm:$0xff] }
 0x5dc   :  { %4102 = vperm.xlu1 %7206, %v10381_v2   ;;  %7469 = vpow2.f32 %v3636_v12  ;;  %v3694_v53 = vmul.f32 1.442695, %v3495_v24  ;;  %v3497_v52 = vsub.f32 %v13497_v39, %v10367_v57  ;;  %v13499_v12 = vld [vmem:[#allocation162_spill] sm:$0xff] }
 0x5dd   :  { %4027 = vperm.xlu0 %7205, %v10385_v60   ;;  %v10401_v60 = vpop.eup %7451  ;;  %7471 = vpow2.f32 %v3690_v38  ;;  %v3644_v58 = vmul.f32 1.442695, %v3470_v16  ;;  %v3472_v30 = vsub.f32 %v13499_v12, %v10283_v27  ;;  %v13501_v38 = vld [vmem:[#allocation61_spill] sm:$0xff] }
 0x5de   :  { %13490 = vst [vmem:[#allocation214_spill] sm:$0xff] %v10401_v60  ;;  %v10405_v4 = vpop.eup %7453  ;;  %7473 = vpow2.f32 %v3640_v1  ;;  %v3698_v7 = vmul.f32 1.442695, %v3497_v52  ;;  %v3499_v24 = vsub.f32 %v13501_v38, %v10367_v57  ;;  %v13503_v1 = vld [vmem:[#allocation160_spill] sm:$0xff] }
 0x5df   :  { %13492 = vst [vmem:[#allocation136_spill] sm:$0xff] %v10405_v4  ;;  %7475 = vpow2.f32 %v3694_v53  ;;  %v3648_v39 = vmul.f32 1.442695, %v3472_v30  ;;  %v3474_v16 = vsub.f32 %v13503_v1, %v10283_v27  ;;  %v13505_v53 = vld [vmem:[#allocation68_spill] sm:$0xff]  ;;  %v13509_v1 = vld [vmem:[#allocation33_spill] sm:$0xff] }
 0x5e0   :  { %4108 = vperm.xlu1 %7206, %v10391_v41   ;;  %v10411_v41 = vpop.eup %7455  ;;  %7477 = vpow2.f32 %v3644_v58  ;;  %v3702_v12 = vmul.f32 1.442695, %v3499_v24  ;;  %v3501_v52 = vsub.f32 %v13505_v53, %v10367_v57  ;;  %v13507_v58 = vld [vmem:[#allocation164_spill] sm:$0xff]  ;;  %v13510_v53 = vld [vmem:[#allocation67_spill] sm:$0xff] }
 0x5e1   :  { %4033 = vperm.xlu0 %7205, %v10395_v46   ;;  %13494 = vst [vmem:[#allocation198_spill] sm:$0xff] %v10411_v41  ;;  %v10415_v31 = vpop.eup %7457  ;;  %7479 = vpow2.f32 %v3698_v7  ;;  %v3652_v38 = vmul.f32 1.442695, %v3474_v16  ;;  %v3476_v30 = vsub.f32 %v13507_v58, %v10283_v27  ;;  %v10451_v7 = vrot.slane %v10127_v56, %v13509_v1  ;;  %v13512_v58 = vld [vmem:[#allocation161_spill] sm:$0xff] }
 0x5e2   :  { %13496 = vst [vmem:[#allocation201_spill] sm:$0xff] %v10415_v31  ;;  %7481 = vpow2.f32 %v3648_v39  ;;  %v3706_v24 = vmul.f32 1.442695, %v3501_v52  ;;  %v3478_v15 = vsub.f32 %v13512_v58, %v10283_v27 }
 0x5e3   :  { %7483 = vpow2.f32 %v3702_v12  ;;  %v3656_v16 = vmul.f32 1.442695, %v3476_v30  ;;  %v13514_v12 = vld [vmem:[#allocation69_spill] sm:$0xff] }
 0x5e4   :  { %4114 = vperm.xlu1 %7206, %v10401_v60   ;;  %v10421_v60 = vpop.eup %7459  ;;  %7485 = vpow2.f32 %v3652_v38  ;;  %v3505_v52 = vsub.f32 %v13514_v12, %v10451_v7  ;;  %v13516_v38 = vld [vmem:[#allocation166_spill] sm:$0xff] }
 0x5e5   :  { %4039 = vperm.xlu0 %7205, %v10405_v4   ;;  %13498 = vst [vmem:[#allocation213_spill] sm:$0xff] %v10421_v60  ;;  %v10425_v59 = vpop.eup %7461  ;;  %7487 = vpow2.f32 %v3706_v24  ;;  %v3480_v30 = vsub.f32 %v13516_v38, %v10283_v27 }
 0x5e6   :  { %13500 = vst [vmem:[#allocation215_spill] sm:$0xff] %v10425_v59  ;;  %v10431_v35 = vpop.eup %7463  ;;  %7489 = vpow2.f32 %v3656_v16  ;;  %v3714_v58 = vmul.f32 1.442695, %v3505_v52 }
 0x5e7   :  { %13502 = vst [vmem:[#allocation184_spill] sm:$0xff] %v10431_v35  ;;  %v3664_v12 = vmul.f32 1.442695, %v3480_v30  ;;  %v13524_v30 = vld [vmem:[#allocation168_spill] sm:$0xff] }
 0x5e8   :  { %4120 = vperm.xlu1 %7206, %v10411_v41   ;;  %v10435_v41 = vpop.eup %7465 }
 0x5e9   :  { %4045 = vperm.xlu0 %7205, %v10415_v31   ;;  %13504 = vst [vmem:[#allocation176_spill] sm:$0xff] %v10435_v41 }
 0x5ec   :  { %4126 = vperm.xlu1 %7206, %v10421_v60   ;;  %v10441_v60 = vpop.eup %7467 }
 0x5ed   :  { %4051 = vperm.xlu0 %7205, %v10425_v59   ;;  %13506 = vst [vmem:[#allocation190_spill] sm:$0xff] %v10441_v60  ;;  %v10445_v59 = vpop.eup %7469 }
 0x5ee   :  { %13508 = vst [vmem:[#allocation174_spill] sm:$0xff] %v10445_v59  ;;  %v10455_v39 = vpop.eup %7471 }
 0x5ef   :  { %13511 = vst [vmem:[#allocation192_spill] sm:$0xff] %v10455_v39  ;;  %v10459_v2 = vpop.eup %7473 }
 0x5f0   :  { %4132 = vperm.xlu1 %7206, %v10431_v35   ;;  %13513 = vst [vmem:[#allocation175_spill] sm:$0xff] %v10459_v2  ;;  %v10465_v23 = vpop.eup %7475  ;;  %v13539_v35 = vld [vmem:[#allocation155_spill] sm:$0xff] }
 0x5f1   :  { %4057 = vperm.xlu0 %7205, %v10435_v41   ;;  %v3503_v41 = vsub.f32 %v13510_v53, %v10367_v57  ;;  %13515 = vst [vmem:[#allocation194_spill] sm:$0xff] %v10465_v23  ;;  %v3660_v53 = vmul.f32 1.442695, %v3478_v15  ;;  %v10469_v3 = vpop.eup %7477  ;;  %v13520_v15 = vld [vmem:[#allocation163_spill] sm:$0xff] }
 0x5f2   :  { %13517 = vst [vmem:[#allocation178_spill] sm:$0xff] %v10469_v3  ;;  %v3482_v16 = vsub.f32 %v13520_v15, %v10283_v27  ;;  %v3484_v15 = vsub.f32 %v13524_v30, %v10283_v27  ;;  %v13529_v30 = vld [vmem:[#allocation165_spill] sm:$0xff] }
 0x5f3   :  { %v3486_v14 = vsub.f32 %v13529_v30, %v10283_v27 }
 0x5f4   :  { %4138 = vperm.xlu1 %7206, %v10441_v60  }
 0x5f5   :  { %4063 = vperm.xlu0 %7205, %v10445_v59   ;;  %v3710_v59 = vmul.f32 1.442695, %v3503_v41  ;;  %v13518_v41 = vld [vmem:[#allocation71_spill] sm:$0xff]  ;;  %v3676_v30 = vmul.f32 1.442695, %v3486_v14 }
 0x5f6   :  { %v3507_v24 = vsub.f32 %v13518_v41, %v10451_v7 }
 0x5f7   :  { %7491 = vpow2.f32 %v3710_v59  ;;  %v13522_v59 = vld [vmem:[#allocation73_spill] sm:$0xff] }
 0x5f8   :  { %4144 = vperm.xlu1 %7206, %v10455_v39   ;;  %7493 = vpow2.f32 %v3660_v53  ;;  %v3718_v38 = vmul.f32 1.442695, %v3507_v24  ;;  %v3509_v52 = vsub.f32 %v13522_v59, %v10451_v7  ;;  %v3668_v53 = vmul.f32 1.442695, %v3482_v16  ;;  %v13526_v24 = vld [vmem:[#allocation86_spill] sm:$0xff] }
 0x5f9   :  { %4069 = vperm.xlu0 %7205, %v10459_v2   ;;  %v10475_v2 = vpop.eup %7479  ;;  %7495 = vpow2.f32 %v3714_v58  ;;  %v3511_v59 = vsub.f32 %v13526_v24, %v10451_v7  ;;  %v3672_v16 = vmul.f32 1.442695, %v3484_v15 }
 0x5fa   :  { %13519 = vst [vmem:[#allocation196_spill] sm:$0xff] %v10475_v2  ;;  %v10479_v31 = vpop.eup %7481  ;;  %7497 = vpow2.f32 %v3664_v12  ;;  %v3722_v58 = vmul.f32 1.442695, %v3509_v52 }
 0x5fb   :  { %13521 = vst [vmem:[#allocation177_spill] sm:$0xff] %v10479_v31  ;;  %7499 = vpow2.f32 %v3718_v38  ;;  %v13531_v38 = vld [vmem:[#allocation34_spill] sm:$0xff]  ;;  %v3726_v24 = vmul.f32 1.442695, %v3511_v59 }
 0x5fc   :  { %4150 = vperm.xlu1 %7206, %v10465_v23   ;;  %7501 = vpow2.f32 %v3668_v53  ;;  %v10513_v52 = vrot.slane %v10127_v56, %v13531_v38  ;;  %v13532_v53 = vld [vmem:[#allocation88_spill] sm:$0xff] }
 0x5fd   :  { %4075 = vperm.xlu0 %7205, %v10469_v3   ;;  %v10485_v3 = vpop.eup %7483  ;;  %7503 = vpow2.f32 %v3722_v58  ;;  %v3513_v15 = vsub.f32 %v13532_v53, %v10451_v7  ;;  %v13536_v58 = vld [vmem:[#allocation35_spill] sm:$0xff] }
 0x5fe   :  { %13523 = vst [vmem:[#allocation142_spill] sm:$0xff] %v10485_v3  ;;  %v10491_v23 = vpop.eup %7485  ;;  %7505 = vpow2.f32 %v3672_v16  ;;  %v10531_v59 = vrot.slane %v10127_v56, %v13536_v58  ;;  %v13537_v16 = vld [vmem:[#allocation91_spill] sm:$0xff] }
 0x5ff   :  { %13525 = vst [vmem:[#allocation180_spill] sm:$0xff] %v10491_v23  ;;  %7507 = vpow2.f32 %v3726_v24  ;;  %v3730_v53 = vmul.f32 1.442695, %v3513_v15  ;;  %v3521_v14 = vsub.f32 %v13537_v16, %v10513_v52  ;;  %v13541_v24 = vld [vmem:[#allocation110_spill] sm:$0xff] }
 0x600   :  { %4156 = vperm.xlu1 %7206, %v10475_v2   ;;  %v10499_v2 = vpop.eup %7487  ;;  %7509 = vpow2.f32 %v3676_v30  ;;  %v3536_v15 = vsub.f32 %v13541_v24, %v10531_v59 }
 0x601   :  { %4081 = vperm.xlu0 %7205, %v10479_v31   ;;  %13527 = vst [vmem:[#allocation40_spill] sm:$0xff] %v10499_v2  ;;  %v10505_v32 = vpop.eup %7489  ;;  %7511 = vpow2.f32 %v3730_v53  ;;  %v3746_v56 = vmul.f32 1.442695, %v3521_v14  ;;  %v13545_v14 = vld [vmem:[#allocation94_spill] sm:$0xff] }
 0x602   :  { %13530 = vst [vmem:[#allocation37_spill] sm:$0xff] %v10505_v32  ;;  %v3776_v53 = vmul.f32 1.442695, %v3536_v15  ;;  %v3523_v24 = vsub.f32 %v13545_v14, %v10513_v52  ;;  %v13549_v15 = vld [vmem:[#allocation97_spill] sm:$0xff] }
 0x603   :  { %v10487_v41 = vpop.permute.xlu1 %3964  ;;  %v3524_v14 = vsub.f32 %v13549_v15, %v10513_v52 }
 0x604   :  { %v10493_v44 = vpop.permute.xlu0 %3937  ;;  %4162 = vperm.xlu1 %7206, %v10485_v3   ;;  %v10517_v3 = vpop.eup %7491 }
 0x605   :  { %4087 = vperm.xlu0 %7205, %v10491_v23   ;;  %13533 = vst [vmem:[#allocation182_spill] sm:$0xff] %v10517_v3  ;;  %v10523_v10 = vpop.eup %7493 }
 0x606   :  { %13535 = vst [vmem:[#allocation42_spill] sm:$0xff] %v10523_v10  ;;  %v10535_v18 = vpop.eup %7495 }
 0x607   :  { %v10501_v12 = vpop.permute.xlu1 %3982  ;;  %13538 = vst [vmem:[#allocation181_spill] sm:$0xff] %v10535_v18 }
 0x608   :  { %13528 = vst [vmem:[#allocation179_spill] sm:$0xff] %v10501_v12  ;;  %v10507_v39 = vpop.permute.xlu0 %3940  ;;  %4168 = vperm.xlu1 %7206, %v10499_v2   ;;  %v3488_v2 = vsub.f32 %v13534_v62, %v10367_v57 }
 0x609   :  { %4093 = vperm.xlu0 %7205, %v10505_v32   ;;  %v10541_v32 = vpop.eup %7497 }
 0x60a   :  { %v3680_v55 = vmul.f32 1.442695, %v3488_v2  ;;  %13540 = vst [vmem:[#allocation39_spill] sm:$0xff] %v10541_v32  ;;  %v10549_v16 = vpop.eup %7499 }
 0x60b   :  { %v10519_v27 = vpop.permute.xlu1 %3988  ;;  %13542 = vst [vmem:[#allocation183_spill] sm:$0xff] %v10549_v16  ;;  %v10555_v4 = vpop.eup %7501 }
 0x60c   :  { %v10525_v9 = vpop.permute.xlu0 %3943  ;;  %4174 = vperm.xlu1 %7206, %v10517_v3   ;;  %v3490_v3 = vsub.f32 %v13539_v35, %v10367_v57  ;;  %7513 = vpow2.f32 %v3680_v55  ;;  %v13543_v35 = vld [vmem:[#allocation157_spill] sm:$0xff]  ;;  %13544 = vst [vmem:[#allocation44_spill] sm:$0xff] %v10555_v4 }
 0x60d   :  { %4099 = vperm.xlu0 %7205, %v10523_v10   ;;  %v3492_v29 = vsub.f32 %v13543_v35, %v10367_v57  ;;  %7515 = vpow2.f32 %v3746_v56  ;;  %v13547_v35 = vld [vmem:[#allocation159_spill] sm:$0xff]  ;;  %v3750_v56 = vmul.f32 1.442695, %v3523_v24  ;;  %v13553_v24 = vld [vmem:[#allocation96_spill] sm:$0xff] }
 0x60e   :  { %v3684_v2 = vmul.f32 1.442695, %v3490_v3  ;;  %v3494_v19 = vsub.f32 %v13547_v35, %v10367_v57  ;;  %v13551_v35 = vld [vmem:[#allocation167_spill] sm:$0xff]  ;;  %v3525_v15 = vsub.f32 %v13553_v24, %v10513_v52 }
 0x60f   :  { %v10537_v62 = vpop.permute.xlu1 %3994  ;;  %v3688_v3 = vmul.f32 1.442695, %v3492_v29 }
 0x610   :  { %v10543_v10 = vpop.permute.xlu0 %3946  ;;  %4180 = vperm.xlu1 %7206, %v10535_v18   ;;  %7517 = vpow2.f32 %v3684_v2  ;;  %v3692_v29 = vmul.f32 1.442695, %v3494_v19 }
 0x611   :  { %4105 = vperm.xlu0 %7205, %v10541_v32   ;;  %v10563_v32 = vpop.eup %7503  ;;  %7519 = vpow2.f32 %v3776_v53  ;;  %v3752_v53 = vmul.f32 1.442695, %v3524_v14  ;;  %v13558_v14 = vld [vmem:[#allocation99_spill] sm:$0xff] }
 0x612   :  { %13546 = vst [vmem:[#allocation186_spill] sm:$0xff] %v10563_v32  ;;  %v10569_v61 = vpop.eup %7505  ;;  %7521 = vpow2.f32 %v3688_v3  ;;  %v3526_v24 = vsub.f32 %v13558_v14, %v10513_v52 }
 0x613   :  { %v10551_v30 = vpop.permute.xlu1 %4000  ;;  %13548 = vst [vmem:[#allocation41_spill] sm:$0xff] %v10569_v61  ;;  %7523 = vpow2.f32 %v3750_v56  ;;  %v3754_v56 = vmul.f32 1.442695, %v3525_v15  ;;  %v13563_v15 = vld [vmem:[#allocation98_spill] sm:$0xff] }
 0x614   :  { %v10557_v60 = vpop.permute.xlu0 %3949  ;;  %4186 = vperm.xlu1 %7206, %v10549_v16   ;;  %v3496_v16 = vsub.f32 %v13551_v35, %v10367_v57  ;;  %7525 = vpow2.f32 %v3692_v29  ;;  %v13556_v35 = vld [vmem:[#allocation62_spill] sm:$0xff]  ;;  %v3527_v14 = vsub.f32 %v13563_v15, %v10513_v52 }
 0x615   :  { %4111 = vperm.xlu0 %7205, %v10555_v4   ;;  %v10577_v4 = vpop.eup %7507  ;;  %7527 = vpow2.f32 %v3752_v53  ;;  %v3756_v53 = vmul.f32 1.442695, %v3526_v24  ;;  %v13568_v24 = vld [vmem:[#allocation101_spill] sm:$0xff] }
 0x616   :  { %13550 = vst [vmem:[#allocation185_spill] sm:$0xff] %v10577_v4  ;;  %v10583_v25 = vpop.eup %7509  ;;  %v3696_v19 = vmul.f32 1.442695, %v3496_v16  ;;  %v3528_v15 = vsub.f32 %v13568_v24, %v10513_v52 }
 0x617   :  { %v10565_v55 = vpop.permute.xlu1 %4006  ;;  %13552 = vst [vmem:[#allocation46_spill] sm:$0xff] %v10583_v25 }
 0x618   :  { %v10571_v42 = vpop.permute.xlu0 %3952  ;;  %4192 = vperm.xlu1 %7206, %v10563_v32   ;;  %v3498_v32 = vsub.f32 %v13556_v35, %v10367_v57  ;;  %7529 = vpow2.f32 %v3696_v19  ;;  %v13561_v35 = vld [vmem:[#allocation64_spill] sm:$0xff] }
 0x619   :  { %4117 = vperm.xlu0 %7205, %v10569_v61   ;;  %v10591_v61 = vpop.eup %7511  ;;  %7531 = vpow2.f32 %v3754_v56  ;;  %v3758_v56 = vmul.f32 1.442695, %v3527_v14  ;;  %v13572_v14 = vld [vmem:[#allocation75_spill] sm:$0xff] }
 0x61a   :  { %13554 = vst [vmem:[#allocation188_spill] sm:$0xff] %v10591_v61  ;;  %v10597_v46 = vpop.eup %7513  ;;  %v3700_v16 = vmul.f32 1.442695, %v3498_v32  ;;  %v3514_v24 = vsub.f32 %v13572_v14, %v10451_v7 }
 0x61b   :  { %v10579_v2 = vpop.permute.xlu1 %4012  ;;  %13557 = vst [vmem:[#allocation187_spill] sm:$0xff] %v10597_v46 }
 0x61c   :  { %v10585_v40 = vpop.permute.xlu0 %3955  ;;  %4198 = vperm.xlu1 %7206, %v10577_v4   ;;  %v3500_v4 = vsub.f32 %v13561_v35, %v10367_v57  ;;  %7533 = vpow2.f32 %v3700_v16  ;;  %v13566_v35 = vld [vmem:[#allocation63_spill] sm:$0xff] }
 0x61d   :  { %4123 = vperm.xlu0 %7205, %v10583_v25   ;;  %v10605_v25 = vpop.eup %7515  ;;  %7535 = vpow2.f32 %v3756_v53  ;;  %v3760_v53 = vmul.f32 1.442695, %v3528_v15  ;;  %v13576_v15 = vld [vmem:[#allocation127_spill] sm:$0xff] }
 0x61e   :  { %13559 = vst [vmem:[#allocation48_spill] sm:$0xff] %v10605_v25  ;;  %v10611_v18 = vpop.eup %7517  ;;  %v3704_v32 = vmul.f32 1.442695, %v3500_v4  ;;  %v3544_v14 = vsub.f32 %v13576_v15, %v10531_v59 }
 0x61f   :  { %v10593_v3 = vpop.permute.xlu1 %4018  ;;  %13562 = vst [vmem:[#allocation154_spill] sm:$0xff] %v10611_v18 }
 0x620   :  { %13555 = vst [vmem:[#allocation43_spill] sm:$0xff] %v10593_v3  ;;  %v10599_v0 = vpop.permute.xlu0 %3958  ;;  %4204 = vperm.xlu1 %7206, %v10591_v61   ;;  %v10619_v61 = vpop.eup %7519  ;;  %7537 = vpow2.f32 %v3704_v32 }
 0x621   :  { %4129 = vperm.xlu0 %7205, %v10597_v46   ;;  %13564 = vst [vmem:[#allocation191_spill] sm:$0xff] %v10619_v61  ;;  %v3502_v46 = vsub.f32 %v13566_v35, %v10367_v57  ;;  %v10625_v6 = vpop.eup %7521  ;;  %v13570_v57 = vld [vmem:[#allocation70_spill] sm:$0xff]  ;;  %7539 = vpow2.f32 %v3758_v56  ;;  %v3732_v56 = vmul.f32 1.442695, %v3514_v24  ;;  %v13580_v24 = vld [vmem:[#allocation103_spill] sm:$0xff] }
 0x622   :  { %13567 = vst [vmem:[#allocation193_spill] sm:$0xff] %v10625_v6  ;;  %v3504_v35 = vsub.f32 %v13570_v57, %v10451_v7  ;;  %v13574_v57 = vld [vmem:[#allocation72_spill] sm:$0xff]  ;;  %v3530_v15 = vsub.f32 %v13580_v24, %v10513_v52 }
 0x623   :  { %v10607_v29 = vpop.permute.xlu1 %4024  ;;  %v3708_v4 = vmul.f32 1.442695, %v3502_v46 }
 0x624   :  { %13560 = vst [vmem:[#allocation189_spill] sm:$0xff] %v10607_v29  ;;  %v10613_v58 = vpop.permute.xlu0 %3961  ;;  %4228 = vperm.xlu1 %7206, %v10605_v25   ;;  %v10633_v25 = vpop.eup %7523  ;;  %v3712_v46 = vmul.f32 1.442695, %v3504_v35 }
 0x625   :  { %4135 = vperm.xlu0 %7205, %v10611_v18   ;;  %13569 = vst [vmem:[#allocation49_spill] sm:$0xff] %v10633_v25  ;;  %v10639_v18 = vpop.eup %7525  ;;  %7541 = vpow2.f32 %v3708_v4 }
 0x626   :  { %13571 = vst [vmem:[#allocation195_spill] sm:$0xff] %v10639_v18  ;;  %7543 = vpow2.f32 %v3760_v53  ;;  %v3792_v53 = vmul.f32 1.442695, %v3544_v14  ;;  %v13585_v14 = vld [vmem:[#allocation170_spill] sm:$0xff] }
 0x627   :  { %v10621_v19 = vpop.permute.xlu1 %4030  ;;  %7545 = vpow2.f32 %v3712_v46  ;;  %v3516_v24 = vsub.f32 %v13585_v14, %v10451_v7 }
 0x628   :  { %13565 = vst [vmem:[#allocation47_spill] sm:$0xff] %v10621_v19  ;;  %v10627_v23 = vpop.permute.xlu0 %3967  ;;  %4273 = vperm.xlu1 %7206, %v10619_v61   ;;  %v10647_v61 = vpop.eup %7527  ;;  %7547 = vpow2.f32 %v3732_v56  ;;  %v3764_v56 = vmul.f32 1.442695, %v3530_v15  ;;  %v13590_v15 = vld [vmem:[#allocation124_spill] sm:$0xff] }
 0x629   :  { %4141 = vperm.xlu0 %7205, %v10625_v6   ;;  %13573 = vst [vmem:[#allocation57_spill] sm:$0xff] %v10647_v61  ;;  %v3506_v6 = vsub.f32 %v13574_v57, %v10451_v7  ;;  %v10653_v31 = vpop.eup %7529  ;;  %v13578_v57 = vld [vmem:[#allocation74_spill] sm:$0xff]  ;;  %v3546_v14 = vsub.f32 %v13590_v15, %v10531_v59 }
 0x62a   :  { %13575 = vst [vmem:[#allocation38_spill] sm:$0xff] %v10653_v31 }
 0x62b   :  { %v10635_v16 = vpop.permute.xlu1 %4036  ;;  %v3716_v35 = vmul.f32 1.442695, %v3506_v6 }
 0x62c   :  { %v10641_v63 = vpop.permute.xlu0 %3970  ;;  %4234 = vperm.xlu1 %7206, %v10633_v25   ;;  %v10661_v25 = vpop.eup %7531 }
 0x62d   :  { %4147 = vperm.xlu0 %7205, %v10639_v18   ;;  %13577 = vst [vmem:[#allocation78_spill] sm:$0xff] %v10661_v25  ;;  %v3508_v18 = vsub.f32 %v13578_v57, %v10451_v7  ;;  %v10667_v38 = vpop.eup %7533  ;;  %7549 = vpow2.f32 %v3716_v35  ;;  %v13583_v57 = vld [vmem:[#allocation76_spill] sm:$0xff] }
 0x62e   :  { %13579 = vst [vmem:[#allocation36_spill] sm:$0xff] %v10667_v38  ;;  %7551 = vpow2.f32 %v3792_v53  ;;  %v3736_v53 = vmul.f32 1.442695, %v3516_v24  ;;  %v13595_v24 = vld [vmem:[#allocation102_spill] sm:$0xff] }
 0x62f   :  { %v10649_v32 = vpop.permute.xlu1 %4042  ;;  %v3720_v6 = vmul.f32 1.442695, %v3508_v18  ;;  %v3532_v15 = vsub.f32 %v13595_v24, %v10513_v52 }
 0x630   :  { %v10655_v26 = vpop.permute.xlu0 %3973  ;;  %4237 = vperm.xlu1 %7206, %v10647_v61   ;;  %v10675_v61 = vpop.eup %7535 }
 0x631   :  { %4153 = vperm.xlu0 %7205, %v10653_v31   ;;  %13581 = vst [vmem:[#allocation59_spill] sm:$0xff] %v10675_v61  ;;  %v3510_v31 = vsub.f32 %v13583_v57, %v10451_v7  ;;  %v10681_v11 = vpop.eup %7537  ;;  %7553 = vpow2.f32 %v3720_v6  ;;  %v13588_v57 = vld [vmem:[#allocation171_spill] sm:$0xff] }
 0x632   :  { %13584 = vst [vmem:[#allocation80_spill] sm:$0xff] %v10681_v11  ;;  %7555 = vpow2.f32 %v3764_v56  ;;  %v3796_v56 = vmul.f32 1.442695, %v3546_v14  ;;  %v13600_v14 = vld [vmem:[#allocation87_spill] sm:$0xff] }
 0x633   :  { %v10663_v4 = vpop.permute.xlu1 %4048  ;;  %v3724_v18 = vmul.f32 1.442695, %v3510_v31  ;;  %v3518_v24 = vsub.f32 %v13600_v14, %v10451_v7 }
 0x634   :  { %v10669_v13 = vpop.permute.xlu0 %3976  ;;  %4240 = vperm.xlu1 %7206, %v10661_v25   ;;  %v3512_v25 = vsub.f32 %v13588_v57, %v10451_v7  ;;  %v13593_v57 = vld [vmem:[#allocation89_spill] sm:$0xff] }
 0x635   :  { %4159 = vperm.xlu0 %7205, %v10667_v38   ;;  %v10689_v38 = vpop.eup %7539  ;;  %7557 = vpow2.f32 %v3724_v18 }
 0x636   :  { %13586 = vst [vmem:[#allocation146_spill] sm:$0xff] %v10689_v38  ;;  %v10695_v17 = vpop.eup %7541  ;;  %v3728_v31 = vmul.f32 1.442695, %v3512_v25  ;;  %7559 = vpow2.f32 %v3736_v53  ;;  %v3768_v53 = vmul.f32 1.442695, %v3532_v15  ;;  %v13605_v15 = vld [vmem:[#allocation129_spill] sm:$0xff] }
 0x637   :  { %v10677_v46 = vpop.permute.xlu1 %4054  ;;  %13589 = vst [vmem:[#allocation144_spill] sm:$0xff] %v10695_v17  ;;  %v3548_v14 = vsub.f32 %v13605_v15, %v10531_v59 }
 0x638   :  { %13582 = vst [vmem:[#allocation143_spill] sm:$0xff] %v10677_v46  ;;  %v10683_v1 = vpop.permute.xlu0 %3979  ;;  %4243 = vperm.xlu1 %7206, %v10675_v61   ;;  %v3520_v61 = vsub.f32 %v13593_v57, %v10513_v52  ;;  %7561 = vpow2.f32 %v3728_v31  ;;  %v13598_v57 = vld [vmem:[#allocation173_spill] sm:$0xff] }
 0x639   :  { %4165 = vperm.xlu0 %7205, %v10681_v11   ;;  %v10703_v11 = vpop.eup %7543  ;;  %7563 = vpow2.f32 %v3796_v56  ;;  %v3740_v56 = vmul.f32 1.442695, %v3518_v24  ;;  %v13610_v24 = vld [vmem:[#allocation106_spill] sm:$0xff] }
 0x63a   :  { %13591 = vst [vmem:[#allocation82_spill] sm:$0xff] %v10703_v11  ;;  %v10709_v49 = vpop.eup %7545  ;;  %v3744_v25 = vmul.f32 1.442695, %v3520_v61  ;;  %v3534_v15 = vsub.f32 %v13610_v24, %v10513_v52 }
 0x63b   :  { %v10691_v35 = vpop.permute.xlu1 %4060  ;;  %13594 = vst [vmem:[#allocation79_spill] sm:$0xff] %v10709_v49 }
 0x63c   :  { %13587 = vst [vmem:[#allocation77_spill] sm:$0xff] %v10691_v35  ;;  %v10697_v34 = vpop.permute.xlu0 %3985  ;;  %4246 = vperm.xlu1 %7206, %v10689_v38   ;;  %v3522_v38 = vsub.f32 %v13598_v57, %v10513_v52  ;;  %7565 = vpow2.f32 %v3744_v25  ;;  %v13603_v57 = vld [vmem:[#allocation119_spill] sm:$0xff] }
 0x63d   :  { %4171 = vperm.xlu0 %7205, %v10695_v17   ;;  %v10717_v17 = vpop.eup %7547  ;;  %7567 = vpow2.f32 %v3768_v53  ;;  %v3800_v53 = vmul.f32 1.442695, %v3548_v14  ;;  %v13615_v14 = vld [vmem:[#allocation115_spill] sm:$0xff] }
 0x63e   :  { %13596 = vst [vmem:[#allocation145_spill] sm:$0xff] %v10717_v17  ;;  %v3748_v61 = vmul.f32 1.442695, %v3522_v38  ;;  %v3535_v24 = vsub.f32 %v13615_v14, %v10513_v52 }
 0x63f   :  { %v10705_v6 = vpop.permute.xlu1 %4066 }
 0x640   :  { %13592 = vst [vmem:[#allocation148_spill] sm:$0xff] %v10705_v6  ;;  %v10711_v35 = vpop.permute.xlu0 %3991  ;;  %4249 = vperm.xlu1 %7206, %v10703_v11   ;;  %v10723_v6 = vpop.eup %7549  ;;  %7569 = vpow2.f32 %v3748_v61 }
 0x641   :  { %4177 = vperm.xlu0 %7205, %v10709_v49   ;;  %13599 = vst [vmem:[#allocation150_spill] sm:$0xff] %v10723_v6  ;;  %v10731_v11 = vpop.eup %7551  ;;  %v3537_v49 = vsub.f32 %v13603_v57, %v10531_v59  ;;  %v13608_v57 = vld [vmem:[#allocation114_spill] sm:$0xff]  ;;  %7571 = vpow2.f32 %v3740_v56  ;;  %v3772_v56 = vmul.f32 1.442695, %v3534_v15  ;;  %v13621_v15 = vld [vmem:[#allocation56_spill] sm:$0xff] }
 0x642   :  { %13601 = vst [vmem:[#allocation51_spill] sm:$0xff] %v10731_v11  ;;  %v3551_v14 = vsub.f32 %v13621_v15, %v10531_v59 }
 0x643   :  { %v10719_v18 = vpop.permute.xlu1 %4072  ;;  %v3778_v38 = vmul.f32 1.442695, %v3537_v49 }
 0x644   :  { %13597 = vst [vmem:[#allocation81_spill] sm:$0xff] %v10719_v18  ;;  %v10725_v19 = vpop.permute.xlu0 %3997  ;;  %4207 = vperm.xlu1 %7206, %v10717_v17   ;;  %v10737_v18 = vpop.eup %7553 }
 0x645   :  { %4183 = vperm.xlu0 %7205, %v10723_v6   ;;  %13604 = vst [vmem:[#allocation53_spill] sm:$0xff] %v10737_v18  ;;  %v10745_v17 = vpop.eup %7555  ;;  %v3538_v6 = vsub.f32 %v13608_v57, %v10531_v59  ;;  %7573 = vpow2.f32 %v3778_v38  ;;  %v13613_v57 = vld [vmem:[#allocation123_spill] sm:$0xff] }
 0x646   :  { %13606 = vst [vmem:[#allocation152_spill] sm:$0xff] %v10745_v17  ;;  %7575 = vpow2.f32 %v3800_v53  ;;  %v3774_v53 = vmul.f32 1.442695, %v3535_v24 }
 0x647   :  { %v10733_v31 = vpop.permute.xlu1 %4078  ;;  %v3780_v49 = vmul.f32 1.442695, %v3538_v6 }
 0x648   :  { %13602 = vst [vmem:[#allocation147_spill] sm:$0xff] %v10733_v31  ;;  %v10739_v29 = vpop.permute.xlu0 %4003  ;;  %4297 = vperm.xlu1 %7206, %v10731_v11   ;;  %v10751_v31 = vpop.eup %7557 }
 0x649   :  { %4189 = vperm.xlu0 %7205, %v10737_v18   ;;  %13609 = vst [vmem:[#allocation45_spill] sm:$0xff] %v10751_v31  ;;  %v10759_v11 = vpop.eup %7559  ;;  %v3539_v18 = vsub.f32 %v13613_v57, %v10531_v59  ;;  %7577 = vpow2.f32 %v3780_v49  ;;  %v13618_v57 = vld [vmem:[#allocation118_spill] sm:$0xff] }
 0x64a   :  { %13611 = vst [vmem:[#allocation60_spill] sm:$0xff] %v10759_v11  ;;  %7579 = vpow2.f32 %v3772_v56  ;;  %v3806_v56 = vmul.f32 1.442695, %v3551_v14 }
 0x64b   :  { %v10747_v25 = vpop.permute.xlu1 %4084  ;;  %v3782_v6 = vmul.f32 1.442695, %v3539_v18 }
 0x64c   :  { %13607 = vst [vmem:[#allocation55_spill] sm:$0xff] %v10747_v25  ;;  %v10753_v12 = vpop.permute.xlu0 %4009  ;;  %4255 = vperm.xlu1 %7206, %v10745_v17   ;;  %v10765_v25 = vpop.eup %7561 }
 0x64d   :  { %4195 = vperm.xlu0 %7205, %v10751_v31   ;;  %13614 = vst [vmem:[#allocation169_spill] sm:$0xff] %v10765_v25  ;;  %v10773_v17 = vpop.eup %7563  ;;  %v3540_v31 = vsub.f32 %v13618_v57, %v10531_v59  ;;  %7581 = vpow2.f32 %v3782_v6  ;;  %v13624_v57 = vld [vmem:[#allocation122_spill] sm:$0xff] }
 0x64e   :  { %13616 = vst [vmem:[#allocation162_spill] sm:$0xff] %v10773_v17  ;;  %7583 = vpow2.f32 %v3774_v53 }
 0x64f   :  { %v10761_v61 = vpop.permute.xlu1 %4090  ;;  %v3784_v18 = vmul.f32 1.442695, %v3540_v31  ;;  %v13629_v31 = vld [vmem:[#allocation149_spill] sm:$0xff] }
 0x650   :  { %13612 = vst [vmem:[#allocation151_spill] sm:$0xff] %v10761_v61  ;;  %v10767_v22 = vpop.permute.xlu0 %4015  ;;  %4213 = vperm.xlu1 %7206, %v10759_v11   ;;  %v10779_v61 = vpop.eup %7565 }
 0x651   :  { %4201 = vperm.xlu0 %7205, %v10765_v25   ;;  %13619 = vst [vmem:[#allocation160_spill] sm:$0xff] %v10779_v61  ;;  %v10787_v11 = vpop.eup %7567  ;;  %v3541_v25 = vsub.f32 %v13624_v57, %v10531_v59  ;;  %7585 = vpow2.f32 %v3784_v18 }
 0x652   :  { %13622 = vst [vmem:[#allocation164_spill] sm:$0xff] %v10787_v11  ;;  %7587 = vpow2.f32 %v3806_v56 }
 0x653   :  { %v10775_v38 = vpop.permute.xlu1 %4096  ;;  %v3786_v6 = vmul.f32 1.442695, %v3541_v25  ;;  %v13633_v25 = vld [vmem:[#allocation50_spill] sm:$0xff] }
 0x654   :  { %13617 = vst [vmem:[#allocation61_spill] sm:$0xff] %v10775_v38  ;;  %v10781_v46 = vpop.permute.xlu0 %4021  ;;  %4303 = vperm.xlu1 %7206, %v10773_v17   ;;  %v10793_v38 = vpop.eup %7569  ;;  %v3542_v17 = vsub.f32 %v13629_v31, %v10531_v59  ;;  %v3543_v18 = vsub.f32 %v13633_v25, %v10531_v59 }
 0x655   :  { %13620 = vst [vmem:[#allocation68_spill] sm:$0xff] %v10781_v46  ;;  %4225 = vperm.xlu0 %7205, %v10779_v61   ;;  %13625 = vst [vmem:[#allocation161_spill] sm:$0xff] %v10793_v38  ;;  %v10799_v24 = vpop.eup %7571  ;;  %7589 = vpow2.f32 %v3786_v6  ;;  %v13637_v6 = vld [vmem:[#allocation100_spill] sm:$0xff] }
 0x656   :  { %13627 = vst [vmem:[#allocation166_spill] sm:$0xff] %v10799_v24  ;;  %v10805_v57 = vpop.eup %7573 }
 0x657   :  { %v10789_v49 = vpop.permute.xlu1 %4102  ;;  %13630 = vst [vmem:[#allocation163_spill] sm:$0xff] %v10805_v57  ;;  %v10811_v53 = vpop.eup %7575 }
 0x658   :  { %13623 = vst [vmem:[#allocation67_spill] sm:$0xff] %v10789_v49  ;;  %v10795_v3 = vpop.permute.xlu0 %4027  ;;  %4261 = vperm.xlu1 %7206, %v10787_v11   ;;  %13631 = vst [vmem:[#allocation73_spill] sm:$0xff] %v10811_v53  ;;  %v3788_v11 = vmul.f32 1.442695, %v3542_v17  ;;  %v3529_v17 = vsub.f32 %v13637_v6, %v10513_v52 }
 0x659   :  { %13626 = vst [vmem:[#allocation69_spill] sm:$0xff] %v10795_v3  ;;  %4231 = vperm.xlu0 %7205, %v10793_v38   ;;  %v10817_v38 = vpop.eup %7577  ;;  %v13649_v3 = vld [vmem:[#allocation107_spill] sm:$0xff] }
 0x65a   :  { %13634 = vst [vmem:[#allocation86_spill] sm:$0xff] %v10817_v38  ;;  %7591 = vpow2.f32 %v3788_v11  ;;  %v13641_v11 = vld [vmem:[#allocation85_spill] sm:$0xff] }
 0x65b   :  { %v10801_v15 = vpop.permute.xlu1 %4108 }
 0x65c   :  { %13628 = vst [vmem:[#allocation71_spill] sm:$0xff] %v10801_v15  ;;  %v10807_v61 = vpop.permute.xlu0 %4033  ;;  %4219 = vperm.xlu1 %7206, %v10799_v24   ;;  %v10823_v24 = vpop.eup %7579  ;;  %v3762_v15 = vmul.f32 1.442695, %v3529_v17 }
 0x65d   :  { %4276 = vperm.xlu0 %7205, %v10805_v57   ;;  %13635 = vst [vmem:[#allocation165_spill] sm:$0xff] %v10823_v24  ;;  %v3790_v57 = vmul.f32 1.442695, %v3543_v18  ;;  %v3515_v18 = vsub.f32 %v13641_v11, %v10451_v7 }
 0x65f   :  { %v10813_v14 = vpop.permute.xlu1 %4114  ;;  %7593 = vpow2.f32 %v3790_v57  ;;  %v3734_v49 = vmul.f32 1.442695, %v3515_v18  ;;  %v13645_v57 = vld [vmem:[#allocation54_spill] sm:$0xff] }
 0x660   :  { %13632 = vst [vmem:[#allocation168_spill] sm:$0xff] %v10813_v14  ;;  %v10819_v31 = vpop.permute.xlu0 %4039  ;;  %4309 = vperm.xlu1 %7206, %v10811_v53   ;;  %v10829_v14 = vpop.eup %7581  ;;  %7595 = vpow2.f32 %v3762_v15  ;;  %v3545_v17 = vsub.f32 %v13645_v57, %v10531_v59 }
 0x661   :  { %4279 = vperm.xlu0 %7205, %v10817_v38   ;;  %13638 = vst [vmem:[#allocation153_spill] sm:$0xff] %v10829_v14  ;;  %v10835_v53 = vpop.eup %7583  ;;  %7597 = vpow2.f32 %v3734_v49 }
 0x662   :  { %13639 = vst [vmem:[#allocation91_spill] sm:$0xff] %v10835_v53 }
 0x663   :  { %v10825_v56 = vpop.permute.xlu1 %4120 }
 0x664   :  { %13636 = vst [vmem:[#allocation88_spill] sm:$0xff] %v10825_v56  ;;  %v10831_v25 = vpop.permute.xlu0 %4045  ;;  %4267 = vperm.xlu1 %7206, %v10823_v24   ;;  %v10841_v56 = vpop.eup %7585 }
 0x665   :  { %4282 = vperm.xlu0 %7205, %v10829_v14   ;;  %13642 = vst [vmem:[#allocation110_spill] sm:$0xff] %v10841_v56  ;;  %v10847_v24 = vpop.eup %7587 }
 0x666   :  { %13643 = vst [vmem:[#allocation157_spill] sm:$0xff] %v10847_v24 }
 0x667   :  { %v10837_v38 = vpop.permute.xlu1 %4126 }
 0x668   :  { %13640 = vst [vmem:[#allocation155_spill] sm:$0xff] %v10837_v38  ;;  %v10843_v6 = vpop.permute.xlu0 %4051  ;;  %4270 = vperm.xlu1 %7206, %v10835_v53   ;;  %v10853_v38 = vpop.eup %7589 }
 0x669   :  { %4285 = vperm.xlu0 %7205, %v10841_v56   ;;  %13646 = vst [vmem:[#allocation159_spill] sm:$0xff] %v10853_v38  ;;  %v3794_v56 = vmul.f32 1.442695, %v3545_v17  ;;  %v10863_v15 = vpop.eup %7591 }
 0x66a   :  { %13650 = vst [vmem:[#allocation96_spill] sm:$0xff] %v10863_v15 }
 0x66b   :  { %v10849_v14 = vpop.permute.xlu1 %4132  ;;  %7599 = vpow2.f32 %v3794_v56 }
 0x66c   :  { %13644 = vst [vmem:[#allocation94_spill] sm:$0xff] %v10849_v14  ;;  %v10855_v11 = vpop.permute.xlu0 %4057  ;;  %4318 = vperm.xlu1 %7206, %v10847_v24   ;;  %v3531_v14 = vsub.f32 %v13649_v3, %v10513_v52  ;;  %v13653_v24 = vld [vmem:[#allocation92_spill] sm:$0xff]  ;;  %v10872_v46 = vpop.eup %7593 }
 0x66d   :  { %13647 = vst [vmem:[#allocation97_spill] sm:$0xff] %v10855_v11  ;;  %4288 = vperm.xlu0 %7205, %v10853_v38   ;;  %v3517_v38 = vsub.f32 %v13653_v24, %v10451_v7  ;;  %13654 = vst [vmem:[#allocation64_spill] sm:$0xff] %v10872_v46 }
 0x66e   :  { %v3766_v11 = vmul.f32 1.442695, %v3531_v14 }
 0x66f   :  { %v10859_v53 = vpop.permute.xlu1 %4138  ;;  %v3738_v17 = vmul.f32 1.442695, %v3517_v38 }
 0x670   :  { %13648 = vst [vmem:[#allocation167_spill] sm:$0xff] %v10859_v53  ;;  %v10865_v18 = vpop.permute.xlu0 %4063  ;;  %7601 = vpow2.f32 %v3766_v11  ;;  %v13657_v53 = vld [vmem:[#allocation156_spill] sm:$0xff] }
 0x671   :  { %13651 = vst [vmem:[#allocation62_spill] sm:$0xff] %v10865_v18  ;;  %4291 = vperm.xlu0 %7205, %v10863_v15   ;;  %v3547_v15 = vsub.f32 %v13657_v53, %v10531_v59  ;;  %v10881_v18 = vpop.eup %7595  ;;  %7603 = vpow2.f32 %v3738_v17 }
 0x672   :  { %13658 = vst [vmem:[#allocation101_spill] sm:$0xff] %v10881_v18 }
 0x673   :  { %v10868_v57 = vpop.permute.xlu1 %4144  ;;  %v3798_v14 = vmul.f32 1.442695, %v3547_v15 }
 0x674   :  { %13652 = vst [vmem:[#allocation99_spill] sm:$0xff] %v10868_v57  ;;  %v10874_v49 = vpop.permute.xlu0 %4069  ;;  %v13661_v57 = vld [vmem:[#allocation111_spill] sm:$0xff] }
 0x675   :  { %13655 = vst [vmem:[#allocation98_spill] sm:$0xff] %v10874_v49  ;;  %4294 = vperm.xlu0 %7205, %v10872_v46   ;;  %v3533_v46 = vsub.f32 %v13661_v57, %v10513_v52  ;;  %v10890_v49 = vpop.eup %7597  ;;  %7605 = vpow2.f32 %v3798_v14  ;;  %v13667_v57 = vld [vmem:[#allocation158_spill] sm:$0xff] }
 0x676   :  { %13662 = vst [vmem:[#allocation72_spill] sm:$0xff] %v10890_v49 }
 0x677   :  { %v10877_v3 = vpop.permute.xlu1 %4150  ;;  %v3770_v53 = vmul.f32 1.442695, %v3533_v46 }
 0x678   :  { %13656 = vst [vmem:[#allocation63_spill] sm:$0xff] %v10877_v3  ;;  %v10883_v56 = vpop.permute.xlu0 %4075  ;;  %v13664_v3 = vld [vmem:[#allocation95_spill] sm:$0xff] }
 0x679   :  { %13659 = vst [vmem:[#allocation70_spill] sm:$0xff] %v10883_v56  ;;  %4252 = vperm.xlu0 %7205, %v10881_v18   ;;  %v3519_v18 = vsub.f32 %v13664_v3, %v10451_v7  ;;  %v10899_v56 = vpop.eup %7599  ;;  %7607 = vpow2.f32 %v3770_v53  ;;  %v13670_v3 = vld [vmem:[#allocation131_spill] sm:$0xff] }
 0x67a   :  { %13665 = vst [vmem:[#allocation74_spill] sm:$0xff] %v10899_v56 }
 0x67b   :  { %v10886_v24 = vpop.permute.xlu1 %4156  ;;  %v3742_v15 = vmul.f32 1.442695, %v3519_v18 }
 0x67c   :  { %13660 = vst [vmem:[#allocation75_spill] sm:$0xff] %v10886_v24  ;;  %v10892_v11 = vpop.permute.xlu0 %4081 }
 0x67d   :  { %4210 = vperm.xlu0 %7205, %v10890_v49   ;;  %v3549_v49 = vsub.f32 %v13667_v57, %v10531_v59  ;;  %v10908_v24 = vpop.eup %7601  ;;  %7609 = vpow2.f32 %v3742_v15 }
 0x67e   :  { %13668 = vst [vmem:[#allocation76_spill] sm:$0xff] %v10908_v24 }
 0x67f   :  { %v10895_v38 = vpop.permute.xlu1 %4162  ;;  %v3802_v46 = vmul.f32 1.442695, %v3549_v49 }
 0x680   :  { %13663 = vst [vmem:[#allocation127_spill] sm:$0xff] %v10895_v38  ;;  %v10901_v17 = vpop.permute.xlu0 %4087  ;;  %v10917_v38 = vpop.eup %7603 }
 0x681   :  { %4300 = vperm.xlu0 %7205, %v10899_v56   ;;  %v3550_v56 = vsub.f32 %v13670_v3, %v10531_v59  ;;  %13671 = vst [vmem:[#allocation171_spill] sm:$0xff] %v10917_v38  ;;  %7611 = vpow2.f32 %v3802_v46 }
 0x682   :  { %v10922_v57 = vpop.eup %7605 }
 0x683   :  { %v10904_v52 = vpop.permute.xlu1 %4168  ;;  %v3804_v18 = vmul.f32 1.442695, %v3550_v56  ;;  %13673 = vst [vmem:[#allocation89_spill] sm:$0xff] %v10922_v57 }
 0x684   :  { %13666 = vst [vmem:[#allocation103_spill] sm:$0xff] %v10904_v52  ;;  %v10910_v14 = vpop.permute.xlu0 %4093 }
 0x685   :  { %4258 = vperm.xlu0 %7205, %v10908_v24   ;;  %7613 = vpow2.f32 %v3804_v18 }
 0x686   :  { %v10929_v49 = vpop.eup %7607 }
 0x687   :  { %v10913_v7 = vpop.permute.xlu1 %4174  ;;  %13676 = vst [vmem:[#allocation87_spill] sm:$0xff] %v10929_v49 }
 0x688   :  { %13669 = vst [vmem:[#allocation170_spill] sm:$0xff] %v10913_v7  ;;  %v10919_v53 = vpop.permute.xlu0 %4099 }
 0x689   :  { %13672 = vst [vmem:[#allocation124_spill] sm:$0xff] %v10919_v53  ;;  %4216 = vperm.xlu0 %7205, %v10917_v38  }
 0x68a   :  { %v10936_v3 = vpop.eup %7609 }
 0x68b   :  { %v10926_v24 = vpop.permute.xlu1 %4180  ;;  %13679 = vst [vmem:[#allocation114_spill] sm:$0xff] %v10936_v3 }
 0x68c   :  { %v10924_v52 = vpop.permute.xlu0 %4105  ;;  %13675 = vst [vmem:[#allocation173_spill] sm:$0xff] %v10926_v24 }
 0x68d   :  { %13674 = vst [vmem:[#allocation102_spill] sm:$0xff] %v10924_v52  ;;  %4306 = vperm.xlu0 %7205, %v10922_v57  }
 0x68e   :  { %v10941_v46 = vpop.eup %7611 }
 0x68f   :  { %v10934_v15 = vpop.permute.xlu1 %4186  ;;  %13681 = vst [vmem:[#allocation123_spill] sm:$0xff] %v10941_v46 }
 0x690   :  { %v10931_v59 = vpop.permute.xlu0 %4111  ;;  %13678 = vst [vmem:[#allocation129_spill] sm:$0xff] %v10934_v15 }
 0x691   :  { %13677 = vst [vmem:[#allocation119_spill] sm:$0xff] %v10931_v59  ;;  %4264 = vperm.xlu0 %7205, %v10929_v49  }
 0x692   :  { %v10948_v18 = vpop.eup %7613 }
 0x693   :  { %v10945_v57 = vpop.permute.xlu1 %4192  ;;  %13684 = vst [vmem:[#allocation56_spill] sm:$0xff] %v10948_v18 }
 0x694   :  { %v10938_v56 = vpop.permute.xlu0 %4117  ;;  %13683 = vst [vmem:[#allocation118_spill] sm:$0xff] %v10945_v57 }
 0x695   :  { %13680 = vst [vmem:[#allocation106_spill] sm:$0xff] %v10938_v56  ;;  %4222 = vperm.xlu0 %7205, %v10936_v3  }
 0x697   :  { %v10953_v49 = vpop.permute.xlu1 %4198 }
 0x698   :  { %v10943_v38 = vpop.permute.xlu0 %4123  ;;  %13685 = vst [vmem:[#allocation122_spill] sm:$0xff] %v10953_v49 }
 0x699   :  { %13682 = vst [vmem:[#allocation115_spill] sm:$0xff] %v10943_v38  ;;  %4312 = vperm.xlu0 %7205, %v10941_v46  }
 0x69b   :  { %v10959_v3 = vpop.permute.xlu1 %4204 }
 0x69c   :  { %v10950_v7 = vpop.permute.xlu0 %4129  ;;  %13687 = vst [vmem:[#allocation50_spill] sm:$0xff] %v10959_v3 }
 0x69d   :  { %4315 = vperm.xlu0 %7205, %v10948_v18  }
 0x69f   :  { %v10963_v38 = vpop.permute.xlu1 %4228 }
 0x6a0   :  { %v10955_v59 = vpop.permute.xlu0 %4135  ;;  %13689 = vst [vmem:[#allocation85_spill] sm:$0xff] %v10963_v38 }
 0x6a3   :  { %v10969_v52 = vpop.permute.xlu1 %4273 }
 0x6a4   :  { %v10957_v56 = vpop.permute.xlu0 %4141  ;;  %13692 = vst [vmem:[#allocation92_spill] sm:$0xff] %v10969_v52 }
 0x6a5   :  { %13686 = vst [vmem:[#allocation149_spill] sm:$0xff] %v10957_v56 }
 0x6a7   :  { %v10973_v18 = vpop.permute.xlu1 %4234 }
 0x6a8   :  { %v10961_v15 = vpop.permute.xlu0 %4147  ;;  %13694 = vst [vmem:[#allocation111_spill] sm:$0xff] %v10973_v18 }
 0x6a9   :  { %13688 = vst [vmem:[#allocation100_spill] sm:$0xff] %v10961_v15 }
 0x6ab   :  { %v10979_v56 = vpop.permute.xlu1 %4237 }
 0x6ac   :  { %v10965_v57 = vpop.permute.xlu0 %4153  ;;  %13696 = vst [vmem:[#allocation158_spill] sm:$0xff] %v10979_v56  ;;  %v4411_v56 = vrot.slane %v10711_v35, %v9653_v50  ;;  %v4332_v35 = vrot.slane %v10525_v9, %v9653_v50  ;;  %v4347_v9 = vrot.slane %v10571_v42, %v9688_v51 }
 0x6ad   :  { %13690 = vst [vmem:[#allocation54_spill] sm:$0xff] %v10965_v57 }
 0x6af   :  { %v10983_v15 = vpop.permute.xlu1 %4240 }
 0x6b0   :  { %v10967_v46 = vpop.permute.xlu0 %4159  ;;  %13698 = vst [vmem:[#allocation223_spill] sm:$0xff] %v10983_v15  ;;  %v4406_v15 = vrot.slane %v10519_v27, %v9650_v8  ;;  %v4416_v27 = vrot.slane %v10537_v62, %v9659_v45 }
 0x6b1   :  { %13691 = vst [vmem:[#allocation107_spill] sm:$0xff] %v10967_v46 }
 0x6b3   :  { %v10989_v46 = vpop.permute.xlu1 %4243 }
 0x6b4   :  { %v10971_v24 = vpop.permute.xlu0 %4165  ;;  %13701 = vst [vmem:[#allocation226_spill] sm:$0xff] %v10989_v46 }
 0x6b5   :  { %13693 = vst [vmem:[#allocation156_spill] sm:$0xff] %v10971_v24 }
 0x6b7   :  { %v10993_v24 = vpop.permute.xlu1 %4246 }
 0x6b8   :  { %v10975_v49 = vpop.permute.xlu0 %4171  ;;  %13703 = vst [vmem:[#allocation228_spill] sm:$0xff] %v10993_v24  ;;  %v4327_v24 = vrot.slane %v10507_v39, %v9650_v8  ;;  %v4342_v39 = vrot.slane %v10557_v60, %v9672_v33  ;;  %v4426_v60 = vrot.slane %v10551_v30, %v9688_v51  ;;  %v4485_v30 = vrot.slane %v10635_v16, %v9650_v8 }
 0x6b9   :  { %13695 = vst [vmem:[#allocation95_spill] sm:$0xff] %v10975_v49  ;;  %v4402_v49 = vrot.slane %v10697_v34, %v9642_v21  ;;  %v4421_v34 = vrot.slane %v10725_v19, %v9672_v33 }
 0x6bb   :  { %v4407_v46 = vsel %vm2713_vm0, %v4406_v15, %v4402_v49  ;;  %v4337_v49 = vrot.slane %v10543_v10, %v9659_v45 }
 0x6bc   :  { %v10977_v53 = vpop.permute.xlu0 %4177 }
 0x6c0   :  { %v10981_v3 = vpop.permute.xlu0 %4183 }
 0x6c1   :  { %13697 = vst [vmem:[#allocation131_spill] sm:$0xff] %v10981_v3 }
 0x6c4   :  { %v10985_v38 = vpop.permute.xlu0 %4189 }
 0x6c5   :  { %13699 = vst [vmem:[#allocation224_spill] sm:$0xff] %v10985_v38 }
 0x6c8   :  { %v10987_v57 = vpop.permute.xlu0 %4195 }
 0x6c9   :  { %13700 = vst [vmem:[#allocation225_spill] sm:$0xff] %v10987_v57  ;;  %v11005_v57 = vpop.permute.xlu1 %4249 }
 0x6ca   :  { %13704 = vst [vmem:[#allocation229_spill] sm:$0xff] %v11005_v57  ;;  %v4323_v57 = vrot.slane %v10493_v44, %v9642_v21  ;;  %v4431_v44 = vrot.slane %v10739_v29, %v9685_v47  ;;  %v4490_v29 = vrot.slane %v10819_v31, %v9653_v50  ;;  %v4436_v31 = vrot.slane %v10565_v55, %v9713_v43 }
 0x6cb   :  { %v4495_v55 = vrot.slane %v10649_v32, %v9659_v45  ;;  %v4382_v32 = vrot.slane %v10655_v26, %v9747_v28  ;;  %v4392_v26 = vrot.slane %v10683_v1, %v9777_v54 }
 0x6cc   :  { %v10991_v52 = vpop.permute.xlu0 %4201 }
 0x6cd   :  { %13702 = vst [vmem:[#allocation227_spill] sm:$0xff] %v10991_v52  ;;  %v4412_v52 = vsel %vm2720_vm1, %v4411_v56, %v4407_v46  ;;  %v11026_v19 = vpop.permute.xlu1 %4207  ;;  %v4328_v56 = vsel %vm2713_vm0, %v4327_v24, %v4323_v57  ;;  %v4481_v24 = vrot.slane %v10807_v61, %v9642_v21  ;;  %v4357_v57 = vrot.slane %v10599_v0, %v9713_v43 }
 0x6ce   :  { %v4417_v15 = vsel %vm2727_vm2, %v4416_v27, %v4412_v52  ;;  %v4333_v10 = vsel %vm2720_vm1, %v4332_v35, %v4328_v56  ;;  %v4352_v52 = vrot.slane %v10585_v40, %v9685_v47  ;;  %v4362_v35 = vrot.slane %v10613_v58, %v9698_v5 }
 0x6cf   :  { %v4422_v62 = vsel %vm2734_vm3, %v4421_v34, %v4417_v15  ;;  %v4338_v42 = vsel %vm2727_vm2, %v4337_v49, %v4333_v10  ;;  %v4441_v0 = vrot.slane %v10753_v12, %v9698_v5  ;;  %v4486_v58 = vsel %vm2713_vm0, %v4485_v30, %v4481_v24 }
 0x6d0   :  { %v10995_v18 = vpop.permute.xlu0 %4225  ;;  %v4343_v34 = vsel %vm2734_vm3, %v4342_v39, %v4338_v42  ;;  %v4427_v40 = vsel %vm2741_vm4, %v4426_v60, %v4422_v62  ;;  %v4491_v56 = vsel %vm2720_vm1, %v4490_v29, %v4486_v58  ;;  %v4372_v62 = vrot.slane %v10627_v23, %v9717_v37  ;;  %v13716_v58 = vld [vmem:[#allocation97_spill] sm:$0xff] }
 0x6d1   :  { %v4348_v61 = vsel %vm2741_vm4, %v4347_v9, %v4343_v34  ;;  %v4432_v27 = vsel %vm13705_vm11, %v4431_v44, %v4427_v40  ;;  %v11064_v15 = vpop.permute.xlu1 %4297  ;;  %v4500_v9 = vrot.slane %v10831_v25, %v9672_v33  ;;  %v4367_v10 = vrot.slane %v10487_v41, %v9742_v20  ;;  %v13712_v40 = vld [vmem:[#allocation68_spill] sm:$0xff] }
 0x6d2   :  { %v4353_v39 = vsel %vm13706_vm9, %v4352_v52, %v4348_v61  ;;  %vm13708_vm9 = vmmov %vm13707_vm10  ;;  %v4377_v60 = vrot.slane %v10641_v63, %v9754_v36  ;;  %v4451_v25 = vrot.slane %v10767_v22, %v9717_v37  ;;  %v4446_v23 = vrot.slane %v10579_v2, %v9742_v20 }
 0x6d3   :  { %v4358_v16 = vsel %vm13707_vm10, %v4357_v57, %v4353_v39  ;;  %v4437_v44 = vsel %vm13708_vm9, %v4436_v31, %v4432_v27  ;;  %v4496_v42 = vsel %vm2727_vm2, %v4495_v55, %v4491_v56  ;;  %v4387_v63 = vrot.slane %v10669_v13, %v9783_v48  ;;  %v13713_v27 = vld [vmem:[#allocation43_spill] sm:$0xff] }
 0x6d4   :  { %v11001_v3 = vpop.permute.xlu0 %4231  ;;  %v4363_v12 = vsel %vm2762_vm7, %v4362_v35, %v4358_v16  ;;  %v4442_v52 = vsel %vm2762_vm7, %v4441_v0, %v4437_v44  ;;  %v4501_v57 = vsel %vm2734_vm3, %v4500_v9, %v4496_v42  ;;  %v4510_v22 = vrot.slane %v10843_v6, %v9685_v47  ;;  %v13717_v56 = vld [vmem:[#allocation143_spill] sm:$0xff]  ;;  %v13718_v44 = vld [vmem:[#allocation222_spill] sm:$0xff] }
 0x6d5   :  { %v4368_v41 = vsel %vm2769_vm8, %v4367_v10, %v4363_v12  ;;  %vm13709_vm10 = vcmask 720512   ;;  %v4505_v2 = vrot.slane %v10663_v4, %v9688_v51  ;;  %v4447_v34 = vsel %vm2769_vm8, %v4446_v23, %v4442_v52  ;;  %v11102_v35 = vpop.permute.xlu1 %4255  ;;  %v13719_v10 = vld [vmem:[#allocation179_spill] sm:$0xff] }
 0x6d6   :  { %v4373_v29 = vsel %vm13709_vm10, %v4372_v62, %v4368_v41  ;;  %vm13710_vm11 = vcmask 786112   ;;  %vm13711_vm9 = vmmov %vm13709_vm10  ;;  %v4461_v61 = vrot.slane %v13712_v40, %v9747_v28  ;;  %v4456_v0 = vrot.slane %v13713_v27, %v9754_v36  ;;  %v13722_v41 = vld [vmem:[#allocation189_spill] sm:$0xff]  ;;  %v13727_v40 = vld [vmem:[#allocation62_spill] sm:$0xff] }
 0x6d7   :  { %v4378_v30 = vsel %vm13710_vm11, %v4377_v60, %v4373_v29  ;;  %v4452_v13 = vsel %vm13711_vm9, %v4451_v25, %v4447_v34  ;;  %vm13714_vm10 = vcmask 851712   ;;  %v4506_v1 = vsel %vm2741_vm4, %v4505_v2, %v4501_v57  ;;  %v13721_v25 = vld [vmem:[#allocation69_spill] sm:$0xff]  ;;  %v13723_v57 = vld [vmem:[#allocation47_spill] sm:$0xff]  ;;  %v13728_v27 = vld [vmem:[#allocation148_spill] sm:$0xff] }
 0x6d8   :  { %v11013_v38 = vpop.permute.xlu0 %4276  ;;  %v4383_v4 = vsel %vm13714_vm10, %v4382_v32, %v4378_v30  ;;  %v4511_v39 = vsel %vm13715_vm6, %v4510_v22, %v4506_v1  ;;  %v4520_v16 = vrot.slane %v13716_v58, %v9698_v5  ;;  %v4515_v9 = vrot.slane %v13717_v56, %v9713_v43  ;;  %vm13720_vm9 = vmmov %vm13714_vm10 }
 0x6d9   :  { %v4388_v31 = vsel %vm2797_vm12, %v4387_v63, %v4383_v4  ;;  %v4457_v62 = vsel %vm13710_vm11, %v4456_v0, %v4452_v13  ;;  %v4560_v55 = vrot.slane %v10892_v11, %v9642_v21  ;;  %v4397_v60 = vrot.slane %v13719_v10, %v13718_v44  ;;  %v13724_v11 = vld [vmem:[#allocation55_spill] sm:$0xff]  ;;  %v13729_v4 = vld [vmem:[#allocation81_spill] sm:$0xff] }
 0x6da   :  { %v4393_v12 = vsel %vm2804_vm13, %v4392_v26, %v4388_v31  ;;  %v4462_v52 = vsel %vm13720_vm9, %v4461_v61, %v4457_v62  ;;  %v4471_v23 = vrot.slane %v13721_v25, %v9777_v54  ;;  %v4569_v32 = vrot.slane %v10901_v17, %v9653_v50  ;;  %v11140_v26 = vpop.permute.xlu1 %4213  ;;  %v13726_v17 = vld [vmem:[#allocation77_spill] sm:$0xff]  ;;  %v13730_v62 = vld [vmem:[#allocation147_spill] sm:$0xff] }
 0x6db   :  { %v4466_v63 = vrot.slane %v13722_v41, %v9783_v48  ;;  %v4476_v22 = vrot.slane %v13723_v57, %v13718_v44  ;;  %v4564_v29 = vrot.slane %v13724_v11, %v9650_v8  ;;  %vm13725_vm6 = vcmask 523712   ;;  %v13736_v11 = vld [vmem:[#allocation67_spill] sm:$0xff] }
 0x6dc   :  { %v11034_v46 = vpop.permute.xlu0 %4279  ;;  %v4516_v2 = vsel %vm13725_vm6, %v4515_v9, %v4511_v39  ;;  %v11143_v34 = vsel %vm2811_vm14, %v4397_v60, %v4393_v12  ;;  %v4525_v30 = vrot.slane %v13726_v17, %v9742_v20  ;;  %v4530_v61 = vrot.slane %v13727_v40, %v9717_v37  ;;  %v13731_v60 = vld [vmem:[#allocation151_spill] sm:$0xff] }
 0x6dd   :  { %v4521_v13 = vsel %vm2762_vm7, %v4520_v16, %v4516_v2  ;;  %v4535_v0 = vrot.slane %v13728_v27, %v9754_v36  ;;  %v4545_v1 = vrot.slane %v13729_v4, %v9783_v48  ;;  %v4467_v31 = vsel %vm2797_vm12, %v4466_v63, %v4462_v52  ;;  %v13735_v63 = vld [vmem:[#allocation98_spill] sm:$0xff]  ;;  %v13737_v17 = vld [vmem:[#allocation71_spill] sm:$0xff]  ;;  %v13739_v4 = vld [vmem:[#allocation124_spill] sm:$0xff] }
 0x6de   :  { %v4565_v39 = vsel %vm2713_vm0, %v4564_v29, %v4560_v55  ;;  %v4472_v58 = vsel %vm2804_vm13, %v4471_v23, %v4467_v31  ;;  %v4579_v16 = vrot.slane %v10910_v14, %v9672_v33  ;;  %v4639_v9 = vrot.slane %v10950_v7, %v9642_v21  ;;  %v13732_v23 = vld [vmem:[#allocation61_spill] sm:$0xff]  ;;  %v13733_v14 = vld [vmem:[#allocation94_spill] sm:$0xff]  ;;  %v13738_v40 = vld [vmem:[#allocation167_spill] sm:$0xff] }
 0x6df   :  { %v4570_v56 = vsel %vm2720_vm1, %v4569_v32, %v4565_v39  ;;  %v4555_v10 = vrot.slane %v13730_v62, %v13718_v44  ;;  %v4574_v52 = vrot.slane %v13731_v60, %v9659_v45  ;;  %v4526_v55 = vsel %vm2769_vm8, %v4525_v30, %v4521_v13  ;;  %v11186_v13 = vpop.permute.xlu1 %4303 }
 0x6e0   :  { %v11058_v49 = vpop.permute.xlu0 %4282  ;;  %v4648_v25 = vrot.slane %v10955_v59, %v9653_v50  ;;  %v4584_v32 = vrot.slane %v13732_v23, %v9688_v51  ;;  %v4643_v41 = vrot.slane %v13733_v14, %v9650_v8  ;;  %vm13734_vm10 = vcmask 720512  }
 0x6e1   :  { %v4531_v7 = vsel %vm13734_vm10, %v4530_v61, %v4526_v55  ;;  %v4540_v57 = vrot.slane %v13735_v63, %v9747_v28  ;;  %v4594_v29 = vrot.slane %v13736_v11, %v9713_v43  ;;  %v11181_v2 = vsel %vm2811_vm14, %v4476_v22, %v4472_v58 }
 0x6e2   :  { %v4604_v59 = vrot.slane %v13737_v17, %v9742_v20  ;;  %v4575_v30 = vsel %vm2727_vm2, %v4574_v52, %v4570_v56  ;;  %v4653_v27 = vrot.slane %v13738_v40, %v9659_v45  ;;  %v4589_v31 = vrot.slane %v13739_v4, %v9685_v47  ;;  %v13740_v56 = vld [vmem:[#allocation149_spill] sm:$0xff] }
 0x6e3   :  { %v4580_v61 = vsel %vm2734_vm3, %v4579_v16, %v4575_v30  ;;  %v4644_v39 = vsel %vm2713_vm0, %v4643_v41, %v4639_v9  ;;  %v4536_v22 = vsel %vm13710_vm11, %v4535_v0, %v4531_v7  ;;  %v4658_v60 = vrot.slane %v13740_v56, %v9672_v33  ;;  %v13741_v16 = vld [vmem:[#allocation70_spill] sm:$0xff]  ;;  %v13742_v0 = vld [vmem:[#allocation168_spill] sm:$0xff]  ;;  %v13743_v7 = vld [vmem:[#allocation85_spill] sm:$0xff] }
 0x6e4   :  { %v11083_v24 = vpop.permute.xlu0 %4285  ;;  %v4649_v58 = vsel %vm2720_vm1, %v4648_v25, %v4644_v39  ;;  %v4797_v52 = vrot.slane %v10995_v18, %v9642_v21  ;;  %v4541_v55 = vsel %vm13720_vm9, %v4540_v57, %v4536_v22  ;;  %v4550_v23 = vrot.slane %v13741_v16, %v9777_v54  ;;  %v13744_v18 = vld [vmem:[#allocation131_spill] sm:$0xff]  ;;  %v13746_v17 = vld [vmem:[#allocation173_spill] sm:$0xff]  ;;  %v13748_v39 = vld [vmem:[#allocation100_spill] sm:$0xff] }
 0x6e5   :  { %v4718_v9 = vrot.slane %v10977_v53, %v9642_v21  ;;  %v4806_v14 = vrot.slane %v11001_v3, %v9653_v50  ;;  %v4614_v25 = vrot.slane %v13742_v0, %v9754_v36  ;;  %v4585_v41 = vsel %vm2741_vm4, %v4584_v32, %v4580_v61  ;;  %v13747_v53 = vld [vmem:[#allocation102_spill] sm:$0xff]  ;;  %v13749_v16 = vld [vmem:[#allocation99_spill] sm:$0xff] }
 0x6e6   :  { %v4801_v63 = vrot.slane %v13743_v7, %v9650_v8  ;;  %v4727_v57 = vrot.slane %v13744_v18, %v9653_v50  ;;  %vm13745_vm6 = vcmask 458112   ;;  %v4722_v30 = vrot.slane %v13746_v17, %v9650_v8  ;;  %v13753_v17 = vld [vmem:[#allocation129_spill] sm:$0xff] }
 0x6e7   :  { %v4590_v11 = vsel %vm13745_vm6, %v4589_v31, %v4585_v41  ;;  %v4599_v40 = vrot.slane %v13747_v53, %v9698_v5  ;;  %v4654_v3 = vsel %vm2727_vm2, %v4653_v27, %v4649_v58  ;;  %v4546_v32 = vsel %vm2797_vm12, %v4545_v1, %v4541_v55  ;;  %v11229_v31 = vpop.permute.xlu1 %4261  ;;  %vm13756_vm11 = vmmov %vm13745_vm6 }
 0x6e8   :  { %v11108_v6 = vpop.permute.xlu0 %4288  ;;  %v4659_v61 = vsel %vm2734_vm3, %v4658_v60, %v4654_v3  ;;  %v4668_v22 = vrot.slane %v13748_v39, %v9685_v47  ;;  %v4802_v56 = vsel %vm2713_vm0, %v4801_v63, %v4797_v52  ;;  %v4663_v0 = vrot.slane %v13749_v16, %v9688_v51  ;;  %v13751_v60 = vld [vmem:[#allocation111_spill] sm:$0xff]  ;;  %v13752_v52 = vld [vmem:[#allocation224_spill] sm:$0xff]  ;;  %v13757_v3 = vld [vmem:[#allocation54_spill] sm:$0xff] }
 0x6e9   :  { %v4551_v41 = vsel %vm2804_vm13, %v4550_v23, %v4546_v32  ;;  %v4723_v27 = vsel %vm2713_vm0, %v4722_v30, %v4718_v9  ;;  %v4807_v58 = vsel %vm2720_vm1, %v4806_v14, %v4802_v56  ;;  %vm13750_vm10 = vcmask 523712   ;;  %v13754_v23 = vld [vmem:[#allocation119_spill] sm:$0xff] }
 0x6ea   :  { %v4595_v1 = vsel %vm13750_vm10, %v4594_v29, %v4590_v11  ;;  %v4811_v55 = vrot.slane %v13751_v60, %v9659_v45  ;;  %v4728_v7 = vsel %vm2720_vm1, %v4727_v57, %v4723_v27  ;;  %v4737_v63 = vrot.slane %v13752_v52, %v9672_v33  ;;  %v13755_v29 = vld [vmem:[#allocation88_spill] sm:$0xff]  ;;  %v13758_v39 = vld [vmem:[#allocation155_spill] sm:$0xff]  ;;  %vm13764_vm6 = vmmov %vm13750_vm10 }
 0x6eb   :  { %v4600_v18 = vsel %vm2762_vm7, %v4599_v40, %v4595_v1  ;;  %v4732_v53 = vrot.slane %v13753_v17, %v9659_v45  ;;  %v4609_v9 = vrot.slane %v13754_v23, %v9717_v37  ;;  %v4664_v14 = vsel %vm2741_vm4, %v4663_v0, %v4659_v61  ;;  %v13759_v16 = vld [vmem:[#allocation63_spill] sm:$0xff]  ;;  %v13760_v61 = vld [vmem:[#allocation158_spill] sm:$0xff]  ;;  %v11270_v17 = vpop.permute.xlu1 %4219 }
 0x6ec   :  { %v11131_v42 = vpop.permute.xlu0 %4291  ;;  %v4669_v57 = vsel %vm13756_vm11, %v4668_v22, %v4664_v14  ;;  %v4678_v32 = vrot.slane %v13757_v3, %v9698_v5  ;;  %v4812_v40 = vsel %vm2727_vm2, %v4811_v55, %v4807_v58  ;;  %v4673_v27 = vrot.slane %v13759_v16, %v9713_v43  ;;  %v13761_v58 = vld [vmem:[#allocation225_spill] sm:$0xff]  ;;  %v13763_v14 = vld [vmem:[#allocation118_spill] sm:$0xff] }
 0x6ed   :  { %v4816_v0 = vrot.slane %v13760_v61, %v9672_v33  ;;  %v4733_v1 = vsel %vm2727_vm2, %v4732_v53, %v4728_v7  ;;  %v11264_v60 = vsel %vm2811_vm14, %v4555_v10, %v4551_v41  ;;  %v4605_v22 = vsel %vm2769_vm8, %v4604_v59, %v4600_v18  ;;  %v13765_v59 = vld [vmem:[#allocation106_spill] sm:$0xff]  ;;  %v13766_v18 = vld [vmem:[#allocation223_spill] sm:$0xff] }
 0x6ee   :  { %v4738_v52 = vsel %vm2734_vm3, %v4737_v63, %v4733_v1  ;;  %v4747_v55 = vrot.slane %v13761_v58, %v9685_v47  ;;  %vm13762_vm9 = vcmask 720512   ;;  %v4742_v3 = vrot.slane %v13763_v14, %v9688_v51  ;;  %v13767_v61 = vld [vmem:[#allocation107_spill] sm:$0xff] }
 0x6ef   :  { %v4610_v23 = vsel %vm13762_vm9, %v4609_v9, %v4605_v22  ;;  %v4674_v16 = vsel %vm13764_vm6, %v4673_v27, %v4669_v57  ;;  %v4817_v7 = vsel %vm2734_vm3, %v4816_v0, %v4812_v40  ;;  %v4619_v41 = vrot.slane %v13765_v59, %v9747_v28  ;;  %v13768_v1 = vld [vmem:[#allocation75_spill] sm:$0xff] }
 0x6f0   :  { %v11162_v12 = vpop.permute.xlu0 %4294  ;;  %v4679_v63 = vsel %vm2762_vm7, %v4678_v32, %v4674_v16  ;;  %v4821_v53 = vrot.slane %v13766_v18, %v9688_v51  ;;  %v4688_v9 = vrot.slane %v13767_v61, %v9717_v37  ;;  %v4683_v22 = vrot.slane %v13768_v1, %v9742_v20  ;;  %v13769_v57 = vld [vmem:[#allocation127_spill] sm:$0xff]  ;;  %v13773_v61 = vld [vmem:[#allocation122_spill] sm:$0xff] }
 0x6f1   :  { %v4693_v27 = vrot.slane %v13769_v57, %v9754_v36  ;;  %v13770_v40 = vld [vmem:[#allocation103_spill] sm:$0xff]  ;;  %v4743_v58 = vsel %vm2741_vm4, %v4742_v3, %v4738_v52  ;;  %vm13771_vm10 = vcmask 786112   ;;  %v4752_v1 = vrot.slane %v13773_v61, %v9713_v43  ;;  %v13774_v57 = vld [vmem:[#allocation226_spill] sm:$0xff] }
 0x6f2   :  { %v4703_v0 = vrot.slane %v13770_v40, %v9783_v48  ;;  %v4615_v14 = vsel %vm13771_vm10, %v4614_v25, %v4610_v23  ;;  %v4748_v32 = vsel %vm13756_vm11, %v4747_v55, %v4743_v58  ;;  %v13772_v16 = vld [vmem:[#allocation227_spill] sm:$0xff]  ;;  %v4822_v18 = vsel %vm2741_vm4, %v4821_v53, %v4817_v7  ;;  %v13776_v55 = vld [vmem:[#allocation50_spill] sm:$0xff]  ;;  %v11309_v7 = vpop.permute.xlu1 %4309 }
 0x6f3   :  { %v4757_v59 = vrot.slane %v13772_v16, %v9698_v5  ;;  %v4684_v56 = vsel %vm2769_vm8, %v4683_v22, %v4679_v63  ;;  %v4826_v11 = vrot.slane %v13774_v57, %v9685_v47  ;;  %v4880_v52 = vrot.slane %v11013_v38, %v9650_v8  ;;  %v13778_v63 = vld [vmem:[#allocation92_spill] sm:$0xff] }
 0x6f4   :  { %v11194_v62 = vpop.permute.xlu0 %4252  ;;  %vm13775_vm9 = vcmask 851712   ;;  %v4762_v23 = vrot.slane %v13776_v55, %v9742_v20  ;;  %vm13777_vm6 = vcmask 720512   ;;  %v4885_v53 = vrot.slane %v11034_v46, %v9653_v50 }
 0x6f5   :  { %v4620_v25 = vsel %vm13775_vm9, %v4619_v41, %v4615_v14  ;;  %v4689_v40 = vsel %vm13777_vm6, %v4688_v9, %v4684_v56  ;;  %v4876_v22 = vrot.slane %v13778_v63, %v9642_v21  ;;  %vm13779_vm10 = vcmask 523712   ;;  %v13780_v14 = vld [vmem:[#allocation156_spill] sm:$0xff] }
 0x6f6   :  { %v4753_v58 = vsel %vm13779_vm10, %v4752_v1, %v4748_v32  ;;  %v4890_v38 = vrot.slane %v11058_v49, %v9659_v45  ;;  %v4827_v41 = vsel %vm13756_vm11, %v4826_v11, %v4822_v18  ;;  %v4698_v16 = vrot.slane %v13780_v14, %v9747_v28  ;;  %v13781_v56 = vld [vmem:[#allocation228_spill] sm:$0xff]  ;;  %v13783_v32 = vld [vmem:[#allocation229_spill] sm:$0xff]  ;;  %vm13784_vm6 = vmmov %vm13779_vm10 }
 0x6f7   :  { %v4831_v9 = vrot.slane %v13781_v56, %v9713_v43  ;;  %v4758_v61 = vsel %vm2762_vm7, %v4757_v59, %v4753_v58  ;;  %v4895_v46 = vrot.slane %v11083_v24, %v9672_v33  ;;  %vm13782_vm9 = vcmask 786112  }
 0x6f8   :  { %v11222_v4 = vpop.permute.xlu0 %4210  ;;  %v4694_v57 = vsel %vm13782_vm9, %v4693_v27, %v4689_v40  ;;  %v4836_v1 = vrot.slane %v13783_v32, %v9698_v5  ;;  %v4881_v49 = vsel %vm2713_vm0, %v4880_v52, %v4876_v22  ;;  %v4900_v11 = vrot.slane %v11108_v6, %v9688_v51 }
 0x6f9   :  { %v4886_v55 = vsel %vm2720_vm1, %v4885_v53, %v4881_v49  ;;  %v4905_v63 = vrot.slane %v11131_v42, %v9685_v47  ;;  %v4832_v59 = vsel %vm13784_vm6, %v4831_v9, %v4827_v41  ;;  %v4841_v24 = vrot.slane %v11194_v62, %v9742_v20  ;;  %v13785_v53 = vld [vmem:[#allocation115_spill] sm:$0xff]  ;;  %v4268_v41 = vpop.permute.xlu1 %4267 }
 0x6fa   :  { %v4763_v27 = vsel %vm2769_vm8, %v4762_v23, %v4758_v61  ;;  %v4891_v40 = vsel %vm2727_vm2, %v4890_v38, %v4886_v55  ;;  %v4910_v52 = vrot.slane %v11162_v12, %v9713_v43  ;;  %v4772_v6 = vrot.slane %v11222_v4, %v9754_v36  ;;  %v13787_v23 = vld [vmem:[#allocation95_spill] sm:$0xff] }
 0x6fb   :  { %v4629_v22 = vrot.slane %v13785_v53, %v9777_v54  ;;  %vm13786_vm10 = vcmask 851712   ;;  %v4767_v58 = vrot.slane %v11026_v19, %v9717_v37  ;;  %v4896_v62 = vsel %vm2734_vm3, %v4895_v46, %v4891_v40  ;;  %v13795_v53 = vld [vmem:[#allocation170_spill] sm:$0xff] }
 0x6fc   :  { %v11248_v30 = vpop.permute.xlu0 %4300  ;;  %v4699_v42 = vsel %vm13786_vm10, %v4698_v16, %v4694_v57  ;;  %v4708_v38 = vrot.slane %v13787_v23, %v9777_v54  ;;  %v4846_v12 = vrot.slane %v11102_v35, %v9717_v37  ;;  %v4901_v14 = vsel %vm2741_vm4, %v4900_v11, %v4896_v62 }
 0x6fd   :  { %v4837_v4 = vsel %vm2762_vm7, %v4836_v1, %v4832_v59  ;;  %v4906_v9 = vsel %vm13756_vm11, %v4905_v63, %v4901_v14  ;;  %vm13788_vm9 = vcmask 720512   ;;  %vm13789_vm10 = vcmask 786112  }
 0x6fe   :  { %v4842_v16 = vsel %vm2769_vm8, %v4841_v24, %v4837_v4  ;;  %v4768_v19 = vsel %vm13788_vm9, %v4767_v58, %v4763_v27  ;;  %v4911_v46 = vsel %vm13784_vm6, %v4910_v52, %v4906_v9  ;;  %v4920_v35 = vrot.slane %v11248_v30, %v9742_v20  ;;  %vm13791_vm11 = vmmov %vm13788_vm9  ;;  %v4271_v24 = vpop.permute.xlu1 %4270 }
 0x6ff   :  { %v4773_v57 = vsel %vm13789_vm10, %v4772_v6, %v4768_v19  ;;  %v13790_v1 = vrot.slane %v13755_v29, %v9783_v48  ;;  %v4704_v11 = vsel %vm2797_vm12, %v4703_v0, %v4699_v42  ;;  %v4915_v55 = vrot.slane %v11064_v15, %v9698_v5  ;;  %vm13792_vm9 = vmmov %vm13789_vm10 }
 0x700   :  { %v11277_v10 = vpop.permute.xlu0 %4258  ;;  %v4709_v59 = vsel %vm2804_vm13, %v4708_v38, %v4704_v11  ;;  %v4856_v30 = vrot.slane %v11229_v31, %v9747_v28  ;;  %vm13793_vm6 = vcmask 851712   ;;  %vm13794_vm10 = vcmask 1041409  }
 0x701   :  { %v4851_v61 = vrot.slane %v11277_v10, %v9754_v36  ;;  %v4625_v49 = vsel %vm2797_vm12, %v13790_v1, %v4620_v25  ;;  %v4777_v10 = vrot.slane %v11140_v26, %v9747_v28  ;;  %v4916_v25 = vsel %vm2762_vm7, %v4915_v55, %v4911_v46 }
 0x702   :  { %v4630_v63 = vsel %vm2804_vm13, %v4629_v22, %v4625_v49  ;;  %v4921_v26 = vsel %vm2769_vm8, %v4920_v35, %v4916_v25  ;;  %v4952_v6 = vsel %vm13794_vm10, %v11181_v2, %v11143_v34  ;;  %v4713_v22 = vrot.slane %v13795_v53, %v13718_v44  ;;  %v4319_v9 = vpop.permute.xlu1 %4318  ;;  %v13806_v25 = vld [vmem:[#allocation29_spill] sm:$0xff]  ;;  %v13810_v53 = vld [vmem:[#allocation34_spill] sm:$0xff] }
 0x703   :  { %v4778_v15 = vsel %vm13793_vm6, %v4777_v10, %v4773_v57  ;;  %v4925_v42 = vrot.slane %v11186_v13, %v9717_v37  ;;  %v4787_v58 = vrot.slane %v11270_v17, %v9777_v54  ;;  %v4953_v62 = vsel %vm3368_vm15, %v11264_v60, %v4952_v6  ;;  %v13921_v37 = vld [vmem:[#allocation101_spill] sm:$0xff] }
 0x704   :  { %v4217_v3 = vpop.permute.xlu0 %4216  ;;  %v4714_v2 = vsel %vm2811_vm14, %v4713_v22, %v4709_v59  ;;  %v4866_v17 = vrot.slane %v4268_v41, %v9777_v54  ;;  %vm13800_vm10 = vcmask 1044484   ;;  %v4871_v57 = vrot.slane %v4271_v24, %v13718_v44 }
 0x705   :  { %v4782_v32 = vrot.slane %v4217_v3, %v9783_v48  ;;  %v4847_v3 = vsel %vm13791_vm11, %v4846_v12, %v4842_v16  ;;  %vm13797_vm11 = vmmov %vm13793_vm6  ;;  %vm13799_vm6 = vcmask 786112   ;;  %v4950_v1 = vrot.slane %v4319_v9, %v13718_v44 }
 0x706   :  { %v4852_v0 = vsel %vm13792_vm9, %v4851_v61, %v4847_v3  ;;  %vm13798_vm9 = vcmask 720512  }
 0x707   :  { %v4783_v40 = vsel %vm2797_vm12, %v4782_v32, %v4778_v15  ;;  %v4857_v38 = vsel %vm13797_vm11, %v4856_v30, %v4852_v0  ;;  %v4926_v12 = vsel %vm13798_vm9, %v4925_v42, %v4921_v26  ;;  %vm13801_vm9 = vcmask 1045509   ;;  %v13804_v30 = vld [vmem:[#allocation28_spill] sm:$0xff]  ;;  %v13807_v15 = vld [vmem:[#allocation33_spill] sm:$0xff]  ;;  %v13811_v42 = vld [vmem:[#allocation66_spill] sm:$0xff] }
 0x708   :  { %v4307_v18 = vpop.permute.xlu0 %4306  ;;  %v4788_v14 = vsel %vm2804_vm13, %v4787_v58, %v4783_v40  ;;  %v13808_v26 = vld [vmem:[#allocation32_spill] sm:$0xff] }
 0x709   :  { %v4930_v52 = vrot.slane %v4307_v18, %v9754_v36  ;;  %v13796_v18 = vrot.slane %v13758_v39, %v13718_v44  ;;  %v13918_v36 = vld [vmem:[#allocation40_spill] sm:$0xff] }
 0x70b   :  { %v4635_v23 = vsel %vm2811_vm14, %v13796_v18, %v4630_v63  ;;  %v4931_v60 = vsel %vm13799_vm6, %v4930_v52, %v4926_v12  ;;  %vm13802_vm6 = vcmask 1046534   ;;  %v13809_v52 = vld [vmem:[#allocation30_spill] sm:$0xff]  ;;  %v13812_v18 = vld [vmem:[#allocation177_spill] sm:$0xff]  ;;  %v13814_v12 = vld [vmem:[#allocation180_spill] sm:$0xff] }
 0x70c   :  { %v4265_v56 = vpop.permute.xlu0 %4264  ;;  %v4954_v16 = vsel %vm3370_vm5, %v4635_v23, %v4953_v62 }
 0x70d   :  { %v4861_v27 = vrot.slane %v4265_v56, %v9783_v48  ;;  %v4935_v56 = vrot.slane %v11309_v7, %v9747_v28  ;;  %v4955_v46 = vsel %vm13800_vm10, %v4714_v2, %v4954_v16  ;;  %vm13803_vm10 = vcmask 1047559  }
 0x70f   :  { %v4862_v13 = vsel %vm2797_vm12, %v4861_v27, %v4857_v38  ;;  %v4936_v41 = vsel %vm13797_vm11, %v4935_v56, %v4931_v60  ;;  %v13813_v38 = vld [vmem:[#allocation90_spill] sm:$0xff]  ;;  %v13817_v56 = vld [vmem:[#allocation181_spill] sm:$0xff]  ;;  %vm13928_vm11 = vcmask 458112  }
 0x710   :  { %v4223_v29 = vpop.permute.xlu0 %4222  ;;  %v4867_v61 = vsel %vm2804_vm13, %v4866_v17, %v4862_v13  ;;  %v13815_v17 = vld [vmem:[#allocation113_spill] sm:$0xff] }
 0x711   :  { %v4792_v31 = vrot.slane %v4223_v29, %v13718_v44  ;;  %v4872_v49 = vsel %vm2811_vm14, %v4871_v57, %v4867_v61  ;;  %v13805_v29 = vld [vmem:[#allocation31_spill] sm:$0xff]  ;;  %v13820_v57 = vld [vmem:[#allocation154_spill] sm:$0xff] }
 0x713   :  { %v4793_v4 = vsel %vm2811_vm14, %v4792_v31, %v4788_v14 }
 0x714   :  { %v4313_v34 = vpop.permute.xlu0 %4312  ;;  %v4956_v32 = vsel %vm13801_vm9, %v4793_v4, %v4955_v46  ;;  %v13816_v4 = vld [vmem:[#allocation35_spill] sm:$0xff]  ;;  %vm13929_vm9 = vcmask 523712  }
 0x715   :  { %v4940_v39 = vrot.slane %v4313_v34, %v9783_v48  ;;  %v4957_v10 = vsel %vm13802_vm6, %v4872_v49, %v4956_v32  ;;  %v13821_v32 = vld [vmem:[#allocation211_spill] sm:$0xff]  ;;  %v13916_v48 = vld [vmem:[#allocation89_spill] sm:$0xff]  ;;  %vm13931_vm6 = vmmov %vm13928_vm11 }
 0x717   :  { %v4941_v7 = vsel %vm2797_vm12, %v4940_v39, %v4936_v41 }
 0x718   :  { %v4316_v19 = vpop.permute.xlu0 %4315 }
 0x719   :  { %v4945_v35 = vrot.slane %v4316_v19, %v9777_v54  ;;  %v13819_v19 = vld [vmem:[#allocation126_spill] sm:$0xff]  ;;  %v13915_v54 = vld [vmem:[#allocation135_spill] sm:$0xff] }
 0x71b   :  { %v4946_v11 = vsel %vm2804_vm13, %v4945_v35, %v4941_v7  ;;  %v13822_v7 = vld [vmem:[#allocation48_spill] sm:$0xff] }
 0x71c   :  { %v4951_v55 = vsel %vm2811_vm14, %v4950_v1, %v4946_v11  ;;  %v13823_v11 = vld [vmem:[#allocation132_spill] sm:$0xff] }
 0x71d   :  { %v4958_v63 = vsel %vm13803_vm10, %v4951_v55, %v4957_v10  ;;  %v13824_v10 = vld [vmem:[#allocation209_spill] sm:$0xff]  ;;  %vm13942_vm10 = vmmov %vm13931_vm6 }
 0x71e   :  { %4960 = vadd.xlane.f32.xlu0 %v4958_v63 }
 0x7a7   :  { %v4961_v59 = vpop.xlane.xlu0 %4960 }
 0x7a8   :  { %v4966_v3 = vrot.slane %v4961_v59, %v13804_v30  ;;  %v4978_v24 = vrot.slane %v4961_v59, %v13805_v29  ;;  %v4970_v0 = vrot.slane %v4961_v59, %v13806_v25  ;;  %v4986_v27 = vrot.slane %v4961_v59, %v13807_v15  ;;  %v13827_v25 = vld [vmem:[#allocation139_spill] sm:$0xff] }
 0x7a9   :  { %v4982_v40 = vrot.slane %v4961_v59, %v13808_v26  ;;  %v4974_v31 = vrot.slane %v4961_v59, %v13809_v52  ;;  %v4990_v22 = vrot.slane %v4961_v59, %v13810_v53  ;;  %v4994_v39 = vrot.slane %v4961_v59, %v13816_v4  ;;  %v13825_v59 = vld [vmem:[#allocation108_spill] sm:$0xff]  ;;  %v13828_v15 = vld [vmem:[#allocation163_spill] sm:$0xff]  ;;  %v13829_v26 = vld [vmem:[#allocation138_spill] sm:$0xff] }
 0x7aa   :  { %7615 = vrcp.f32 %v4966_v3  ;;  %v13826_v3 = vld [vmem:[#allocation150_spill] sm:$0xff]  ;;  %v13831_v53 = vld [vmem:[#allocation136_spill] sm:$0xff] }
 0x7ab   :  { %7617 = vrcp.f32 %v4978_v24  ;;  %v13830_v52 = vld [vmem:[#allocation190_spill] sm:$0xff]  ;;  %v13837_v4 = vld [vmem:[#allocation172_spill] sm:$0xff] }
 0x7ac   :  { %7619 = vrcp.f32 %v4970_v0 }
 0x7ad   :  { %7621 = vrcp.f32 %v4986_v27 }
 0x7ae   :  { %7623 = vrcp.f32 %v4982_v40 }
 0x7af   :  { %7625 = vrcp.f32 %v4974_v31 }
 0x7b0   :  { %7627 = vrcp.f32 %v4990_v22 }
 0x7b1   :  { %7629 = vrcp.f32 %v4994_v39 }
 0x7b7   :  { %v11434_v6 = vpop.eup %7615 }
 0x7b8   :  { %v5004_v58 = vmul.f32 %v11434_v6, %v13811_v42  ;;  %v11439_v62 = vpop.eup %7617  ;;  %v5005_v34 = vmul.f32 %v11434_v6, %v13813_v38  ;;  %v5006_v30 = vmul.f32 %v11434_v6, %v13825_v59  ;;  %v13832_v42 = vld [vmem:[#allocation121_spill] sm:$0xff]  ;;  %v5007_v39 = vmul.f32 %v11434_v6, %v13837_v4  ;;  %v13845_v59 = vld [vmem:[#allocation160_spill] sm:$0xff] }
 0x7b9   :  { %v5055_v23 = vmul.f32 %v11439_v62, %v13812_v18  ;;  %v11445_v2 = vpop.eup %7619  ;;  %v5057_v13 = vmul.f32 %v11439_v62, %v13814_v12  ;;  %v5056_v40 = vmul.f32 %v11439_v62, %v13829_v26  ;;  %v13833_v18 = vld [vmem:[#allocation187_spill] sm:$0xff]  ;;  %v13834_v38 = vld [vmem:[#allocation37_spill] sm:$0xff]  ;;  %v13835_v12 = vld [vmem:[#allocation184_spill] sm:$0xff] }
 0x7ba   :  { %5268 = vperm.xlu1 %7206, %v5004_v58   ;;  %v11449_v14 = vpop.eup %7621  ;;  %v5021_v60 = vmul.f32 %v11445_v2, %v13815_v17  ;;  %v5022_v61 = vmul.f32 %v11445_v2, %v13819_v19  ;;  %v5025_v63 = vmul.f32 %v11445_v2, %v13824_v10  ;;  %v5023_v0 = vmul.f32 %v11445_v2, %v13827_v25  ;;  %v13836_v17 = vld [vmem:[#allocation86_spill] sm:$0xff]  ;;  %v13839_v19 = vld [vmem:[#allocation133_spill] sm:$0xff]  ;;  %v13847_v25 = vld [vmem:[#allocation112_spill] sm:$0xff] }
 0x7bb   :  { %5412 = vperm.xlu0 %7205, %v5055_v23   ;;  %v5090_v9 = vmul.f32 %v11449_v14, %v13817_v56  ;;  %v11456_v16 = vpop.eup %7623  ;;  %v5091_v29 = vmul.f32 %v11449_v14, %v13826_v3  ;;  %v5009_v58 = vmul.f32 %v11434_v6, %v13832_v42  ;;  %v13838_v56 = vld [vmem:[#allocation193_spill] sm:$0xff]  ;;  %v13846_v3 = vld [vmem:[#allocation192_spill] sm:$0xff]  ;;  %v13849_v26 = vld [vmem:[#allocation210_spill] sm:$0xff] }
 0x7bc   :  { %13818 = vst [vmem:[#allocation68_spill] sm:$0xff] %v11456_v16  ;;  %v11460_v46 = vpop.eup %7625  ;;  %v5074_v41 = vmul.f32 %v11456_v16, %v13820_v57  ;;  %v5075_v31 = vmul.f32 %v11456_v16, %v13830_v52  ;;  %v5072_v23 = vmul.f32 %v11456_v16, %v13833_v18  ;;  %v13840_v57 = vld [vmem:[#allocation128_spill] sm:$0xff]  ;;  %v13844_v10 = vld [vmem:[#allocation153_spill] sm:$0xff]  ;;  %v13850_v52 = vld [vmem:[#allocation42_spill] sm:$0xff] }
 0x7bd   :  { %v11464_v35 = vpop.eup %7627  ;;  %v5038_v1 = vmul.f32 %v11460_v46, %v13821_v32  ;;  %v5039_v55 = vmul.f32 %v11460_v46, %v13823_v11  ;;  %v5040_v22 = vmul.f32 %v11460_v46, %v13831_v53  ;;  %v13841_v32 = vld [vmem:[#allocation79_spill] sm:$0xff]  ;;  %v13843_v11 = vld [vmem:[#allocation202_spill] sm:$0xff]  ;;  %v13853_v18 = vld [vmem:[#allocation201_spill] sm:$0xff] }
 0x7be   :  { %5271 = vperm.xlu1 %7206, %v5005_v34   ;;  %v5107_v49 = vmul.f32 %v11464_v35, %v13822_v7  ;;  %v11478_v24 = vpop.eup %7629  ;;  %v5059_v34 = vmul.f32 %v11439_v62, %v13834_v38  ;;  %v13842_v7 = vld [vmem:[#allocation197_spill] sm:$0xff]  ;;  %v13851_v53 = vld [vmem:[#allocation191_spill] sm:$0xff]  ;;  %v13852_v42 = vld [vmem:[#allocation110_spill] sm:$0xff] }
 0x7bf   :  { %5418 = vperm.xlu0 %7205, %v5057_v13   ;;  %v5124_v27 = vmul.f32 %v11478_v24, %v13828_v15  ;;  %v5073_v13 = vmul.f32 %v11456_v16, %v13835_v12  ;;  %v13848_v15 = vld [vmem:[#allocation104_spill] sm:$0xff]  ;;  %v13854_v38 = vld [vmem:[#allocation195_spill] sm:$0xff]  ;;  %v13855_v12 = vld [vmem:[#allocation161_spill] sm:$0xff]  ;;  %v11697_v28 = vmul.f32 %v11478_v24, %v13916_v48 }
 0x7c0   :  { %v13857_v4 = vld [vmem:[#allocation105_spill] sm:$0xff] }
 0x7c2   :  { %5316 = vperm.xlu1 %7206, %v5021_v60   ;;  %v5125_v60 = vmul.f32 %v11478_v24, %v13836_v17  ;;  %v13856_v17 = vld [vmem:[#allocation203_spill] sm:$0xff] }
 0x7c3   :  { %5511 = vperm.xlu0 %7205, %v5090_v9   ;;  %v5076_v9 = vmul.f32 %v11456_v16, %v13838_v56  ;;  %v13858_v56 = vld [vmem:[#allocation212_spill] sm:$0xff] }
 0x7c6   :  { %5319 = vperm.xlu1 %7206, %v5022_v61   ;;  %v5024_v61 = vmul.f32 %v11445_v2, %v13839_v19  ;;  %v13859_v19 = vld [vmem:[#allocation183_spill] sm:$0xff] }
 0x7c7   :  { %5466 = vperm.xlu0 %7205, %v5074_v41   ;;  %v5010_v41 = vmul.f32 %v11434_v6, %v13840_v57  ;;  %v13860_v57 = vld [vmem:[#allocation159_spill] sm:$0xff] }
 0x7ca   :  { %5364 = vperm.xlu1 %7206, %v5038_v1   ;;  %v5089_v1 = vmul.f32 %v11449_v14, %v13841_v32  ;;  %v13861_v32 = vld [vmem:[#allocation205_spill] sm:$0xff] }
 0x7cb   :  { %5559 = vperm.xlu0 %7205, %v5107_v49   ;;  %v5060_v49 = vmul.f32 %v11439_v62, %v13842_v7  ;;  %v13862_v7 = vld [vmem:[#allocation194_spill] sm:$0xff] }
 0x7ce   :  { %5367 = vperm.xlu1 %7206, %v5039_v55   ;;  %v5041_v55 = vmul.f32 %v11460_v46, %v13843_v11  ;;  %v13863_v11 = vld [vmem:[#allocation49_spill] sm:$0xff] }
 0x7cf   :  { %5328 = vperm.xlu0 %7205, %v5025_v63   ;;  %v5126_v63 = vmul.f32 %v11478_v24, %v13844_v10  ;;  %v13864_v10 = vld [vmem:[#allocation83_spill] sm:$0xff] }
 0x7d2   :  { %5274 = vperm.xlu1 %7206, %v5006_v30   ;;  %v5106_v30 = vmul.f32 %v11464_v35, %v13845_v59  ;;  %v13865_v59 = vld [vmem:[#allocation134_spill] sm:$0xff] }
 0x7d3   :  { %5514 = vperm.xlu0 %7205, %v5091_v29   ;;  %v5077_v29 = vmul.f32 %v11456_v16, %v13846_v3  ;;  %v13866_v3 = vld [vmem:[#allocation39_spill] sm:$0xff] }
 0x7d6   :  { %5322 = vperm.xlu1 %7206, %v5023_v0   ;;  %v5008_v0 = vmul.f32 %v11434_v6, %v13847_v25  ;;  %v13867_v25 = vld [vmem:[#allocation53_spill] sm:$0xff] }
 0x7d7   :  { %5607 = vperm.xlu0 %7205, %v5124_v27   ;;  %v5011_v27 = vmul.f32 %v11434_v6, %v13848_v15  ;;  %v13868_v15 = vld [vmem:[#allocation96_spill] sm:$0xff] }
 0x7da   :  { %5415 = vperm.xlu1 %7206, %v5056_v40   ;;  %v5058_v40 = vmul.f32 %v11439_v62, %v13849_v26  ;;  %v13869_v26 = vld [vmem:[#allocation215_spill] sm:$0xff] }
 0x7db   :  { %5469 = vperm.xlu0 %7205, %v5075_v31   ;;  %v5061_v31 = vmul.f32 %v11439_v62, %v13850_v52  ;;  %v13870_v52 = vld [vmem:[#allocation38_spill] sm:$0xff] }
 0x7de   :  { %5370 = vperm.xlu1 %7206, %v5040_v22   ;;  %v5123_v22 = vmul.f32 %v11478_v24, %v13851_v53  ;;  %v13871_v53 = vld [vmem:[#allocation57_spill] sm:$0xff] }
 0x7df   :  { %5283 = vperm.xlu0 %7205, %v5009_v58   ;;  %v5127_v58 = vmul.f32 %v11478_v24, %v13852_v42  ;;  %v13872_v42 = vld [vmem:[#allocation130_spill] sm:$0xff] }
 0x7e2   :  { %5460 = vperm.xlu1 %7206, %v5072_v23   ;;  %v5042_v23 = vmul.f32 %v11460_v46, %v13853_v18  ;;  %v13873_v18 = vld [vmem:[#allocation109_spill] sm:$0xff] }
 0x7e3   :  { %5424 = vperm.xlu0 %7205, %v5059_v34   ;;  %v5078_v34 = vmul.f32 %v11456_v16, %v13854_v38  ;;  %v13874_v38 = vld [vmem:[#allocation199_spill] sm:$0xff] }
 0x7e6   :  { %5463 = vperm.xlu1 %7206, %v5073_v13   ;;  %v5108_v13 = vmul.f32 %v11464_v35, %v13855_v12  ;;  %v13875_v12 = vld [vmem:[#allocation186_spill] sm:$0xff] }
 0x7e7   :  { %5610 = vperm.xlu0 %7205, %v5125_v60   ;;  %v5012_v60 = vmul.f32 %v11434_v6, %v13856_v17 }
 0x7ea   :  { %5277 = vperm.xlu1 %7206, %v5007_v39   ;;  %v5026_v39 = vmul.f32 %v11445_v2, %v13857_v4 }
 0x7eb   :  { %5472 = vperm.xlu0 %7205, %v5076_v9   ;;  %v5062_v9 = vmul.f32 %v11439_v62, %v13858_v56  ;;  %v13877_v56 = vld [vmem:[#allocation217_spill] sm:$0xff] }
 0x7ee   :  { %5325 = vperm.xlu1 %7206, %v5024_v61   ;;  %v5092_v61 = vmul.f32 %v11449_v14, %v13859_v19 }
 0x7ef   :  { %5286 = vperm.xlu0 %7205, %v5010_v41   ;;  %v5128_v41 = vmul.f32 %v11478_v24, %v13860_v57 }
 0x7f2   :  { %5508 = vperm.xlu1 %7206, %v5089_v1   ;;  %v5043_v1 = vmul.f32 %v11460_v46, %v13861_v32  ;;  %v13879_v32 = vld [vmem:[#allocation78_spill] sm:$0xff] }
 0x7f3   :  { %5427 = vperm.xlu0 %7205, %v5060_v49   ;;  %v5079_v49 = vmul.f32 %v11456_v16, %v13862_v7 }
 0x7f6   :  { %5373 = vperm.xlu1 %7206, %v5041_v55   ;;  %v5109_v55 = vmul.f32 %v11464_v35, %v13863_v11 }
 0x7f7   :  { %5613 = vperm.xlu0 %7205, %v5126_v63   ;;  %v5013_v63 = vmul.f32 %v11434_v6, %v13864_v10  ;;  %v13881_v10 = vld [vmem:[#allocation208_spill] sm:$0xff] }
 0x7fa   :  { %5556 = vperm.xlu1 %7206, %v5106_v30   ;;  %v5027_v30 = vmul.f32 %v11445_v2, %v13865_v59 }
 0x7fb   :  { %5475 = vperm.xlu0 %7205, %v5077_v29   ;;  %v5063_v29 = vmul.f32 %v11439_v62, %v13866_v3 }
 0x7fe   :  { %5280 = vperm.xlu1 %7206, %v5008_v0   ;;  %v5093_v0 = vmul.f32 %v11449_v14, %v13867_v25  ;;  %v13883_v25 = vld [vmem:[#allocation45_spill] sm:$0xff] }
 0x7ff   :  { %5289 = vperm.xlu0 %7205, %v5011_v27   ;;  %v5129_v27 = vmul.f32 %v11478_v24, %v13868_v15 }
 0x802   :  { %5421 = vperm.xlu1 %7206, %v5058_v40   ;;  %v5044_v40 = vmul.f32 %v11460_v46, %v13869_v26 }
 0x803   :  { %5430 = vperm.xlu0 %7205, %v5061_v31   ;;  %v5080_v31 = vmul.f32 %v11456_v16, %v13870_v52  ;;  %v13887_v52 = vld [vmem:[#allocation176_spill] sm:$0xff] }
 0x806   :  { %5604 = vperm.xlu1 %7206, %v5123_v22   ;;  %v5110_v22 = vmul.f32 %v11464_v35, %v13871_v53 }
 0x807   :  { %5616 = vperm.xlu0 %7205, %v5127_v58   ;;  %v5014_v58 = vmul.f32 %v11434_v6, %v13872_v42 }
 0x80a   :  { %5376 = vperm.xlu1 %7206, %v5042_v23   ;;  %v5028_v23 = vmul.f32 %v11445_v2, %v13873_v18  ;;  %v13891_v18 = vld [vmem:[#allocation59_spill] sm:$0xff] }
 0x80b   :  { %5478 = vperm.xlu0 %7205, %v5078_v34   ;;  %v5064_v34 = vmul.f32 %v11439_v62, %v13874_v38 }
 0x80e   :  { %5562 = vperm.xlu1 %7206, %v5108_v13   ;;  %v5094_v13 = vmul.f32 %v11449_v14, %v13875_v12 }
 0x80f   :  { %5292 = vperm.xlu0 %7205, %v5012_v60   ;;  %v13876_v60 = vld [vmem:[#allocation64_spill] sm:$0xff] }
 0x810   :  { %v5130_v4 = vmul.f32 %v11478_v24, %v13876_v60  ;;  %v13894_v60 = vld [vmem:[#allocation65_spill] sm:$0xff] }
 0x812   :  { %5331 = vperm.xlu1 %7206, %v5026_v39  }
 0x813   :  { %5433 = vperm.xlu0 %7205, %v5062_v9   ;;  %v5045_v9 = vmul.f32 %v11460_v46, %v13877_v56 }
 0x816   :  { %5517 = vperm.xlu1 %7206, %v5092_v61   ;;  %v13878_v61 = vld [vmem:[#allocation196_spill] sm:$0xff] }
 0x817   :  { %5619 = vperm.xlu0 %7205, %v5128_v41   ;;  %v5081_v57 = vmul.f32 %v11456_v16, %v13878_v61 }
 0x81a   :  { %5379 = vperm.xlu1 %7206, %v5043_v1   ;;  %v5111_v1 = vmul.f32 %v11464_v35, %v13879_v32  ;;  %v13897_v32 = vld [vmem:[#allocation185_spill] sm:$0xff] }
 0x81b   :  { %5481 = vperm.xlu0 %7205, %v5079_v49   ;;  %v13880_v49 = vld [vmem:[#allocation200_spill] sm:$0xff] }
 0x81c   :  { %v5015_v11 = vmul.f32 %v11434_v6, %v13880_v49 }
 0x81e   :  { %5565 = vperm.xlu1 %7206, %v5109_v55  }
 0x81f   :  { %5295 = vperm.xlu0 %7205, %v5013_v63   ;;  %v5029_v63 = vmul.f32 %v11445_v2, %v13881_v10 }
 0x822   :  { %5334 = vperm.xlu1 %7206, %v5027_v30   ;;  %v13882_v30 = vld [vmem:[#allocation44_spill] sm:$0xff] }
 0x823   :  { %5436 = vperm.xlu0 %7205, %v5063_v29   ;;  %v5065_v3 = vmul.f32 %v11439_v62, %v13882_v30  ;;  %v13899_v30 = vld [vmem:[#allocation204_spill] sm:$0xff] }
 0x826   :  { %5520 = vperm.xlu1 %7206, %v5093_v0   ;;  %v5095_v0 = vmul.f32 %v11449_v14, %v13883_v25 }
 0x827   :  { %5622 = vperm.xlu0 %7205, %v5129_v27   ;;  %v13885_v27 = vld [vmem:[#allocation51_spill] sm:$0xff] }
 0x828   :  { %v5131_v26 = vmul.f32 %v11478_v24, %v13885_v27 }
 0x82a   :  { %5382 = vperm.xlu1 %7206, %v5044_v40  }
 0x82b   :  { %5484 = vperm.xlu0 %7205, %v5080_v31   ;;  %v5046_v31 = vmul.f32 %v11460_v46, %v13887_v52  ;;  %v13902_v52 = vld [vmem:[#allocation146_spill] sm:$0xff] }
 0x82e   :  { %5568 = vperm.xlu1 %7206, %v5110_v22   ;;  %v13889_v22 = vld [vmem:[#allocation36_spill] sm:$0xff] }
 0x82f   :  { %5298 = vperm.xlu0 %7205, %v5014_v58   ;;  %v5082_v42 = vmul.f32 %v11456_v16, %v13889_v22 }
 0x832   :  { %5337 = vperm.xlu1 %7206, %v5028_v23   ;;  %v5112_v23 = vmul.f32 %v11464_v35, %v13891_v18 }
 0x833   :  { %5439 = vperm.xlu0 %7205, %v5064_v34   ;;  %v13892_v34 = vld [vmem:[#allocation120_spill] sm:$0xff] }
 0x834   :  { %v5016_v12 = vmul.f32 %v11434_v6, %v13892_v34  ;;  %v13904_v34 = vld [vmem:[#allocation141_spill] sm:$0xff] }
 0x835   :  { %v11578_v17 = vpop.permute.xlu1 %5268 }
 0x836   :  { %5523 = vperm.xlu1 %7206, %v5094_v13   ;;  %v11582_v39 = vpop.permute.xlu0 %5412 }
 0x837   :  { %5625 = vperm.xlu0 %7205, %v5130_v4   ;;  %v5030_v4 = vmul.f32 %v11445_v2, %v13894_v60 }
 0x839   :  { %v11586_v19 = vpop.permute.xlu1 %5271 }
 0x83a   :  { %5385 = vperm.xlu1 %7206, %v5045_v9   ;;  %v11590_v41 = vpop.permute.xlu0 %5418  ;;  %v13896_v9 = vld [vmem:[#allocation214_spill] sm:$0xff] }
 0x83b   :  { %5487 = vperm.xlu0 %7205, %v5081_v57   ;;  %v5066_v61 = vmul.f32 %v11439_v62, %v13896_v9 }
 0x83d   :  { %v11594_v7 = vpop.permute.xlu1 %5316 }
 0x83e   :  { %5571 = vperm.xlu1 %7206, %v5111_v1   ;;  %v11598_v55 = vpop.permute.xlu0 %5511  ;;  %v5096_v1 = vmul.f32 %v11449_v14, %v13897_v32  ;;  %v13906_v32 = vld [vmem:[#allocation169_spill] sm:$0xff] }
 0x83f   :  { %5301 = vperm.xlu0 %7205, %v5015_v11   ;;  %v13898_v11 = vld [vmem:[#allocation74_spill] sm:$0xff] }
 0x840   :  { %v5132_v10 = vmul.f32 %v11478_v24, %v13898_v11 }
 0x841   :  { %v11602_v59 = vpop.permute.xlu1 %5319 }
 0x842   :  { %5340 = vperm.xlu1 %7206, %v5029_v63   ;;  %v11606_v29 = vpop.permute.xlu0 %5466 }
 0x843   :  { %5442 = vperm.xlu0 %7205, %v5065_v3   ;;  %v5047_v3 = vmul.f32 %v11460_v46, %v13899_v30 }
 0x845   :  { %v11610_v15 = vpop.permute.xlu1 %5364 }
 0x846   :  { %13884 = vst [vmem:[#allocation43_spill] sm:$0xff] %v11610_v15  ;;  %5526 = vperm.xlu1 %7206, %v5095_v0   ;;  %v11614_v40 = vpop.permute.xlu0 %5559  ;;  %v13901_v0 = vld [vmem:[#allocation142_spill] sm:$0xff]  ;;  %v7637_v15 = vld [vmem:[#allocation7] sm:$0xff] }
 0x847   :  { %13886 = vst [vmem:[#allocation97_spill] sm:$0xff] %v11614_v40  ;;  %5628 = vperm.xlu0 %7205, %v5131_v26   ;;  %v5083_v27 = vmul.f32 %v11456_v16, %v13901_v0  ;;  %v13908_v0 = vld [vmem:[#allocation174_spill] sm:$0xff] }
 0x849   :  { %v11618_v53 = vpop.permute.xlu1 %5367 }
 0x84a   :  { %13888 = vst [vmem:[#allocation143_spill] sm:$0xff] %v11618_v53  ;;  %5388 = vperm.xlu1 %7206, %v5046_v31   ;;  %v11622_v58 = vpop.permute.xlu0 %5328  ;;  %v5113_v31 = vmul.f32 %v11464_v35, %v13902_v52  ;;  %v7633_v52 = vld [vmem:[#allocation7 + $0x208] sm:$0xff] }
 0x84b   :  { %13890 = vst [vmem:[#allocation179_spill] sm:$0xff] %v11622_v58  ;;  %5490 = vperm.xlu0 %7205, %v5082_v42   ;;  %v13903_v42 = vld [vmem:[#allocation52_spill] sm:$0xff] }
 0x84c   :  { %v5017_v18 = vmul.f32 %v11434_v6, %v13903_v42 }
 0x84d   :  { %v11626_v38 = vpop.permute.xlu1 %5274 }
 0x84e   :  { %5574 = vperm.xlu1 %7206, %v5112_v23   ;;  %v11630_v13 = vpop.permute.xlu0 %5514 }
 0x84f   :  { %13893 = vst [vmem:[#allocation69_spill] sm:$0xff] %v11630_v13  ;;  %5304 = vperm.xlu0 %7205, %v5016_v12   ;;  %v5031_v12 = vmul.f32 %v11445_v2, %v13904_v34 }
 0x851   :  { %v11634_v56 = vpop.permute.xlu1 %5322 }
 0x852   :  { %13895 = vst [vmem:[#allocation189_spill] sm:$0xff] %v11634_v56  ;;  %5343 = vperm.xlu1 %7206, %v5030_v4   ;;  %v11638_v57 = vpop.permute.xlu0 %5607  ;;  %v13905_v4 = vld [vmem:[#allocation41_spill] sm:$0xff]  ;;  %v5979_v56 = vrot.slane %v11606_v29, %v9653_v50 }
 0x853   :  { %5445 = vperm.xlu0 %7205, %v5066_v61   ;;  %v5067_v9 = vmul.f32 %v11439_v62, %v13905_v4 }
 0x855   :  { %v11642_v49 = vpop.permute.xlu1 %5415 }
 0x856   :  { %5529 = vperm.xlu1 %7206, %v5096_v1   ;;  %v11646_v63 = vpop.permute.xlu0 %5469  ;;  %v5097_v1 = vmul.f32 %v11449_v14, %v13906_v32  ;;  %v13911_v32 = vld [vmem:[#allocation58_spill] sm:$0xff] }
 0x857   :  { %5631 = vperm.xlu0 %7205, %v5132_v10   ;;  %v13907_v10 = vld [vmem:[#allocation162_spill] sm:$0xff] }
 0x858   :  { %v5133_v30 = vmul.f32 %v11478_v24, %v13907_v10  ;;  %v13912_v10 = vld [vmem:[#allocation82_spill] sm:$0xff] }
 0x859   :  { %v11650_v25 = vpop.permute.xlu1 %5370  ;;  %v5114_v44 = vmul.f32 %v11464_v35, %v13912_v10 }
 0x85a   :  { %13900 = vst [vmem:[#allocation47_spill] sm:$0xff] %v11650_v25  ;;  %5391 = vperm.xlu1 %7206, %v5047_v3   ;;  %v11654_v26 = vpop.permute.xlu0 %5283 }
 0x85b   :  { %5493 = vperm.xlu0 %7205, %v5083_v27   ;;  %v5048_v27 = vmul.f32 %v11460_v46, %v13908_v0 }
 0x85d   :  { %v5461_v22 = vpop.permute.xlu1 %5460 }
 0x85e   :  { %5577 = vperm.xlu1 %7206, %v5113_v31   ;;  %v11660_v23 = vpop.permute.xlu0 %5424 }
 0x85f   :  { %5307 = vperm.xlu0 %7205, %v5017_v18   ;;  %v7634_v18 = vld [vmem:[#allocation7 + $0x200] sm:$0xff] }
 0x860   :  { %v6484_v34 = vmul.f32 %v7634_v18, %v5461_v22 }
 0x861   :  { %v5464_v60 = vpop.permute.xlu1 %5463 }
 0x862   :  { %5346 = vperm.xlu1 %7206, %v5031_v12   ;;  %v11666_v61 = vpop.permute.xlu0 %5610  ;;  %v6485_v31 = vmul.f32 %v7633_v52, %v5464_v60  ;;  %v13910_v12 = vld [vmem:[#allocation80_spill] sm:$0xff]  ;;  %v5974_v0 = vrot.slane %v5464_v60, %v9650_v8  ;;  %v11703_v60 = vmul.f32 %v11456_v16, %v13918_v36  ;;  %v5658_v36 = vrot.slane %v11586_v19, %v9650_v8 }
 0x863   :  { %5448 = vperm.xlu0 %7205, %v5067_v9   ;;  %v5084_v4 = vmul.f32 %v11456_v16, %v13910_v12  ;;  %v5032_v12 = vmul.f32 %v11445_v2, %v13915_v54  ;;  %v5970_v54 = vrot.slane %v5461_v22, %v9642_v21 }
 0x864   :  { %v6632_v52 = vadd.f32 %v6485_v31, %v6484_v34  ;;  %v13919_v31 = vld [vmem:[#allocation207_spill] sm:$0xff] }
 0x865   :  { %v11670_v11 = vpop.permute.xlu1 %5277  ;;  %v11707_v34 = vmul.f32 %v11460_v46, %v13919_v31  ;;  %v13922_v31 = vld [vmem:[#allocation46_spill] sm:$0xff]  ;;  %v5975_v25 = vsel %vm2713_vm0, %v5974_v0, %v5970_v54 }
 0x866   :  { %5532 = vperm.xlu1 %7206, %v5097_v1   ;;  %v11674_v3 = vpop.permute.xlu0 %5472  ;;  %v5018_v1 = vmul.f32 %v11434_v6, %v13911_v32  ;;  %v13917_v32 = vld [vmem:[#allocation188_spill] sm:$0xff]  ;;  %v11725_v13 = vmul.f32 %v11439_v62, %v13922_v31  ;;  %v7639_v54 = vld [vmem:[#allocation7 + $0x218] sm:$0xff] }
 0x867   :  { %5634 = vperm.xlu0 %7205, %v5133_v30   ;;  %v5098_v10 = vmul.f32 %v11449_v14, %v13917_v32  ;;  %v11717_v32 = vmul.f32 %v11464_v35, %v13921_v37 }
 0x869   :  { %v11678_v42 = vpop.permute.xlu1 %5325 }
 0x86a   :  { %13909 = vst [vmem:[#allocation55_spill] sm:$0xff] %v11678_v42  ;;  %5394 = vperm.xlu1 %7206, %v5048_v27   ;;  %v11682_v9 = vpop.permute.xlu0 %5286  ;;  %v13914_v27 = vld [vmem:[#allocation198_spill] sm:$0xff]  ;;  %v13926_v42 = vld [vmem:[#allocation145_spill] sm:$0xff] }
 0x86b   :  { %5496 = vperm.xlu0 %7205, %v5084_v4   ;;  %v5068_v18 = vmul.f32 %v11439_v62, %v13914_v27  ;;  %v7635_v4 = vld [vmem:[#allocation7 + $0x210] sm:$0xff]  ;;  %v11741_v31 = vmul.f32 %v11449_v14, %v13926_v42 }
 0x86c   :  { %v6486_v27 = vmul.f32 %v7635_v4, %v11606_v29  ;;  %v13923_v4 = vld [vmem:[#allocation27_spill] sm:$0xff]  ;;  %v7640_v29 = vld [vmem:[#allocation7 + $0x10] sm:$0xff] }
 0x86d   :  { %v11689_v30 = vpop.permute.xlu1 %5508  ;;  %v11729_v22 = vmul.f32 %v11445_v2, %v13923_v4  ;;  %v5654_v4 = vrot.slane %v11578_v17, %v9642_v21 }
 0x86e   :  { %13913 = vst [vmem:[#allocation77_spill] sm:$0xff] %v11689_v30  ;;  %5580 = vperm.xlu1 %7206, %v5114_v44   ;;  %v13920_v44 = vld [vmem:[#allocation117_spill] sm:$0xff]  ;;  %v11721_v20 = vpop.permute.xlu0 %5427  ;;  %v6633_v58 = vadd.f32 %v6632_v52, %v6486_v27  ;;  %v7638_v52 = vld [vmem:[#allocation7 + $0x180] sm:$0xff]  ;;  %v5663_v27 = vrot.slane %v11626_v38, %v9653_v50 }
 0x86f   :  { %v11713_v48 = vmul.f32 %v11434_v6, %v13920_v44  ;;  %v13924_v30 = vld [vmem:[#allocation73_spill] sm:$0xff]  ;;  %v7636_v44 = vld [vmem:[#allocation7 + $0x8] sm:$0xff]  ;;  %5310 = vperm.xlu0 %7205, %v5018_v1   ;;  %v5891_v1 = vrot.slane %v11582_v39, %v9642_v21  ;;  %v6468_v42 = vmul.f32 %v7638_v52, %v11582_v39  ;;  %v5984_v39 = vrot.slane %v11646_v63, %v9659_v45 }
 0x870   :  { %v11733_v6 = vmul.f32 %v11478_v24, %v13924_v30  ;;  %v6421_v37 = vmul.f32 %v7636_v44, %v11586_v19  ;;  %v6420_v30 = vmul.f32 %v7637_v15, %v11578_v17  ;;  %v13927_v19 = vld [vmem:[#allocation144_spill] sm:$0xff]  ;;  %v6487_v17 = vmul.f32 %v7639_v54, %v11646_v63 }
 0x871   :  { %v11737_v40 = vpop.permute.xlu1 %5373  ;;  %v11750_v0 = vmul.f32 %v11456_v16, %v13927_v19  ;;  %v5659_v15 = vsel %vm2713_vm0, %v5658_v36, %v5654_v4  ;;  %v5895_v44 = vrot.slane %v11642_v49, %v9650_v8  ;;  %v5980_v19 = vsel %vm2720_vm1, %v5979_v56, %v5975_v25  ;;  %v7641_v52 = vld [vmem:[#allocation7 + $0x188] sm:$0xff]  ;;  %v7642_v4 = vld [vmem:[#allocation7 + $0x190] sm:$0xff]  ;;  %v7643_v25 = vld [vmem:[#allocation7 + $0x18] sm:$0xff] }
 0x872   :  { %13925 = vst [vmem:[#allocation62_spill] sm:$0xff] %v11737_v40  ;;  %5349 = vperm.xlu1 %7206, %v5032_v12   ;;  %v6422_v12 = vmul.f32 %v7640_v29, %v11626_v38  ;;  %v11763_v16 = vpop.permute.xlu0 %5613  ;;  %v6548_v40 = vadd.f32 %v6421_v37, %v6420_v30  ;;  %v6469_v53 = vmul.f32 %v7641_v52, %v11642_v49  ;;  %v7644_v49 = vld [vmem:[#allocation7 + $0x220] sm:$0xff]  ;;  %v7645_v52 = vld [vmem:[#allocation7 + $0x388] sm:$0xff] }
 0x873   :  { %v6634_v54 = vadd.f32 %v6633_v58, %v6487_v17  ;;  %5451 = vperm.xlu0 %7205, %v5068_v18   ;;  %v5900_v38 = vrot.slane %v11590_v41, %v9653_v50  ;;  %v6470_v29 = vmul.f32 %v7642_v4, %v11590_v41  ;;  %v5989_v56 = vrot.slane %v11674_v3, %v9672_v33  ;;  %v7647_v41 = vld [vmem:[#allocation7 + $0x20] sm:$0xff] }
 0x874   :  { %v6423_v37 = vmul.f32 %v7643_v25, %v11670_v11  ;;  %v5664_v63 = vsel %vm2720_vm1, %v5663_v27, %v5659_v15  ;;  %v5985_v58 = vsel %vm2727_vm2, %v5984_v39, %v5980_v19  ;;  %v6488_v18 = vmul.f32 %v7644_v49, %v11674_v3  ;;  %v7646_v39 = vld [vmem:[#allocation7 + $0x228] sm:$0xff] }
 0x875   :  { %v11768_v36 = vpop.permute.xlu1 %5556  ;;  %v5668_v30 = vrot.slane %v11670_v11, %v9659_v45  ;;  %v6549_v17 = vadd.f32 %v6548_v40, %v6422_v12  ;;  %v11784_v4 = vmul.f32 %v7645_v52, %v11638_v57  ;;  %v6611_v27 = vadd.f32 %v6469_v53, %v6468_v42 }
 0x876   :  { %5535 = vperm.xlu1 %7206, %v5098_v10   ;;  %v5896_v10 = vsel %vm2713_vm0, %v5895_v44, %v5891_v1  ;;  %v5476_v25 = vpop.permute.xlu0 %5475  ;;  %v6635_v15 = vadd.f32 %v6634_v54, %v6488_v18  ;;  %v5990_v40 = vsel %vm2734_vm3, %v5989_v56, %v5985_v58  ;;  %v5678_v53 = vrot.slane %v11654_v26, %v9688_v51  ;;  %v7649_v18 = vld [vmem:[#allocation7 + $0x30] sm:$0xff] }
 0x877   :  { %v5994_v19 = vrot.slane %v5476_v25, %v9688_v51  ;;  %v6489_v3 = vmul.f32 %v7646_v39, %v5476_v25  ;;  %5637 = vperm.xlu0 %7205, %v11697_v28   ;;  %v6550_v12 = vadd.f32 %v6549_v17, %v6423_v37  ;;  %v5669_v1 = vsel %vm2727_vm2, %v5668_v30, %v5664_v63  ;;  %v7648_v28 = vld [vmem:[#allocation7 + $0x28] sm:$0xff] }
 0x878   :  { %v6425_v54 = vmul.f32 %v7648_v28, %v11654_v26  ;;  %v5683_v56 = vrot.slane %v11682_v9, %v9685_v47  ;;  %v6426_v17 = vmul.f32 %v7649_v18, %v11682_v9  ;;  %v5910_v9 = vrot.slane %v11660_v23, %v9672_v33  ;;  %v7653_v28 = vld [vmem:[#allocation7 + $0x1a8] sm:$0xff] }
 0x879   :  { %v5281_v11 = vpop.permute.xlu1 %5280  ;;  %v11796_v42 = vsel %vm2741_vm4, %v5994_v19, %v5990_v40  ;;  %v11798_v44 = vadd.f32 %v6635_v15, %v6489_v3  ;;  %v7650_v19 = vld [vmem:[#allocation7 + $0x198] sm:$0xff] }
 0x87a   :  { %v5673_v49 = vrot.slane %v5281_v11, %v9672_v33  ;;  %v6424_v52 = vmul.f32 %v7647_v41, %v5281_v11  ;;  %5397 = vperm.xlu1 %7206, %v11707_v34   ;;  %v5290_v37 = vpop.permute.xlu0 %5289  ;;  %v6612_v41 = vadd.f32 %v6611_v27, %v6470_v29  ;;  %v7651_v11 = vld [vmem:[#allocation7 + $0x1a0] sm:$0xff]  ;;  %v7652_v29 = vld [vmem:[#allocation7 + $0x38] sm:$0xff] }
 0x87b   :  { %v5688_v63 = vrot.slane %v5290_v37, %v9713_v43  ;;  %5499 = vperm.xlu0 %7205, %v11703_v60   ;;  %v6472_v40 = vmul.f32 %v7651_v11, %v11660_v23  ;;  %v6427_v27 = vmul.f32 %v7652_v29, %v5290_v37  ;;  %v13932_v11 = vld [vmem:[#allocation175_spill] sm:$0xff] }
 0x87c   :  { %v5674_v58 = vsel %vm2734_vm3, %v5673_v49, %v5669_v1  ;;  %v6551_v34 = vadd.f32 %v6550_v12, %v6424_v52  ;;  %v5901_v12 = vsel %vm2720_vm1, %v5900_v38, %v5896_v10  ;;  %v5915_v1 = vrot.slane %v11721_v20, %v9688_v51 }
 0x87d   :  { %v5679_v30 = vsel %vm2741_vm4, %v5678_v53, %v5674_v58  ;;  %v5422_v25 = vpop.permute.xlu1 %5421  ;;  %v7654_v58 = vld [vmem:[#allocation7 + $0x380] sm:$0xff] }
 0x87e   :  { %v6552_v15 = vadd.f32 %v6551_v34, %v6425_v54  ;;  %v5905_v26 = vrot.slane %v5422_v25, %v9659_v45  ;;  %v6471_v39 = vmul.f32 %v7650_v19, %v5422_v25  ;;  %5583 = vperm.xlu1 %7206, %v11717_v32   ;;  %v5684_v3 = vsel %vm13928_vm11, %v5683_v56, %v5679_v30  ;;  %v5431_v49 = vpop.permute.xlu0 %5430  ;;  %v7656_v30 = vld [vmem:[#allocation7 + $0x1b0] sm:$0xff]  ;;  %vm13953_vm11 = vmmov %vm13929_vm9 }
 0x87f   :  { %v11816_v60 = vsel %vm13929_vm9, %v5688_v63, %v5684_v3  ;;  %v6473_v54 = vmul.f32 %v7653_v28, %v11721_v20  ;;  %v5920_v23 = vrot.slane %v5431_v49, %v9685_v47  ;;  %5313 = vperm.xlu0 %7205, %v11713_v48   ;;  %v7655_v20 = vld [vmem:[#allocation7 + $0x390] sm:$0xff]  ;;  %v6221_v3 = vrot.slane %v11763_v16, %v9659_v45 }
 0x880   :  { %v5906_v52 = vsel %vm2727_vm2, %v5905_v26, %v5901_v12  ;;  %v6613_v53 = vadd.f32 %v6612_v41, %v6471_v39  ;;  %v6553_v32 = vadd.f32 %v6552_v15, %v6426_v17  ;;  %v6216_v17 = vrot.slane %v11666_v61, %v9653_v50 }
 0x881   :  { %v5911_v38 = vsel %vm2734_vm3, %v5910_v9, %v5906_v52  ;;  %v5605_v10 = vpop.permute.xlu1 %5604  ;;  %v6534_v63 = vmul.f32 %v7655_v20, %v11666_v61  ;;  %v6474_v41 = vmul.f32 %v7656_v30, %v5431_v49  ;;  %v13930_v15 = vrot.slane %v11638_v57, %v9650_v8 }
 0x882   :  { %v6614_v56 = vadd.f32 %v6613_v53, %v6472_v40  ;;  %v6207_v37 = vrot.slane %v5605_v10, %v9642_v21  ;;  %v6532_v34 = vmul.f32 %v7654_v58, %v5605_v10  ;;  %5352 = vperm.xlu1 %7206, %v11729_v22   ;;  %v11827_v18 = vadd.f32 %v6553_v32, %v6427_v27  ;;  %v5617_v25 = vpop.permute.xlu0 %5616  ;;  %v13933_v40 = vld [vmem:[#allocation213_spill] sm:$0xff] }
 0x883   :  { %v5916_v48 = vsel %vm2741_vm4, %v5915_v1, %v5911_v38  ;;  %5454 = vperm.xlu0 %7205, %v11725_v13   ;;  %v5050_v57 = vmul.f32 %v11460_v46, %v13932_v11  ;;  %v11851_v12 = vmul.f32 %v11439_v62, %v13933_v40  ;;  %v6226_v27 = vrot.slane %v5617_v25, %v9672_v33  ;;  %v13934_v13 = vld [vmem:[#allocation152_spill] sm:$0xff]  ;;  %v13935_v1 = vld [vmem:[#allocation123_spill] sm:$0xff] }
 0x884   :  { %v6212_v26 = vsel %vm2713_vm0, %v13930_v15, %v6207_v37  ;;  %v6695_v22 = vadd.f32 %v11784_v4, %v6532_v34  ;;  %v11839_v19 = vsel %vm13931_vm6, %v5920_v23, %v5916_v48  ;;  %v6615_v39 = vadd.f32 %v6614_v56, %v6473_v54  ;;  %v7657_v4 = vld [vmem:[#allocation7 + $0x398] sm:$0xff]  ;;  %v13936_v62 = vld [vmem:[#allocation116_spill] sm:$0xff]  ;;  %v13937_v56 = vld [vmem:[#allocation165_spill] sm:$0xff] }
 0x885   :  { %v6217_v61 = vsel %vm2720_vm1, %v6216_v17, %v6212_v26  ;;  %v11845_v9 = vpop.permute.xlu1 %5376  ;;  %v6535_v29 = vmul.f32 %v7657_v4, %v11763_v16  ;;  %v5116_v53 = vmul.f32 %v11464_v35, %v13934_v13  ;;  %v11863_v28 = vmul.f32 %v11478_v24, %v13935_v1  ;;  %v7658_v16 = vld [vmem:[#allocation7 + $0x3a0] sm:$0xff]  ;;  %v7659_v34 = vld [vmem:[#allocation7 + $0x230] sm:$0xff]  ;;  %v13940_v26 = vld [vmem:[#allocation206_spill] sm:$0xff] }
 0x886   :  { %v6696_v49 = vadd.f32 %v6695_v22, %v6534_v63  ;;  %5538 = vperm.xlu1 %7206, %v11741_v31   ;;  %v11856_v52 = vadd.f32 %v6615_v39, %v6474_v41  ;;  %v6222_v32 = vsel %vm2727_vm2, %v6221_v3, %v6217_v61  ;;  %v11867_v54 = vmul.f32 %v11445_v2, %v13936_v62  ;;  %v5479_v38 = vpop.permute.xlu0 %5478  ;;  %v13938_v63 = vld [vmem:[#allocation72_spill] sm:$0xff] }
 0x887   :  { %v6536_v23 = vmul.f32 %v7658_v16, %v5617_v25  ;;  %v11870_v31 = vsel %vm2734_vm3, %v6226_v27, %v6222_v32  ;;  %v11874_v37 = vmul.f32 %v11464_v35, %v13937_v56  ;;  %v5999_v58 = vrot.slane %v5479_v38, %v9685_v47  ;;  %5640 = vperm.xlu0 %7205, %v11733_v6   ;;  %v13939_v41 = vld [vmem:[#allocation56_spill] sm:$0xff]  ;;  %v13941_v6 = vld [vmem:[#allocation157_spill] sm:$0xff]  ;;  %v7661_v27 = vld [vmem:[#allocation7 + $0x80] sm:$0xff] }
 0x888   :  { %v6697_v10 = vadd.f32 %v6696_v49, %v6535_v29  ;;  %v6490_v17 = vmul.f32 %v7659_v34, %v5479_v38  ;;  %v11882_v30 = vmul.f32 %v11449_v14, %v13938_v63  ;;  %v11886_v48 = vmul.f32 %v11478_v24, %v13939_v41  ;;  %v7660_v3 = vld [vmem:[#allocation7 + $0x88] sm:$0xff]  ;;  %v13946_v56 = vld [vmem:[#allocation143_spill] sm:$0xff]  ;;  %v7665_v63 = vld [vmem:[#allocation7 + $0x90] sm:$0xff] }
 0x889   :  { %v11878_v20 = vpop.permute.xlu1 %5562  ;;  %v5737_v25 = vrot.slane %v11602_v59, %v9650_v8  ;;  %v11894_v22 = vmul.f32 %v11460_v46, %v13940_v26  ;;  %v11898_v39 = vmul.f32 %v11478_v24, %v13941_v6  ;;  %v6437_v61 = vmul.f32 %v7660_v3, %v11602_v59  ;;  %v13944_v13 = vld [vmem:[#allocation140_spill] sm:$0xff]  ;;  %v13947_v41 = vld [vmem:[#allocation189_spill] sm:$0xff] }
 0x88a   :  { %5400 = vperm.xlu1 %7206, %v5050_v57   ;;  %v11890_v15 = vadd.f32 %v6697_v10, %v6536_v23  ;;  %v11903_v11 = vsel %vm13942_vm10, %v5999_v58, %v11796_v42  ;;  %v11906_v40 = vadd.f32 %v11798_v44, %v6490_v17  ;;  %v13943_v57 = vld [vmem:[#allocation76_spill] sm:$0xff]  ;;  %v5733_v29 = vrot.slane %v11594_v7, %v9642_v21  ;;  %v5293_v49 = vpop.permute.xlu0 %5292  ;;  %v7663_v23 = vld [vmem:[#allocation7 + $0x40] sm:$0xff] }
 0x88b   :  { %v11910_v4 = vmul.f32 %v11464_v35, %v13943_v57  ;;  %v6436_v24 = vmul.f32 %v7661_v27, %v11594_v7  ;;  %v11917_v59 = vmul.f32 %v11445_v2, %v13944_v13  ;;  %v13945_v42 = vld [vmem:[#allocation60_spill] sm:$0xff]  ;;  %v5693_v16 = vrot.slane %v5293_v49, %v9698_v5  ;;  %5502 = vperm.xlu0 %7205, %v11750_v0   ;;  %v13948_v57 = vld [vmem:[#allocation43_spill] sm:$0xff] }
 0x88c   :  { %v11921_v32 = vmul.f32 %v11449_v14, %v13945_v42  ;;  %v7662_v1 = vld [vmem:[#allocation7 + $0x288] sm:$0xff]  ;;  %v6428_v7 = vmul.f32 %v7663_v23, %v5293_v49  ;;  %v5738_v10 = vsel %vm2713_vm0, %v5737_v25, %v5733_v29  ;;  %v5816_v58 = vrot.slane %v13946_v56, %v9650_v8  ;;  %v7666_v27 = vld [vmem:[#allocation7 + $0x100] sm:$0xff] }
 0x88d   :  { %v11926_v62 = vmul.f32 %v7662_v1, %v11598_v55  ;;  %v11930_v38 = vpop.permute.xlu1 %5331  ;;  %v7664_v34 = vld [vmem:[#allocation7 + $0x108] sm:$0xff]  ;;  %v6438_v26 = vmul.f32 %v7665_v63, %v13947_v41  ;;  %v6569_v6 = vadd.f32 %v6437_v61, %v6436_v24  ;;  %v5742_v3 = vrot.slane %v13947_v41, %v9653_v50  ;;  %v13949_v13 = vld [vmem:[#allocation55_spill] sm:$0xff]  ;;  %v7667_v61 = vld [vmem:[#allocation7 + $0x98] sm:$0xff] }
 0x88e   :  { %v6453_v17 = vmul.f32 %v7664_v34, %v13946_v56  ;;  %5586 = vperm.xlu1 %7206, %v5116_v53   ;;  %v11941_v0 = vsel %vm2762_vm7, %v5693_v16, %v11816_v60  ;;  %v11944_v25 = vadd.f32 %v11827_v18, %v6428_v7  ;;  %v5812_v29 = vrot.slane %v13948_v57, %v9642_v21  ;;  %v5434_v42 = vpop.permute.xlu0 %5433  ;;  %v13950_v1 = vld [vmem:[#allocation97_spill] sm:$0xff]  ;;  %v7668_v16 = vld [vmem:[#allocation7 + $0x308] sm:$0xff]  ;;  %v7669_v7 = vld [vmem:[#allocation7 + $0x1b8] sm:$0xff] }
 0x88f   :  { %v6452_v49 = vmul.f32 %v7666_v27, %v13948_v57  ;;  %v5747_v53 = vrot.slane %v13949_v13, %v9659_v45  ;;  %v6439_v24 = vmul.f32 %v7667_v61, %v13949_v13  ;;  %v6132_v60 = vrot.slane %v13950_v1, %v9650_v8  ;;  %5457 = vperm.xlu0 %7205, %v11851_v12   ;;  %v13951_v63 = vld [vmem:[#allocation179_spill] sm:$0xff] }
 0x890   :  { %v6517_v18 = vmul.f32 %v7668_v16, %v13950_v1  ;;  %v5925_v23 = vrot.slane %v5434_v42, %v9713_v43  ;;  %v6475_v56 = vmul.f32 %v7669_v7, %v5434_v42  ;;  %v5752_v41 = vrot.slane %v13951_v63, %v9672_v33  ;;  %v7670_v1 = vld [vmem:[#allocation7 + $0x110] sm:$0xff]  ;;  %v13952_v16 = vld [vmem:[#allocation47_spill] sm:$0xff] }
 0x891   :  { %v11957_v34 = vpop.permute.xlu1 %5517  ;;  %v11962_v57 = vsel %vm2713_vm0, %v5816_v58, %v5812_v29  ;;  %v6590_v27 = vadd.f32 %v6453_v17, %v6452_v49  ;;  %v6570_v13 = vadd.f32 %v6569_v6, %v6438_v26  ;;  %v5743_v61 = vsel %vm2720_vm1, %v5742_v3, %v5738_v10  ;;  %v7671_v7 = vld [vmem:[#allocation7 + $0xa0] sm:$0xff]  ;;  %v13954_v3 = vld [vmem:[#allocation77_spill] sm:$0xff] }
 0x892   :  { %5355 = vperm.xlu1 %7206, %v11867_v54   ;;  %v6454_v44 = vmul.f32 %v7670_v1, %v13952_v16  ;;  %v11969_v12 = vsel %vm13953_vm11, %v5925_v23, %v11839_v19  ;;  %v11972_v42 = vadd.f32 %v11856_v52, %v6475_v56  ;;  %v6440_v58 = vmul.f32 %v7671_v7, %v13951_v63  ;;  %v7672_v6 = vld [vmem:[#allocation7 + $0x300] sm:$0xff]  ;;  %v5620_v10 = vpop.permute.xlu0 %5619  ;;  %v7673_v52 = vld [vmem:[#allocation7 + $0x3a8] sm:$0xff]  ;;  %v7674_v63 = vld [vmem:[#allocation7 + $0x290] sm:$0xff] }
 0x893   :  { %v5748_v17 = vsel %vm2727_vm2, %v5747_v53, %v5743_v61  ;;  %v6571_v26 = vadd.f32 %v6570_v13, %v6439_v24  ;;  %v6516_v54 = vmul.f32 %v7672_v6, %v11768_v36  ;;  %v6049_v29 = vrot.slane %v13954_v3, %v9642_v21  ;;  %5643 = vperm.xlu0 %7205, %v11863_v28   ;;  %v13955_v53 = vld [vmem:[#allocation69_spill] sm:$0xff] }
 0x894   :  { %v6128_v19 = vrot.slane %v11768_v36, %v9642_v21  ;;  %v6231_v49 = vrot.slane %v5620_v10, %v9688_v51  ;;  %v6537_v23 = vmul.f32 %v7673_v52, %v5620_v10  ;;  %v6058_v24 = vrot.slane %v13955_v53, %v9653_v50  ;;  %v7675_v1 = vld [vmem:[#allocation7 + $0x310] sm:$0xff]  ;;  %v7676_v10 = vld [vmem:[#allocation7 + $0x280] sm:$0xff] }
 0x895   :  { %v11983_v56 = vpop.permute.xlu1 %5379  ;;  %v6502_v13 = vmul.f32 %v7674_v63, %v13955_v53  ;;  %v6518_v21 = vmul.f32 %v7675_v1, %v11878_v20  ;;  %v6591_v36 = vadd.f32 %v6590_v27, %v6454_v44  ;;  %v6137_v28 = vrot.slane %v11878_v20, %v9653_v50  ;;  %v7677_v27 = vld [vmem:[#allocation7 + $0x238] sm:$0xff] }
 0x896   :  { %5541 = vperm.xlu1 %7206, %v11882_v30   ;;  %v11996_v7 = vsel %vm2741_vm4, %v6231_v49, %v11870_v31  ;;  %v11999_v6 = vadd.f32 %v11890_v15, %v6537_v23  ;;  %v6500_v52 = vmul.f32 %v7676_v10, %v13954_v3  ;;  %v6674_v53 = vadd.f32 %v6517_v18, %v6516_v54  ;;  %v5482_v61 = vpop.permute.xlu0 %5481  ;;  %v7678_v18 = vld [vmem:[#allocation7 + $0xa8] sm:$0xff] }
 0x897   :  { %v5753_v63 = vsel %vm2734_vm3, %v5752_v41, %v5748_v17  ;;  %v6572_v1 = vadd.f32 %v6571_v26, %v6440_v58  ;;  %v13956_v30 = vrot.slane %v11598_v55, %v9650_v8  ;;  %v6133_v44 = vsel %vm2713_vm0, %v6132_v60, %v6128_v19  ;;  %5598 = vperm.xlu0 %7205, %v11874_v37   ;;  %v7679_v17 = vld [vmem:[#allocation7 + $0x318] sm:$0xff] }
 0x898   :  { %v6004_v31 = vrot.slane %v5482_v61, %v9713_v43  ;;  %v6491_v15 = vmul.f32 %v7677_v27, %v5482_v61  ;;  %v6675_v3 = vadd.f32 %v6674_v53, %v6518_v21  ;;  %v6441_v41 = vmul.f32 %v7678_v18, %v11930_v38  ;;  %v13958_v61 = vld [vmem:[#allocation62_spill] sm:$0xff] }
 0x899   :  { %v6054_v20 = vsel %vm2713_vm0, %v13956_v30, %v6049_v29  ;;  %v5566_v49 = vpop.permute.xlu1 %5565  ;;  %v6138_v8 = vsel %vm2720_vm1, %v6137_v28, %v6133_v44  ;;  %v5757_v55 = vrot.slane %v11930_v38, %v9688_v51  ;;  %vm13957_vm0 = vmmov %vm13929_vm9  ;;  %v6653_v54 = vadd.f32 %v11926_v62, %v6500_v52  ;;  %v7680_v21 = vld [vmem:[#allocation7 + $0x118] sm:$0xff]  ;;  %v7683_v44 = vld [vmem:[#allocation7 + $0xb0] sm:$0xff] }
 0x89a   :  { %v6142_v58 = vrot.slane %v5566_v49, %v9659_v45  ;;  %v6519_v26 = vmul.f32 %v7679_v17, %v5566_v49  ;;  %5403 = vperm.xlu1 %7206, %v11894_v22   ;;  %v12018_v60 = vsel %vm13957_vm0, %v6004_v31, %v11903_v11  ;;  %v12021_v37 = vadd.f32 %v11906_v40, %v6491_v15  ;;  %v5296_v19 = vpop.permute.xlu0 %5295  ;;  %v13959_v28 = vld [vmem:[#allocation218_spill] sm:$0xff]  ;;  %v7681_v40 = vld [vmem:[#allocation7 + $0x48] sm:$0xff]  ;;  %vm13960_vm9 = vmmov %vm13931_vm6 }
 0x89b   :  { %v6059_v29 = vsel %vm2720_vm1, %v6058_v24, %v6054_v20  ;;  %v5826_v38 = vrot.slane %v13958_v61, %v9659_v45  ;;  %v6455_v11 = vmul.f32 %v7680_v21, %v13958_v61  ;;  %v5698_v10 = vrot.slane %v5296_v19, %v13959_v28  ;;  %5646 = vperm.xlu0 %7205, %v11886_v48   ;;  %v7682_v52 = vld [vmem:[#allocation7 + $0x298] sm:$0xff]  ;;  %vm13971_vm10 = vmmov %vm13957_vm0 }
 0x89c   :  { %v12026_v23 = vsel %vm2727_vm2, %v6142_v58, %v6138_v8  ;;  %v12028_v22 = vadd.f32 %v6675_v3, %v6519_v26  ;;  %v6429_v53 = vmul.f32 %v7681_v40, %v5296_v19  ;;  %v6573_v24 = vadd.f32 %v6572_v1, %v6441_v41  ;;  %v7684_v1 = vld [vmem:[#allocation7 + $0x120] sm:$0xff]  ;;  %v7686_v8 = vld [vmem:[#allocation7 + $0x128] sm:$0xff]  ;;  %vm13972_vm11 = vmmov %vm13957_vm0 }
 0x89d   :  { %v5335_v62 = vpop.permute.xlu1 %5334  ;;  %v6503_v30 = vmul.f32 %v7682_v52, %v11957_v34  ;;  %v5758_v27 = vsel %vm2741_vm4, %v5757_v55, %v5753_v63  ;;  %v6063_v15 = vrot.slane %v11957_v34, %v9659_v45  ;;  %v12043_v49 = vsel %vm2769_vm8, %v5698_v10, %v11941_v0  ;;  %v7685_v34 = vld [vmem:[#allocation7 + $0x1c0] sm:$0xff] }
 0x89e   :  { %v5762_v20 = vrot.slane %v5335_v62, %v9685_v47  ;;  %v6442_v31 = vmul.f32 %v7683_v44, %v5335_v62  ;;  %5589 = vperm.xlu1 %7206, %v11910_v4   ;;  %v12046_v48 = vadd.f32 %v11944_v25, %v6429_v53  ;;  %v6456_v3 = vmul.f32 %v7684_v1, %v11845_v9  ;;  %v5437_v41 = vpop.permute.xlu0 %5436  ;;  %v7688_v62 = vld [vmem:[#allocation7 + $0x3b0] sm:$0xff] }
 0x89f   :  { %v6654_v18 = vadd.f32 %v6653_v54, %v6502_v13  ;;  %v6592_v63 = vadd.f32 %v6591_v36, %v6455_v11  ;;  %v5831_v45 = vrot.slane %v11845_v9, %v9672_v33  ;;  %v5930_v0 = vrot.slane %v5437_v41, %v9698_v5  ;;  %5649 = vperm.xlu0 %7205, %v11898_v39   ;;  %v7687_v54 = vld [vmem:[#allocation7 + $0x2a0] sm:$0xff] }
 0x8a0   :  { %v12050_v58 = vsel %vm13960_vm9, %v5762_v20, %v5758_v27  ;;  %v12052_v4 = vadd.f32 %v6573_v24, %v6442_v31  ;;  %v6476_v17 = vmul.f32 %v7685_v34, %v5437_v41  ;;  %v6457_v13 = vmul.f32 %v7686_v8, %v11983_v56 }
 0x8a1   :  { %v5521_v25 = vpop.permute.xlu1 %5520  ;;  %v6655_v26 = vadd.f32 %v6654_v18, %v6503_v30  ;;  %v6064_v36 = vsel %vm2727_vm2, %v6063_v15, %v6059_v29  ;;  %v5836_v9 = vrot.slane %v11983_v56, %v9688_v51  ;;  %v5931_v61 = vsel %vm2762_vm7, %v5930_v0, %v11969_v12  ;;  %v13964_v15 = vld [vmem:[#allocation178_spill] sm:$0xff]  ;;  %v7690_v18 = vld [vmem:[#allocation7 + $0x240] sm:$0xff] }
 0x8a2   :  { %v6068_v55 = vrot.slane %v5521_v25, %v9672_v33  ;;  %v6504_v19 = vmul.f32 %v7687_v54, %v5521_v25  ;;  %5358 = vperm.xlu1 %7206, %v11917_v59   ;;  %v6618_v39 = vadd.f32 %v11972_v42, %v6476_v17  ;;  %v13961_v21 = vrot.slane %v13952_v16, %v9653_v50  ;;  %v5623_v40 = vpop.permute.xlu0 %5622  ;;  %v7689_v50 = vld [vmem:[#allocation7 + $0x130] sm:$0xff] }
 0x8a3   :  { %v6593_v10 = vadd.f32 %v6592_v63, %v6456_v3  ;;  %v6236_v56 = vrot.slane %v5623_v40, %v9685_v47  ;;  %v6538_v24 = vmul.f32 %v7688_v62, %v5623_v40  ;;  %v5052_v1 = vmul.f32 %v11460_v46, %v13964_v15 }
 0x8a4   :  { %v5822_v11 = vsel %vm2720_vm1, %v13961_v21, %v11962_v57  ;;  %v6069_v59 = vsel %vm2734_vm3, %v6068_v55, %v6064_v36  ;;  %v6656_v53 = vadd.f32 %v6655_v26, %v6504_v19  ;;  %vm13962_vm1 = vmmov %vm13931_vm6  ;;  %v13965_v26 = vld [vmem:[#allocation164_spill] sm:$0xff]  ;;  %vm13967_vm6 = vcmask 720512  }
 0x8a5   :  { %v5827_v29 = vsel %vm2727_vm2, %v5826_v38, %v5822_v11  ;;  %v5383_v12 = vpop.permute.xlu1 %5382  ;;  %v6594_v52 = vadd.f32 %v6593_v10, %v6457_v13  ;;  %v6237_v20 = vsel %vm13962_vm1, %v6236_v56, %v11996_v7  ;;  %v6700_v38 = vadd.f32 %v11999_v6, %v6538_v24  ;;  %vm13963_vm2 = vmmov %vm13962_vm1  ;;  %v13966_v13 = vld [vmem:[#allocation216_spill] sm:$0xff]  ;;  %v13969_v10 = vld [vmem:[#allocation125_spill] sm:$0xff] }
 0x8a6   :  { %v5832_v42 = vsel %vm2734_vm3, %v5831_v45, %v5827_v29  ;;  %v5841_v30 = vrot.slane %v5383_v12, %v9685_v47  ;;  %v6458_v16 = vmul.f32 %v7689_v50, %v5383_v12  ;;  %5544 = vperm.xlu1 %7206, %v11921_v32   ;;  %v5485_v44 = vpop.permute.xlu0 %5484  ;;  %v7691_v45 = vld [vmem:[#allocation7 + $0x320] sm:$0xff]  ;;  %v5118_v8 = vmul.f32 %v11464_v35, %v13965_v26  ;;  %v7694_v56 = vld [vmem:[#allocation7 + $0x1c8] sm:$0xff]  ;;  %vm13979_vm9 = vmmov %vm13962_vm1 }
 0x8a7   :  { %v5837_v57 = vsel %vm2741_vm4, %v5836_v9, %v5832_v42  ;;  %v6009_v3 = vrot.slane %v5485_v44, %v9698_v5  ;;  %v6492_v41 = vmul.f32 %v7690_v18, %v5485_v44  ;;  %v7693_v9 = vld [vmem:[#allocation7 + $0xb8] sm:$0xff]  ;;  %v5036_v40 = vmul.f32 %v11445_v2, %v13969_v10  ;;  %v7695_v42 = vld [vmem:[#allocation7 + $0x2a8] sm:$0xff]  ;;  %v13970_v50 = vld [vmem:[#allocation171_spill] sm:$0xff] }
 0x8a8   :  { %v5842_v31 = vsel %vm13963_vm2, %v5841_v30, %v5837_v57  ;;  %v6595_v27 = vadd.f32 %v6594_v52, %v6458_v16  ;;  %v5102_v2 = vmul.f32 %v11449_v14, %v13970_v50  ;;  %v7696_v57 = vld [vmem:[#allocation7 + $0x3b8] sm:$0xff] }
 0x8a9   :  { %v5569_v63 = vpop.permute.xlu1 %5568  ;;  %v6010_v7 = vsel %vm2762_vm7, %v6009_v3, %v12018_v60  ;;  %v6639_v6 = vadd.f32 %v12021_v37, %v6492_v41  ;;  %v7697_v3 = vld [vmem:[#allocation7 + $0x138] sm:$0xff] }
 0x8aa   :  { %v6147_v32 = vrot.slane %v5569_v63, %v9672_v33  ;;  %v6520_v0 = vmul.f32 %v7691_v45, %v5569_v63  ;;  %5406 = vperm.xlu1 %7206, %v5052_v1   ;;  %v5299_v34 = vpop.permute.xlu0 %5298  ;;  %v7692_v33 = vld [vmem:[#allocation7 + $0x50] sm:$0xff] }
 0x8ab   :  { %v5703_v55 = vrot.slane %v5299_v34, %v13966_v13  ;;  %v6430_v54 = vmul.f32 %v7692_v33, %v5299_v34  ;;  %v13973_v63 = vld [vmem:[#allocation137_spill] sm:$0xff] }
 0x8ac   :  { %v6148_v17 = vsel %vm2734_vm3, %v6147_v32, %v12026_v23  ;;  %v6677_v25 = vadd.f32 %v12028_v22, %v6520_v0  ;;  %vm13968_vm3 = vmmov %vm13957_vm0  ;;  %v5053_v32 = vmul.f32 %v11460_v46, %v13973_v63  ;;  %v7698_v0 = vld [vmem:[#allocation7 + $0x248] sm:$0xff]  ;;  %vm13976_vm0 = vcmask 786112  }
 0x8ad   :  { %v5338_v19 = vpop.permute.xlu1 %5337  ;;  %v5704_v37 = vsel %vm13967_vm6, %v5703_v55, %v12043_v49  ;;  %v6557_v23 = vadd.f32 %v12046_v48, %v6430_v54  ;;  %v7699_v55 = vld [vmem:[#allocation7 + $0x328] sm:$0xff] }
 0x8ae   :  { %v5767_v36 = vrot.slane %v5338_v19, %v9713_v43  ;;  %v6443_v60 = vmul.f32 %v7693_v9, %v5338_v19  ;;  %5592 = vperm.xlu1 %7206, %v5118_v8   ;;  %v5440_v21 = vpop.permute.xlu0 %5439  ;;  %v13974_v19 = vld [vmem:[#allocation87_spill] sm:$0xff] }
 0x8af   :  { %v5935_v29 = vrot.slane %v5440_v21, %v13959_v28  ;;  %v6477_v62 = vmul.f32 %v7694_v56, %v5440_v21  ;;  %v5119_v46 = vmul.f32 %v11464_v35, %v13974_v19 }
 0x8b0   :  { %v5768_v22 = vsel %vm13968_vm3, %v5767_v36, %v12050_v58  ;;  %v6575_v11 = vadd.f32 %v12052_v4, %v6443_v60  ;;  %v13975_v36 = vld [vmem:[#allocation220_spill] sm:$0xff]  ;;  %v7700_v60 = vld [vmem:[#allocation7 + $0x58] sm:$0xff]  ;;  %vm13987_vm3 = vmmov %vm13976_vm0 }
 0x8b1   :  { %v5524_v24 = vpop.permute.xlu1 %5523  ;;  %v5936_v48 = vsel %vm2769_vm8, %v5935_v29, %v5931_v61  ;;  %v6619_v52 = vadd.f32 %v6618_v39, %v6477_v62  ;;  %v13977_v62 = vld [vmem:[#allocation166_spill] sm:$0xff] }
 0x8b2   :  { %v6073_v12 = vrot.slane %v5524_v24, %v9688_v51  ;;  %v6505_v49 = vmul.f32 %v7695_v42, %v5524_v24  ;;  %5361 = vperm.xlu1 %7206, %v5036_v40   ;;  %v5626_v30 = vpop.permute.xlu0 %5625  ;;  %v7701_v40 = vld [vmem:[#allocation7 + $0xc0] sm:$0xff]  ;;  %v5103_v24 = vmul.f32 %v11449_v14, %v13977_v62  ;;  %v7702_v42 = vld [vmem:[#allocation7 + $0x1d0] sm:$0xff] }
 0x8b3   :  { %v6241_v16 = vrot.slane %v5626_v30, %v9713_v43  ;;  %v6539_v44 = vmul.f32 %v7696_v57, %v5626_v30 }
 0x8b4   :  { %v6074_v58 = vsel %vm2741_vm4, %v6073_v12, %v6069_v59  ;;  %v6657_v4 = vadd.f32 %v6656_v53, %v6505_v49 }
 0x8b5   :  { %v5386_v15 = vpop.permute.xlu1 %5385  ;;  %v6242_v61 = vsel %vm13971_vm10, %v6241_v16, %v6237_v20  ;;  %v6701_v39 = vadd.f32 %v6700_v38, %v6539_v44  ;;  %v13980_v44 = vld [vmem:[#allocation182_spill] sm:$0xff] }
 0x8b6   :  { %v5846_v1 = vrot.slane %v5386_v15, %v9713_v43  ;;  %v6459_v18 = vmul.f32 %v7697_v3, %v5386_v15  ;;  %5547 = vperm.xlu1 %7206, %v5102_v2   ;;  %v5488_v41 = vpop.permute.xlu0 %5487  ;;  %v7703_v2 = vld [vmem:[#allocation7 + $0x2b0] sm:$0xff]  ;;  %v13981_v15 = vld [vmem:[#allocation68_spill] sm:$0xff] }
 0x8b7   :  { %v6014_v45 = vrot.slane %v5488_v41, %v13959_v28  ;;  %v6493_v34 = vmul.f32 %v7698_v0, %v5488_v41 }
 0x8b8   :  { %v5847_v59 = vsel %vm13972_vm11, %v5846_v1, %v5842_v31  ;;  %v6596_v53 = vadd.f32 %v6595_v27, %v6459_v18  ;;  %v5087_v1 = vmul.f32 %v13981_v15, %v13980_v44  ;;  %v7704_v18 = vld [vmem:[#allocation7 + $0x3c0] sm:$0xff]  ;;  %vm13988_vm11 = vmmov %vm13971_vm10 }
 0x8b9   :  { %v5572_v26 = vpop.permute.xlu1 %5571  ;;  %v6015_v20 = vsel %vm2769_vm8, %v6014_v45, %v6010_v7  ;;  %v6640_v38 = vadd.f32 %v6639_v6, %v6493_v34  ;;  %v7705_v45 = vld [vmem:[#allocation7 + $0x140] sm:$0xff] }
 0x8ba   :  { %v6152_v8 = vrot.slane %v5572_v26, %v9688_v51  ;;  %v6521_v33 = vmul.f32 %v7699_v55, %v5572_v26  ;;  %5409 = vperm.xlu1 %7206, %v5053_v32   ;;  %v5302_v54 = vpop.permute.xlu0 %5301  ;;  %v13982_v26 = vld [vmem:[#allocation114_spill] sm:$0xff] }
 0x8bb   :  { %v5708_v9 = vrot.slane %v5302_v54, %v13975_v36  ;;  %v6431_v21 = vmul.f32 %v7700_v60, %v5302_v54 }
 0x8bc   :  { %v6153_v31 = vsel %vm2741_vm4, %v6152_v8, %v6148_v17  ;;  %v6678_v27 = vadd.f32 %v6677_v25, %v6521_v33  ;;  %vm13978_vm4 = vmmov %vm13967_vm6  ;;  %v5104_v8 = vmul.f32 %v11449_v14, %v13982_v26  ;;  %v7706_v33 = vld [vmem:[#allocation7 + $0x250] sm:$0xff]  ;;  %v13984_v14 = vld [vmem:[#allocation91_spill] sm:$0xff]  ;;  %vm13986_vm6 = vcmask 851712  }
 0x8bd   :  { %v5341_v10 = vpop.permute.xlu1 %5340  ;;  %v5709_v7 = vsel %vm13976_vm0, %v5708_v9, %v5704_v37  ;;  %v6558_v6 = vadd.f32 %v6557_v23, %v6431_v21  ;;  %v7707_v9 = vld [vmem:[#allocation7 + $0x330] sm:$0xff]  ;;  %vm13983_vm1 = vmmov %vm13978_vm4  ;;  %v7713_v26 = vld [vmem:[#allocation7 + $0x338] sm:$0xff]  ;;  %vm8011_vm0 = vmmov 0  }
 0x8be   :  { %v5772_v51 = vrot.slane %v5341_v10, %v9698_v5  ;;  %v6444_v29 = vmul.f32 %v7701_v40, %v5341_v10  ;;  %5595 = vperm.xlu1 %7206, %v5119_v46   ;;  %v5443_v56 = vpop.permute.xlu0 %5442  ;;  %v5121_v10 = vmul.f32 %v11464_v35, %v13984_v14  ;;  %v7715_v14 = vld [vmem:[#allocation7 + $0x2c0] sm:$0xff] }
 0x8bf   :  { %v5940_v12 = vrot.slane %v5443_v56, %v13966_v13  ;;  %v6478_v49 = vmul.f32 %v7702_v42, %v5443_v56 }
 0x8c0   :  { %v5773_v17 = vsel %vm2762_vm7, %v5772_v51, %v5768_v22  ;;  %v6576_v25 = vadd.f32 %v6575_v11, %v6444_v29  ;;  %v13985_v51 = vld [vmem:[#allocation219_spill] sm:$0xff] }
 0x8c1   :  { %v5527_v30 = vpop.permute.xlu1 %5526  ;;  %v5941_v37 = vsel %vm13978_vm4, %v5940_v12, %v5936_v48  ;;  %v6620_v23 = vadd.f32 %v6619_v52, %v6478_v49  ;;  %v7708_v29 = vld [vmem:[#allocation7 + $0x60] sm:$0xff]  ;;  %v7710_v49 = vld [vmem:[#allocation7 + $0x1d8] sm:$0xff]  ;;  %vm13989_vm4 = vmmov %vm13983_vm1 }
 0x8c2   :  { %v6078_v50 = vrot.slane %v5527_v30, %v9685_v47  ;;  %v6506_v16 = vmul.f32 %v7703_v2, %v5527_v30  ;;  %5550 = vperm.xlu1 %7206, %v5103_v24   ;;  %v5629_v57 = vpop.permute.xlu0 %5628  ;;  %v7709_v24 = vld [vmem:[#allocation7 + $0xc8] sm:$0xff] }
 0x8c3   :  { %v6246_v3 = vrot.slane %v5629_v57, %v9698_v5  ;;  %v6540_v41 = vmul.f32 %v7704_v18, %v5629_v57  ;;  %v8010_v18 = vmov 0.0  }
 0x8c4   :  { %v6079_v22 = vsel %vm13979_vm9, %v6078_v50, %v6074_v58  ;;  %v6658_v11 = vadd.f32 %v6657_v4, %v6506_v16  ;;  %v7711_v16 = vld [vmem:[#allocation7 + $0x2b8] sm:$0xff]  ;;  %7144 = vmatprep.subr.bf16.mxu1 %v8010_v18  ;;  %7164 = vmatprep.subr.bf16.mxu0 %v8010_v18  ;;  %vm13990_vm9 = vmmov %vm13983_vm1 }
 0x8c5   :  { %v5389_v63 = vpop.permute.xlu1 %5388  ;;  %v6247_v48 = vsel %vm2762_vm7, %v6246_v3, %v6242_v61  ;;  %v12138_v52 = vadd.f32 %v6701_v39, %v6540_v41  ;;  %v7712_v41 = vld [vmem:[#allocation7 + $0x148] sm:$0xff]  ;;  %7160 = vmatprep.mubr.msk.bf16.mxu1 %vm8011_vm0, %v8010_v18  ;;  %7180 = vmatprep.mubr.msk.bf16.mxu0 %vm8011_vm0, %v8010_v18 }
 0x8c6   :  { %v5851_v32 = vrot.slane %v5389_v63, %v9698_v5  ;;  %v6460_v0 = vmul.f32 %v7705_v45, %v5389_v63  ;;  %5505 = vperm.xlu1 %7206, %v5087_v1   ;;  %v5491_v34 = vpop.permute.xlu0 %5490  ;;  %v7328_v45 = vld [vmem:[#allocation11 + $0x30] sm:$0xff]  }
 0x8c7   :  { %v6019_v55 = vrot.slane %v5491_v34, %v13966_v13  ;;  %v6494_v54 = vmul.f32 %v7706_v33, %v5491_v34 }
 0x8c8   :  { %v5852_v58 = vsel %vm2762_vm7, %v5851_v32, %v5847_v59  ;;  %v6597_v4 = vadd.f32 %v6596_v53, %v6460_v0 }
 0x8c9   :  { %v5575_v19 = vpop.permute.xlu1 %5574  ;;  %v12146_v61 = vsel %vm13983_vm1, %v6019_v55, %v6015_v20  ;;  %v12148_v39 = vadd.f32 %v6640_v38, %v6494_v54  ;;  %vm13991_vm1 = vmmov %vm13987_vm3 }
 0x8ca   :  { %v6157_v46 = vrot.slane %v5575_v19, %v9685_v47  ;;  %v6522_v60 = vmul.f32 %v7707_v9, %v5575_v19  ;;  %5553 = vperm.xlu1 %7206, %v5104_v8   ;;  %v5305_v59 = vpop.permute.xlu0 %5304  ;;  %v7329_v19 = vld [vmem:[#allocation11 + $0x28] sm:$0xff]   ;;  %vm14001_vm0 = vmmov %vm13991_vm1 }
 0x8cb   :  { %v5713_v40 = vrot.slane %v5305_v59, %v13985_v51  ;;  %v6432_v56 = vmul.f32 %v7708_v29, %v5305_v59  ;;  %v7335_v29 = vld [vmem:[#allocation13 + $0x38] sm:$0xff]  }
 0x8cc   :  { %v6158_v53 = vsel %vm13963_vm2, %v6157_v46, %v6153_v31  ;;  %v6679_v21 = vadd.f32 %v6678_v27, %v6522_v60  ;;  %7165 = vmatpush3.bf16.msra.mxu0 %v7335_v29  ;;  %vm13993_vm2 = vmmov %vm13986_vm6 }
 0x8cd   :  { %v5344_v47 = vpop.permute.xlu1 %5343  ;;  %v12156_v20 = vsel %vm13986_vm6, %v5713_v40, %v5709_v7  ;;  %v12158_v38 = vadd.f32 %v6558_v6, %v6432_v56  ;;  %v7331_v40 = vld [vmem:[#allocation11 + $0x18] sm:$0xff]   ;;  %7166 = vmatprep.subr.bf16.mxu0 %v8010_v18  ;;  %vm13997_vm6 = vmmov %vm13991_vm1 }
 0x8ce   :  { %v5777_v62 = vrot.slane %v5344_v47, %v13959_v28  ;;  %v6445_v12 = vmul.f32 %v7709_v24, %v5344_v47  ;;  %5601 = vperm.xlu1 %7206, %v5121_v10   ;;  %v5446_v31 = vpop.permute.xlu0 %5445 }
 0x8cf   :  { %v5945_v35 = vrot.slane %v5446_v31, %v13975_v36  ;;  %v6479_v30 = vmul.f32 %v7710_v49, %v5446_v31 }
 0x8d0   :  { %v5778_v27 = vsel %vm2769_vm8, %v5777_v62, %v5773_v17  ;;  %v6577_v42 = vadd.f32 %v6576_v25, %v6445_v12  ;;  %v7327_v25 = vld [vmem:[#allocation11 + $0x38] sm:$0xff]   ;;  %v7336_v12 = vld [vmem:[#allocation13 + $0x30] sm:$0xff]  }
 0x8d1   :  { %v5530_v50 = vpop.permute.xlu1 %5529  ;;  %v12164_v44 = vsel %vm13987_vm3, %v5945_v35, %v5941_v37  ;;  %v12166_v7 = vadd.f32 %v6620_v23, %v6479_v30  ;;  %7145 = vmatpush3.bf16.msra.mxu1 %v7327_v25  ;;  %v7332_v35 = vld [vmem:[#allocation11 + $0x10] sm:$0xff]   ;;  %7167 = vmatpush3.bf16.msra.mxu0 %v7336_v12  ;;  %v7333_v25 = vld [vmem:[#allocation11 + $0x8] sm:$0xff]   ;;  %vm13998_vm3 = vmmov %vm13993_vm2 }
 0x8d2   :  { %v6083_v2 = vrot.slane %v5530_v50, %v9713_v43  ;;  %v6507_v57 = vmul.f32 %v7711_v16, %v5530_v50  ;;  %v12168_v6 = vpop.permute.xlu0 %5631  ;;  %7146 = vmatprep.subr.bf16.mxu1 %v8010_v18  ;;  %v7337_v16 = vld [vmem:[#allocation13 + $0x28] sm:$0xff]   ;;  %7168 = vmatprep.subr.bf16.mxu0 %v8010_v18 }
 0x8d3   :  { %v6251_v1 = vrot.slane %v12168_v6, %v13959_v28 }
 0x8d4   :  { %v6084_v15 = vsel %vm13971_vm10, %v6083_v2, %v6079_v22  ;;  %v6659_v17 = vadd.f32 %v6658_v11, %v6507_v57  ;;  %vm13999_vm10 = vmmov %vm13989_vm4 }
 0x8d5   :  { %v5392_v3 = vpop.permute.xlu1 %5391  ;;  %v12177_v63 = vsel %vm2769_vm8, %v6251_v1, %v6247_v48  ;;  %7147 = vmatpush3.bf16.msra.mxu1 %v7328_v45  ;;  %7169 = vmatpush3.bf16.msra.mxu0 %v7337_v16 }
 0x8d6   :  { %v5856_v37 = vrot.slane %v5392_v3, %v13959_v28  ;;  %v6461_v23 = vmul.f32 %v7712_v41, %v5392_v3  ;;  %v12180_v22 = vpop.permute.xlu0 %5493  ;;  %7148 = vmatprep.subr.bf16.mxu1 %v8010_v18  ;;  %7170 = vmatprep.subr.bf16.mxu0 %v8010_v18 }
 0x8d8   :  { %v5857_v11 = vsel %vm2769_vm8, %v5856_v37, %v5852_v58  ;;  %v6598_v32 = vadd.f32 %v6597_v4, %v6461_v23  ;;  %v7714_v58 = vld [vmem:[#allocation7 + $0xd0] sm:$0xff] }
 0x8d9   :  { %v5578_v0 = vpop.permute.xlu1 %5577  ;;  %7149 = vmatpush3.bf16.msra.mxu1 %v7329_v19 }
 0x8da   :  { %v6162_v34 = vrot.slane %v5578_v0, %v9713_v43  ;;  %v6523_v8 = vmul.f32 %v7713_v26, %v5578_v0  ;;  %v12185_v55 = vpop.permute.xlu0 %5307  ;;  %v7330_v43 = vld [vmem:[#allocation11 + $0x20] sm:$0xff]   ;;  %7150 = vmatprep.subr.bf16.mxu1 %v8010_v18 }
 0x8dc   :  { %v6163_v48 = vsel %vm13988_vm11, %v6162_v34, %v6158_v53  ;;  %v6680_v33 = vadd.f32 %v6679_v21, %v6523_v8  ;;  %vm14000_vm11 = vmmov %vm13993_vm2 }
 0x8dd   :  { %v5347_v54 = vpop.permute.xlu1 %5346  ;;  %7151 = vmatpush3.bf16.msra.mxu1 %v7330_v43  ;;  %v7720_v43 = vld [vmem:[#allocation7 + $0x158] sm:$0xff] }
 0x8de   :  { %v5782_v46 = vrot.slane %v5347_v54, %v13966_v13  ;;  %v6446_v4 = vmul.f32 %v7714_v58, %v5347_v54  ;;  %v12191_v9 = vpop.permute.xlu0 %5448  ;;  %7152 = vmatprep.subr.bf16.mxu1 %v8010_v18 }
 0x8e0   :  { %v5783_v60 = vsel %vm13989_vm4, %v5782_v46, %v5778_v27  ;;  %v6578_v59 = vadd.f32 %v6577_v42, %v6446_v4  ;;  %v7716_v27 = vld [vmem:[#allocation7 + $0x150] sm:$0xff] }
 0x8e1   :  { %v5533_v53 = vpop.permute.xlu1 %5532  ;;  %7153 = vmatpush3.bf16.msra.mxu1 %v7331_v40  ;;  %v7721_v40 = vld [vmem:[#allocation7 + $0x348] sm:$0xff] }
 0x8e2   :  { %v6088_v21 = vrot.slane %v5533_v53, %v9698_v5  ;;  %v6508_v10 = vmul.f32 %v7715_v14, %v5533_v53  ;;  %v12196_v56 = vpop.permute.xlu0 %5634  ;;  %7154 = vmatprep.subr.bf16.mxu1 %v8010_v18 }
 0x8e4   :  { %v6089_v47 = vsel %vm2762_vm7, %v6088_v21, %v6084_v15  ;;  %v6660_v62 = vadd.f32 %v6659_v17, %v6508_v10  ;;  %v7717_v15 = vld [vmem:[#allocation7 + $0x340] sm:$0xff] }
 0x8e5   :  { %v5395_v24 = vpop.permute.xlu1 %5394  ;;  %7155 = vmatpush3.bf16.msra.mxu1 %v7332_v35 }
 0x8e6   :  { %v5861_v31 = vrot.slane %v5395_v24, %v13966_v13  ;;  %v6462_v42 = vmul.f32 %v7716_v27, %v5395_v24  ;;  %v12202_v49 = vpop.permute.xlu0 %5496  ;;  %7156 = vmatprep.subr.bf16.mxu1 %v8010_v18 }
 0x8e8   :  { %v5862_v30 = vsel %vm13990_vm9, %v5861_v31, %v5857_v11  ;;  %v6599_v50 = vadd.f32 %v6598_v32, %v6462_v42  ;;  %v7718_v11 = vld [vmem:[#allocation7 + $0xd8] sm:$0xff]  ;;  %v7722_v31 = vld [vmem:[#allocation7 + $0xe0] sm:$0xff]  ;;  %vm14004_vm9 = vmmov %vm13993_vm2 }
 0x8e9   :  { %v5581_v2 = vpop.permute.xlu1 %5580  ;;  %7157 = vmatpush3.bf16.msra.mxu1 %v7333_v25 }
 0x8ea   :  { %v6167_v57 = vrot.slane %v5581_v2, %v9698_v5  ;;  %v6524_v17 = vmul.f32 %v7717_v15, %v5581_v2  ;;  %v12208_v1 = vpop.permute.xlu0 %5310  ;;  %v7334_v5 = vld [vmem:[#allocation11] sm:$0xff]   ;;  %7158 = vmatprep.subr.bf16.mxu1 %v8010_v18 }
 0x8ec   :  { %v6168_v3 = vsel %vm2762_vm7, %v6167_v57, %v6163_v48  ;;  %v6681_v37 = vadd.f32 %v6680_v33, %v6524_v17  ;;  %v7719_v48 = vld [vmem:[#allocation7 + $0x2c8] sm:$0xff]  ;;  %vm13992_vm7 = vmmov %vm13991_vm1 }
 0x8ed   :  { %v5350_v41 = vpop.permute.xlu1 %5349  ;;  %7159 = vmatpush3.bf16.msra.mxu1 %v7334_v5 }
 0x8ee   :  { %v5787_v23 = vrot.slane %v5350_v41, %v13975_v36  ;;  %v6447_v32 = vmul.f32 %v7718_v11, %v5350_v41  ;;  %v12214_v45 = vpop.permute.xlu0 %5451  ;;  %v7724_v11 = vld [vmem:[#allocation7 + $0x70] sm:$0xff] }
 0x8f0   :  { %v5788_v0 = vsel %vm13991_vm1, %v5787_v23, %v5783_v60  ;;  %v6579_v34 = vadd.f32 %v6578_v59, %v6447_v32  ;;  %v6434_v32 = vmul.f32 %v7724_v11, %v12208_v1  ;;  %v7731_v11 = vld [vmem:[#allocation7 + $0x1f8] sm:$0xff]  ;;  %vm14005_vm1 = vcmask 1041409  }
 0x8f1   :  { %v5536_v26 = vpop.permute.xlu1 %5535 }
 0x8f2   :  { %v6093_v8 = vrot.slane %v5536_v26, %v13959_v28  ;;  %v6509_v33 = vmul.f32 %v7719_v48, %v5536_v26  ;;  %v12219_v54 = vpop.permute.xlu0 %5637 }
 0x8f4   :  { %v6094_v19 = vsel %vm2769_vm8, %v6093_v8, %v6089_v47  ;;  %v12222_v46 = vadd.f32 %v6660_v62, %v6509_v33  ;;  %v7726_v33 = vld [vmem:[#allocation7 + $0x1e0] sm:$0xff] }
 0x8f5   :  { %v5398_v58 = vpop.permute.xlu1 %5397 }
 0x8f6   :  { %v5866_v4 = vrot.slane %v5398_v58, %v13975_v36  ;;  %v6463_v60 = vmul.f32 %v7720_v43, %v5398_v58  ;;  %v12230_v14 = vpop.permute.xlu0 %5499  ;;  %v7727_v43 = vld [vmem:[#allocation7 + $0x1e8] sm:$0xff] }
 0x8f8   :  { %v12226_v59 = vsel %vm13992_vm7, %v5866_v4, %v5862_v30  ;;  %v12228_v53 = vadd.f32 %v6599_v50, %v6463_v60  ;;  %v6481_v60 = vmul.f32 %v7727_v43, %v12214_v45 }
 0x8f9   :  { %v5584_v21 = vpop.permute.xlu1 %5583 }
 0x8fa   :  { %v6172_v10 = vrot.slane %v5584_v21, %v13959_v28  ;;  %v6525_v29 = vmul.f32 %v7721_v40, %v5584_v21  ;;  %v12239_v42 = vpop.permute.xlu0 %5313 }
 0x8fc   :  { %v12234_v47 = vsel %vm2769_vm8, %v6172_v10, %v6168_v3  ;;  %v12236_v62 = vadd.f32 %v6681_v37, %v6525_v29  ;;  %vm13994_vm8 = vmmov %vm13989_vm4  ;;  %v7723_v3 = vld [vmem:[#allocation7 + $0x68] sm:$0xff]  ;;  %v7728_v10 = vld [vmem:[#allocation7 + $0x1f0] sm:$0xff] }
 0x8fd   :  { %v5353_v24 = vpop.permute.xlu1 %5352  ;;  %v6433_v37 = vmul.f32 %v7723_v3, %v12185_v55  ;;  %vm14003_vm4 = vmmov %vm13993_vm2 }
 0x8fe   :  { %v5792_v12 = vrot.slane %v5353_v24, %v13985_v51  ;;  %v6448_v27 = vmul.f32 %v7722_v31, %v5353_v24  ;;  %v12255_v57 = vpop.permute.xlu0 %5454  ;;  %v7729_v24 = vld [vmem:[#allocation7 + $0x3c8] sm:$0xff]  ;;  %vm14006_vm7 = vmmov %vm13994_vm8 }
 0x8ff   :  { %v6560_v5 = vadd.f32 %v12158_v38, %v6433_v37  ;;  %v6482_v40 = vmul.f32 %v7728_v10, %v12255_v57  ;;  %v13996_v10 = vld [vmem:[#allocation84_spill] sm:$0xff] }
 0x900   :  { %v12242_v35 = vsel %vm13993_vm2, %v5792_v12, %v5788_v0  ;;  %v12244_v30 = vadd.f32 %v6579_v34, %v6448_v27  ;;  %v7725_v0 = vld [vmem:[#allocation7 + $0x78] sm:$0xff]  ;;  %v6541_v12 = vmul.f32 %v7729_v24, %v12168_v6  ;;  %v6024_v27 = vrot.slane %v12180_v22, %v13975_v36  ;;  %vm14007_vm2 = vmmov %vm14001_vm0 }
 0x901   :  { %v12246_v28 = vpop.permute.xlu1 %5538  ;;  %v6435_v34 = vmul.f32 %v7725_v0, %v12239_v42  ;;  %v6561_v8 = vadd.f32 %v6560_v5, %v6434_v32  ;;  %v13995_v32 = vld [vmem:[#allocation221_spill] sm:$0xff]  ;;  %v5950_v0 = vrot.slane %v12191_v9, %v13985_v51  ;;  %v6256_v6 = vrot.slane %v12196_v56, %v13966_v13 }
 0x902   :  { %v6098_v50 = vrot.slane %v12246_v28, %v13966_v13  ;;  %v12259_v17 = vpop.permute.xlu0 %5640  ;;  %v5718_v5 = vrot.slane %v12185_v55, %v13995_v32  ;;  %v6703_v55 = vadd.f32 %v12138_v52, %v6541_v12  ;;  %v5955_v24 = vrot.slane %v12214_v45, %v13995_v32 }
 0x903   :  { %v6562_v58 = vadd.f32 %v6561_v8, %v6435_v34  ;;  %v7732_v34 = vld [vmem:[#allocation7 + $0x3d0] sm:$0xff]  ;;  %v5951_v52 = vsel %vm13998_vm3, %v5950_v0, %v12164_v44  ;;  %v6034_v44 = vrot.slane %v12230_v14, %v13995_v32  ;;  %v14002_v0 = vld [vmem:[#allocation222_spill] sm:$0xff] }
 0x904   :  { %v12251_v2 = vsel %vm13994_vm8, %v6098_v50, %v6094_v19  ;;  %v6480_v19 = vmul.f32 %v7726_v33, %v12191_v9  ;;  %v7730_v50 = vld [vmem:[#allocation7 + $0x258] sm:$0xff]  ;;  %v6542_v8 = vmul.f32 %v7732_v34, %v12196_v56  ;;  %v6029_v33 = vrot.slane %v12202_v49, %v13985_v51  ;;  %vm14008_vm8 = vmmov %vm14001_vm0 }
 0x905   :  { %v12253_v16 = vpop.permute.xlu1 %5400  ;;  %v6563_v38 = vrot.slane %v6562_v58, 4  ;;  %v6495_v3 = vmul.f32 %v7730_v50, %v12180_v22  ;;  %v7733_v22 = vld [vmem:[#allocation7 + $0x260] sm:$0xff]  ;;  %v5723_v9 = vrot.slane %v12208_v1, %v13996_v10  ;;  %v6025_v56 = vsel %vm13997_vm6, %v6024_v27, %v12146_v61  ;;  %vm14009_vm6 = vmmov %vm13998_vm3 }
 0x906   :  { %v12266_v23 = vpop.permute.xlu0 %5502  ;;  %v6622_v21 = vadd.f32 %v12166_v7, %v6480_v19  ;;  %v6496_v19 = vmul.f32 %v7733_v22, %v12202_v49  ;;  %v6261_v49 = vrot.slane %v12219_v54, %v13975_v36  ;;  %v6257_v1 = vsel %vm13999_vm10, %v6256_v6, %v12177_v63  ;;  %v7735_v63 = vld [vmem:[#allocation7 + $0x268] sm:$0xff]  ;;  %vm14010_vm3 = vmmov %vm14005_vm1 }
 0x907   :  { %v6564_v43 = vadd.f32 %v6563_v38, %v6562_v58  ;;  %v6642_v50 = vadd.f32 %v12148_v39, %v6495_v3  ;;  %v5719_v38 = vsel %vm2797_vm12, %v5718_v5, %v12156_v20  ;;  %v6030_v61 = vsel %vm14000_vm11, %v6029_v33, %v6025_v56  ;;  %v7734_v39 = vld [vmem:[#allocation7 + $0x3d8] sm:$0xff]  ;;  %v7736_v33 = vld [vmem:[#allocation7 + $0x3e0] sm:$0xff]  ;;  %vm14011_vm10 = vmmov %vm14003_vm4 }
 0x908   :  { %v6623_v37 = vadd.f32 %v6622_v21, %v6481_v60  ;;  %v6543_v27 = vmul.f32 %v7734_v39, %v12219_v54  ;;  %v5724_v20 = vsel %vm2804_vm13, %v5723_v9, %v5719_v38  ;;  %v6262_v5 = vsel %vm14001_vm0, %v6261_v49, %v6257_v1  ;;  %v7739_v56 = vld [vmem:[#allocation7 + $0x160] sm:$0xff] }
 0x909   :  { %v12257_v15 = vpop.permute.xlu1 %5586  ;;  %v6643_v12 = vadd.f32 %v6642_v50, %v6496_v19  ;;  %v6565_v3 = vrot.slane %v6564_v43, 2  ;;  %v5728_v6 = vrot.slane %v12239_v42, %v14002_v0  ;;  %v5960_v54 = vrot.slane %v12255_v57, %v13996_v10  ;;  %v7737_v19 = vld [vmem:[#allocation7 + $0x2d0] sm:$0xff] }
 0x90a   :  { %v12273_v48 = vpop.permute.xlu0 %5457  ;;  %v6624_v60 = vadd.f32 %v6623_v37, %v6482_v40  ;;  %v6704_v40 = vadd.f32 %v6703_v55, %v6542_v8  ;;  %v6266_v8 = vrot.slane %v12259_v17, %v13985_v51  ;;  %v6544_v22 = vmul.f32 %v7736_v33, %v12259_v17  ;;  %v7738_v55 = vld [vmem:[#allocation7 + $0xe8] sm:$0xff] }
 0x90b   :  { %v6483_v7 = vmul.f32 %v7731_v11, %v12273_v48  ;;  %v5956_v11 = vsel %vm2797_vm12, %v5955_v24, %v5951_v52  ;;  %v6566_v24 = vadd.f32 %v6565_v3, %v6564_v43  ;;  %v5871_v42 = vrot.slane %v12253_v16, %v13985_v51  ;;  %v7740_v52 = vld [vmem:[#allocation7 + $0xf0] sm:$0xff]  ;;  %v7744_v33 = vld [vmem:[#allocation7 + $0x168] sm:$0xff] }
 0x90c   :  { %v6705_v9 = vadd.f32 %v6704_v40, %v6543_v27  ;;  %v6464_v57 = vmul.f32 %v7739_v56, %v12253_v16  ;;  %v6035_v49 = vsel %vm2797_vm12, %v6034_v44, %v6030_v61  ;;  %v5729_v43 = vsel %vm2811_vm14, %v5728_v6, %v5724_v20  ;;  %v7742_v6 = vld [vmem:[#allocation7 + $0x270] sm:$0xff] }
 0x90d   :  { %v12261_v25 = vpop.permute.xlu1 %5355  ;;  %v6625_v58 = vadd.f32 %v6624_v60, %v6483_v7  ;;  %v6497_v7 = vmul.f32 %v7735_v63, %v12230_v14  ;;  %v6510_v60 = vmul.f32 %v7737_v19, %v12246_v28  ;;  %v12352_v40 = vsel %vm2804_vm13, %v5960_v54, %v5956_v11 }
 0x90e   :  { %v12284_v31 = vpop.permute.xlu0 %5643  ;;  %v6449_v14 = vmul.f32 %v7738_v55, %v12261_v25  ;;  %v5797_v17 = vrot.slane %v12261_v25, %v13995_v32  ;;  %v12357_v61 = vsel %vm14003_vm4, %v6266_v8, %v6262_v5  ;;  %v6567_v3 = vrot.slane %v6566_v24, 1 }
 0x90f   :  { %v6626_v34 = vrot.slane %v6625_v58, 4  ;;  %v6644_v38 = vadd.f32 %v6643_v12, %v6497_v7  ;;  %v6706_v12 = vadd.f32 %v6705_v9, %v6544_v22  ;;  %v12360_v25 = vadd.f32 %v12222_v46, %v6510_v60  ;;  %v7741_v46 = vld [vmem:[#allocation7 + $0xf8] sm:$0xff] }
 0x910   :  { %v6581_v27 = vadd.f32 %v12244_v30, %v6449_v14  ;;  %v6039_v20 = vrot.slane %v12266_v23, %v13996_v10  ;;  %v5872_v11 = vsel %vm14004_vm9, %v5871_v42, %v12226_v59  ;;  %v6498_v30 = vmul.f32 %v7742_v6, %v12266_v23  ;;  %v7745_v14 = vld [vmem:[#allocation7 + $0x3f0] sm:$0xff] }
 0x911   :  { %v12264_v41 = vpop.permute.xlu1 %5541  ;;  %v6627_v39 = vadd.f32 %v6626_v34, %v6625_v58  ;;  %v6601_v58 = vadd.f32 %v12228_v53, %v6464_v57  ;;  %v7743_v34 = vld [vmem:[#allocation7 + $0x3e8] sm:$0xff]  ;;  %v6177_v53 = vrot.slane %v12257_v15, %v13966_v13  ;;  %v6568_v55 = vadd.f32 %v6567_v3, %v6566_v24  ;;  %v7746_v57 = vld [vmem:[#allocation7 + $0x350] sm:$0xff]  ;;  %v7748_v3 = vld [vmem:[#allocation7 + $0x3f8] sm:$0xff] }
 0x912   :  { %v12318_v45 = vpop.permute.xlu0 %5598  ;;  %v6545_v8 = vmul.f32 %v7743_v34, %v12284_v31  ;;  %v12387_v13 = vsel %vm2804_vm13, %v6039_v20, %v6035_v49  ;;  %v6271_v34 = vrot.slane %v12284_v31, %v13995_v32  ;;  %vm14012_vm11 = vcmask 1044484  }
 0x913   :  { %v6628_v54 = vrot.slane %v6627_v39, 2  ;;  %v6178_v49 = vsel %vm14006_vm7, %v6177_v53, %v12234_v47  ;;  %v6103_v53 = vrot.slane %v12264_v41, %v13975_v36  ;;  %vm14013_vm0 = vcmask 1045509  }
 0x915   :  { %v12271_v26 = vpop.permute.xlu1 %5403 }
 0x916   :  { %v12347_v28 = vpop.permute.xlu0 %5646  ;;  %v5876_v9 = vrot.slane %v12271_v26, %v13995_v32 }
 0x917   :  { %v6546_v23 = vmul.f32 %v7745_v14, %v12347_v28 }
 0x919   :  { %v12276_v4 = vpop.permute.xlu1 %5589 }
 0x91a   :  { %v12377_v22 = vpop.permute.xlu0 %5649  ;;  %v6182_v31 = vrot.slane %v12276_v4, %v13975_v36  ;;  %v6197_v36 = vrot.slane %v12318_v45, %v13996_v10 }
 0x91d   :  { %v12281_v29 = vpop.permute.xlu1 %5358 }
 0x91e   :  { %v6450_v1 = vmul.f32 %v7740_v52, %v12281_v29  ;;  %v5802_v16 = vrot.slane %v12281_v29, %v13996_v10  ;;  %v5798_v29 = vsel %vm2797_vm12, %v5797_v17, %v12242_v35  ;;  %v6465_v35 = vmul.f32 %v7744_v33, %v12271_v26  ;;  %v7747_v52 = vld [vmem:[#allocation7 + $0x170] sm:$0xff]  ;;  %v7750_v33 = vld [vmem:[#allocation7 + $0x2d8] sm:$0xff] }
 0x91f   :  { %v6526_v17 = vmul.f32 %v7746_v57, %v12257_v15  ;;  %v6716_v15 = vpack.c.bf16 %v6568_v55, %v6568_v55  ;;  %v7751_v57 = vld [vmem:[#allocation7 + $0x358] sm:$0xff] }
 0x920   :  { %v6582_v63 = vadd.f32 %v6581_v27, %v6450_v1  ;;  %v5803_v59 = vsel %vm2804_vm13, %v5802_v16, %v5798_v29  ;;  %v6629_v16 = vadd.f32 %v6628_v54, %v6627_v39  ;;  %v6707_v27 = vadd.f32 %v6706_v12, %v6545_v8 }
 0x921   :  { %v12300_v21 = vpop.permute.xlu1 %5544  ;;  %v6602_v20 = vadd.f32 %v6601_v58, %v6465_v35  ;;  %v5877_v39 = vsel %vm2797_vm12, %v5876_v9, %v5872_v11  ;;  %v6683_v54 = vadd.f32 %v12236_v62, %v6526_v17  ;;  %v6511_v35 = vmul.f32 %v7750_v33, %v12264_v41 }
 0x922   :  { %v6527_v17 = vmul.f32 %v7751_v57, %v12276_v4  ;;  %v7752_v4 = vld [vmem:[#allocation7 + $0x2e0] sm:$0xff]  ;;  %v7759_v57 = vld [vmem:[#allocation7 + $0x2f8] sm:$0xff] }
 0x925   :  { %v12322_v37 = vpop.permute.xlu1 %5406 }
 0x926   :  { %v6466_v1 = vmul.f32 %v7747_v52, %v12322_v37  ;;  %v5881_v26 = vrot.slane %v12322_v37, %v13996_v10  ;;  %v7749_v37 = vld [vmem:[#allocation7 + $0x178] sm:$0xff] }
 0x928   :  { %v5882_v58 = vsel %vm2804_vm13, %v5881_v26, %v5877_v39  ;;  %v6183_v26 = vsel %vm14008_vm8, %v6182_v31, %v6178_v49  ;;  %v7755_v49 = vld [vmem:[#allocation7 + $0x360] sm:$0xff] }
 0x929   :  { %v12342_v50 = vpop.permute.xlu1 %5592 }
 0x92a   :  { %v6187_v39 = vrot.slane %v12342_v50, %v13985_v51 }
 0x92d   :  { %v5362_v44 = vpop.permute.xlu1 %5361 }
 0x92e   :  { %v5807_v7 = vrot.slane %v5362_v44, %v14002_v0  ;;  %v6451_v5 = vmul.f32 %v7741_v46, %v5362_v44  ;;  %v6547_v44 = vmul.f32 %v7748_v3, %v12377_v22  ;;  %v6603_v46 = vadd.f32 %v6602_v20, %v6466_v1 }
 0x930   :  { %v5808_v19 = vsel %vm2811_vm14, %v5807_v7, %v5803_v59  ;;  %v6583_v60 = vadd.f32 %v6582_v63, %v6451_v5  ;;  %v5965_v63 = vrot.slane %v12273_v48, %v14002_v0  ;;  %v6708_v7 = vadd.f32 %v6707_v27, %v6546_v23 }
 0x931   :  { %v6283_v42 = vsel %vm14005_vm1, %v5808_v19, %v5729_v43  ;;  %v12384_v56 = vpop.permute.xlu1 %5547  ;;  %v12394_v43 = vadd.f32 %v6644_v38, %v6498_v30  ;;  %v6630_v30 = vrot.slane %v6629_v16, 1  ;;  %v6748_v59 = vunpack.c.l.b16 %v6716_v15 }
 0x932   :  { %v6584_v24 = vrot.slane %v6583_v60, 4  ;;  %v6709_v47 = vadd.f32 %v6708_v7, %v6547_v44  ;;  %v6512_v27 = vmul.f32 %v7752_v4, %v12300_v21  ;;  %v7753_v44 = vld [vmem:[#allocation7 + $0x370] sm:$0xff]  ;;  %v7754_v7 = vld [vmem:[#allocation7 + $0x2e8] sm:$0xff] }
 0x933   :  { %v12417_v23 = vadd.f32 %v6630_v30, %v6629_v16  ;;  %v6663_v16 = vadd.f32 %v12360_v25, %v6511_v35  ;;  %v6513_v25 = vmul.f32 %v7754_v7, %v12384_v56 }
 0x934   :  { %v6585_v29 = vadd.f32 %v6584_v24, %v6583_v60  ;;  %v5966_v60 = vsel %vm2811_vm14, %v5965_v63, %v12352_v40  ;;  %v6710_v9 = vrot.slane %v6709_v47, 4  ;;  %v6108_v40 = vrot.slane %v12300_v21, %v13985_v51 }
 0x935   :  { %v5410_v12 = vpop.permute.xlu1 %5409  ;;  %v6104_v24 = vsel %vm14007_vm2, %v6103_v53, %v12251_v2  ;;  %v6719_v15 = vpack.c.bf16 %v12417_v23, %v12417_v23  ;;  %v6684_v2 = vadd.f32 %v6683_v54, %v6527_v17  ;;  %v7758_v53 = vld [vmem:[#allocation7 + $0x368] sm:$0xff] }
 0x936   :  { %v6586_v5 = vrot.slane %v6585_v29, 2  ;;  %v5886_v6 = vrot.slane %v5410_v12, %v14002_v0  ;;  %v6467_v38 = vmul.f32 %v7749_v37, %v5410_v12  ;;  %v12439_v63 = vadd.f32 %v6710_v9, %v6709_v47 }
 0x937   :  { %v6109_v21 = vsel %vm14009_vm6, %v6108_v40, %v6104_v24  ;;  %v6113_v37 = vrot.slane %v12384_v56, %v13995_v32  ;;  %v6188_v56 = vsel %vm14011_vm10, %v6187_v39, %v6183_v26  ;;  %v6276_v40 = vrot.slane %v12347_v28, %v13996_v10 }
 0x938   :  { %v6587_v48 = vadd.f32 %v6586_v5, %v6585_v29  ;;  %v5887_v8 = vsel %vm2811_vm14, %v5886_v6, %v5882_v58  ;;  %v6604_v11 = vadd.f32 %v6603_v46, %v6467_v38  ;;  %v6664_v5 = vadd.f32 %v6663_v16, %v6512_v27  ;;  %v7756_v38 = vld [vmem:[#allocation7 + $0x2f0] sm:$0xff] }
 0x939   :  { %v6284_v19 = vsel %vm3368_vm15, %v5887_v8, %v6283_v42  ;;  %v12411_v62 = vpop.permute.xlu1 %5595  ;;  %v12423_v42 = vsel %vm2797_vm12, %v6271_v34, %v12357_v61  ;;  %v12434_v61 = vmul.f32 %v7753_v44, %v12318_v45  ;;  %v6528_v6 = vmul.f32 %v7755_v49, %v12342_v50 }
 0x93a   :  { %v6588_v55 = vrot.slane %v6587_v48, 1  ;;  %v6605_v14 = vrot.slane %v6604_v11, 4  ;;  %v6285_v41 = vsel %vm3370_vm5, %v5966_v60, %v6284_v19  ;;  %v6665_v51 = vadd.f32 %v6664_v5, %v6513_v25  ;;  %v7760_v25 = vld [vmem:[#allocation7 + $0x378] sm:$0xff] }
 0x93b   :  { %v6529_v50 = vmul.f32 %v7758_v53, %v12411_v62  ;;  %v6685_v60 = vadd.f32 %v6684_v2, %v6528_v6  ;;  %v6114_v31 = vsel %vm2797_vm12, %v6113_v37, %v6109_v21  ;;  %v6751_v4 = vunpack.c.l.b16 %v6719_v15 }
 0x93c   :  { %v6589_v52 = vadd.f32 %v6588_v55, %v6587_v48  ;;  %v6606_v1 = vadd.f32 %v6605_v14, %v6604_v11  ;;  %v7757_v48 = vld [vmem:[#allocation7 + $0x278] sm:$0xff]  ;;  %v6192_v11 = vrot.slane %v12411_v62, %v13995_v32  ;;  %v6281_v27 = vrot.slane %v12377_v22, %v14002_v0 }
 0x93d   :  { %v5551_v3 = vpop.permute.xlu1 %5550  ;;  %v6277_v39 = vsel %vm2804_vm13, %v6276_v40, %v12423_v42 }
 0x93e   :  { %v6717_v20 = vpack.c.bf16 %v6589_v52, %v6589_v52  ;;  %v6607_v29 = vrot.slane %v6606_v1, 2  ;;  %v6514_v30 = vmul.f32 %v7756_v38, %v5551_v3  ;;  %v6118_v33 = vrot.slane %v5551_v3, %v13996_v10 }
 0x93f   :  { %v6686_v52 = vadd.f32 %v6685_v60, %v6529_v50  ;;  %v6712_v3 = vrot.slane %v12439_v63, 2 }
 0x940   :  { %v6749_v12 = vunpack.c.l.b16 %v6717_v20  ;;  %v6608_v46 = vadd.f32 %v6607_v29, %v6606_v1  ;;  %v6666_v55 = vadd.f32 %v6665_v51, %v6514_v30 }
 0x941   :  { %v5506_v54 = vpop.permute.xlu1 %5505  ;;  %v6687_v15 = vadd.f32 %v6686_v52, %v12434_v61  ;;  %v6713_v45 = vadd.f32 %v6712_v3, %v12439_v63 }
 0x942   :  { %v6756_v47 = vsel %vm14010_vm3, %v6749_v12, %v6748_v59  ;;  %v6609_v58 = vrot.slane %v6608_v46, 1  ;;  %v6044_v34 = vrot.slane %v5506_v54, %v14002_v0  ;;  %v6499_v8 = vmul.f32 %v7757_v48, %v5506_v54 }
 0x943   :  { %v6714_v54 = vrot.slane %v6713_v45, 1 }
 0x944   :  { %v6610_v35 = vadd.f32 %v6609_v58, %v6608_v46  ;;  %v6045_v59 = vsel %vm2811_vm14, %v6044_v34, %v12387_v13  ;;  %v6646_v19 = vadd.f32 %v12394_v43, %v6499_v8  ;;  %v6193_v13 = vsel %vm2797_vm12, %v6192_v11, %v6188_v56 }
 0x945   :  { %v6286_v14 = vsel %vm14012_vm11, %v6045_v59, %v6285_v41  ;;  %v5554_v32 = vpop.permute.xlu1 %5553  ;;  %v6119_v43 = vsel %vm2804_vm13, %v6118_v33, %v6114_v31  ;;  %v6198_v7 = vsel %vm2804_vm13, %v6197_v36, %v6193_v13  ;;  %vm14014_vm12 = vcmask 1046534   ;;  %vm14017_vm13 = vmmov %vm14013_vm0  ;;  %v14020_v13 = vld [vmem:[#allocation93_spill] sm:$0xff] }
 0x946   :  { %v6718_v23 = vpack.c.bf16 %v6610_v35, %v6610_v35  ;;  %v6647_v9 = vrot.slane %v6646_v19, 4  ;;  %v6123_v62 = vrot.slane %v5554_v32, %v14002_v0  ;;  %v6515_v17 = vmul.f32 %v7759_v57, %v5554_v32  ;;  %v7341_v57 = vld [vmem:[#allocation13 + $0x8] sm:$0xff]  }
 0x947   :  { %v6715_v11 = vadd.f32 %v6714_v54, %v6713_v45 }
 0x948   :  { %v6750_v1 = vunpack.c.l.b16 %v6718_v23  ;;  %v6648_v24 = vadd.f32 %v6647_v9, %v6646_v19  ;;  %v6124_v16 = vsel %vm2811_vm14, %v6123_v62, %v6119_v43  ;;  %v6667_v41 = vadd.f32 %v6666_v55, %v6515_v17  ;;  %v7338_v23 = vld [vmem:[#allocation13 + $0x20] sm:$0xff]   ;;  %v7339_v9 = vld [vmem:[#allocation13 + $0x18] sm:$0xff]   ;;  %v7340_v62 = vld [vmem:[#allocation13 + $0x10] sm:$0xff]  }
 0x949   :  { %v6287_v44 = vsel %vm14013_vm0, %v6124_v16, %v6286_v14  ;;  %v5602_v26 = vpop.permute.xlu1 %5601  ;;  %v6723_v35 = vpack.c.bf16 %v6715_v11, %v6715_v11  ;;  %7171 = vmatpush3.bf16.msra.mxu0 %v7338_v23  ;;  %v7342_v17 = vld [vmem:[#allocation13] sm:$0xff]  }
 0x94a   :  { %v6757_v28 = vsel %vm3368_vm15, %v6750_v1, %v6756_v47  ;;  %v6649_v20 = vrot.slane %v6648_v24, 2  ;;  %v6668_v29 = vrot.slane %v6667_v41, 4  ;;  %v6202_v2 = vrot.slane %v5602_v26, %v14002_v0  ;;  %7172 = vmatprep.subr.bf16.mxu0 %v8010_v18 }
 0x94b   :  { %v6531_v22 = vmul.f32 %v7760_v25, %v5602_v26  ;;  %v6758_v21 = vsel %vm3370_vm5, %v6751_v4, %v6757_v28  ;;  %v6282_v0 = vsel %vm2811_vm14, %v6281_v27, %v6277_v39  ;;  %vm14015_vm15 = vcmask 1047559   ;;  %vm14016_vm5 = vmmov %vm14012_vm11 }
 0x94c   :  { %v6650_v12 = vadd.f32 %v6649_v20, %v6648_v24  ;;  %v6669_v46 = vadd.f32 %v6668_v29, %v6667_v41  ;;  %v6203_v5 = vsel %vm2811_vm14, %v6202_v2, %v6198_v7  ;;  %v6755_v31 = vunpack.c.l.b16 %v6723_v35  ;;  %vm14018_vm14 = vmmov %vm14014_vm12 }
 0x94d   :  { %v6688_v49 = vadd.f32 %v6687_v15, %v6531_v22  ;;  %v6288_v10 = vsel %vm14014_vm12, %v6203_v5, %v6287_v44  ;;  %vm14019_vm4 = vmmov %vm14015_vm15  ;;  %7173 = vmatpush3.bf16.msra.mxu0 %v7339_v9 }
 0x94e   :  { %v6651_v36 = vrot.slane %v6650_v12, 1  ;;  %v6670_v61 = vrot.slane %v6669_v46, 2  ;;  %v6289_v6 = vsel %vm14015_vm15, %v6282_v0, %v6288_v10  ;;  %7174 = vmatprep.subr.bf16.mxu0 %v8010_v18 }
 0x94f   :  { %v6689_v37 = vrot.slane %v6688_v49, 4  ;;  %6291 = vst [vmem:[#allocation17] sm:$0xff] %v6289_v6 }
 0x950   :  { %v6652_v38 = vadd.f32 %v6651_v36, %v6650_v12  ;;  %v6671_v30 = vadd.f32 %v6670_v61, %v6669_v46 }
 0x951   :  { %v6690_v42 = vadd.f32 %v6689_v37, %v6688_v49  ;;  %7175 = vmatpush3.bf16.msra.mxu0 %v7340_v62 }
 0x952   :  { %v6720_v47 = vpack.c.bf16 %v6652_v38, %v6652_v38  ;;  %v6672_v58 = vrot.slane %v6671_v30, 1  ;;  %7176 = vmatprep.subr.bf16.mxu0 %v8010_v18 }
 0x953   :  { %v6691_v34 = vrot.slane %v6690_v42, 2 }
 0x954   :  { %v6752_v48 = vunpack.c.l.b16 %v6720_v47  ;;  %v6673_v8 = vadd.f32 %v6672_v58, %v6671_v30 }
 0x955   :  { %v6692_v51 = vadd.f32 %v6691_v34, %v6690_v42  ;;  %7177 = vmatpush3.bf16.msra.mxu0 %v7341_v57 }
 0x956   :  { %v6721_v53 = vpack.c.bf16 %v6673_v8, %v6673_v8  ;;  %v6759_v63 = vsel %vm14016_vm5, %v6752_v48, %v6758_v21  ;;  %7178 = vmatprep.subr.bf16.mxu0 %v8010_v18 }
 0x957   :  { %v6693_v50 = vrot.slane %v6692_v51, 1 }
 0x958   :  { %v6753_v33 = vunpack.c.l.b16 %v6721_v53 }
 0x959   :  { %v6694_v56 = vadd.f32 %v6693_v50, %v6692_v51  ;;  %7179 = vmatpush3.bf16.msra.mxu0 %v7342_v17 }
 0x95a   :  { %v6760_v59 = vsel %vm14017_vm13, %v6753_v33, %v6759_v63 }
 0x95b   :  { %v6722_v19 = vpack.c.bf16 %v6694_v56, %v6694_v56 }
 0x95d   :  { %v6754_v60 = vunpack.c.l.b16 %v6722_v19 }
 0x95f   :  { %v6761_v55 = vsel %vm14018_vm14, %v6754_v60, %v6760_v59 }
 0x960   :  { %v6762_v14 = vsel %vm14019_vm4, %v6755_v31, %v6761_v55 }
 0x961   :  { %v6763_v32 = vpack.c.b16 %v6762_v14, %v6762_v14 }
 0x963   :  { %7161 = vmatmul.mubr.bf16.vlgmr.msra.gmra.mxu1 %v6763_v32 }
 0xa23   :  { %v6847_v40 = vpop.f32.mrf.mxu1 }
 0xa24   :  { %v6848_v52 = vadd.f32 %v6847_v40, %v14020_v13 }
 0xa25   :  { %v7162_v43 = vpop.f32.mrf.mxu1 }
 0xa26   :  { %7631 = vtanh.f32 %v6848_v52 }
 0xa27   :  { %v6850_v1 = vpop.f32.mrf.mxu1 }
 0xa29   :  { %v7163_v24 = vpop.f32.mrf.mxu1 }
 0xa33   :  { %v7632_v16 = vpop.eup %7631 }
 0xa34   :  { %v6854_v41 = vpack.c.bf16 %v7632_v16, %v7632_v16 }
 0xa36   :  { %7181 = vmatmul.mubr.bf16.vlgmr.msra.gmra.mxu0 %v6854_v41 }
 0xa37   :  { %7912 = shalt.err (!%p7909_p11)
}
 0xa38   :  { %6986 = dma.vmem_to_hbm [thread:$0]  %s6984_s17, 128, %s12521_s12, [#allocation16]  }
 0xa39   :  { %s8013_s21 = smov [#allocation14]   ;;  %s8014_s22 = smov [#allocation17]  }
 0xa3a   :  { %s6973_s8 = sshll.u32 %s8013_s21, 4  ;;  %s6993_s23 = sshll.u32 %s8014_s22, 4  ;;  %s6974_s8 = int_to_ptr.vmem [resolvable:$true] %s6973_s8  ;;  %s6994_s23 = int_to_ptr.vmem [resolvable:$true] %s6993_s23 }
 0xa3b   :  { %s7921_s24 = scalar_lea.vmem %s6974_s8, 128  ;;  %p7926_p13 = scmp.lt.s32.totalorder %s6974_s8, %s6974_s8 }
 0xa3c   :  { %p7922_p12 = scmp.ne.s32.totalorder %s6974_s8, %s7921_s24  ;;  %p7927_p0 = scmp.lt.s32.totalorder %s7921_s24, %s7921_s24 }
 0xa3e   :  { %p7928_p1 = por %p7927_p0, %p7926_p13 }
 0xa40   :  { %p7929_p2 = pnand %p7928_p1, %p7922_p12 }
 0xa42   :  { %7932 = shalt.err (!%p7929_p2)
}
 0xa43   :  { %6976 = dma.vmem_to_hbm [thread:$0]  %s6974_s8, 128, %s12520_s11, [#allocation4]  }
 0xa44   :  { %s7941_s27 = scalar_lea.vmem %s6994_s23, 128  ;;  %p7946_p4 = scmp.lt.s32.totalorder %s6994_s23, %s6994_s23 }
 0xa45   :  { %p7942_p3 = scmp.ne.s32.totalorder %s6994_s23, %s7941_s27  ;;  %p7947_p5 = scmp.lt.s32.totalorder %s7941_s27, %s7941_s27 }
 0xa47   :  { %p7948_p6 = por %p7947_p5, %p7946_p4 }
 0xa49   :  { %p7949_p7 = pnand %p7948_p6, %p7942_p3 }
 0xa4b   :  { %7952 = shalt.err (!%p7949_p7)
}
 0xa4c   :  { %6996 = dma.vmem_to_hbm [thread:$0]  %s6994_s23, 128, %s12522_s13, [#allocation16]   ;;  %v7117_v18 = vld [vmem:[%s12519_s10] ss:$0 sm:$0xff] }
 0xa4d   :  { %s8015_s5 = smov [#allocation18]  }
 0xa4e   :  { %s7003_s15 = sshll.u32 %s8015_s5, 4  ;;  %s7004_s15 = int_to_ptr.vmem [resolvable:$true] %s7003_s15 }
 0xa4f   :  { %s7961_s11 = scalar_lea.vmem %s7004_s15, 128  ;;  %p7966_p9 = scmp.lt.s32.totalorder %s7004_s15, %s7004_s15 }
 0xa50   :  { %p7962_p8 = scmp.ne.s32.totalorder %s7004_s15, %s7961_s11  ;;  %p7967_p10 = scmp.lt.s32.totalorder %s7961_s11, %s7961_s11 }
 0xa52   :  { %p7968_p11 = por %p7967_p10, %p7966_p9 }
 0xa54   :  { %p7969_p12 = pnand %p7968_p11, %p7962_p8 }
 0xaf6   :  { %v6960_v4 = vpop.f32.mrf.mxu0 }
 0xaf7   :  { %v6961_v27 = vadd.f32 %v7117_v18, %v6960_v4 }
 0xaf8   :  { %v7182_v3 = vpop.f32.mrf.mxu0 }
 0xaf9   :  { %6966 = vst [vmem:[#allocation18] sm:$0xff] %v6961_v27 }
 0xafa   :  { %v6963_v44 = vpop.f32.mrf.mxu0 }
 0xafb   :  { %7972 = shalt.err (!%p7969_p12)
}
 0xafc   :  { %7006 = dma.vmem_to_hbm [thread:$0]  %s7004_s15, 128, %s12523_s14, [#allocation19]   ;;  %v7183_v26 = vpop.f32.mrf.mxu0 }
 0xafd   :  { %7989 = dma.done.wait [#allocation4], 128  }
 0xafe   :  { %7990 = vsyncadd [#allocation4], 4294967168 }
 0xaff   :  { %7991 = dma.done.wait [#allocation16], 256  }
 0xb00   :  { %7992 = vsyncadd [#allocation16], 4294967040 }
 0xb01   :  { %7993 = dma.done.wait [#allocation19], 128  }
 0xb02   :  { %7994 = vsyncadd [#allocation19], 4294967168 }
 0xb03   :  { %7019 = vsyncpa [#allocation3], 1 }
 0xb04   :  { %7020 = vsyncpa [#allocation6], 1 }
 0xb05   :  { %7021 = vsyncpa [#allocation9], 1 }
 0xb06   :  { %7022 = vsyncpa [#allocation12], 1 }
 0xb07   :  { %7023 = vsyncpa [#allocation4], 1 }
 0xb08   :  { %7024 = vsyncpa [#allocation16], 1 }
 0xb09   :  { %7025 = vsyncpa [#allocation19], 1 }

</bundles_post_ra>
